<compile_context>
chip_gen: v5e
topology: v5e:2x2
jax: 0.10.0
libtpu: 0.0.40
codegen_flags: <defaults>
</compile_context>

<pallas_src>
import functools

import numpy as np
import jax
import jax.numpy as jnp
from jax.experimental import pallas as pl
from jax.experimental.pallas import tpu as pltpu

# Small deterministic config consistent with the module (ndf scaled down; spatial must
# be 64 for the DCGAN discriminator topology to reach the final 4x4 conv).
NDF = 8
CHANNELS = 1
BATCH = 2
SPATIAL = 64

KSIZE = 4
BN_EPS = 1e-5
LEAKY_SLOPE = 0.2


# ------------------------------ Pallas kernel ------------------------------ #

def _dcgan_kernel(x_ref,
                  s1_ref, w1_ref,
                  s2_ref, w2_ref, b2_ref,
                  s3_ref, w3_ref, b3_ref,
                  s4_ref, w4_ref, b4_ref,
                  w5_ref,
                  o_ref,
                  *, bn_counts, rows_per_sample):
    """Entire discriminator forward in one kernel invocation.

    Activation layout: rows = (n, h), lanes = (w, c). bf16 between layers, f32
    accumulation and epilogues. Each 4x4/stride-2/pad-1 conv is four row-tap
    matmuls: sum_i (S_i @ Y) @ Wt_i with constant S_i / Wt_i matrices.
    """

    def leaky(v):
        return jnp.where(v >= 0, v, LEAKY_SLOPE * v)

    def conv(y_bf16, s_ref, wt_ref):
        acc = None
        for i in range(KSIZE):
            g = jnp.dot(s_ref[i], y_bf16,
                        preferred_element_type=jnp.float32).astype(jnp.bfloat16)
            t = jnp.dot(g, wt_ref[i], preferred_element_type=jnp.float32)
            acc = t if acc is None else acc + t
        return acc

    def bn_leaky(acc, b_ref, count):
        # Train-mode BatchNorm2d (gamma=1, beta=0, biased var) + LeakyReLU, one-pass
        # stats.  acc @ B sums each channel's w-positions within a row and broadcasts
        # the result to all of that channel's lanes; the sublane sum finishes the
        # (N, H, W) reduction.
        inv = 1.0 / count
        fold = jnp.dot(acc, b_ref[...], preferred_element_type=jnp.float32)
        foldsq = jnp.dot(acc * acc, b_ref[...], preferred_element_type=jnp.float32)
        mean = jnp.sum(fold, axis=0, keepdims=True) * inv
        meansq = jnp.sum(foldsq, axis=0, keepdims=True) * inv
        var = meansq - mean * mean
        return leaky((acc - mean) * jax.lax.rsqrt(var + BN_EPS))

    c2, c3, c4 = bn_counts

    y = x_ref[...]                                                           # (128, 64)
    y = leaky(conv(y, s1_ref, w1_ref)).astype(jnp.bfloat16)                  # (64, 256)
    y = bn_leaky(conv(y, s2_ref, w2_ref), b2_ref, c2).astype(jnp.bfloat16)   # (32, 256)
    y = bn_leaky(conv(y, s3_ref, w3_ref), b3_ref, c3).astype(jnp.bfloat16)   # (16, 256)
    y4 = bn_leaky(conv(y, s4_ref, w4_ref), b4_ref, c4)                       # (8, 256) f32

    # Final layer: 4x4 valid conv (ndf*8 -> 1) + sigmoid, folded in.  Per-row partial
    # products, then an iota-built per-sample row fold (no extra selector operand).
    rows = o_ref.shape[0]
    z = y4 * w5_ref[...]                                                     # (8, 256)
    r = jax.lax.broadcasted_iota(jnp.int32, (rows, rows), 0)
    c = jax.lax.broadcasted_iota(jnp.int32, (rows, rows), 1)
    sel = ((c >= rows_per_sample * r) &
           (c < rows_per_sample * r + rows_per_sample)).astype(jnp.float32)
    zs = jnp.dot(sel, z, preferred_element_type=jnp.float32)                 # (8, 256)
    logits = jnp.sum(zs, axis=1, keepdims=True)                              # (8, 1)
    o_ref[...] = 1.0 / (1.0 + jnp.exp(-logits))


# --------------------- host-side (numpy) weight preprocessing --------------------- #

def _row_select_taps(n_batch, h_in):
    """S[i]: selects input row h = 2*oh + i - 1 (if 0 <= h < h_in) for each output row."""
    oh = h_in // 2
    s = np.zeros((KSIZE, n_batch * oh, n_batch * h_in), np.float32)
    for i in range(KSIZE):
        for b in range(n_batch):
            for o in range(oh):
                h = 2 * o + i - 1
                if 0 <= h < h_in:
                    s[i, b * oh + o, b * h_in + h] = 1.0
    return s


def _col_tap_weights(w_np, w_in):
    """Wt[i]: folds column taps j and zero padding of a (Cout,Cin,4,4) conv weight into
    a (w_in*Cin, (w_in//2)*Cout) banded matrix for row-tap i (lanes are (w, c))."""
    cout, cin = w_np.shape[:2]
    ow = w_in // 2
    wt = np.zeros((KSIZE, w_in * cin, ow * cout), np.float32)
    for i in range(KSIZE):
        for j in range(KSIZE):
            for o in range(ow):
                w = 2 * o + j - 1
                if 0 <= w < w_in:
                    wt[i, w * cin:(w + 1) * cin, o * cout:(o + 1) * cout] = \
                        w_np[:, :, i, j].T
    return wt


def _channel_fold(ow, cout):
    """B[(w,c),(w',c')] = 1 iff c == c': per-channel sum over w + broadcast back."""
    chan = np.arange(ow * cout) % cout
    return (chan[:, None] == chan[None, :]).astype(np.float32)


def prepare_params(weights, n_batch=BATCH, spatial=SPATIAL):
    """Host-side weight preprocessing -- hoisted out of the jitted forward path."""
    ws = [np.asarray(w, np.float32) for w in weights]
    params = {}
    h = spatial
    for layer, w_np in enumerate(ws[:4], start=1):
        params[f"s{layer}"] = jnp.asarray(_row_select_taps(n_batch, h), jnp.bfloat16)
        params[f"w{layer}"] = jnp.asarray(_col_tap_weights(w_np, h), jnp.bfloat16)
        if layer >= 2:
            params[f"b{layer}"] = jnp.asarray(_channel_fold(h // 2, w_np.shape[0]),
                                              jnp.float32)
        h //= 2
    w5 = ws[4]                                                 # (1, C4, 4, 4)
    c4 = w5.shape[1]
    w5rows = np.transpose(w5[0], (1, 2, 0)).reshape(KSIZE, KSIZE * c4)   # [h, w*C4+c]
    params["w5"] = jnp.asarray(np.tile(w5rows, (n_batch, 1)), jnp.float32)
    return params


# ------------------------------- forward wrapper ----------------------------------- #

def dcgan_discriminator_forward(x_nchw, params):
    n, c, h, w = x_nchw.shape
    # Only input-side prep remains in the jitted path: NCHW -> rows=(n,h), lanes=(w,c).
    y0 = jnp.transpose(x_nchw, (0, 2, 3, 1)).reshape(n * h, w * c).astype(jnp.bfloat16)

    bn_counts = (float(n * (h // 4) * (w // 4)),
                 float(n * (h // 8) * (w // 8)),
                 float(n * (h // 16) * (w // 16)))
    final_rows = n * (h // 16)                               # N * 4 rows of the 4x4 map
    kernel = functools.partial(_dcgan_kernel, bn_counts=bn_counts,
                               rows_per_sample=h // 16)

    operands = (y0,
                params["s1"], params["w1"],
                params["s2"], params["w2"], params["b2"],
                params["s3"], params["w3"], params["b3"],
                params["s4"], params["w4"], params["b4"],
                params["w5"])
    out = pl.pallas_call(
        kernel,
        out_shape=jax.ShapeDtypeStruct((final_rows, 1), jnp.float32),
        in_specs=[pl.BlockSpec(memory_space=pltpu.MemorySpace.VMEM)] * len(operands),
        out_specs=pl.BlockSpec(memory_space=pltpu.MemorySpace.VMEM),
    )(*operands)
    # Matches `output.view(-1, 1).squeeze(1)` -> shape (N,)
    return out[:n, 0]


# ------------------------------- pure-JAX reference -------------------------------- #

def reference_forward(x, weights):
    """Reference matching the PyTorch module in training mode (batch-stat BN)."""
    dn = ("NCHW", "OIHW", "NCHW")
    y = x
    for idx, w in enumerate(weights[:4]):
        y = jax.lax.conv_general_dilated(y, w, (2, 2), ((1, 1), (1, 1)),
                                         dimension_numbers=dn)
        if idx > 0:   # layers 2-4 have BatchNorm (gamma=1, beta=0, biased var)
            mean = jnp.mean(y, axis=(0, 2, 3), keepdims=True)
            var = jnp.mean((y - mean) ** 2, axis=(0, 2, 3), keepdims=True)
            y = (y - mean) * jax.lax.rsqrt(var + BN_EPS)
        y = jnp.where(y >= 0, y, LEAKY_SLOPE * y)
    y = jax.lax.conv_general_dilated(y, weights[4], (1, 1), "VALID",
                                     dimension_numbers=dn)
    return jax.nn.sigmoid(y).reshape(-1, 1)[:, 0]


if __name__ == "__main__":
    key = jax.random.PRNGKey(0)
    kx, k1, k2, k3, k4, k5 = jax.random.split(key, 6)

    x = jax.random.normal(kx, (BATCH, CHANNELS, SPATIAL, SPATIAL), jnp.float32)
    weights = [
        0.02 * jax.random.normal(k1, (NDF, CHANNELS, KSIZE, KSIZE), jnp.float32),
        0.02 * jax.random.normal(k2, (NDF * 2, NDF, KSIZE, KSIZE), jnp.float32),
        0.02 * jax.random.normal(k3, (NDF * 4, NDF * 2, KSIZE, KSIZE), jnp.float32),
        0.02 * jax.random.normal(k4, (NDF * 8, NDF * 4, KSIZE, KSIZE), jnp.float32),
        0.02 * jax.random.normal(k5, (1, NDF * 8, KSIZE, KSIZE), jnp.float32),
    ]

    params = prepare_params(weights)        # host-side, outside the jitted path
    fwd = jax.jit(dcgan_discriminator_forward)
    out = fwd(x, params)
    jax.block_until_ready(out)

    assert out.shape == (BATCH,), out.shape
    assert bool(jnp.all((out >= 0.0) & (out <= 1.0)))   # sigmoid output range

    # bf16 activations/weights in the kernel vs f32 reference -> small drift only.
    ref = reference_forward(x, weights)
    max_err = float(jnp.max(jnp.abs(out - ref)))
    assert max_err < 3e-2, f"max |kernel - reference| = {max_err}"
    print("KERNEL_OK")
</pallas_src>

<mosaic_0001>
module attributes {stable_mosaic.version = 11 : i64} {
  func.func @_dcgan_kernel(%arg0: memref<128x64xbf16, #tpu.memory_space<vmem>>, %arg1: memref<4x64x128xbf16, #tpu.memory_space<vmem>>, %arg2: memref<4x64x256xbf16, #tpu.memory_space<vmem>>, %arg3: memref<4x32x64xbf16, #tpu.memory_space<vmem>>, %arg4: memref<4x256x256xbf16, #tpu.memory_space<vmem>>, %arg5: memref<256x256xf32, #tpu.memory_space<vmem>>, %arg6: memref<4x16x32xbf16, #tpu.memory_space<vmem>>, %arg7: memref<4x256x256xbf16, #tpu.memory_space<vmem>>, %arg8: memref<256x256xf32, #tpu.memory_space<vmem>>, %arg9: memref<4x8x16xbf16, #tpu.memory_space<vmem>>, %arg10: memref<4x256x256xbf16, #tpu.memory_space<vmem>>, %arg11: memref<256x256xf32, #tpu.memory_space<vmem>>, %arg12: memref<8x256xf32, #tpu.memory_space<vmem>>, %arg13: memref<8x1xf32, #tpu.memory_space<vmem>>) attributes {dimension_semantics = [], scalar_prefetch = 0 : i64, scratch_operands = 0 : i64, tpu.core_type = #tpu.core_type<tc>} {
    %c0 = arith.constant 0 : index
    %c0_0 = arith.constant 0 : index
    %0 = vector.load %arg0[%c0, %c0_0] : memref<128x64xbf16, #tpu.memory_space<vmem>>, vector<128x64xbf16>
    %c0_1 = arith.constant 0 : index
    %c0_2 = arith.constant 0 : index
    %c0_3 = arith.constant 0 : index
    %1 = vector.load %arg1[%c0_1, %c0_2, %c0_3] : memref<4x64x128xbf16, #tpu.memory_space<vmem>>, vector<1x64x128xbf16>
    %2 = vector.shape_cast %1 : vector<1x64x128xbf16> to vector<64x128xbf16>
    %cst = arith.constant dense<0.000000e+00> : vector<64x64xf32>
    %3 = tpu.matmul %2, %0, %cst {dimension_numbers = #tpu.dot_dimension_numbers<[1], [0], [0], [1], [0, 0, 1, 1], [], []>} : vector<64x128xbf16>, vector<128x64xbf16>, vector<64x64xf32> -> vector<64x64xf32>
    %4 = arith.truncf %3 : vector<64x64xf32> to vector<64x64xbf16>
    %c0_4 = arith.constant 0 : index
    %c0_5 = arith.constant 0 : index
    %c0_6 = arith.constant 0 : index
    %5 = vector.load %arg2[%c0_4, %c0_5, %c0_6] : memref<4x64x256xbf16, #tpu.memory_space<vmem>>, vector<1x64x256xbf16>
    %6 = vector.shape_cast %5 : vector<1x64x256xbf16> to vector<64x256xbf16>
    %cst_7 = arith.constant dense<0.000000e+00> : vector<64x256xf32>
    %7 = tpu.matmul %4, %6, %cst_7 {dimension_numbers = #tpu.dot_dimension_numbers<[1], [0], [0], [1], [0, 0, 1, 1], [], []>} : vector<64x64xbf16>, vector<64x256xbf16>, vector<64x256xf32> -> vector<64x256xf32>
    %c1 = arith.constant 1 : index
    %c0_8 = arith.constant 0 : index
    %c0_9 = arith.constant 0 : index
    %8 = vector.load %arg1[%c1, %c0_8, %c0_9] : memref<4x64x128xbf16, #tpu.memory_space<vmem>>, vector<1x64x128xbf16>
    %9 = vector.shape_cast %8 : vector<1x64x128xbf16> to vector<64x128xbf16>
    %cst_10 = arith.constant dense<0.000000e+00> : vector<64x64xf32>
    %10 = tpu.matmul %9, %0, %cst_10 {dimension_numbers = #tpu.dot_dimension_numbers<[1], [0], [0], [1], [0, 0, 1, 1], [], []>} : vector<64x128xbf16>, vector<128x64xbf16>, vector<64x64xf32> -> vector<64x64xf32>
    %11 = arith.truncf %10 : vector<64x64xf32> to vector<64x64xbf16>
    %c1_11 = arith.constant 1 : index
    %c0_12 = arith.constant 0 : index
    %c0_13 = arith.constant 0 : index
    %12 = vector.load %arg2[%c1_11, %c0_12, %c0_13] : memref<4x64x256xbf16, #tpu.memory_space<vmem>>, vector<1x64x256xbf16>
    %13 = vector.shape_cast %12 : vector<1x64x256xbf16> to vector<64x256xbf16>
    %cst_14 = arith.constant dense<0.000000e+00> : vector<64x256xf32>
    %14 = tpu.matmul %11, %13, %cst_14 {dimension_numbers = #tpu.dot_dimension_numbers<[1], [0], [0], [1], [0, 0, 1, 1], [], []>} : vector<64x64xbf16>, vector<64x256xbf16>, vector<64x256xf32> -> vector<64x256xf32>
    %15 = arith.addf %7, %14 : vector<64x256xf32>
    %c2 = arith.constant 2 : index
    %c0_15 = arith.constant 0 : index
    %c0_16 = arith.constant 0 : index
    %16 = vector.load %arg1[%c2, %c0_15, %c0_16] : memref<4x64x128xbf16, #tpu.memory_space<vmem>>, vector<1x64x128xbf16>
    %17 = vector.shape_cast %16 : vector<1x64x128xbf16> to vector<64x128xbf16>
    %cst_17 = arith.constant dense<0.000000e+00> : vector<64x64xf32>
    %18 = tpu.matmul %17, %0, %cst_17 {dimension_numbers = #tpu.dot_dimension_numbers<[1], [0], [0], [1], [0, 0, 1, 1], [], []>} : vector<64x128xbf16>, vector<128x64xbf16>, vector<64x64xf32> -> vector<64x64xf32>
    %19 = arith.truncf %18 : vector<64x64xf32> to vector<64x64xbf16>
    %c2_18 = arith.constant 2 : index
    %c0_19 = arith.constant 0 : index
    %c0_20 = arith.constant 0 : index
    %20 = vector.load %arg2[%c2_18, %c0_19, %c0_20] : memref<4x64x256xbf16, #tpu.memory_space<vmem>>, vector<1x64x256xbf16>
    %21 = vector.shape_cast %20 : vector<1x64x256xbf16> to vector<64x256xbf16>
    %cst_21 = arith.constant dense<0.000000e+00> : vector<64x256xf32>
    %22 = tpu.matmul %19, %21, %cst_21 {dimension_numbers = #tpu.dot_dimension_numbers<[1], [0], [0], [1], [0, 0, 1, 1], [], []>} : vector<64x64xbf16>, vector<64x256xbf16>, vector<64x256xf32> -> vector<64x256xf32>
    %23 = arith.addf %15, %22 : vector<64x256xf32>
    %c3 = arith.constant 3 : index
    %c0_22 = arith.constant 0 : index
    %c0_23 = arith.constant 0 : index
    %24 = vector.load %arg1[%c3, %c0_22, %c0_23] : memref<4x64x128xbf16, #tpu.memory_space<vmem>>, vector<1x64x128xbf16>
    %25 = vector.shape_cast %24 : vector<1x64x128xbf16> to vector<64x128xbf16>
    %cst_24 = arith.constant dense<0.000000e+00> : vector<64x64xf32>
    %26 = tpu.matmul %25, %0, %cst_24 {dimension_numbers = #tpu.dot_dimension_numbers<[1], [0], [0], [1], [0, 0, 1, 1], [], []>} : vector<64x128xbf16>, vector<128x64xbf16>, vector<64x64xf32> -> vector<64x64xf32>
    %27 = arith.truncf %26 : vector<64x64xf32> to vector<64x64xbf16>
    %c3_25 = arith.constant 3 : index
    %c0_26 = arith.constant 0 : index
    %c0_27 = arith.constant 0 : index
    %28 = vector.load %arg2[%c3_25, %c0_26, %c0_27] : memref<4x64x256xbf16, #tpu.memory_space<vmem>>, vector<1x64x256xbf16>
    %29 = vector.shape_cast %28 : vector<1x64x256xbf16> to vector<64x256xbf16>
    %cst_28 = arith.constant dense<0.000000e+00> : vector<64x256xf32>
    %30 = tpu.matmul %27, %29, %cst_28 {dimension_numbers = #tpu.dot_dimension_numbers<[1], [0], [0], [1], [0, 0, 1, 1], [], []>} : vector<64x64xbf16>, vector<64x256xbf16>, vector<64x256xf32> -> vector<64x256xf32>
    %31 = arith.addf %23, %30 : vector<64x256xf32>
    %cst_29 = arith.constant 0.000000e+00 : f32
    %32 = vector.broadcast %cst_29 : f32 to vector<64x256xf32>
    %33 = arith.cmpf oge, %31, %32 : vector<64x256xf32>
    %cst_30 = arith.constant 2.000000e-01 : f32
    %34 = vector.broadcast %cst_30 : f32 to vector<64x256xf32>
    %35 = arith.mulf %34, %31 : vector<64x256xf32>
    %36 = arith.select %33, %31, %35 : vector<64x256xi1>, vector<64x256xf32>
    %37 = arith.truncf %36 : vector<64x256xf32> to vector<64x256xbf16>
    %c0_31 = arith.constant 0 : index
    %c0_32 = arith.constant 0 : index
    %c0_33 = arith.constant 0 : index
    %38 = vector.load %arg3[%c0_31, %c0_32, %c0_33] : memref<4x32x64xbf16, #tpu.memory_space<vmem>>, vector<1x32x64xbf16>
    %39 = vector.shape_cast %38 : vector<1x32x64xbf16> to vector<32x64xbf16>
    %cst_34 = arith.constant dense<0.000000e+00> : vector<32x256xf32>
    %40 = tpu.matmul %39, %37, %cst_34 {dimension_numbers = #tpu.dot_dimension_numbers<[1], [0], [0], [1], [0, 0, 1, 1], [], []>} : vector<32x64xbf16>, vector<64x256xbf16>, vector<32x256xf32> -> vector<32x256xf32>
    %41 = arith.truncf %40 : vector<32x256xf32> to vector<32x256xbf16>
    %c0_35 = arith.constant 0 : index
    %c0_36 = arith.constant 0 : index
    %c0_37 = arith.constant 0 : index
    %42 = vector.load %arg4[%c0_35, %c0_36, %c0_37] : memref<4x256x256xbf16, #tpu.memory_space<vmem>>, vector<1x256x256xbf16>
    %43 = vector.shape_cast %42 : vector<1x256x256xbf16> to vector<256x256xbf16>
    %cst_38 = arith.constant dense<0.000000e+00> : vector<32x256xf32>
    %44 = tpu.matmul %41, %43, %cst_38 {dimension_numbers = #tpu.dot_dimension_numbers<[1], [0], [0], [1], [0, 0, 1, 1], [], []>} : vector<32x256xbf16>, vector<256x256xbf16>, vector<32x256xf32> -> vector<32x256xf32>
    %c1_39 = arith.constant 1 : index
    %c0_40 = arith.constant 0 : index
    %c0_41 = arith.constant 0 : index
    %45 = vector.load %arg3[%c1_39, %c0_40, %c0_41] : memref<4x32x64xbf16, #tpu.memory_space<vmem>>, vector<1x32x64xbf16>
    %46 = vector.shape_cast %45 : vector<1x32x64xbf16> to vector<32x64xbf16>
    %cst_42 = arith.constant dense<0.000000e+00> : vector<32x256xf32>
    %47 = tpu.matmul %46, %37, %cst_42 {dimension_numbers = #tpu.dot_dimension_numbers<[1], [0], [0], [1], [0, 0, 1, 1], [], []>} : vector<32x64xbf16>, vector<64x256xbf16>, vector<32x256xf32> -> vector<32x256xf32>
    %48 = arith.truncf %47 : vector<32x256xf32> to vector<32x256xbf16>
    %c1_43 = arith.constant 1 : index
    %c0_44 = arith.constant 0 : index
    %c0_45 = arith.constant 0 : index
    %49 = vector.load %arg4[%c1_43, %c0_44, %c0_45] : memref<4x256x256xbf16, #tpu.memory_space<vmem>>, vector<1x256x256xbf16>
    %50 = vector.shape_cast %49 : vector<1x256x256xbf16> to vector<256x256xbf16>
    %cst_46 = arith.constant dense<0.000000e+00> : vector<32x256xf32>
    %51 = tpu.matmul %48, %50, %cst_46 {dimension_numbers = #tpu.dot_dimension_numbers<[1], [0], [0], [1], [0, 0, 1, 1], [], []>} : vector<32x256xbf16>, vector<256x256xbf16>, vector<32x256xf32> -> vector<32x256xf32>
    %52 = arith.addf %44, %51 : vector<32x256xf32>
    %c2_47 = arith.constant 2 : index
    %c0_48 = arith.constant 0 : index
    %c0_49 = arith.constant 0 : index
    %53 = vector.load %arg3[%c2_47, %c0_48, %c0_49] : memref<4x32x64xbf16, #tpu.memory_space<vmem>>, vector<1x32x64xbf16>
    %54 = vector.shape_cast %53 : vector<1x32x64xbf16> to vector<32x64xbf16>
    %cst_50 = arith.constant dense<0.000000e+00> : vector<32x256xf32>
    %55 = tpu.matmul %54, %37, %cst_50 {dimension_numbers = #tpu.dot_dimension_numbers<[1], [0], [0], [1], [0, 0, 1, 1], [], []>} : vector<32x64xbf16>, vector<64x256xbf16>, vector<32x256xf32> -> vector<32x256xf32>
    %56 = arith.truncf %55 : vector<32x256xf32> to vector<32x256xbf16>
    %c2_51 = arith.constant 2 : index
    %c0_52 = arith.constant 0 : index
    %c0_53 = arith.constant 0 : index
    %57 = vector.load %arg4[%c2_51, %c0_52, %c0_53] : memref<4x256x256xbf16, #tpu.memory_space<vmem>>, vector<1x256x256xbf16>
    %58 = vector.shape_cast %57 : vector<1x256x256xbf16> to vector<256x256xbf16>
    %cst_54 = arith.constant dense<0.000000e+00> : vector<32x256xf32>
    %59 = tpu.matmul %56, %58, %cst_54 {dimension_numbers = #tpu.dot_dimension_numbers<[1], [0], [0], [1], [0, 0, 1, 1], [], []>} : vector<32x256xbf16>, vector<256x256xbf16>, vector<32x256xf32> -> vector<32x256xf32>
    %60 = arith.addf %52, %59 : vector<32x256xf32>
    %c3_55 = arith.constant 3 : index
    %c0_56 = arith.constant 0 : index
    %c0_57 = arith.constant 0 : index
    %61 = vector.load %arg3[%c3_55, %c0_56, %c0_57] : memref<4x32x64xbf16, #tpu.memory_space<vmem>>, vector<1x32x64xbf16>
    %62 = vector.shape_cast %61 : vector<1x32x64xbf16> to vector<32x64xbf16>
    %cst_58 = arith.constant dense<0.000000e+00> : vector<32x256xf32>
    %63 = tpu.matmul %62, %37, %cst_58 {dimension_numbers = #tpu.dot_dimension_numbers<[1], [0], [0], [1], [0, 0, 1, 1], [], []>} : vector<32x64xbf16>, vector<64x256xbf16>, vector<32x256xf32> -> vector<32x256xf32>
    %64 = arith.truncf %63 : vector<32x256xf32> to vector<32x256xbf16>
    %c3_59 = arith.constant 3 : index
    %c0_60 = arith.constant 0 : index
    %c0_61 = arith.constant 0 : index
    %65 = vector.load %arg4[%c3_59, %c0_60, %c0_61] : memref<4x256x256xbf16, #tpu.memory_space<vmem>>, vector<1x256x256xbf16>
    %66 = vector.shape_cast %65 : vector<1x256x256xbf16> to vector<256x256xbf16>
    %cst_62 = arith.constant dense<0.000000e+00> : vector<32x256xf32>
    %67 = tpu.matmul %64, %66, %cst_62 {dimension_numbers = #tpu.dot_dimension_numbers<[1], [0], [0], [1], [0, 0, 1, 1], [], []>} : vector<32x256xbf16>, vector<256x256xbf16>, vector<32x256xf32> -> vector<32x256xf32>
    %68 = arith.addf %60, %67 : vector<32x256xf32>
    %c0_63 = arith.constant 0 : index
    %c0_64 = arith.constant 0 : index
    %69 = vector.load %arg5[%c0_63, %c0_64] : memref<256x256xf32, #tpu.memory_space<vmem>>, vector<256x256xf32>
    %cst_65 = arith.constant dense<0.000000e+00> : vector<32x256xf32>
    %70 = tpu.matmul %68, %69, %cst_65 {dimension_numbers = #tpu.dot_dimension_numbers<[1], [0], [0], [1], [0, 0, 1, 1], [], []>} : vector<32x256xf32>, vector<256x256xf32>, vector<32x256xf32> -> vector<32x256xf32>
    %71 = arith.mulf %68, %68 : vector<32x256xf32>
    %c0_66 = arith.constant 0 : index
    %c0_67 = arith.constant 0 : index
    %72 = vector.load %arg5[%c0_66, %c0_67] : memref<256x256xf32, #tpu.memory_space<vmem>>, vector<256x256xf32>
    %cst_68 = arith.constant dense<0.000000e+00> : vector<32x256xf32>
    %73 = tpu.matmul %71, %72, %cst_68 {dimension_numbers = #tpu.dot_dimension_numbers<[1], [0], [0], [1], [0, 0, 1, 1], [], []>} : vector<32x256xf32>, vector<256x256xf32>, vector<32x256xf32> -> vector<32x256xf32>
    %cst_69 = arith.constant dense<0.000000e+00> : vector<256xf32>
    %74 = vector.multi_reduction <add>, %70, %cst_69 [0] : vector<32x256xf32> to vector<256xf32>
    %75 = vector.shape_cast %74 : vector<256xf32> to vector<1x256xf32>
    %cst_70 = arith.constant 0.001953125 : f32
    %76 = vector.broadcast %cst_70 : f32 to vector<1x256xf32>
    %77 = arith.mulf %75, %76 : vector<1x256xf32>
    %cst_71 = arith.constant dense<0.000000e+00> : vector<256xf32>
    %78 = vector.multi_reduction <add>, %73, %cst_71 [0] : vector<32x256xf32> to vector<256xf32>
    %79 = vector.shape_cast %78 : vector<256xf32> to vector<1x256xf32>
    %cst_72 = arith.constant 0.001953125 : f32
    %80 = vector.broadcast %cst_72 : f32 to vector<1x256xf32>
    %81 = arith.mulf %79, %80 : vector<1x256xf32>
    %82 = arith.mulf %77, %77 : vector<1x256xf32>
    %83 = arith.subf %81, %82 : vector<1x256xf32>
    %84 = vector.broadcast %77 : vector<1x256xf32> to vector<32x256xf32>
    %85 = arith.subf %68, %84 : vector<32x256xf32>
    %cst_73 = arith.constant 9.99999974E-6 : f32
    %86 = vector.broadcast %cst_73 : f32 to vector<1x256xf32>
    %87 = arith.addf %83, %86 : vector<1x256xf32>
    %88 = math.rsqrt %87 : vector<1x256xf32>
    %89 = vector.broadcast %88 : vector<1x256xf32> to vector<32x256xf32>
    %90 = arith.mulf %85, %89 : vector<32x256xf32>
    %cst_74 = arith.constant 0.000000e+00 : f32
    %91 = vector.broadcast %cst_74 : f32 to vector<32x256xf32>
    %92 = arith.cmpf oge, %90, %91 : vector<32x256xf32>
    %cst_75 = arith.constant 2.000000e-01 : f32
    %93 = vector.broadcast %cst_75 : f32 to vector<32x256xf32>
    %94 = arith.mulf %93, %90 : vector<32x256xf32>
    %95 = arith.select %92, %90, %94 : vector<32x256xi1>, vector<32x256xf32>
    %96 = arith.truncf %95 : vector<32x256xf32> to vector<32x256xbf16>
    %c0_76 = arith.constant 0 : index
    %c0_77 = arith.constant 0 : index
    %c0_78 = arith.constant 0 : index
    %97 = vector.load %arg6[%c0_76, %c0_77, %c0_78] : memref<4x16x32xbf16, #tpu.memory_space<vmem>>, vector<1x16x32xbf16>
    %98 = vector.shape_cast %97 : vector<1x16x32xbf16> to vector<16x32xbf16>
    %cst_79 = arith.constant dense<0.000000e+00> : vector<16x256xf32>
    %99 = tpu.matmul %98, %96, %cst_79 {dimension_numbers = #tpu.dot_dimension_numbers<[1], [0], [0], [1], [0, 0, 1, 1], [], []>} : vector<16x32xbf16>, vector<32x256xbf16>, vector<16x256xf32> -> vector<16x256xf32>
    %100 = arith.truncf %99 : vector<16x256xf32> to vector<16x256xbf16>
    %c0_80 = arith.constant 0 : index
    %c0_81 = arith.constant 0 : index
    %c0_82 = arith.constant 0 : index
    %101 = vector.load %arg7[%c0_80, %c0_81, %c0_82] : memref<4x256x256xbf16, #tpu.memory_space<vmem>>, vector<1x256x256xbf16>
    %102 = vector.shape_cast %101 : vector<1x256x256xbf16> to vector<256x256xbf16>
    %cst_83 = arith.constant dense<0.000000e+00> : vector<16x256xf32>
    %103 = tpu.matmul %100, %102, %cst_83 {dimension_numbers = #tpu.dot_dimension_numbers<[1], [0], [0], [1], [0, 0, 1, 1], [], []>} : vector<16x256xbf16>, vector<256x256xbf16>, vector<16x256xf32> -> vector<16x256xf32>
    %c1_84 = arith.constant 1 : index
    %c0_85 = arith.constant 0 : index
    %c0_86 = arith.constant 0 : index
    %104 = vector.load %arg6[%c1_84, %c0_85, %c0_86] : memref<4x16x32xbf16, #tpu.memory_space<vmem>>, vector<1x16x32xbf16>
    %105 = vector.shape_cast %104 : vector<1x16x32xbf16> to vector<16x32xbf16>
    %cst_87 = arith.constant dense<0.000000e+00> : vector<16x256xf32>
    %106 = tpu.matmul %105, %96, %cst_87 {dimension_numbers = #tpu.dot_dimension_numbers<[1], [0], [0], [1], [0, 0, 1, 1], [], []>} : vector<16x32xbf16>, vector<32x256xbf16>, vector<16x256xf32> -> vector<16x256xf32>
    %107 = arith.truncf %106 : vector<16x256xf32> to vector<16x256xbf16>
    %c1_88 = arith.constant 1 : index
    %c0_89 = arith.constant 0 : index
    %c0_90 = arith.constant 0 : index
    %108 = vector.load %arg7[%c1_88, %c0_89, %c0_90] : memref<4x256x256xbf16, #tpu.memory_space<vmem>>, vector<1x256x256xbf16>
    %109 = vector.shape_cast %108 : vector<1x256x256xbf16> to vector<256x256xbf16>
    %cst_91 = arith.constant dense<0.000000e+00> : vector<16x256xf32>
    %110 = tpu.matmul %107, %109, %cst_91 {dimension_numbers = #tpu.dot_dimension_numbers<[1], [0], [0], [1], [0, 0, 1, 1], [], []>} : vector<16x256xbf16>, vector<256x256xbf16>, vector<16x256xf32> -> vector<16x256xf32>
    %111 = arith.addf %103, %110 : vector<16x256xf32>
    %c2_92 = arith.constant 2 : index
    %c0_93 = arith.constant 0 : index
    %c0_94 = arith.constant 0 : index
    %112 = vector.load %arg6[%c2_92, %c0_93, %c0_94] : memref<4x16x32xbf16, #tpu.memory_space<vmem>>, vector<1x16x32xbf16>
    %113 = vector.shape_cast %112 : vector<1x16x32xbf16> to vector<16x32xbf16>
    %cst_95 = arith.constant dense<0.000000e+00> : vector<16x256xf32>
    %114 = tpu.matmul %113, %96, %cst_95 {dimension_numbers = #tpu.dot_dimension_numbers<[1], [0], [0], [1], [0, 0, 1, 1], [], []>} : vector<16x32xbf16>, vector<32x256xbf16>, vector<16x256xf32> -> vector<16x256xf32>
    %115 = arith.truncf %114 : vector<16x256xf32> to vector<16x256xbf16>
    %c2_96 = arith.constant 2 : index
    %c0_97 = arith.constant 0 : index
    %c0_98 = arith.constant 0 : index
    %116 = vector.load %arg7[%c2_96, %c0_97, %c0_98] : memref<4x256x256xbf16, #tpu.memory_space<vmem>>, vector<1x256x256xbf16>
    %117 = vector.shape_cast %116 : vector<1x256x256xbf16> to vector<256x256xbf16>
    %cst_99 = arith.constant dense<0.000000e+00> : vector<16x256xf32>
    %118 = tpu.matmul %115, %117, %cst_99 {dimension_numbers = #tpu.dot_dimension_numbers<[1], [0], [0], [1], [0, 0, 1, 1], [], []>} : vector<16x256xbf16>, vector<256x256xbf16>, vector<16x256xf32> -> vector<16x256xf32>
    %119 = arith.addf %111, %118 : vector<16x256xf32>
    %c3_100 = arith.constant 3 : index
    %c0_101 = arith.constant 0 : index
    %c0_102 = arith.constant 0 : index
    %120 = vector.load %arg6[%c3_100, %c0_101, %c0_102] : memref<4x16x32xbf16, #tpu.memory_space<vmem>>, vector<1x16x32xbf16>
    %121 = vector.shape_cast %120 : vector<1x16x32xbf16> to vector<16x32xbf16>
    %cst_103 = arith.constant dense<0.000000e+00> : vector<16x256xf32>
    %122 = tpu.matmul %121, %96, %cst_103 {dimension_numbers = #tpu.dot_dimension_numbers<[1], [0], [0], [1], [0, 0, 1, 1], [], []>} : vector<16x32xbf16>, vector<32x256xbf16>, vector<16x256xf32> -> vector<16x256xf32>
    %123 = arith.truncf %122 : vector<16x256xf32> to vector<16x256xbf16>
    %c3_104 = arith.constant 3 : index
    %c0_105 = arith.constant 0 : index
    %c0_106 = arith.constant 0 : index
    %124 = vector.load %arg7[%c3_104, %c0_105, %c0_106] : memref<4x256x256xbf16, #tpu.memory_space<vmem>>, vector<1x256x256xbf16>
    %125 = vector.shape_cast %124 : vector<1x256x256xbf16> to vector<256x256xbf16>
    %cst_107 = arith.constant dense<0.000000e+00> : vector<16x256xf32>
    %126 = tpu.matmul %123, %125, %cst_107 {dimension_numbers = #tpu.dot_dimension_numbers<[1], [0], [0], [1], [0, 0, 1, 1], [], []>} : vector<16x256xbf16>, vector<256x256xbf16>, vector<16x256xf32> -> vector<16x256xf32>
    %127 = arith.addf %119, %126 : vector<16x256xf32>
    %c0_108 = arith.constant 0 : index
    %c0_109 = arith.constant 0 : index
    %128 = vector.load %arg8[%c0_108, %c0_109] : memref<256x256xf32, #tpu.memory_space<vmem>>, vector<256x256xf32>
    %cst_110 = arith.constant dense<0.000000e+00> : vector<16x256xf32>
    %129 = tpu.matmul %127, %128, %cst_110 {dimension_numbers = #tpu.dot_dimension_numbers<[1], [0], [0], [1], [0, 0, 1, 1], [], []>} : vector<16x256xf32>, vector<256x256xf32>, vector<16x256xf32> -> vector<16x256xf32>
    %130 = arith.mulf %127, %127 : vector<16x256xf32>
    %c0_111 = arith.constant 0 : index
    %c0_112 = arith.constant 0 : index
    %131 = vector.load %arg8[%c0_111, %c0_112] : memref<256x256xf32, #tpu.memory_space<vmem>>, vector<256x256xf32>
    %cst_113 = arith.constant dense<0.000000e+00> : vector<16x256xf32>
    %132 = tpu.matmul %130, %131, %cst_113 {dimension_numbers = #tpu.dot_dimension_numbers<[1], [0], [0], [1], [0, 0, 1, 1], [], []>} : vector<16x256xf32>, vector<256x256xf32>, vector<16x256xf32> -> vector<16x256xf32>
    %cst_114 = arith.constant dense<0.000000e+00> : vector<256xf32>
    %133 = vector.multi_reduction <add>, %129, %cst_114 [0] : vector<16x256xf32> to vector<256xf32>
    %134 = vector.shape_cast %133 : vector<256xf32> to vector<1x256xf32>
    %cst_115 = arith.constant 7.812500e-03 : f32
    %135 = vector.broadcast %cst_115 : f32 to vector<1x256xf32>
    %136 = arith.mulf %134, %135 : vector<1x256xf32>
    %cst_116 = arith.constant dense<0.000000e+00> : vector<256xf32>
    %137 = vector.multi_reduction <add>, %132, %cst_116 [0] : vector<16x256xf32> to vector<256xf32>
    %138 = vector.shape_cast %137 : vector<256xf32> to vector<1x256xf32>
    %cst_117 = arith.constant 7.812500e-03 : f32
    %139 = vector.broadcast %cst_117 : f32 to vector<1x256xf32>
    %140 = arith.mulf %138, %139 : vector<1x256xf32>
    %141 = arith.mulf %136, %136 : vector<1x256xf32>
    %142 = arith.subf %140, %141 : vector<1x256xf32>
    %143 = vector.broadcast %136 : vector<1x256xf32> to vector<16x256xf32>
    %144 = arith.subf %127, %143 : vector<16x256xf32>
    %cst_118 = arith.constant 9.99999974E-6 : f32
    %145 = vector.broadcast %cst_118 : f32 to vector<1x256xf32>
    %146 = arith.addf %142, %145 : vector<1x256xf32>
    %147 = math.rsqrt %146 : vector<1x256xf32>
    %148 = vector.broadcast %147 : vector<1x256xf32> to vector<16x256xf32>
    %149 = arith.mulf %144, %148 : vector<16x256xf32>
    %cst_119 = arith.constant 0.000000e+00 : f32
    %150 = vector.broadcast %cst_119 : f32 to vector<16x256xf32>
    %151 = arith.cmpf oge, %149, %150 : vector<16x256xf32>
    %cst_120 = arith.constant 2.000000e-01 : f32
    %152 = vector.broadcast %cst_120 : f32 to vector<16x256xf32>
    %153 = arith.mulf %152, %149 : vector<16x256xf32>
    %154 = arith.select %151, %149, %153 : vector<16x256xi1>, vector<16x256xf32>
    %155 = arith.truncf %154 : vector<16x256xf32> to vector<16x256xbf16>
    %c0_121 = arith.constant 0 : index
    %c0_122 = arith.constant 0 : index
    %c0_123 = arith.constant 0 : index
    %156 = vector.load %arg9[%c0_121, %c0_122, %c0_123] : memref<4x8x16xbf16, #tpu.memory_space<vmem>>, vector<1x8x16xbf16>
    %157 = vector.shape_cast %156 : vector<1x8x16xbf16> to vector<8x16xbf16>
    %cst_124 = arith.constant dense<0.000000e+00> : vector<8x256xf32>
    %158 = tpu.matmul %157, %155, %cst_124 {dimension_numbers = #tpu.dot_dimension_numbers<[1], [0], [0], [1], [0, 0, 1, 1], [], []>} : vector<8x16xbf16>, vector<16x256xbf16>, vector<8x256xf32> -> vector<8x256xf32>
    %159 = arith.truncf %158 : vector<8x256xf32> to vector<8x256xbf16>
    %c0_125 = arith.constant 0 : index
    %c0_126 = arith.constant 0 : index
    %c0_127 = arith.constant 0 : index
    %160 = vector.load %arg10[%c0_125, %c0_126, %c0_127] : memref<4x256x256xbf16, #tpu.memory_space<vmem>>, vector<1x256x256xbf16>
    %161 = vector.shape_cast %160 : vector<1x256x256xbf16> to vector<256x256xbf16>
    %cst_128 = arith.constant dense<0.000000e+00> : vector<8x256xf32>
    %162 = tpu.matmul %159, %161, %cst_128 {dimension_numbers = #tpu.dot_dimension_numbers<[1], [0], [0], [1], [0, 0, 1, 1], [], []>} : vector<8x256xbf16>, vector<256x256xbf16>, vector<8x256xf32> -> vector<8x256xf32>
    %c1_129 = arith.constant 1 : index
    %c0_130 = arith.constant 0 : index
    %c0_131 = arith.constant 0 : index
    %163 = vector.load %arg9[%c1_129, %c0_130, %c0_131] : memref<4x8x16xbf16, #tpu.memory_space<vmem>>, vector<1x8x16xbf16>
    %164 = vector.shape_cast %163 : vector<1x8x16xbf16> to vector<8x16xbf16>
    %cst_132 = arith.constant dense<0.000000e+00> : vector<8x256xf32>
    %165 = tpu.matmul %164, %155, %cst_132 {dimension_numbers = #tpu.dot_dimension_numbers<[1], [0], [0], [1], [0, 0, 1, 1], [], []>} : vector<8x16xbf16>, vector<16x256xbf16>, vector<8x256xf32> -> vector<8x256xf32>
    %166 = arith.truncf %165 : vector<8x256xf32> to vector<8x256xbf16>
    %c1_133 = arith.constant 1 : index
    %c0_134 = arith.constant 0 : index
    %c0_135 = arith.constant 0 : index
    %167 = vector.load %arg10[%c1_133, %c0_134, %c0_135] : memref<4x256x256xbf16, #tpu.memory_space<vmem>>, vector<1x256x256xbf16>
    %168 = vector.shape_cast %167 : vector<1x256x256xbf16> to vector<256x256xbf16>
    %cst_136 = arith.constant dense<0.000000e+00> : vector<8x256xf32>
    %169 = tpu.matmul %166, %168, %cst_136 {dimension_numbers = #tpu.dot_dimension_numbers<[1], [0], [0], [1], [0, 0, 1, 1], [], []>} : vector<8x256xbf16>, vector<256x256xbf16>, vector<8x256xf32> -> vector<8x256xf32>
    %170 = arith.addf %162, %169 : vector<8x256xf32>
    %c2_137 = arith.constant 2 : index
    %c0_138 = arith.constant 0 : index
    %c0_139 = arith.constant 0 : index
    %171 = vector.load %arg9[%c2_137, %c0_138, %c0_139] : memref<4x8x16xbf16, #tpu.memory_space<vmem>>, vector<1x8x16xbf16>
    %172 = vector.shape_cast %171 : vector<1x8x16xbf16> to vector<8x16xbf16>
    %cst_140 = arith.constant dense<0.000000e+00> : vector<8x256xf32>
    %173 = tpu.matmul %172, %155, %cst_140 {dimension_numbers = #tpu.dot_dimension_numbers<[1], [0], [0], [1], [0, 0, 1, 1], [], []>} : vector<8x16xbf16>, vector<16x256xbf16>, vector<8x256xf32> -> vector<8x256xf32>
    %174 = arith.truncf %173 : vector<8x256xf32> to vector<8x256xbf16>
    %c2_141 = arith.constant 2 : index
    %c0_142 = arith.constant 0 : index
    %c0_143 = arith.constant 0 : index
    %175 = vector.load %arg10[%c2_141, %c0_142, %c0_143] : memref<4x256x256xbf16, #tpu.memory_space<vmem>>, vector<1x256x256xbf16>
    %176 = vector.shape_cast %175 : vector<1x256x256xbf16> to vector<256x256xbf16>
    %cst_144 = arith.constant dense<0.000000e+00> : vector<8x256xf32>
    %177 = tpu.matmul %174, %176, %cst_144 {dimension_numbers = #tpu.dot_dimension_numbers<[1], [0], [0], [1], [0, 0, 1, 1], [], []>} : vector<8x256xbf16>, vector<256x256xbf16>, vector<8x256xf32> -> vector<8x256xf32>
    %178 = arith.addf %170, %177 : vector<8x256xf32>
    %c3_145 = arith.constant 3 : index
    %c0_146 = arith.constant 0 : index
    %c0_147 = arith.constant 0 : index
    %179 = vector.load %arg9[%c3_145, %c0_146, %c0_147] : memref<4x8x16xbf16, #tpu.memory_space<vmem>>, vector<1x8x16xbf16>
    %180 = vector.shape_cast %179 : vector<1x8x16xbf16> to vector<8x16xbf16>
    %cst_148 = arith.constant dense<0.000000e+00> : vector<8x256xf32>
    %181 = tpu.matmul %180, %155, %cst_148 {dimension_numbers = #tpu.dot_dimension_numbers<[1], [0], [0], [1], [0, 0, 1, 1], [], []>} : vector<8x16xbf16>, vector<16x256xbf16>, vector<8x256xf32> -> vector<8x256xf32>
    %182 = arith.truncf %181 : vector<8x256xf32> to vector<8x256xbf16>
    %c3_149 = arith.constant 3 : index
    %c0_150 = arith.constant 0 : index
    %c0_151 = arith.constant 0 : index
    %183 = vector.load %arg10[%c3_149, %c0_150, %c0_151] : memref<4x256x256xbf16, #tpu.memory_space<vmem>>, vector<1x256x256xbf16>
    %184 = vector.shape_cast %183 : vector<1x256x256xbf16> to vector<256x256xbf16>
    %cst_152 = arith.constant dense<0.000000e+00> : vector<8x256xf32>
    %185 = tpu.matmul %182, %184, %cst_152 {dimension_numbers = #tpu.dot_dimension_numbers<[1], [0], [0], [1], [0, 0, 1, 1], [], []>} : vector<8x256xbf16>, vector<256x256xbf16>, vector<8x256xf32> -> vector<8x256xf32>
    %186 = arith.addf %178, %185 : vector<8x256xf32>
    %c0_153 = arith.constant 0 : index
    %c0_154 = arith.constant 0 : index
    %187 = vector.load %arg11[%c0_153, %c0_154] : memref<256x256xf32, #tpu.memory_space<vmem>>, vector<256x256xf32>
    %cst_155 = arith.constant dense<0.000000e+00> : vector<8x256xf32>
    %188 = tpu.matmul %186, %187, %cst_155 {dimension_numbers = #tpu.dot_dimension_numbers<[1], [0], [0], [1], [0, 0, 1, 1], [], []>} : vector<8x256xf32>, vector<256x256xf32>, vector<8x256xf32> -> vector<8x256xf32>
    %189 = arith.mulf %186, %186 : vector<8x256xf32>
    %c0_156 = arith.constant 0 : index
    %c0_157 = arith.constant 0 : index
    %190 = vector.load %arg11[%c0_156, %c0_157] : memref<256x256xf32, #tpu.memory_space<vmem>>, vector<256x256xf32>
    %cst_158 = arith.constant dense<0.000000e+00> : vector<8x256xf32>
    %191 = tpu.matmul %189, %190, %cst_158 {dimension_numbers = #tpu.dot_dimension_numbers<[1], [0], [0], [1], [0, 0, 1, 1], [], []>} : vector<8x256xf32>, vector<256x256xf32>, vector<8x256xf32> -> vector<8x256xf32>
    %cst_159 = arith.constant dense<0.000000e+00> : vector<256xf32>
    %192 = vector.multi_reduction <add>, %188, %cst_159 [0] : vector<8x256xf32> to vector<256xf32>
    %193 = vector.shape_cast %192 : vector<256xf32> to vector<1x256xf32>
    %cst_160 = arith.constant 3.125000e-02 : f32
    %194 = vector.broadcast %cst_160 : f32 to vector<1x256xf32>
    %195 = arith.mulf %193, %194 : vector<1x256xf32>
    %cst_161 = arith.constant dense<0.000000e+00> : vector<256xf32>
    %196 = vector.multi_reduction <add>, %191, %cst_161 [0] : vector<8x256xf32> to vector<256xf32>
    %197 = vector.shape_cast %196 : vector<256xf32> to vector<1x256xf32>
    %cst_162 = arith.constant 3.125000e-02 : f32
    %198 = vector.broadcast %cst_162 : f32 to vector<1x256xf32>
    %199 = arith.mulf %197, %198 : vector<1x256xf32>
    %200 = arith.mulf %195, %195 : vector<1x256xf32>
    %201 = arith.subf %199, %200 : vector<1x256xf32>
    %202 = vector.broadcast %195 : vector<1x256xf32> to vector<8x256xf32>
    %203 = arith.subf %186, %202 : vector<8x256xf32>
    %cst_163 = arith.constant 9.99999974E-6 : f32
    %204 = vector.broadcast %cst_163 : f32 to vector<1x256xf32>
    %205 = arith.addf %201, %204 : vector<1x256xf32>
    %206 = math.rsqrt %205 : vector<1x256xf32>
    %207 = vector.broadcast %206 : vector<1x256xf32> to vector<8x256xf32>
    %208 = arith.mulf %203, %207 : vector<8x256xf32>
    %cst_164 = arith.constant 0.000000e+00 : f32
    %209 = vector.broadcast %cst_164 : f32 to vector<8x256xf32>
    %210 = arith.cmpf oge, %208, %209 : vector<8x256xf32>
    %cst_165 = arith.constant 2.000000e-01 : f32
    %211 = vector.broadcast %cst_165 : f32 to vector<8x256xf32>
    %212 = arith.mulf %211, %208 : vector<8x256xf32>
    %213 = arith.select %210, %208, %212 : vector<8x256xi1>, vector<8x256xf32>
    %c0_166 = arith.constant 0 : index
    %c0_167 = arith.constant 0 : index
    %214 = vector.load %arg12[%c0_166, %c0_167] : memref<8x256xf32, #tpu.memory_space<vmem>>, vector<8x256xf32>
    %215 = arith.mulf %213, %214 : vector<8x256xf32>
    %216 = tpu.iota {dimensions = array<i32: 0>} : vector<8x8xi32>
    %217 = tpu.iota {dimensions = array<i32: 1>} : vector<8x8xi32>
    %c4_i32 = arith.constant 4 : i32
    %218 = vector.broadcast %c4_i32 : i32 to vector<8x8xi32>
    %219 = arith.muli %218, %216 : vector<8x8xi32>
    %220 = arith.cmpi sge, %217, %219 : vector<8x8xi32>
    %c4_i32_168 = arith.constant 4 : i32
    %221 = vector.broadcast %c4_i32_168 : i32 to vector<8x8xi32>
    %222 = arith.muli %221, %216 : vector<8x8xi32>
    %c4_i32_169 = arith.constant 4 : i32
    %223 = vector.broadcast %c4_i32_169 : i32 to vector<8x8xi32>
    %224 = arith.addi %222, %223 : vector<8x8xi32>
    %225 = arith.cmpi slt, %217, %224 : vector<8x8xi32>
    %226 = arith.andi %220, %225 : vector<8x8xi1>
    %227 = arith.extui %226 : vector<8x8xi1> to vector<8x8xi32>
    %228 = arith.sitofp %227 : vector<8x8xi32> to vector<8x8xf32>
    %cst_170 = arith.constant dense<0.000000e+00> : vector<8x256xf32>
    %229 = tpu.matmul %228, %215, %cst_170 {dimension_numbers = #tpu.dot_dimension_numbers<[1], [0], [0], [1], [0, 0, 1, 1], [], []>} : vector<8x8xf32>, vector<8x256xf32>, vector<8x256xf32> -> vector<8x256xf32>
    %cst_171 = arith.constant dense<0.000000e+00> : vector<8xf32>
    %230 = vector.multi_reduction <add>, %229, %cst_171 [1] : vector<8x256xf32> to vector<8xf32>
    %231 = vector.shape_cast %230 : vector<8xf32> to vector<8x1xf32>
    %cst_172 = arith.constant 0.000000e+00 : f32
    %232 = vector.broadcast %cst_172 : f32 to vector<8x1xf32>
    %233 = arith.subf %232, %231 : vector<8x1xf32>
    %234 = math.exp %233 : vector<8x1xf32>
    %cst_173 = arith.constant 1.000000e+00 : f32
    %235 = vector.broadcast %cst_173 : f32 to vector<8x1xf32>
    %236 = arith.addf %235, %234 : vector<8x1xf32>
    %cst_174 = arith.constant 1.000000e+00 : f32
    %237 = vector.broadcast %cst_174 : f32 to vector<8x1xf32>
    %238 = arith.divf %237, %236 : vector<8x1xf32>
    %c0_175 = arith.constant 0 : index
    %c0_176 = arith.constant 0 : index
    %239 = vector.load %arg13[%c0_175, %c0_176] : memref<8x1xf32, #tpu.memory_space<vmem>>, vector<8x1xf32>
    tpu.vector_store %arg13[%c0_175, %c0_176], %238 {strides = array<i32>} : memref<8x1xf32, #tpu.memory_space<vmem>>, vector<8x1xf32>,
    return
  }
}

</mosaic_0001>

<bundles_post_ra>
// kernel: dcgan_discriminator_forward.1
= control target key start
LH: loop header
LB: loop body
LE: loop exit
PB: predicated region body
PF: predicated region fallthrough
CT: control target
= control target key end

     0   :  { %18 = vsyncpa [#allocation3], 0  ;;  %s10091_s0 = inlined_call_operand.vmem [shape: bf16[128,64], index: 0, kind: input, shape index: {}]   ;;  %s10092_s1 = inlined_call_operand.vmem [shape: bf16[4,64,128], index: 1, kind: input, shape index: {}]   ;;  %s10093_s2 = inlined_call_operand.hbm [shape: bf16[4,64,256], index: 2, kind: input, shape index: {}]   ;;  %s10094_s3 = inlined_call_operand.vmem [shape: bf16[4,32,64], index: 3, kind: input, shape index: {}]   ;;  %s10095_s4 = inlined_call_operand.hbm [shape: bf16[4,256,256], index: 4, kind: input, shape index: {}]   ;;  %s10096_s5 = inlined_call_operand.hbm [shape: f32[256,256], index: 5, kind: input, shape index: {}]   ;;  %s10097_s6 = inlined_call_operand.hbm [shape: bf16[4,16,32], index: 6, kind: input, shape index: {}]   ;;  %s10098_s7 = inlined_call_operand.hbm [shape: bf16[4,256,256], index: 7, kind: input, shape index: {}]   ;;  %s10099_s8 = inlined_call_operand.hbm [shape: f32[256,256], index: 8, kind: input, shape index: {}]   ;;  %s10100_s9 = inlined_call_operand.hbm [shape: bf16[4,8,16], index: 9, kind: input, shape index: {}]   ;;  %s10101_s10 = inlined_call_operand.hbm [shape: bf16[4,256,256], index: 10, kind: input, shape index: {}]   ;;  %s10102_s11 = inlined_call_operand.hbm [shape: f32[256,256], index: 11, kind: input, shape index: {}]   ;;  %s10103_s12 = inlined_call_operand.hbm [shape: f32[8,256], index: 12, kind: input, shape index: {}]   ;;  %s10104_s13 = inlined_call_operand.vmem [shape: f32[8,1], index: 13, kind: output, shape index: {}]  }
   0x1   :  { %19 = vsyncpa [#allocation5], 0 }
   0x2   :  { %20 = vsyncpa [#allocation8], 0 }
   0x3   :  { %21 = vsyncpa [#allocation11], 0 }
   0x4   :  { %22 = vsyncpa [#allocation14], 0 }
   0x5   :  { %23 = vsyncpa [#allocation17], 0  ;;  %s47_s27 = sshll.u32 %s10095_s4, 4  ;;  %s8491_s28 = smov [#allocation4]   ;;  %s48_s27 = int_to_ptr.hbm [resolvable:$true] %s47_s27 }
   0x6   :  { %s49_s29 = sshll.u32 %s8491_s28, 4  ;;  %s73_s15 = sshll.u32 %s10097_s6, 4  ;;  %s50_s29 = int_to_ptr.vmem [resolvable:$true] %s49_s29  ;;  %s74_s15 = int_to_ptr.hbm [resolvable:$true] %s73_s15 }
   0x7   :  { %s8492_s16 = smov 128   ;;  %s8493_s17 = smov 8  }
   0x8   :  { %55 = dma.hbm_to_vmem [thread:$0]  %s48_s27, 16384, %s50_s29, [#allocation5], %s8492_s16, %s8492_s16, %s8493_s17  }
   0x9   :  { %s8494_s18 = smov [#allocation7]   ;;  %s8495_s20 = smov 64  }
   0xa   :  { %s75_s19 = sshll.u32 %s8494_s18, 4  ;;  %s8496_s4 = smov 4   ;;  %s76_s19 = int_to_ptr.vmem [resolvable:$true] %s75_s19 }
   0xb   :  { %81 = dma.hbm_to_vmem [thread:$0]  %s74_s15, 512, %s76_s19, [#allocation8], %s8495_s20, %s8495_s20, %s8496_s4  }
   0xc   :  { %s99_s6 = sshll.u32 %s10099_s8, 4  ;;  %s8497_s23 = smov [#allocation10]   ;;  %s100_s6 = int_to_ptr.hbm [resolvable:$true] %s99_s6 }
   0xd   :  { %s101_s24 = sshll.u32 %s8497_s23, 4  ;;  %s125_s27 = sshll.u32 %s10101_s10, 4  ;;  %s102_s24 = int_to_ptr.vmem [resolvable:$true] %s101_s24  ;;  %s126_s27 = int_to_ptr.hbm [resolvable:$true] %s125_s27 }
   0xe   :  { %s8498_s28 = smov 256   ;;  %s8499_s29 = smov 16  }
   0xf   :  { %107 = dma.hbm_to_vmem [thread:$0]  %s100_s6, 8192, %s102_s24, [#allocation11], %s8498_s28, %s8498_s28, %s8499_s29  }
  0x10   :  { %s8500_s30 = smov [#allocation13]   ;;  %s32_s8 = sshll.u32 %s10093_s2, 4  ;;  %s33_s8 = int_to_ptr.hbm [resolvable:$true] %s32_s8 }
  0x11   :  { %s127_s14 = sshll.u32 %s8500_s30, 4  ;;  %s60_s21 = sshll.u32 %s10096_s5, 4  ;;  %s128_s14 = int_to_ptr.vmem [resolvable:$true] %s127_s14  ;;  %s61_s21 = int_to_ptr.hbm [resolvable:$true] %s60_s21 }
  0x12   :  { %133 = dma.hbm_to_vmem [thread:$0]  %s126_s27, 16384, %s128_s14, [#allocation14], %s8492_s16, %s8492_s16, %s8493_s17  }
  0x13   :  { %s8501_s22 = smov [#allocation2]   ;;  %s8502_s6 = smov [#allocation6]  }
  0x14   :  { %s34_s23 = sshll.u32 %s8501_s22, 4  ;;  %s62_s2 = sshll.u32 %s8502_s6, 4  ;;  %s35_s23 = int_to_ptr.vmem [resolvable:$true] %s34_s23  ;;  %s63_s2 = int_to_ptr.vmem [resolvable:$true] %s62_s2 }
  0x15   :  { %40 = dma.hbm_to_vmem [thread:$0]  %s33_s8, 4096, %s35_s23, [#allocation3], %s8492_s16, %s8492_s16, %s8493_s17  }
  0x16   :  { %s86_s26 = sshll.u32 %s10098_s7, 4  ;;  %s112_s30 = sshll.u32 %s10100_s9, 4  ;;  %s87_s26 = int_to_ptr.hbm [resolvable:$true] %s86_s26  ;;  %s113_s30 = int_to_ptr.hbm [resolvable:$true] %s112_s30 }
  0x17   :  { %68 = dma.hbm_to_vmem [thread:$0]  %s61_s21, 8192, %s63_s2, [#allocation5], %s8498_s28, %s8498_s28, %s8499_s29  }
  0x18   :  { %s8503_s14 = smov [#allocation9]   ;;  %s8504_s18 = smov [#allocation12]  }
  0x19   :  { %s88_s15 = sshll.u32 %s8503_s14, 4  ;;  %s114_s7 = sshll.u32 %s8504_s18, 4  ;;  %s89_s15 = int_to_ptr.vmem [resolvable:$true] %s88_s15  ;;  %s115_s7 = int_to_ptr.vmem [resolvable:$true] %s114_s7 }
  0x1a   :  { %94 = dma.hbm_to_vmem [thread:$0]  %s87_s26, 16384, %s89_s15, [#allocation8], %s8492_s16, %s8492_s16, %s8493_s17  }
  0x1b   :  { %s138_s19 = sshll.u32 %s10102_s11, 4  ;;  %s152_s22 = sshll.u32 %s10103_s12, 4  ;;  %s139_s19 = int_to_ptr.hbm [resolvable:$true] %s138_s19  ;;  %s153_s22 = int_to_ptr.hbm [resolvable:$true] %s152_s22 }
  0x1c   :  { %120 = dma.hbm_to_vmem [thread:$0]  %s113_s30, 256, %s115_s7, [#allocation11], %s8495_s20, %s8495_s20, %s8496_s4  }
  0x1d   :  { %s8505_s23 = smov [#allocation15]   ;;  %s8506_s16 = smov [#allocation16]  }
  0x1e   :  { %s140_s6 = sshll.u32 %s8505_s23, 4  ;;  %s154_s11 = sshll.u32 %s8506_s16, 4  ;;  %s141_s6 = int_to_ptr.vmem [resolvable:$true] %s140_s6  ;;  %s155_s11 = int_to_ptr.vmem [resolvable:$true] %s154_s11 }
  0x1f   :  { %146 = dma.hbm_to_vmem [thread:$0]  %s139_s19, 8192, %s141_s6, [#allocation14], %s8498_s28, %s8498_s28, %s8499_s29  }
  0x20   :  { %157 = dma.hbm_to_vmem [thread:$0]  %s153_s22, 256, %s155_s11, [#allocation17]  }
  0x21   :  { %8479 = dma.done.wait [#allocation3], 4096  }
  0x22   :  { %8480 = vsyncadd [#allocation3], 4294963200 }
  0x23   :  { %8481 = dma.done.wait [#allocation5], 24576  }
  0x24   :  { %8482 = vsyncadd [#allocation5], 4294942720 }
  0x25   :  { %8483 = dma.done.wait [#allocation8], 16896  }
  0x26   :  { %8484 = vsyncadd [#allocation8], 4294950400 }
  0x27   :  { %8485 = dma.done.wait [#allocation11], 8448  }
  0x28   :  { %8486 = vsyncadd [#allocation11], 4294958848 }
  0x29   :  { %8487 = dma.done.wait [#allocation14], 24576  }
  0x2a   :  { %8488 = vsyncadd [#allocation14], 4294942720 }
  0x2b   :  { %8489 = dma.done.wait [#allocation17], 256  }
  0x2c   :  { %8490 = vsyncadd [#allocation17], 4294967040  ;;  %v8638_v0 = vld [vmem:[%s10091_s0 + $0x38] sm:$0xff]  ;;  %v8644_v1 = vld [vmem:[%s10091_s0 + $0x30] sm:$0xff]  ;;  %vm451_vm0 = vcmask 523264  }
  0x2d   :  { %369 = vmatpush.bf16.msra.mxu1 %v8638_v0  ;;  %295 = vmatpush.bf16.msra.mxu0 %v8638_v0  ;;  %v8651_v2 = vld [vmem:[%s10091_s0 + $0x28] sm:$0xff]  ;;  %v8658_v3 = vld [vmem:[%s10091_s0 + $0x20] sm:$0xff]  ;;  %v8665_v4 = vld [vmem:[%s10091_s0 + $0x18] sm:$0xff] }
  0x2e   :  { %v8672_v5 = vld [vmem:[%s10091_s0 + $0x10] sm:$0xff]  ;;  %v8679_v6 = vld [vmem:[%s10091_s0 + $0x8] sm:$0xff]  ;;  %v8686_v7 = vld [vmem:[%s10091_s0] sm:$0xff] }
  0x2f   :  { %v7774_v8 = vld [vmem:[%s10092_s1 + $0x20] sm:$0xff]  ;;  %v7775_v10 = vld [vmem:[%s10092_s1 + $0x28] sm:$0xff]  ;;  %v7776_v12 = vld [vmem:[%s10092_s1 + $0x30] sm:$0xff] }
  0x30   :  { %v7762_v9 = vld [vmem:[%s10092_s1] sm:$0xff]  ;;  %v7763_v11 = vld [vmem:[%s10092_s1 + $0x8] sm:$0xff]  ;;  %v7764_v13 = vld [vmem:[%s10092_s1 + $0x10] sm:$0xff] }
  0x31   :  { %370 = vmatpush.bf16.msra.mxu1 %v8644_v1  ;;  %296 = vmatpush.bf16.msra.mxu0 %v8644_v1  ;;  %v7777_v14 = vld [vmem:[%s10092_s1 + $0x38] sm:$0xff]  ;;  %v7786_v16 = vld [vmem:[%s10092_s1 + $0x40] sm:$0xff]  ;;  %v7787_v17 = vld [vmem:[%s10092_s1 + $0x48] sm:$0xff] }
  0x32   :  { %v7765_v15 = vld [vmem:[%s10092_s1 + $0x18] sm:$0xff]  ;;  %v5941_v18 = vld [vmem:[#allocation2 + $0x70] sm:$0xf]  ;;  %v7784_v20 = vld [vmem:[#allocation2 + $0x74] sm:$0xf] }
  0x33   :  { %v7785_v19 = vld [vmem:[#allocation2 + $0x74] sm:$0xf0]  ;;  %v5943_v22 = vld [vmem:[#allocation2 + $0x78] sm:$0xf0]  ;;  %v5933_v24 = vld [vmem:[#allocation2 + $0x60] sm:$0xf] }
  0x34   :  { %v5942_v21 = vor.u32 %v7785_v19, %v5941_v18  ;;  %v5946_v23 = vor.u32 %v7784_v20, %v5943_v22  ;;  %v7783_v25 = vld [vmem:[#allocation2 + $0x64] sm:$0xf0]  ;;  %v7782_v26 = vld [vmem:[#allocation2 + $0x64] sm:$0xf]  ;;  %v5935_v28 = vld [vmem:[#allocation2 + $0x68] sm:$0xf0] }
  0x35   :  { %371 = vmatpush.bf16.msra.mxu1 %v8651_v2  ;;  %297 = vmatpush.bf16.msra.mxu0 %v8651_v2  ;;  %v5934_v27 = vor.u32 %v7783_v25, %v5933_v24  ;;  %v7788_v29 = vld [vmem:[%s10092_s1 + $0x50] sm:$0xff]  ;;  %v5938_v30 = vor.u32 %v7782_v26, %v5935_v28  ;;  %v7781_v32 = vld [vmem:[#allocation2 + $0x54] sm:$0xf0]  ;;  %v5927_v35 = vld [vmem:[#allocation2 + $0x58] sm:$0xf0] }
  0x36   :  { %468 = vmatpush.bf16.msra.mxu2 %v5942_v21  ;;  %497 = vmatpush.bf16.msra.mxu3 %v5946_v23  ;;  %v5925_v31 = vld [vmem:[#allocation2 + $0x50] sm:$0xf]  ;;  %v7780_v33 = vld [vmem:[#allocation2 + $0x54] sm:$0xf]  ;;  %v5917_v37 = vld [vmem:[#allocation2 + $0x40] sm:$0xf] }
  0x37   :  { %v5926_v34 = vor.u32 %v7781_v32, %v5925_v31  ;;  %v5930_v36 = vor.u32 %v7780_v33, %v5927_v35  ;;  %v7779_v38 = vld [vmem:[#allocation2 + $0x44] sm:$0xf0]  ;;  %v7778_v39 = vld [vmem:[#allocation2 + $0x44] sm:$0xf]  ;;  %v5919_v41 = vld [vmem:[#allocation2 + $0x48] sm:$0xf0] }
  0x38   :  { %v5918_v40 = vor.u32 %v7779_v38, %v5917_v37  ;;  %v5922_v42 = vor.u32 %v7778_v39, %v5919_v41  ;;  %v7789_v43 = vld [vmem:[%s10092_s1 + $0x58] sm:$0xff]  ;;  %v5981_v54 = vld [vmem:[#allocation2 + $0x30] sm:$0xf]  ;;  %v7772_v56 = vld [vmem:[#allocation2 + $0x34] sm:$0xf] }
  0x39   :  { %372 = vmatpush.bf16.msra.mxu1 %v8658_v3  ;;  %298 = vmatpush.bf16.msra.mxu0 %v8658_v3  ;;  %v7773_v55 = vld [vmem:[#allocation2 + $0x34] sm:$0xf0]  ;;  %v5983_v58 = vld [vmem:[#allocation2 + $0x38] sm:$0xf0]  ;;  %v5973_v60 = vld [vmem:[#allocation2 + $0x20] sm:$0xf] }
  0x3a   :  { %469 = vmatpush.bf16.msra.mxu2 %v5934_v27  ;;  %498 = vmatpush.bf16.msra.mxu3 %v5938_v30  ;;  %v5982_v57 = vor.u32 %v7773_v55, %v5981_v54  ;;  %v5986_v59 = vor.u32 %v7772_v56, %v5983_v58  ;;  %v7771_v61 = vld [vmem:[#allocation2 + $0x24] sm:$0xf0]  ;;  %v7770_v62 = vld [vmem:[#allocation2 + $0x24] sm:$0xf]  ;;  %v6037_v20 = vld [vmem:[#allocation2 + $0xa0] sm:$0xf] }
  0x3b   :  { %v5974_v63 = vor.u32 %v7771_v61, %v5973_v60  ;;  %v7795_v21 = vld [vmem:[#allocation2 + $0xa4] sm:$0xf0]  ;;  %v5957_v23 = vld [vmem:[#allocation2] sm:$0xf]  ;;  %v7766_v26 = vld [vmem:[#allocation2 + $0x4] sm:$0xf] }
  0x3c   :  { %v7767_v24 = vld [vmem:[#allocation2 + $0x4] sm:$0xf0]  ;;  %v6038_v25 = vor.u32 %v7795_v21, %v6037_v20  ;;  %v5959_v27 = vld [vmem:[#allocation2 + $0x8] sm:$0xf0]  ;;  %v6029_v33 = vld [vmem:[#allocation2 + $0x90] sm:$0xf] }
  0x3d   :  { %373 = vmatpush.bf16.msra.mxu1 %v8665_v4  ;;  %299 = vmatpush.bf16.msra.mxu0 %v8665_v4  ;;  %v5958_v28 = vor.u32 %v7767_v24, %v5957_v23  ;;  %v7791_v37 = vld [vmem:[#allocation2 + $0x84] sm:$0xf0]  ;;  %v7801_v23 = vld [vmem:[%s10092_s1 + $0x78] sm:$0xff] }
  0x3e   :  { %470 = vmatpush.bf16.msra.mxu2 %v5926_v34  ;;  %499 = vmatpush.bf16.msra.mxu3 %v5930_v36  ;;  %v7793_v34 = vld [vmem:[#allocation2 + $0x94] sm:$0xf0]  ;;  %v6021_v36 = vld [vmem:[#allocation2 + $0x80] sm:$0xf] }
  0x3f   :  { %v6030_v35 = vor.u32 %v7793_v34, %v6029_v33  ;;  %v6022_v38 = vor.u32 %v7791_v37, %v6021_v36 }
  0x41   :  { %374 = vmatpush.bf16.msra.mxu1 %v8672_v5  ;;  %300 = vmatpush.bf16.msra.mxu0 %v8672_v5 }
  0x42   :  { %471 = vmatpush.bf16.msra.mxu2 %v5918_v40  ;;  %500 = vmatpush.bf16.msra.mxu3 %v5922_v42 }
  0x45   :  { %375 = vmatpush.bf16.msra.mxu1 %v8679_v6  ;;  %301 = vmatpush.bf16.msra.mxu0 %v8679_v6 }
  0x46   :  { %578 = vmatpush.bf16.msrb.mxu2 %v5982_v57  ;;  %607 = vmatpush.bf16.msrb.mxu3 %v5986_v59 }
  0x49   :  { %376 = vmatpush.bf16.msra.mxu1 %v8686_v7  ;;  %302 = vmatpush.bf16.msra.mxu0 %v8686_v7 }
  0x4a   :  { %579 = vmatpush.bf16.msrb.mxu2 %v5974_v63 }
  0x4c   :  { %377 = vmatmul.bf16.vlgmr.msra.gmra.mxu1 %v7774_v8  ;;  %303 = vmatmul.bf16.vlgmr.msra.gmra.mxu0 %v7762_v9  ;;  %v5975_v8 = vld [vmem:[#allocation2 + $0x28] sm:$0xf0] }
  0x4d   :  { %665 = vmatpush.bf16.msrb.mxu0 %v8638_v0  ;;  %v5978_v9 = vor.u32 %v7770_v62, %v5975_v8  ;;  %v7798_v8 = vld [vmem:[%s10092_s1 + $0x60] sm:$0xff] }
  0x4f   :  { %608 = vmatpush.bf16.msrb.mxu3 %v5978_v9 }
  0x51   :  { %666 = vmatpush.bf16.msrb.mxu0 %v8644_v1 }
  0x55   :  { %667 = vmatpush.bf16.msrb.mxu0 %v8651_v2 }
  0x59   :  { %668 = vmatpush.bf16.msrb.mxu0 %v8658_v3 }
  0x5c   :  { %382 = vmatmul.bf16.gmra.mxu1 %v7775_v10  ;;  %308 = vmatmul.bf16.gmra.mxu0 %v7763_v11  ;;  %v5965_v10 = vld [vmem:[#allocation2 + $0x10] sm:$0xf]  ;;  %v7769_v11 = vld [vmem:[#allocation2 + $0x14] sm:$0xf0] }
  0x5d   :  { %669 = vmatpush.bf16.msrb.mxu0 %v8665_v4  ;;  %v5966_v19 = vor.u32 %v7769_v11, %v5965_v10 }
  0x5f   :  { %580 = vmatpush.bf16.msrb.mxu2 %v5966_v19 }
  0x61   :  { %670 = vmatpush.bf16.msrb.mxu0 %v8672_v5 }
  0x63   :  { %581 = vmatpush.bf16.msrb.mxu2 %v5958_v28 }
  0x65   :  { %671 = vmatpush.bf16.msrb.mxu0 %v8679_v6 }
  0x69   :  { %672 = vmatpush.bf16.msrb.mxu0 %v8686_v7 }
  0x6c   :  { %387 = vmatmul.bf16.gmra.mxu1 %v7776_v12  ;;  %313 = vmatmul.bf16.gmra.mxu0 %v7764_v13  ;;  %v6045_v12 = vld [vmem:[#allocation2 + $0xb0] sm:$0xf]  ;;  %v7768_v13 = vld [vmem:[#allocation2 + $0x14] sm:$0xf] }
  0x7c   :  { %392 = vmatmul.bf16.gmra.mxu1 %v7777_v14  ;;  %318 = vmatmul.bf16.gmra.mxu0 %v7765_v15  ;;  %v5967_v14 = vld [vmem:[#allocation2 + $0x18] sm:$0xf0]  ;;  %v7797_v15 = vld [vmem:[#allocation2 + $0xb4] sm:$0xf0] }
  0x7d   :  { %v5970_v22 = vor.u32 %v7768_v13, %v5967_v14  ;;  %v7799_v13 = vld [vmem:[%s10092_s1 + $0x68] sm:$0xff] }
  0x7f   :  { %609 = vmatpush.bf16.msrb.mxu3 %v5970_v22 }
  0x8c   :  { %673 = vmatmul.bf16.vlgmr.msrb.gmra.mxu0 %v7786_v16  ;;  %v6046_v16 = vor.u32 %v7797_v15, %v6045_v12 }
  0x8e   :  { %763 = vmatpush.bf16.msrb.mxu1 %v6046_v16 }
  0x92   :  { %764 = vmatpush.bf16.msrb.mxu1 %v6038_v25 }
  0x96   :  { %765 = vmatpush.bf16.msrb.mxu1 %v6030_v35 }
  0x9a   :  { %766 = vmatpush.bf16.msrb.mxu1 %v6022_v38 }
  0x9c   :  { %678 = vmatmul.bf16.gmra.mxu0 %v7787_v17 }
  0xac   :  { %683 = vmatmul.bf16.gmra.mxu0 %v7788_v29  ;;  %v5962_v29 = vor.u32 %v7766_v26, %v5959_v27 }
  0xae   :  { %610 = vmatpush.bf16.msrb.mxu3 %v5962_v29 }
  0xbc   :  { %688 = vmatmul.bf16.gmra.mxu0 %v7789_v43 }
  0xc9   :  { %v378_v44 = vpop.f32.mrf.mxu1  ;;  %v8735_v45 = vpop.f32.mrf.mxu0 }
  0xd1   :  { %v380_v46 = vpop.f32.mrf.mxu1  ;;  %v8737_v47 = vpop.f32.mrf.mxu0 }
  0xd2   :  { %v398_v48 = vpack.c.bf16 %v380_v46, %v378_v44 }
  0xd4   :  { %5947 = vmatmul.msk.bf16.vlgmr.msra.gmra.mxu2 %vm451_vm0, %v398_v48  ;;  %5951 = vmatmul.msk.bf16.vlgmr.msra.gmra.mxu3 %vm451_vm0, %v398_v48  ;;  %v6047_v48 = vld [vmem:[#allocation2 + $0xb8] sm:$0xf0] }
  0xd5   :  { %866 = vmatpush.bf16.msra.mxu3 %v8638_v0 }
  0xd9   :  { %v383_v49 = vpop.f32.mrf.mxu1  ;;  %v8741_v50 = vpop.f32.mrf.mxu0  ;;  %867 = vmatpush.bf16.msra.mxu3 %v8644_v1 }
  0xdd   :  { %868 = vmatpush.bf16.msra.mxu3 %v8651_v2  ;;  %v324_v2 = vpack.c.bf16 %v8737_v47, %v8735_v45  ;;  %v7794_v45 = vld [vmem:[#allocation2 + $0xa4] sm:$0xf]  ;;  %v6039_v47 = vld [vmem:[#allocation2 + $0xa8] sm:$0xf0] }
  0xe1   :  { %v385_v51 = vpop.f32.mrf.mxu1  ;;  %v8743_v52 = vpop.f32.mrf.mxu0  ;;  %869 = vmatpush.bf16.msra.mxu3 %v8658_v3 }
  0xe2   :  { %v399_v53 = vpack.c.bf16 %v385_v51, %v383_v49  ;;  %v6042_v49 = vor.u32 %v7794_v45, %v6039_v47  ;;  %v7792_v51 = vld [vmem:[#allocation2 + $0x94] sm:$0xf]  ;;  %v7806_v45 = vld [vmem:[#allocation2 + $0xe4] sm:$0xf] }
  0xe4   :  { %5948 = vmatmul.msk.bf16.gmra.mxu2 %vm451_vm0, %v399_v53  ;;  %5952 = vmatmul.msk.bf16.gmra.mxu3 %vm451_vm0, %v399_v53  ;;  %v6031_v53 = vld [vmem:[#allocation2 + $0x98] sm:$0xf0] }
  0xe5   :  { %870 = vmatpush.bf16.msra.mxu3 %v8665_v4  ;;  %v6034_v55 = vor.u32 %v7792_v51, %v6031_v53 }
  0xe9   :  { %v388_v17 = vpop.f32.mrf.mxu1  ;;  %v8747_v18 = vpop.f32.mrf.mxu0  ;;  %871 = vmatpush.bf16.msra.mxu3 %v8672_v5  ;;  %v325_v5 = vpack.c.bf16 %v8743_v52, %v8741_v50  ;;  %v7790_v50 = vld [vmem:[#allocation2 + $0x84] sm:$0xf]  ;;  %v6023_v52 = vld [vmem:[#allocation2 + $0x88] sm:$0xf0] }
  0xea   :  { %v6026_v56 = vor.u32 %v7790_v50, %v6023_v52  ;;  %v6093_v52 = vld [vmem:[#allocation2 + $0xd0] sm:$0xf] }
  0xed   :  { %872 = vmatpush.bf16.msra.mxu3 %v8679_v6  ;;  %v7796_v6 = vld [vmem:[#allocation2 + $0xb4] sm:$0xf] }
  0xf1   :  { %v390_v30 = vpop.f32.mrf.mxu1  ;;  %v316_v31 = vpop.f32.mrf.mxu0  ;;  %873 = vmatpush.bf16.msra.mxu3 %v8686_v7  ;;  %v6050_v7 = vor.u32 %v7796_v6, %v6047_v48  ;;  %v6101_v48 = vld [vmem:[#allocation2 + $0xe0] sm:$0xf] }
  0xf2   :  { %v400_v32 = vpack.c.bf16 %v390_v30, %v388_v17  ;;  %v326_v58 = vpack.c.bf16 %v316_v31, %v8747_v18  ;;  %v7800_v18 = vld [vmem:[%s10092_s1 + $0x70] sm:$0xff] }
  0xf3   :  { %792 = vmatpush.bf16.msra.mxu2 %v6050_v7  ;;  %v7807_v7 = vld [vmem:[#allocation2 + $0xe4] sm:$0xf0] }
  0xf4   :  { %5949 = vmatmul.msk.bf16.gmra.mxu2 %vm451_vm0, %v400_v32  ;;  %5953 = vmatmul.msk.bf16.gmra.mxu3 %vm451_vm0, %v400_v32  ;;  %v6102_v47 = vor.u32 %v7807_v7, %v6101_v48 }
  0xf7   :  { %793 = vmatpush.bf16.msra.mxu2 %v6042_v49  ;;  %v6103_v49 = vld [vmem:[#allocation2 + $0xe8] sm:$0xf0] }
  0xf8   :  { %v6106_v51 = vor.u32 %v7806_v45, %v6103_v49 }
  0xf9   :  { %v393_v39 = vpop.f32.mrf.mxu1  ;;  %v319_v40 = vpop.f32.mrf.mxu0 }
  0xfb   :  { %794 = vmatpush.bf16.msra.mxu2 %v6034_v55 }
  0xff   :  { %795 = vmatpush.bf16.msra.mxu2 %v6026_v56  ;;  %v7805_v56 = vld [vmem:[#allocation2 + $0xd4] sm:$0xf0] }
 0x101   :  { %v395_v41 = vpop.f32.mrf.mxu1  ;;  %v321_v42 = vpop.f32.mrf.mxu0 }
 0x102   :  { %v401_v0 = vpack.c.bf16 %v395_v41, %v393_v39  ;;  %v327_v62 = vpack.c.bf16 %v321_v42, %v319_v40 }
 0x104   :  { %5950 = vmatmul.msk.bf16.gmra.mxu2 %vm451_vm0, %v401_v0  ;;  %5954 = vmatmul.msk.bf16.gmra.mxu3 %vm451_vm0, %v401_v0 }
 0x109   :  { %v674_v43 = vpop.f32.mrf.mxu0 }
 0x111   :  { %v676_v1 = vpop.f32.mrf.mxu0 }
 0x112   :  { %v694_v3 = vpack.c.bf16 %v676_v1, %v674_v43 }
 0x114   :  { %5987 = vmatmul.msk.bf16.vlgmr.msrb.gmra.mxu2 %vm451_vm0, %v324_v2  ;;  %5991 = vmatmul.msk.bf16.vlgmr.msrb.gmra.mxu3 %vm451_vm0, %v324_v2  ;;  %v6109_v2 = vld [vmem:[#allocation2 + $0xf0] sm:$0xf] }
 0x115   :  { %6051 = vmatmul.msk.bf16.vlgmr.msrb.gmra.mxu1 %vm451_vm0, %v694_v3 }
 0x119   :  { %v679_v4 = vpop.f32.mrf.mxu0 }
 0x121   :  { %v681_v44 = vpop.f32.mrf.mxu0 }
 0x122   :  { %v695_v46 = vpack.c.bf16 %v681_v44, %v679_v4  ;;  %v7808_v4 = vld [vmem:[#allocation2 + $0xf4] sm:$0xf] }
 0x124   :  { %5988 = vmatmul.msk.bf16.gmra.mxu2 %vm451_vm0, %v325_v5  ;;  %5992 = vmatmul.msk.bf16.gmra.mxu3 %vm451_vm0, %v325_v5  ;;  %v6111_v5 = vld [vmem:[#allocation2 + $0xf8] sm:$0xf0] }
 0x125   :  { %6052 = vmatmul.msk.bf16.gmra.mxu1 %vm451_vm0, %v695_v46  ;;  %v6114_v6 = vor.u32 %v7808_v4, %v6111_v5 }
 0x127   :  { %993 = vmatpush.bf16.msra.mxu1 %v6114_v6 }
 0x129   :  { %v684_v54 = vpop.f32.mrf.mxu0 }
 0x12b   :  { %994 = vmatpush.bf16.msra.mxu1 %v6106_v51 }
 0x131   :  { %v686_v57 = vpop.f32.mrf.mxu0 }
 0x132   :  { %v696_v59 = vpack.c.bf16 %v686_v57, %v684_v54  ;;  %v7804_v57 = vld [vmem:[#allocation2 + $0xd4] sm:$0xf] }
 0x134   :  { %5989 = vmatmul.msk.bf16.gmra.mxu2 %vm451_vm0, %v326_v58  ;;  %5993 = vmatmul.msk.bf16.gmra.mxu3 %vm451_vm0, %v326_v58  ;;  %v6094_v58 = vor.u32 %v7805_v56, %v6093_v52 }
 0x135   :  { %6053 = vmatmul.msk.bf16.gmra.mxu1 %vm451_vm0, %v696_v59 }
 0x139   :  { %v689_v60 = vpop.f32.mrf.mxu0 }
 0x141   :  { %v691_v61 = vpop.f32.mrf.mxu0 }
 0x142   :  { %v697_v63 = vpack.c.bf16 %v691_v61, %v689_v60 }
 0x144   :  { %5990 = vmatmul.msk.bf16.gmra.mxu2 %vm451_vm0, %v327_v62  ;;  %5994 = vmatmul.msk.bf16.gmra.mxu3 %vm451_vm0, %v327_v62 }
 0x145   :  { %6054 = vmatmul.msk.bf16.gmra.mxu1 %vm451_vm0, %v697_v63 }
 0x154   :  { %6055 = vmatmul.msk.bf16.vlgmr.msra.gmra.mxu2 %vm451_vm0, %v694_v3  ;;  %874 = vmatmul.bf16.vlgmr.msra.gmra.mxu3 %v7798_v8  ;;  %v7809_v3 = vld [vmem:[#allocation2 + $0xf4] sm:$0xf0]  ;;  %v7803_v8 = vld [vmem:[#allocation2 + $0xc4] sm:$0xf0] }
 0x155   :  { %v6110_v44 = vor.u32 %v7809_v3, %v6109_v2 }
 0x157   :  { %v473_v9 = vpop.f32.mrf.mxu2  ;;  %v502_v10 = vpop.f32.mrf.mxu3  ;;  %964 = vmatpush.bf16.msra.mxu0 %v6110_v44 }
 0x15b   :  { %965 = vmatpush.bf16.msra.mxu0 %v6102_v47 }
 0x15f   :  { %v8782_v11 = vpop.f32.mrf.mxu2  ;;  %v8784_v12 = vpop.f32.mrf.mxu3  ;;  %966 = vmatpush.bf16.msra.mxu0 %v6094_v58 }
 0x164   :  { %6056 = vmatmul.msk.bf16.gmra.mxu2 %vm451_vm0, %v695_v46  ;;  %879 = vmatmul.bf16.gmra.mxu3 %v7799_v13  ;;  %v6087_v13 = vld [vmem:[#allocation2 + $0xc8] sm:$0xf0] }
 0x167   :  { %v478_v14 = vpop.f32.mrf.mxu2  ;;  %v507_v15 = vpop.f32.mrf.mxu3 }
 0x16f   :  { %v8790_v16 = vpop.f32.mrf.mxu2  ;;  %v8792_v17 = vpop.f32.mrf.mxu3 }
 0x174   :  { %6057 = vmatmul.msk.bf16.gmra.mxu2 %vm451_vm0, %v696_v59  ;;  %884 = vmatmul.bf16.gmra.mxu3 %v7800_v18  ;;  %v6095_v59 = vld [vmem:[#allocation2 + $0xd8] sm:$0xf0] }
 0x175   :  { %v6098_v61 = vor.u32 %v7804_v57, %v6095_v59 }
 0x177   :  { %v483_v19 = vpop.f32.mrf.mxu2  ;;  %v512_v20 = vpop.f32.mrf.mxu3  ;;  %995 = vmatpush.bf16.msra.mxu1 %v6098_v61 }
 0x17f   :  { %v8798_v21 = vpop.f32.mrf.mxu2  ;;  %v8800_v22 = vpop.f32.mrf.mxu3 }
 0x184   :  { %6058 = vmatmul.msk.bf16.gmra.mxu2 %vm451_vm0, %v697_v63  ;;  %889 = vmatmul.bf16.gmra.mxu3 %v7801_v23  ;;  %v6085_v63 = vld [vmem:[#allocation2 + $0xc0] sm:$0xf] }
 0x187   :  { %v8806_v24 = vpop.f32.mrf.mxu2  ;;  %v8808_v25 = vpop.f32.mrf.mxu3 }
 0x18f   :  { %v8810_v26 = vpop.f32.mrf.mxu2  ;;  %v8812_v27 = vpop.f32.mrf.mxu3 }
 0x192   :  { %v768_v28 = vpop.f32.mrf.mxu1 }
 0x197   :  { %v583_v29 = vpop.f32.mrf.mxu2  ;;  %v612_v30 = vpop.f32.mrf.mxu3 }
 0x198   :  { %v584_v31 = vadd.f32 %v583_v29, %v473_v9  ;;  %v8814_v32 = vadd.f32 %v612_v30, %v502_v10  ;;  %v7802_v9 = vld [vmem:[#allocation2 + $0xc4] sm:$0xf]  ;;  %v6086_v10 = vor.u32 %v7803_v8, %v6085_v63 }
 0x19a   :  { %v8816_v33 = vadd.f32 %v768_v28, %v584_v31  ;;  %v8818_v34 = vpop.f32.mrf.mxu1  ;;  %967 = vmatpush.bf16.msra.mxu0 %v6086_v10 }
 0x19f   :  { %v8820_v35 = vpop.f32.mrf.mxu2  ;;  %v8822_v36 = vpop.f32.mrf.mxu3 }
 0x1a2   :  { %v773_v37 = vpop.f32.mrf.mxu1 }
 0x1a7   :  { %v588_v38 = vpop.f32.mrf.mxu2  ;;  %v617_v39 = vpop.f32.mrf.mxu3 }
 0x1a8   :  { %v589_v40 = vadd.f32 %v588_v38, %v478_v14  ;;  %v8824_v41 = vadd.f32 %v617_v39, %v507_v15  ;;  %v6090_v14 = vor.u32 %v7802_v9, %v6087_v13 }
 0x1aa   :  { %v8826_v42 = vadd.f32 %v773_v37, %v589_v40  ;;  %v8828_v0 = vpop.f32.mrf.mxu1  ;;  %996 = vmatpush.bf16.msra.mxu1 %v6090_v14 }
 0x1af   :  { %v8830_v43 = vpop.f32.mrf.mxu2  ;;  %v8832_v1 = vpop.f32.mrf.mxu3 }
 0x1b2   :  { %v778_v46 = vpop.f32.mrf.mxu1 }
 0x1b7   :  { %v593_v53 = vpop.f32.mrf.mxu2  ;;  %v622_v54 = vpop.f32.mrf.mxu3 }
 0x1b8   :  { %v594_v55 = vadd.f32 %v593_v53, %v483_v19  ;;  %v8834_v50 = vadd.f32 %v622_v54, %v512_v20 }
 0x1ba   :  { %v8836_v60 = vadd.f32 %v778_v46, %v594_v55  ;;  %v8838_v62 = vpop.f32.mrf.mxu1 }
 0x1bf   :  { %v595_v15 = vpop.f32.mrf.mxu2  ;;  %v624_v18 = vpop.f32.mrf.mxu3 }
 0x1c2   :  { %v783_v19 = vpop.f32.mrf.mxu1 }
 0x1c7   :  { %v598_v20 = vpop.f32.mrf.mxu2  ;;  %v627_v23 = vpop.f32.mrf.mxu3 }
 0x1c8   :  { %v599_v28 = vadd.f32 %v598_v20, %v8806_v24  ;;  %v628_v29 = vadd.f32 %v627_v23, %v8808_v25  ;;  %v591_v20 = vadd.f32 %v8830_v43, %v8790_v16  ;;  %v596_v23 = vadd.f32 %v595_v15, %v8798_v21 }
 0x1ca   :  { %v8842_v30 = vadd.f32 %v783_v19, %v599_v28  ;;  %v785_v45 = vpop.f32.mrf.mxu1  ;;  %v827_v16 = vadd.f32 %v8838_v62, %v596_v23 }
 0x1cf   :  { %v600_v31 = vpop.f32.mrf.mxu2  ;;  %v629_v37 = vpop.f32.mrf.mxu3 }
 0x1d0   :  { %v601_v28 = vadd.f32 %v600_v31, %v8810_v26  ;;  %v630_v26 = vadd.f32 %v629_v37, %v8812_v27 }
 0x1d2   :  { %v831_v43 = vadd.f32 %v785_v45, %v601_v28 }
 0x1d7   :  { %v797_v38 = vpop.f32.mrf.mxu2  ;;  %v875_v39 = vpop.f32.mrf.mxu3 }
 0x1d8   :  { %v818_v40 = vadd.f32 %v797_v38, %v8814_v32 }
 0x1df   :  { %v877_v2 = vpop.f32.mrf.mxu3  ;;  %v799_v7 = vpop.f32.mrf.mxu2 }
 0x1e0   :  { %v895_v3 = vpack.c.bf16 %v877_v2, %v875_v39 }
 0x1e2   :  { %6115 = vmatmul.msk.bf16.vlgmr.msra.gmra.mxu0 %vm451_vm0, %v895_v3  ;;  %6119 = vmatmul.msk.bf16.vlgmr.msra.gmra.mxu1 %vm451_vm0, %v895_v3  ;;  %v625_v3 = vadd.f32 %v624_v18, %v8800_v22 }
 0x1e7   :  { %v880_v4 = vpop.f32.mrf.mxu3  ;;  %v802_v51 = vpop.f32.mrf.mxu2 }
 0x1ef   :  { %v882_v44 = vpop.f32.mrf.mxu3  ;;  %v804_v56 = vpop.f32.mrf.mxu2 }
 0x1f0   :  { %v896_v5 = vpack.c.bf16 %v882_v44, %v880_v4  ;;  %v620_v4 = vadd.f32 %v8832_v1, %v8792_v17 }
 0x1f2   :  { %6116 = vmatmul.msk.bf16.gmra.mxu0 %vm451_vm0, %v896_v5  ;;  %6120 = vmatmul.msk.bf16.gmra.mxu1 %vm451_vm0, %v896_v5 }
 0x1f7   :  { %v885_v24 = vpop.f32.mrf.mxu3  ;;  %v807_v59 = vpop.f32.mrf.mxu2 }
 0x1f8   :  { %v826_v18 = vadd.f32 %v807_v59, %v8834_v50 }
 0x1ff   :  { %v887_v25 = vpop.f32.mrf.mxu3  ;;  %v809_v8 = vpop.f32.mrf.mxu2 }
 0x200   :  { %v897_v46 = vpack.c.bf16 %v887_v25, %v885_v24  ;;  %v828_v31 = vadd.f32 %v809_v8, %v625_v3 }
 0x202   :  { %6117 = vmatmul.msk.bf16.gmra.mxu0 %vm451_vm0, %v897_v46  ;;  %6121 = vmatmul.msk.bf16.gmra.mxu1 %vm451_vm0, %v897_v46 }
 0x207   :  { %v890_v32 = vpop.f32.mrf.mxu3  ;;  %v812_v19 = vpop.f32.mrf.mxu2 }
 0x20f   :  { %v892_v6 = vpop.f32.mrf.mxu3  ;;  %v814_v21 = vpop.f32.mrf.mxu2 }
 0x210   :  { %v898_v48 = vpack.c.bf16 %v892_v6, %v890_v32  ;;  %v832_v17 = vadd.f32 %v814_v21, %v630_v26  ;;  %v7861_v21 = vld [vmem:[#allocation4 + $0x174] sm:$0xf0]  ;;  %v6273_v26 = vld [vmem:[#allocation4 + $0x1f0] sm:$0xf] }
 0x212   :  { %6118 = vmatmul.msk.bf16.gmra.mxu0 %vm451_vm0, %v898_v48  ;;  %6122 = vmatmul.msk.bf16.gmra.mxu1 %vm451_vm0, %v898_v48 }
 0x25f   :  { %v969_v47 = vpop.f32.mrf.mxu0  ;;  %v998_v49 = vpop.f32.mrf.mxu1 }
 0x260   :  { %v8854_v53 = vadd.f32 %v969_v47, %v8816_v33  ;;  %v8856_v54 = vadd.f32 %v998_v49, %v818_v40  ;;  %v586_v33 = vadd.f32 %v8820_v35, %v8782_v11  ;;  %v615_v40 = vadd.f32 %v8822_v36, %v8784_v12 }
 0x261   :  { %v823_v11 = vadd.f32 %v8828_v0, %v591_v20  ;;  %v830_v35 = vadd.f32 %v812_v19, %v628_v29  ;;  %v822_v12 = vadd.f32 %v802_v51, %v8824_v41  ;;  %v824_v36 = vadd.f32 %v804_v56, %v620_v4 }
 0x262   :  { %v819_v2 = vadd.f32 %v8818_v34, %v586_v33  ;;  %v820_v15 = vadd.f32 %v799_v7, %v615_v40  ;;  %vm1034_vm15 = vcmp.ge.f32.partialorder %v8854_v53, 0.0 }
 0x267   :  { %v971_v55 = vpop.f32.mrf.mxu0  ;;  %v1000_v52 = vpop.f32.mrf.mxu1 }
 0x268   :  { %v8876_v44 = vadd.f32 %v971_v55, %v819_v2  ;;  %v8878_v62 = vadd.f32 %v1000_v52, %v820_v15 }
 0x26a   :  { %v1052_v33 = vmul.f32 0.2, %v8876_v44  ;;  %v1053_v20 = vmul.f32 0.2, %v8878_v62  ;;  %vm1036_vm13 = vcmp.ge.f32.partialorder %v8876_v44, 0.0  ;;  %vm1037_vm14 = vcmp.ge.f32.partialorder %v8878_v62, 0.0 }
 0x26f   :  { %v974_v57 = vpop.f32.mrf.mxu0  ;;  %v1003_v58 = vpop.f32.mrf.mxu1 }
 0x270   :  { %v1022_v27 = vadd.f32 %v974_v57, %v8826_v42  ;;  %v1023_v29 = vadd.f32 %v1003_v58, %v822_v12  ;;  %v7810_v12 = vld [vmem:[%s10094_s3] sm:$0xff] }
 0x272   :  { %v1054_v8 = vmul.f32 0.2, %v1022_v27  ;;  %vm1038_vm11 = vcmp.ge.f32.partialorder %v1022_v27, 0.0  ;;  %vm1039_vm12 = vcmp.ge.f32.partialorder %v1023_v29, 0.0 }
 0x274   :  { %v1070_v40 = vsel %vm1038_vm11, %v1022_v27, %v1054_v8  ;;  %v7875_v27 = vld [vmem:[#allocation4 + $0x1e4] sm:$0xf0] }
 0x277   :  { %v976_v61 = vpop.f32.mrf.mxu0  ;;  %v1005_v63 = vpop.f32.mrf.mxu1 }
 0x278   :  { %v1024_v37 = vadd.f32 %v976_v61, %v823_v11  ;;  %v1025_v5 = vadd.f32 %v1005_v63, %v824_v36  ;;  %v6209_v11 = vld [vmem:[#allocation4 + $0x170] sm:$0xf]  ;;  %v7860_v36 = vld [vmem:[#allocation4 + $0x174] sm:$0xf] }
 0x27a   :  { %v1056_v58 = vmul.f32 0.2, %v1024_v37  ;;  %v1057_v59 = vmul.f32 0.2, %v1025_v5  ;;  %vm1040_vm9 = vcmp.ge.f32.partialorder %v1024_v37, 0.0  ;;  %vm1041_vm10 = vcmp.ge.f32.partialorder %v1025_v5, 0.0 }
 0x27c   :  { %v1072_v23 = vsel %vm1040_vm9, %v1024_v37, %v1056_v58  ;;  %v1073_v28 = vsel %vm1041_vm10, %v1025_v5, %v1057_v59  ;;  %v6185_v58 = vld [vmem:[#allocation4 + $0x140] sm:$0xf]  ;;  %v7855_v59 = vld [vmem:[#allocation4 + $0x144] sm:$0xf0] }
 0x27d   :  { %v8908_v3 = vpack.c.bf16 %v1072_v23, %v1070_v40  ;;  %v7870_v23 = vld [vmem:[#allocation4 + $0x1c4] sm:$0xf]  ;;  %v6241_v40 = vld [vmem:[#allocation4 + $0x1b0] sm:$0xf] }
 0x27f   :  { %v979_v9 = vpop.f32.mrf.mxu0  ;;  %v1008_v10 = vpop.f32.mrf.mxu1 }
 0x280   :  { %v1026_v41 = vadd.f32 %v979_v9, %v8836_v60  ;;  %v1027_v24 = vadd.f32 %v1008_v10, %v826_v18  ;;  %v1055_v9 = vmul.f32 0.2, %v1023_v29 }
 0x282   :  { %v1058_v47 = vmul.f32 0.2, %v1026_v41  ;;  %v1059_v49 = vmul.f32 0.2, %v1027_v24  ;;  %vm1042_vm7 = vcmp.ge.f32.partialorder %v1026_v41, 0.0  ;;  %vm1043_vm8 = vcmp.ge.f32.partialorder %v1027_v24, 0.0 }
 0x283   :  { %v1071_v2 = vsel %vm1039_vm12, %v1023_v29, %v1055_v9  ;;  %v7844_v29 = vld [vmem:[%s10094_s3 + $0x10] sm:$0xff] }
 0x284   :  { %v1074_v10 = vsel %vm1042_vm7, %v1026_v41, %v1058_v47  ;;  %v8910_v4 = vpack.c.bf16 %v1073_v28, %v1071_v2  ;;  %v7858_v41 = vld [vmem:[#allocation4 + $0x164] sm:$0xf]  ;;  %v7856_v47 = vld [vmem:[#allocation4 + $0x154] sm:$0xf]  ;;  %v6251_v28 = vld [vmem:[#allocation4 + $0x1c8] sm:$0xf0] }
 0x285   :  { %v7869_v2 = vld [vmem:[#allocation4 + $0x1b4] sm:$0xf0] }
 0x287   :  { %v981_v13 = vpop.f32.mrf.mxu0  ;;  %v1010_v14 = vpop.f32.mrf.mxu1 }
 0x288   :  { %v1028_v1 = vadd.f32 %v981_v13, %v827_v16  ;;  %v1029_v0 = vadd.f32 %v1010_v14, %v828_v31  ;;  %v1075_v13 = vsel %vm1043_vm8, %v1027_v24, %v1059_v49  ;;  %v1068_v16 = vsel %vm1036_vm13, %v8876_v44, %v1052_v33  ;;  %v6201_v44 = vld [vmem:[#allocation4 + $0x160] sm:$0xf]  ;;  %v6203_v24 = vld [vmem:[#allocation4 + $0x168] sm:$0xf0]  ;;  %v6195_v49 = vld [vmem:[#allocation4 + $0x158] sm:$0xf0] }
 0x289   :  { %v6198_v8 = vor.u32 %v7856_v47, %v6195_v49  ;;  %v6186_v33 = vor.u32 %v7855_v59, %v6185_v58  ;;  %v6153_v47 = vld [vmem:[#allocation4 + $0x100] sm:$0xf]  ;;  %v7847_v49 = vld [vmem:[#allocation4 + $0x104] sm:$0xf0]  ;;  %v6401_v58 = vld [vmem:[#allocation4 + $0xf0] sm:$0xf] }
 0x28a   :  { %v1060_v48 = vmul.f32 0.2, %v1028_v1  ;;  %v1061_v7 = vmul.f32 0.2, %v1029_v0  ;;  %vm1044_vm5 = vcmp.ge.f32.partialorder %v1028_v1, 0.0  ;;  %vm1045_vm6 = vcmp.ge.f32.partialorder %v1029_v0, 0.0 }
 0x28b   :  { %v7843_v59 = vld [vmem:[#allocation4 + $0xf4] sm:$0xf0] }
 0x28c   :  { %v1076_v61 = vsel %vm1044_vm5, %v1028_v1, %v1060_v48  ;;  %v1077_v63 = vsel %vm1045_vm6, %v1029_v0, %v1061_v7  ;;  %v7876_v0 = vld [vmem:[#allocation4 + $0x1f4] sm:$0xf]  ;;  %v6257_v48 = vld [vmem:[#allocation4 + $0x1d0] sm:$0xf]  ;;  %v7873_v7 = vld [vmem:[#allocation4 + $0x1d4] sm:$0xf0] }
 0x28d   :  { %v8890_v14 = vpack.c.bf16 %v1076_v61, %v1074_v10  ;;  %v8892_v19 = vpack.c.bf16 %v1077_v63, %v1075_v13  ;;  %v6249_v61 = vld [vmem:[#allocation4 + $0x1c0] sm:$0xf]  ;;  %v7871_v63 = vld [vmem:[#allocation4 + $0x1c4] sm:$0xf0]  ;;  %v7854_v10 = vld [vmem:[#allocation4 + $0x144] sm:$0xf] }
 0x28e   :  { %v6187_v13 = vld [vmem:[#allocation4 + $0x148] sm:$0xf0] }
 0x28f   :  { %v984_v38 = vpop.f32.mrf.mxu0  ;;  %v1013_v39 = vpop.f32.mrf.mxu1 }
 0x290   :  { %v1030_v34 = vadd.f32 %v984_v38, %v8842_v30  ;;  %v1031_v22 = vadd.f32 %v1013_v39, %v830_v35  ;;  %v1050_v38 = vmul.f32 0.2, %v8854_v53  ;;  %v1051_v39 = vmul.f32 0.2, %v8856_v54 }
 0x291   :  { %v1069_v35 = vsel %vm1037_vm14, %v8878_v62, %v1053_v20  ;;  %v6265_v62 = vld [vmem:[#allocation4 + $0x1e0] sm:$0xf]  ;;  %v6250_v20 = vor.u32 %v7871_v63, %v6249_v61 }
 0x292   :  { %v1062_v46 = vmul.f32 0.2, %v1030_v34  ;;  %v1063_v32 = vmul.f32 0.2, %v1031_v22  ;;  %vm1046_vm1 = vcmp.ge.f32.partialorder %v1030_v34, 0.0  ;;  %vm1047_vm2 = vcmp.ge.f32.partialorder %v1031_v22, 0.0 }
 0x293   :  { %v1066_v15 = vsel %vm1034_vm15, %v8854_v53, %v1050_v38  ;;  %v6275_v53 = vld [vmem:[#allocation4 + $0x1f8] sm:$0xf0]  ;;  %v6177_v38 = vld [vmem:[#allocation4 + $0x130] sm:$0xf]  ;;  %vm2853_vm15 = vcmask 261120  }
 0x294   :  { %v1078_v60 = vsel %vm1046_vm1, %v1030_v34, %v1062_v46  ;;  %v1079_v51 = vsel %vm1047_vm2, %v1031_v22, %v1063_v32  ;;  %vm1035_vm1 = vcmp.ge.f32.partialorder %v8856_v54, 0.0  ;;  %v6211_v34 = vld [vmem:[#allocation4 + $0x178] sm:$0xf0]  ;;  %v8923_v22 = vpack.c.bf16 %v1068_v16, %v1066_v15  ;;  %v7874_v46 = vld [vmem:[#allocation4 + $0x1e4] sm:$0xf] }
 0x295   :  { %v1067_v31 = vsel %vm1035_vm1, %v8856_v54, %v1051_v39  ;;  %v7859_v54 = vld [vmem:[#allocation4 + $0x164] sm:$0xf0]  ;;  %v6214_v37 = vor.u32 %v7860_v36, %v6211_v34  ;;  %v6278_v5 = vor.u32 %v7876_v0, %v6275_v53  ;;  %v6267_v32 = vld [vmem:[#allocation4 + $0x1e8] sm:$0xf0]  ;;  %v7853_v39 = vld [vmem:[#allocation4 + $0x134] sm:$0xf0]  ;;  %v6190_v16 = vor.u32 %v7854_v10, %v6187_v13 }
 0x296   :  { %v8925_v18 = vpack.c.bf16 %v1069_v35, %v1067_v31  ;;  %v6254_v35 = vor.u32 %v7870_v23, %v6251_v28  ;;  %v6242_v15 = vor.u32 %v7869_v2, %v6241_v40  ;;  %v7868_v31 = vld [vmem:[#allocation4 + $0x1b4] sm:$0xf]  ;;  %v6169_v36 = vld [vmem:[#allocation4 + $0x120] sm:$0xf]  ;;  %v7851_v34 = vld [vmem:[#allocation4 + $0x124] sm:$0xf0]  ;;  %v6154_v13 = vor.u32 %v7847_v49, %v6153_v47 }
 0x297   :  { %v986_v25 = vpop.f32.mrf.mxu0  ;;  %v1015_v30 = vpop.f32.mrf.mxu1  ;;  %v7845_v0 = vld [vmem:[%s10094_s3 + $0x18] sm:$0xff]  ;;  %v7862_v10 = vld [vmem:[#allocation4 + $0x184] sm:$0xf]  ;;  %v7826_v23 = vld [vmem:[#allocation4 + $0x74] sm:$0xf] }
 0x298   :  { %v1032_v50 = vadd.f32 %v986_v25, %v831_v43  ;;  %v1033_v6 = vadd.f32 %v1015_v30, %v832_v17  ;;  %v7877_v43 = vld [vmem:[#allocation4 + $0x1f4] sm:$0xf0]  ;;  %v6210_v17 = vor.u32 %v7861_v21, %v6209_v11  ;;  %v6202_v25 = vor.u32 %v7859_v54, %v6201_v44  ;;  %v7811_v11 = vld [vmem:[%s10094_s3 + $0x8] sm:$0xff]  ;;  %v7852_v21 = vld [vmem:[#allocation4 + $0x134] sm:$0xf] }
 0x299   :  { %v6274_v1 = vor.u32 %v7877_v43, %v6273_v26  ;;  %v6266_v30 = vor.u32 %v7875_v27, %v6265_v62  ;;  %v6179_v26 = vld [vmem:[#allocation4 + $0x138] sm:$0xf0]  ;;  %v6178_v43 = vor.u32 %v7853_v39, %v6177_v38  ;;  %v7850_v54 = vld [vmem:[#allocation4 + $0x124] sm:$0xf]  ;;  %v6171_v62 = vld [vmem:[#allocation4 + $0x128] sm:$0xf0]  ;;  %v6170_v27 = vor.u32 %v7851_v34, %v6169_v36 }
 0x29a   :  { %vm1048_vm3 = vcmp.ge.f32.partialorder %v1032_v50, 0.0  ;;  %v1064_v45 = vmul.f32 0.2, %v1032_v50  ;;  %vm1049_vm4 = vcmp.ge.f32.partialorder %v1033_v6, 0.0  ;;  %v1065_v42 = vmul.f32 0.2, %v1033_v6 }
 0x29b   :  { %v6182_v53 = vor.u32 %v7852_v21, %v6179_v26  ;;  %v6339_v28 = vld [vmem:[#allocation4 + $0x78] sm:$0xf0]  ;;  %v6402_v39 = vor.u32 %v7843_v59, %v6401_v58  ;;  %v7842_v40 = vld [vmem:[#allocation4 + $0xf4] sm:$0xf]  ;;  %v7841_v21 = vld [vmem:[#allocation4 + $0xe4] sm:$0xf0] }
 0x29c   :  { %v1080_v55 = vsel %vm1048_vm3, %v1032_v50, %v1064_v45  ;;  %v1081_v52 = vsel %vm1049_vm4, %v1033_v6, %v1065_v42  ;;  %v6193_v50 = vld [vmem:[#allocation4 + $0x150] sm:$0xf]  ;;  %v7857_v6 = vld [vmem:[#allocation4 + $0x154] sm:$0xf0]  ;;  %v6206_v45 = vor.u32 %v7858_v41, %v6203_v24  ;;  %v6270_v42 = vor.u32 %v7874_v46, %v6267_v32  ;;  %v6403_v2 = vld [vmem:[#allocation4 + $0xf8] sm:$0xf0] }
 0x29d   :  { %v8882_v56 = vpack.c.bf16 %v1080_v55, %v1078_v60  ;;  %v8884_v57 = vpack.c.bf16 %v1081_v52, %v1079_v51  ;;  %v6194_v60 = vor.u32 %v7857_v6, %v6193_v50  ;;  %v6258_v51 = vor.u32 %v7873_v7, %v6257_v48  ;;  %v7872_v55 = vld [vmem:[#allocation4 + $0x1d4] sm:$0xf]  ;;  %v6259_v52 = vld [vmem:[#allocation4 + $0x1d8] sm:$0xf0]  ;;  %v6161_v41 = vld [vmem:[#allocation4 + $0x110] sm:$0xf] }
 0x29e   :  { %v6262_v9 = vor.u32 %v7872_v55, %v6259_v52  ;;  %v7849_v24 = vld [vmem:[#allocation4 + $0x114] sm:$0xf0]  ;;  %v6174_v46 = vor.u32 %v7850_v54, %v6171_v62  ;;  %v7848_v50 = vld [vmem:[#allocation4 + $0x114] sm:$0xf]  ;;  %v6163_v6 = vld [vmem:[#allocation4 + $0x118] sm:$0xf0] }
 0x29f   :  { %1114 = vmatpush.bf16.msrb.mxu2 %v8882_v56  ;;  %1133 = vmatpush.bf16.msrb.mxu3 %v8884_v57  ;;  %v7864_v48 = vld [vmem:[#allocation4 + $0x194] sm:$0xf]  ;;  %v6162_v7 = vor.u32 %v7849_v24, %v6161_v41  ;;  %v6337_v55 = vld [vmem:[#allocation4 + $0x70] sm:$0xf]  ;;  %v7827_v52 = vld [vmem:[#allocation4 + $0x74] sm:$0xf0]  ;;  %v6166_v61 = vor.u32 %v7848_v50, %v6163_v6 }
 0x2a0   :  { %1209 = vmatpush.bf16.msrb.mxu0 %v8882_v56  ;;  %1228 = vmatpush.bf16.msrb.mxu1 %v8884_v57  ;;  %v6338_v38 = vor.u32 %v7827_v52, %v6337_v55  ;;  %v6331_v36 = vld [vmem:[#allocation4 + $0x68] sm:$0xf0]  ;;  %v6385_v54 = vld [vmem:[#allocation4 + $0xd0] sm:$0xf]  ;;  %v7839_v62 = vld [vmem:[#allocation4 + $0xd4] sm:$0xf0] }
 0x2a1   :  { %v6386_v24 = vor.u32 %v7839_v62, %v6385_v54  ;;  %v6377_v50 = vld [vmem:[#allocation4 + $0xc0] sm:$0xf]  ;;  %v7837_v6 = vld [vmem:[#allocation4 + $0xc4] sm:$0xf0]  ;;  %v6305_v55 = vld [vmem:[#allocation4 + $0x30] sm:$0xf] }
 0x2a2   :  { %v6378_v49 = vor.u32 %v7837_v6, %v6377_v50  ;;  %v7819_v52 = vld [vmem:[#allocation4 + $0x34] sm:$0xf0]  ;;  %v6369_v58 = vld [vmem:[#allocation4 + $0xb0] sm:$0xf]  ;;  %v7830_v54 = vld [vmem:[#allocation4 + $0x94] sm:$0xf] }
 0x2a3   :  { %1115 = vmatpush.bf16.msrb.mxu2 %v8890_v14  ;;  %1134 = vmatpush.bf16.msrb.mxu3 %v8892_v19  ;;  %v7835_v59 = vld [vmem:[#allocation4 + $0xb4] sm:$0xf0]  ;;  %v7828_v50 = vld [vmem:[#allocation4 + $0x84] sm:$0xf] }
 0x2a4   :  { %1210 = vmatpush.bf16.msrb.mxu0 %v8890_v14  ;;  %1229 = vmatpush.bf16.msrb.mxu1 %v8892_v19 }
 0x2a7   :  { %1116 = vmatpush.bf16.msrb.mxu2 %v8908_v3  ;;  %1135 = vmatpush.bf16.msrb.mxu3 %v8910_v4 }
 0x2a8   :  { %1211 = vmatpush.bf16.msrb.mxu0 %v8908_v3  ;;  %1230 = vmatpush.bf16.msrb.mxu1 %v8910_v4 }
 0x2ab   :  { %1117 = vmatpush.bf16.msrb.mxu2 %v8923_v22  ;;  %1136 = vmatpush.bf16.msrb.mxu3 %v8925_v18 }
 0x2ac   :  { %1212 = vmatpush.bf16.msrb.mxu0 %v8923_v22  ;;  %1231 = vmatpush.bf16.msrb.mxu1 %v8925_v18 }
 0x2ae   :  { %6131 = vmatmul.msk.bf16.vlgmr.msrb.gmra.mxu2 %vm451_vm0, %v7810_v12  ;;  %6133 = vmatmul.msk.bf16.vlgmr.msrb.gmra.mxu3 %vm451_vm0, %v7810_v12  ;;  %v6243_v12 = vld [vmem:[#allocation4 + $0x1b8] sm:$0xf0] }
 0x2af   :  { %1440 = vmatpush.bf16.msra.mxu2 %v6210_v17  ;;  %1459 = vmatpush.bf16.msra.mxu3 %v6274_v1  ;;  %v6233_v17 = vld [vmem:[#allocation4 + $0x1a0] sm:$0xf]  ;;  %v7867_v1 = vld [vmem:[#allocation4 + $0x1a4] sm:$0xf0]  ;;  %v6246_v44 = vor.u32 %v7868_v31, %v6243_v12  ;;  %v6406_v31 = vor.u32 %v7842_v40, %v6403_v2  ;;  %v7824_v12 = vld [vmem:[#allocation4 + $0x64] sm:$0xf] }
 0x2b0   :  { %6147 = vmatmul.msk.bf16.vlgmr.msrb.gmra.mxu0 %vm451_vm0, %v7844_v29  ;;  %6149 = vmatmul.msk.bf16.vlgmr.msrb.gmra.mxu1 %vm451_vm0, %v7844_v29  ;;  %v6234_v29 = vor.u32 %v7867_v1, %v6233_v17  ;;  %v7840_v1 = vld [vmem:[#allocation4 + $0xe4] sm:$0xf]  ;;  %v6361_v2 = vld [vmem:[#allocation4 + $0xa0] sm:$0xf] }
 0x2b1   :  { %1478 = vmatpush.bf16.msra.mxu0 %v6214_v37  ;;  %1497 = vmatpush.bf16.msra.mxu1 %v6278_v5  ;;  %v7866_v37 = vld [vmem:[#allocation4 + $0x1a4] sm:$0xf]  ;;  %v6235_v5 = vld [vmem:[#allocation4 + $0x1a8] sm:$0xf0] }
 0x2b2   :  { %v6238_v32 = vor.u32 %v7866_v37, %v6235_v5  ;;  %v7822_v37 = vld [vmem:[#allocation4 + $0x54] sm:$0xf]  ;;  %v6323_v5 = vld [vmem:[#allocation4 + $0x58] sm:$0xf0] }
 0x2b3   :  { %1441 = vmatpush.bf16.msra.mxu2 %v6202_v25  ;;  %1460 = vmatpush.bf16.msra.mxu3 %v6266_v30  ;;  %v6225_v25 = vld [vmem:[#allocation4 + $0x190] sm:$0xf]  ;;  %v7865_v30 = vld [vmem:[#allocation4 + $0x194] sm:$0xf0] }
 0x2b5   :  { %1479 = vmatpush.bf16.msra.mxu0 %v6206_v45  ;;  %1498 = vmatpush.bf16.msra.mxu1 %v6270_v42  ;;  %v6226_v45 = vor.u32 %v7865_v30, %v6225_v25  ;;  %v6227_v42 = vld [vmem:[#allocation4 + $0x198] sm:$0xf0]  ;;  %v7838_v25 = vld [vmem:[#allocation4 + $0xd4] sm:$0xf] }
 0x2b6   :  { %v6230_v63 = vor.u32 %v7864_v48, %v6227_v42  ;;  %v6387_v30 = vld [vmem:[#allocation4 + $0xd8] sm:$0xf0]  ;;  %v6326_v48 = vor.u32 %v7822_v37, %v6323_v5  ;;  %v6315_v42 = vld [vmem:[#allocation4 + $0x48] sm:$0xf0]  ;;  %v7813_v37 = vld [vmem:[#allocation4 + $0x4] sm:$0xf0] }
 0x2b7   :  { %1442 = vmatpush.bf16.msra.mxu2 %v6194_v60  ;;  %1461 = vmatpush.bf16.msra.mxu3 %v6258_v51  ;;  %v6217_v60 = vld [vmem:[#allocation4 + $0x180] sm:$0xf]  ;;  %v7863_v51 = vld [vmem:[#allocation4 + $0x184] sm:$0xf0] }
 0x2b9   :  { %1480 = vmatpush.bf16.msra.mxu0 %v6198_v8  ;;  %1499 = vmatpush.bf16.msra.mxu1 %v6262_v9  ;;  %v7846_v8 = vld [vmem:[#allocation4 + $0x104] sm:$0xf]  ;;  %v6155_v9 = vld [vmem:[#allocation4 + $0x108] sm:$0xf0] }
 0x2ba   :  { %v6158_v26 = vor.u32 %v7846_v8, %v6155_v9  ;;  %v6306_v8 = vor.u32 %v7819_v52, %v6305_v55  ;;  %v6370_v9 = vor.u32 %v7835_v59, %v6369_v58 }
 0x2bb   :  { %1443 = vmatpush.bf16.msra.mxu2 %v6186_v33  ;;  %1462 = vmatpush.bf16.msra.mxu3 %v6250_v20  ;;  %v6218_v33 = vor.u32 %v7863_v51, %v6217_v60  ;;  %v6219_v20 = vld [vmem:[#allocation4 + $0x188] sm:$0xf0]  ;;  %v7836_v60 = vld [vmem:[#allocation4 + $0xc4] sm:$0xf] }
 0x2bc   :  { %v6379_v51 = vld [vmem:[#allocation4 + $0xc8] sm:$0xf0] }
 0x2bd   :  { %1481 = vmatpush.bf16.msra.mxu0 %v6190_v16  ;;  %1500 = vmatpush.bf16.msra.mxu1 %v6254_v35  ;;  %v7825_v16 = vld [vmem:[#allocation4 + $0x64] sm:$0xf0]  ;;  %v6393_v35 = vld [vmem:[#allocation4 + $0xe0] sm:$0xf] }
 0x2be   :  { %6132 = vmatmul.msk.bf16.gmra.mxu2 %vm451_vm0, %v7811_v11  ;;  %6134 = vmatmul.msk.bf16.gmra.mxu3 %vm451_vm0, %v7811_v11  ;;  %v6329_v11 = vld [vmem:[#allocation4 + $0x60] sm:$0xf]  ;;  %v6394_v17 = vor.u32 %v7841_v21, %v6393_v35  ;;  %v6299_v21 = vld [vmem:[#allocation4 + $0x28] sm:$0xf0] }
 0x2bf   :  { %1444 = vmatpush.bf16.msra.mxu2 %v6178_v43  ;;  %1463 = vmatpush.bf16.msra.mxu3 %v6242_v15  ;;  %v6222_v43 = vor.u32 %v7862_v10, %v6219_v20  ;;  %v6342_v15 = vor.u32 %v7826_v23, %v6339_v28  ;;  %v6330_v34 = vor.u32 %v7825_v16, %v6329_v11  ;;  %v7818_v10 = vld [vmem:[#allocation4 + $0x34] sm:$0xf]  ;;  %v6371_v23 = vld [vmem:[#allocation4 + $0xb8] sm:$0xf0]  ;;  %v6297_v28 = vld [vmem:[#allocation4 + $0x20] sm:$0xf] }
 0x2c0   :  { %6148 = vmatmul.msk.bf16.gmra.mxu0 %vm451_vm0, %v7845_v0  ;;  %6150 = vmatmul.msk.bf16.gmra.mxu1 %vm451_vm0, %v7845_v0  ;;  %v6395_v0 = vld [vmem:[#allocation4 + $0xe8] sm:$0xf0]  ;;  %v7833_v11 = vld [vmem:[#allocation4 + $0xa4] sm:$0xf0]  ;;  %v7816_v16 = vld [vmem:[#allocation4 + $0x24] sm:$0xf] }
 0x2c1   :  { %1482 = vmatpush.bf16.msra.mxu0 %v6182_v53  ;;  %1501 = vmatpush.bf16.msra.mxu1 %v6246_v44  ;;  %v6321_v53 = vld [vmem:[#allocation4 + $0x50] sm:$0xf]  ;;  %v7823_v44 = vld [vmem:[#allocation4 + $0x54] sm:$0xf0]  ;;  %v6362_v35 = vor.u32 %v7833_v11, %v6361_v2 }
 0x2c2   :  { %v6322_v41 = vor.u32 %v7823_v44, %v6321_v53  ;;  %v7814_v53 = vld [vmem:[#allocation4 + $0x14] sm:$0xf]  ;;  %v6291_v44 = vld [vmem:[#allocation4 + $0x18] sm:$0xf0] }
 0x2c3   :  { %1445 = vmatpush.bf16.msra.mxu2 %v6170_v27  ;;  %1464 = vmatpush.bf16.msra.mxu3 %v6234_v29  ;;  %v6334_v27 = vor.u32 %v7824_v12, %v6331_v36  ;;  %v6398_v29 = vor.u32 %v7840_v1, %v6395_v0  ;;  %v6289_v12 = vld [vmem:[#allocation4 + $0x10] sm:$0xf]  ;;  %v7815_v36 = vld [vmem:[#allocation4 + $0x14] sm:$0xf0]  ;;  %v6294_v62 = vor.u32 %v7814_v53, %v6291_v44 }
 0x2c4   :  { %v7831_v1 = vld [vmem:[#allocation4 + $0x94] sm:$0xf0] }
 0x2c5   :  { %1483 = vmatpush.bf16.msra.mxu0 %v6174_v46  ;;  %1502 = vmatpush.bf16.msra.mxu1 %v6238_v32  ;;  %v6313_v46 = vld [vmem:[#allocation4 + $0x40] sm:$0xf]  ;;  %v7821_v32 = vld [vmem:[#allocation4 + $0x44] sm:$0xf0] }
 0x2c6   :  { %v6314_v47 = vor.u32 %v7821_v32, %v6313_v46  ;;  %v7812_v46 = vld [vmem:[#allocation4 + $0x4] sm:$0xf]  ;;  %v6283_v32 = vld [vmem:[#allocation4 + $0x8] sm:$0xf0] }
 0x2c7   :  { %1446 = vmatpush.bf16.msra.mxu2 %v6162_v7  ;;  %1465 = vmatpush.bf16.msra.mxu3 %v6226_v45  ;;  %v6390_v7 = vor.u32 %v7838_v25, %v6387_v30  ;;  %v7820_v45 = vld [vmem:[#allocation4 + $0x44] sm:$0xf]  ;;  %v7829_v25 = vld [vmem:[#allocation4 + $0x84] sm:$0xf0]  ;;  %v6286_v6 = vor.u32 %v7812_v46, %v6283_v32  ;;  %v6433_v46 = vld [vmem:[#allocation4 + $0x210] sm:$0xf] }
 0x2c8   :  { %v7883_v32 = vld [vmem:[#allocation4 + $0x214] sm:$0xf0] }
 0x2c9   :  { %1484 = vmatpush.bf16.msra.mxu0 %v6166_v61  ;;  %1503 = vmatpush.bf16.msra.mxu1 %v6230_v63  ;;  %v6318_v61 = vor.u32 %v7820_v45, %v6315_v42  ;;  %v6382_v63 = vor.u32 %v7836_v60, %v6379_v51  ;;  %v6545_v60 = vld [vmem:[#allocation4 + $0x2f0] sm:$0xf]  ;;  %v7911_v51 = vld [vmem:[#allocation4 + $0x2f4] sm:$0xf0] }
 0x2cb   :  { %1447 = vmatpush.bf16.msra.mxu2 %v6154_v13  ;;  %1466 = vmatpush.bf16.msra.mxu3 %v6218_v33  ;;  %v6307_v13 = vld [vmem:[#allocation4 + $0x38] sm:$0xf0]  ;;  %v7834_v33 = vld [vmem:[#allocation4 + $0xb4] sm:$0xf] }
 0x2cc   :  { %v6310_v20 = vor.u32 %v7818_v10, %v6307_v13  ;;  %v6537_v10 = vld [vmem:[#allocation4 + $0x2e0] sm:$0xf]  ;;  %v7909_v13 = vld [vmem:[#allocation4 + $0x2e4] sm:$0xf0] }
 0x2cd   :  { %1485 = vmatpush.bf16.msra.mxu0 %v6158_v26  ;;  %1504 = vmatpush.bf16.msra.mxu1 %v6222_v43  ;;  %v7832_v26 = vld [vmem:[#allocation4 + $0xa4] sm:$0xf]  ;;  %v6363_v43 = vld [vmem:[#allocation4 + $0xa8] sm:$0xf0] }
 0x2cf   :  { %1676 = vmatpush.bf16.msrb.mxu2 %v6338_v38  ;;  %1695 = vmatpush.bf16.msrb.mxu3 %v6402_v39  ;;  %v7817_v38 = vld [vmem:[#allocation4 + $0x24] sm:$0xf0]  ;;  %v6374_v39 = vor.u32 %v7834_v33, %v6371_v23  ;;  %v6465_v23 = vld [vmem:[#allocation4 + $0x250] sm:$0xf] }
 0x2d0   :  { %v6298_v40 = vor.u32 %v7817_v38, %v6297_v28  ;;  %v7891_v28 = vld [vmem:[#allocation4 + $0x254] sm:$0xf0]  ;;  %v6529_v38 = vld [vmem:[#allocation4 + $0x2d0] sm:$0xf] }
 0x2d1   :  { %1714 = vmatpush.bf16.msrb.mxu0 %v6342_v15  ;;  %1733 = vmatpush.bf16.msrb.mxu1 %v6406_v31  ;;  %v6302_v15 = vor.u32 %v7816_v16, %v6299_v21  ;;  %v6366_v31 = vor.u32 %v7832_v26, %v6363_v43  ;;  %v6466_v11 = vor.u32 %v7891_v28, %v6465_v23  ;;  %v7889_v21 = vld [vmem:[#allocation4 + $0x244] sm:$0xf0]  ;;  %v6521_v26 = vld [vmem:[#allocation4 + $0x2c0] sm:$0xf] }
 0x2d2   :  { %v7905_v43 = vld [vmem:[#allocation4 + $0x2c4] sm:$0xf0] }
 0x2d3   :  { %1677 = vmatpush.bf16.msrb.mxu2 %v6330_v34  ;;  %1696 = vmatpush.bf16.msrb.mxu3 %v6394_v17  ;;  %v6353_v34 = vld [vmem:[#allocation4 + $0x90] sm:$0xf]  ;;  %v6290_v17 = vor.u32 %v7815_v36, %v6289_v12  ;;  %v7887_v36 = vld [vmem:[#allocation4 + $0x234] sm:$0xf0] }
 0x2d4   :  { %v6354_v0 = vor.u32 %v7831_v1, %v6353_v34  ;;  %v6449_v12 = vld [vmem:[#allocation4 + $0x230] sm:$0xf] }
 0x2d5   :  { %1715 = vmatpush.bf16.msrb.mxu0 %v6334_v27  ;;  %1734 = vmatpush.bf16.msrb.mxu1 %v6398_v29  ;;  %v6355_v27 = vld [vmem:[#allocation4 + $0x98] sm:$0xf0]  ;;  %v6281_v29 = vld [vmem:[#allocation4] sm:$0xf]  ;;  %v6513_v34 = vld [vmem:[#allocation4 + $0x2b0] sm:$0xf] }
 0x2d6   :  { %v6358_v5 = vor.u32 %v7830_v54, %v6355_v27  ;;  %v6450_v27 = vor.u32 %v7887_v36, %v6449_v12  ;;  %v6539_v12 = vld [vmem:[#allocation4 + $0x2e8] sm:$0xf0] }
 0x2d7   :  { %1678 = vmatpush.bf16.msrb.mxu2 %v6322_v41  ;;  %1697 = vmatpush.bf16.msrb.mxu3 %v6386_v24  ;;  %v6282_v41 = vor.u32 %v7813_v37, %v6281_v29  ;;  %v6345_v24 = vld [vmem:[#allocation4 + $0x80] sm:$0xf] }
 0x2d8   :  { %v6346_v30 = vor.u32 %v7829_v25, %v6345_v24  ;;  %v6441_v37 = vld [vmem:[#allocation4 + $0x220] sm:$0xf]  ;;  %v7901_v24 = vld [vmem:[#allocation4 + $0x2a4] sm:$0xf0] }
 0x2d9   :  { %1716 = vmatpush.bf16.msrb.mxu0 %v6326_v48  ;;  %1735 = vmatpush.bf16.msrb.mxu1 %v6390_v7  ;;  %v6347_v48 = vld [vmem:[#allocation4 + $0x88] sm:$0xf0] }
 0x2da   :  { %v6350_v7 = vor.u32 %v7828_v50, %v6347_v48  ;;  %v6497_v50 = vld [vmem:[#allocation4 + $0x290] sm:$0xf]  ;;  %v6434_v48 = vor.u32 %v7883_v32, %v6433_v46 }
 0x2db   :  { %1679 = vmatpush.bf16.msrb.mxu2 %v6314_v47  ;;  %1698 = vmatpush.bf16.msrb.mxu3 %v6378_v49  ;;  %v6481_v47 = vld [vmem:[#allocation4 + $0x270] sm:$0xf]  ;;  %v7895_v49 = vld [vmem:[#allocation4 + $0x274] sm:$0xf0] }
 0x2dd   :  { %1717 = vmatpush.bf16.msrb.mxu0 %v6318_v61  ;;  %1736 = vmatpush.bf16.msrb.mxu1 %v6382_v63  ;;  %v6482_v61 = vor.u32 %v7895_v49, %v6481_v47  ;;  %v6546_v63 = vor.u32 %v7911_v51, %v6545_v60  ;;  %v6425_v47 = vld [vmem:[#allocation4 + $0x200] sm:$0xf]  ;;  %v7881_v49 = vld [vmem:[#allocation4 + $0x204] sm:$0xf0] }
 0x2de   :  { %v6489_v60 = vld [vmem:[#allocation4 + $0x280] sm:$0xf]  ;;  %v7897_v51 = vld [vmem:[#allocation4 + $0x284] sm:$0xf0] }
 0x2df   :  { %1680 = vmatpush.bf16.msrb.mxu2 %v6306_v8  ;;  %1699 = vmatpush.bf16.msrb.mxu3 %v6370_v9  ;;  %v6473_v8 = vld [vmem:[#allocation4 + $0x260] sm:$0xf]  ;;  %v7893_v9 = vld [vmem:[#allocation4 + $0x264] sm:$0xf0] }
 0x2e0   :  { %v6474_v33 = vor.u32 %v7893_v9, %v6473_v8 }
 0x2e1   :  { %1718 = vmatpush.bf16.msrb.mxu0 %v6310_v20  ;;  %1737 = vmatpush.bf16.msrb.mxu1 %v6374_v39  ;;  %v6538_v20 = vor.u32 %v7909_v13, %v6537_v10  ;;  %v7907_v39 = vld [vmem:[#allocation4 + $0x2d4] sm:$0xf0] }
 0x2e2   :  { %v6530_v16 = vor.u32 %v7907_v39, %v6529_v38  ;;  %v7894_v38 = vld [vmem:[#allocation4 + $0x274] sm:$0xf]  ;;  %v6483_v39 = vld [vmem:[#allocation4 + $0x278] sm:$0xf0] }
 0x2e3   :  { %1681 = vmatpush.bf16.msrb.mxu2 %v6298_v40  ;;  %1700 = vmatpush.bf16.msrb.mxu3 %v6362_v35  ;;  %v6457_v35 = vld [vmem:[#allocation4 + $0x240] sm:$0xf] }
 0x2e5   :  { %1719 = vmatpush.bf16.msrb.mxu0 %v6302_v15  ;;  %1738 = vmatpush.bf16.msrb.mxu1 %v6366_v31  ;;  %v6458_v15 = vor.u32 %v7889_v21, %v6457_v35  ;;  %v6522_v31 = vor.u32 %v7905_v43, %v6521_v26  ;;  %v7892_v35 = vld [vmem:[#allocation4 + $0x264] sm:$0xf]  ;;  %v6475_v21 = vld [vmem:[#allocation4 + $0x268] sm:$0xf0] }
 0x2e6   :  { %v7908_v26 = vld [vmem:[#allocation4 + $0x2e4] sm:$0xf] }
 0x2e7   :  { %1682 = vmatpush.bf16.msrb.mxu2 %v6290_v17  ;;  %1701 = vmatpush.bf16.msrb.mxu3 %v6354_v0  ;;  %v7903_v17 = vld [vmem:[#allocation4 + $0x2b4] sm:$0xf0]  ;;  %v6542_v36 = vor.u32 %v7908_v26, %v6539_v12  ;;  %v6491_v26 = vld [vmem:[#allocation4 + $0x288] sm:$0xf0] }
 0x2e8   :  { %v6514_v29 = vor.u32 %v7903_v17, %v6513_v34 }
 0x2e9   :  { %1720 = vmatpush.bf16.msrb.mxu0 %v6294_v62  ;;  %1739 = vmatpush.bf16.msrb.mxu1 %v6358_v5  ;;  %v7885_v5 = vld [vmem:[#allocation4 + $0x224] sm:$0xf0] }
 0x2ea   :  { %v6442_v25 = vor.u32 %v7885_v5, %v6441_v37  ;;  %v7904_v37 = vld [vmem:[#allocation4 + $0x2c4] sm:$0xf] }
 0x2eb   :  { %1683 = vmatpush.bf16.msrb.mxu2 %v6282_v41  ;;  %1702 = vmatpush.bf16.msrb.mxu3 %v6346_v30  ;;  %v6505_v41 = vld [vmem:[#allocation4 + $0x2a0] sm:$0xf] }
 0x2ec   :  { %v6506_v30 = vor.u32 %v7901_v24, %v6505_v41 }
 0x2ed   :  { %1721 = vmatpush.bf16.msrb.mxu0 %v6286_v6  ;;  %1740 = vmatpush.bf16.msrb.mxu1 %v6350_v7  ;;  %v7899_v6 = vld [vmem:[#allocation4 + $0x294] sm:$0xf0] }
 0x2ee   :  { %v6498_v7 = vor.u32 %v7899_v6, %v6497_v50  ;;  %v7886_v6 = vld [vmem:[#allocation4 + $0x234] sm:$0xf] }
 0x32d   :  { %v1214_v45 = vpop.f32.mrf.mxu0  ;;  %v1233_v42 = vpop.f32.mrf.mxu1 }
 0x331   :  { %v1119_v1 = vpop.f32.mrf.mxu2  ;;  %v1138_v0 = vpop.f32.mrf.mxu3 }
 0x335   :  { %v1216_v55 = vpop.f32.mrf.mxu0  ;;  %v1235_v52 = vpop.f32.mrf.mxu1 }
 0x336   :  { %v1243_v58 = vpack.c.bf16 %v1216_v55, %v1214_v45  ;;  %v1244_v59 = vpack.c.bf16 %v1235_v52, %v1233_v42  ;;  %v6426_v55 = vor.u32 %v7881_v49, %v6425_v47  ;;  %v6490_v52 = vor.u32 %v7897_v51, %v6489_v60  ;;  %v6515_v47 = vld [vmem:[#allocation4 + $0x2b8] sm:$0xf0] }
 0x338   :  { %1448 = vmatmul.bf16.vlgmr.msra.gmra.mxu2 %v1243_v58  ;;  %1467 = vmatmul.bf16.vlgmr.msra.gmra.mxu3 %v1244_v59 }
 0x339   :  { %1486 = vmatmul.bf16.vlgmr.msra.gmra.mxu0 %v1243_v58  ;;  %1505 = vmatmul.bf16.vlgmr.msra.gmra.mxu1 %v1244_v59  ;;  %v1121_v45 = vpop.f32.mrf.mxu2  ;;  %v1140_v42 = vpop.f32.mrf.mxu3 }
 0x33a   :  { %1777 = vmatpush.bf16.msra.mxu2 %v8882_v56  ;;  %1796 = vmatpush.bf16.msra.mxu3 %v8884_v57  ;;  %v1148_v58 = vpack.c.bf16 %v1121_v45, %v1119_v1  ;;  %v1149_v59 = vpack.c.bf16 %v1140_v42, %v1138_v0  ;;  %v7890_v1 = vld [vmem:[#allocation4 + $0x254] sm:$0xf]  ;;  %v6467_v0 = vld [vmem:[#allocation4 + $0x258] sm:$0xf0] }
 0x33b   :  { %2008 = vmatpush.bf16.msra.mxu0 %v6482_v61  ;;  %2027 = vmatpush.bf16.msra.mxu1 %v6546_v63 }
 0x33d   :  { %v1219_v40 = vpop.f32.mrf.mxu0  ;;  %v1238_v2 = vpop.f32.mrf.mxu1 }
 0x33e   :  { %1778 = vmatpush.bf16.msra.mxu2 %v8890_v14  ;;  %1797 = vmatpush.bf16.msra.mxu3 %v8892_v19 }
 0x33f   :  { %2009 = vmatpush.bf16.msra.mxu0 %v6474_v33  ;;  %2028 = vmatpush.bf16.msra.mxu1 %v6538_v20 }
 0x341   :  { %v1124_v61 = vpop.f32.mrf.mxu2  ;;  %v1143_v63 = vpop.f32.mrf.mxu3 }
 0x342   :  { %1779 = vmatpush.bf16.msra.mxu2 %v8908_v3  ;;  %1798 = vmatpush.bf16.msra.mxu3 %v8910_v4 }
 0x343   :  { %2010 = vmatpush.bf16.msra.mxu0 %v6466_v11  ;;  %2029 = vmatpush.bf16.msra.mxu1 %v6530_v16  ;;  %v6547_v11 = vld [vmem:[#allocation4 + $0x2f8] sm:$0xf0] }
 0x345   :  { %v1221_v53 = vpop.f32.mrf.mxu0  ;;  %v1240_v44 = vpop.f32.mrf.mxu1 }
 0x346   :  { %1780 = vmatpush.bf16.msra.mxu2 %v8923_v22  ;;  %1799 = vmatpush.bf16.msra.mxu3 %v8925_v18  ;;  %v1245_v54 = vpack.c.bf16 %v1221_v53, %v1219_v40  ;;  %v1246_v62 = vpack.c.bf16 %v1240_v44, %v1238_v2  ;;  %v7910_v40 = vld [vmem:[#allocation4 + $0x2f4] sm:$0xf]  ;;  %v6486_v2 = vor.u32 %v7894_v38, %v6483_v39 }
 0x347   :  { %2011 = vmatpush.bf16.msra.mxu0 %v6458_v15  ;;  %2030 = vmatpush.bf16.msra.mxu1 %v6522_v31  ;;  %v6550_v16 = vor.u32 %v7910_v40, %v6547_v11  ;;  %v6478_v31 = vor.u32 %v7892_v35, %v6475_v21  ;;  %v7906_v53 = vld [vmem:[#allocation4 + $0x2d4] sm:$0xf]  ;;  %v6470_v44 = vor.u32 %v7890_v1, %v6467_v0  ;;  %v7880_v40 = vld [vmem:[#allocation4 + $0x204] sm:$0xf] }
 0x348   :  { %1453 = vmatmul.bf16.gmra.mxu2 %v1245_v54  ;;  %1472 = vmatmul.bf16.gmra.mxu3 %v1246_v62  ;;  %v7896_v11 = vld [vmem:[#allocation4 + $0x284] sm:$0xf] }
 0x349   :  { %1491 = vmatmul.bf16.gmra.mxu0 %v1245_v54  ;;  %1510 = vmatmul.bf16.gmra.mxu1 %v1246_v62  ;;  %v1126_v8 = vpop.f32.mrf.mxu2  ;;  %v1145_v9 = vpop.f32.mrf.mxu3  ;;  %v6531_v54 = vld [vmem:[#allocation4 + $0x2d8] sm:$0xf0] }
 0x34a   :  { %v1150_v10 = vpack.c.bf16 %v1126_v8, %v1124_v61  ;;  %v1151_v13 = vpack.c.bf16 %v1145_v9, %v1143_v63  ;;  %v6534_v62 = vor.u32 %v7906_v53, %v6531_v54  ;;  %v6507_v8 = vld [vmem:[#allocation4 + $0x2a8] sm:$0xf0]  ;;  %v7882_v9 = vld [vmem:[#allocation4 + $0x214] sm:$0xf] }
 0x34b   :  { %2012 = vmatpush.bf16.msra.mxu0 %v6450_v27  ;;  %2031 = vmatpush.bf16.msra.mxu1 %v6514_v29  ;;  %v7888_v27 = vld [vmem:[#allocation4 + $0x244] sm:$0xf]  ;;  %v6459_v29 = vld [vmem:[#allocation4 + $0x248] sm:$0xf0] }
 0x34c   :  { %v6462_v24 = vor.u32 %v7888_v27, %v6459_v29 }
 0x34f   :  { %2013 = vmatpush.bf16.msra.mxu0 %v6442_v25  ;;  %2032 = vmatpush.bf16.msra.mxu1 %v6506_v30  ;;  %v6523_v25 = vld [vmem:[#allocation4 + $0x2c8] sm:$0xf0] }
 0x350   :  { %v6526_v30 = vor.u32 %v7904_v37, %v6523_v25 }
 0x353   :  { %2014 = vmatpush.bf16.msra.mxu0 %v6434_v48  ;;  %2033 = vmatpush.bf16.msra.mxu1 %v6498_v7  ;;  %v6451_v48 = vld [vmem:[#allocation4 + $0x238] sm:$0xf0]  ;;  %v7902_v7 = vld [vmem:[#allocation4 + $0x2b4] sm:$0xf] }
 0x354   :  { %v6454_v42 = vor.u32 %v7886_v6, %v6451_v48  ;;  %v6518_v49 = vor.u32 %v7902_v7, %v6515_v47  ;;  %v6625_v47 = vld [vmem:[#allocation4 + $0x370] sm:$0xf] }
 0x357   :  { %2015 = vmatpush.bf16.msra.mxu0 %v6426_v55  ;;  %2034 = vmatpush.bf16.msra.mxu1 %v6490_v52  ;;  %v7884_v55 = vld [vmem:[#allocation4 + $0x224] sm:$0xf]  ;;  %v6443_v52 = vld [vmem:[#allocation4 + $0x228] sm:$0xf0] }
 0x358   :  { %1684 = vmatmul.bf16.vlgmr.msrb.gmra.mxu2 %v1148_v58  ;;  %1703 = vmatmul.bf16.vlgmr.msrb.gmra.mxu3 %v1149_v59  ;;  %v6446_v63 = vor.u32 %v7884_v55, %v6443_v52  ;;  %v7945_v52 = vld [vmem:[#allocation4 + $0x3f4] sm:$0xf0] }
 0x359   :  { %1722 = vmatmul.bf16.vlgmr.msrb.gmra.mxu0 %v1148_v58  ;;  %1741 = vmatmul.bf16.vlgmr.msrb.gmra.mxu1 %v1149_v59  ;;  %v7900_v58 = vld [vmem:[#allocation4 + $0x2a4] sm:$0xf] }
 0x35a   :  { %2046 = vmatpush.bf16.msrb.mxu2 %v6486_v2  ;;  %2065 = vmatpush.bf16.msrb.mxu3 %v6550_v16  ;;  %v6427_v2 = vld [vmem:[#allocation4 + $0x208] sm:$0xf0] }
 0x35b   :  { %2117 = vmatpush.bf16.msrb.mxu0 %v8882_v56  ;;  %2136 = vmatpush.bf16.msrb.mxu1 %v8884_v57  ;;  %v7878_v56 = vld [vmem:[%s10094_s3 + $0x20] sm:$0xff]  ;;  %v7879_v57 = vld [vmem:[%s10094_s3 + $0x28] sm:$0xff]  ;;  %v6430_v21 = vor.u32 %v7880_v40, %v6427_v2 }
 0x35c   :  { %v6619_v40 = vld [vmem:[#allocation4 + $0x368] sm:$0xf0] }
 0x35e   :  { %2047 = vmatpush.bf16.msrb.mxu2 %v6478_v31  ;;  %2066 = vmatpush.bf16.msrb.mxu3 %v6542_v36  ;;  %v6494_v31 = vor.u32 %v7896_v11, %v6491_v26  ;;  %v6683_v26 = vld [vmem:[#allocation4 + $0x3e8] sm:$0xf0] }
 0x35f   :  { %2118 = vmatpush.bf16.msrb.mxu0 %v8890_v14  ;;  %2137 = vmatpush.bf16.msrb.mxu1 %v8892_v19 }
 0x362   :  { %2048 = vmatpush.bf16.msrb.mxu2 %v6470_v44  ;;  %2067 = vmatpush.bf16.msrb.mxu3 %v6534_v62 }
 0x363   :  { %2119 = vmatpush.bf16.msrb.mxu0 %v8908_v3  ;;  %2138 = vmatpush.bf16.msrb.mxu1 %v8910_v4 }
 0x366   :  { %2049 = vmatpush.bf16.msrb.mxu2 %v6462_v24  ;;  %2068 = vmatpush.bf16.msrb.mxu3 %v6526_v30 }
 0x367   :  { %2120 = vmatpush.bf16.msrb.mxu0 %v8923_v22  ;;  %2139 = vmatpush.bf16.msrb.mxu1 %v8925_v18 }
 0x368   :  { %1689 = vmatmul.bf16.gmra.mxu2 %v1150_v10  ;;  %1708 = vmatmul.bf16.gmra.mxu3 %v1151_v13 }
 0x369   :  { %1727 = vmatmul.bf16.gmra.mxu0 %v1150_v10  ;;  %1746 = vmatmul.bf16.gmra.mxu1 %v1151_v13  ;;  %v6435_v10 = vld [vmem:[#allocation4 + $0x218] sm:$0xf0] }
 0x36a   :  { %2050 = vmatpush.bf16.msrb.mxu2 %v6454_v42  ;;  %2069 = vmatpush.bf16.msrb.mxu3 %v6518_v49  ;;  %v7913_v42 = vld [vmem:[%s10094_s3 + $0x38] sm:$0xff] }
 0x36b   :  { %v7929_v49 = vld [vmem:[#allocation4 + $0x374] sm:$0xf0] }
 0x36c   :  { %v6626_v55 = vor.u32 %v7929_v49, %v6625_v47  ;;  %v7938_v49 = vld [vmem:[#allocation4 + $0x3c4] sm:$0xf] }
 0x36e   :  { %2051 = vmatpush.bf16.msrb.mxu2 %v6446_v63 }
 0x378   :  { %6419 = vmatmul.msk.bf16.vlgmr.msra.gmra.mxu2 %vm451_vm0, %v7878_v56  ;;  %6421 = vmatmul.msk.bf16.vlgmr.msra.gmra.mxu3 %vm451_vm0, %v7878_v56  ;;  %v6510_v56 = vor.u32 %v7900_v58, %v6507_v8  ;;  %v7928_v58 = vld [vmem:[#allocation4 + $0x374] sm:$0xf] }
 0x379   :  { %v7944_v8 = vld [vmem:[#allocation4 + $0x3f4] sm:$0xf] }
 0x37a   :  { %2070 = vmatpush.bf16.msrb.mxu3 %v6510_v56  ;;  %v7927_v56 = vld [vmem:[#allocation4 + $0x364] sm:$0xf0] }
 0x388   :  { %6420 = vmatmul.msk.bf16.gmra.mxu2 %vm451_vm0, %v7879_v57  ;;  %6422 = vmatmul.msk.bf16.gmra.mxu3 %vm451_vm0, %v7879_v57  ;;  %v7898_v57 = vld [vmem:[#allocation4 + $0x294] sm:$0xf] }
 0x3b6   :  { %v1487_v14 = vpop.f32.mrf.mxu0  ;;  %v1506_v19 = vpop.f32.mrf.mxu1 }
 0x3b7   :  { %v1507_v46 = vadd.f32 %v1506_v19, %v1487_v14  ;;  %v6499_v14 = vld [vmem:[#allocation4 + $0x298] sm:$0xf0]  ;;  %v6438_v19 = vor.u32 %v7882_v9, %v6435_v10 }
 0x3b8   :  { %v6691_v9 = vld [vmem:[#allocation4 + $0x3f8] sm:$0xf0] }
 0x3b9   :  { %2052 = vmatpush.bf16.msrb.mxu2 %v6438_v19  ;;  %v6694_v10 = vor.u32 %v7944_v8, %v6691_v9  ;;  %v7943_v19 = vld [vmem:[#allocation4 + $0x3e4] sm:$0xf0]  ;;  %v7920_v8 = vld [vmem:[#allocation4 + $0x334] sm:$0xf]  ;;  %v6595_v9 = vld [vmem:[#allocation4 + $0x338] sm:$0xf0] }
 0x3bb   :  { %v1449_v3 = vpop.f32.mrf.mxu2  ;;  %v1468_v4 = vpop.f32.mrf.mxu3 }
 0x3bc   :  { %v1469_v51 = vadd.f32 %v1468_v4, %v1449_v3  ;;  %v6502_v4 = vor.u32 %v7898_v57, %v6499_v14  ;;  %v6681_v57 = vld [vmem:[#allocation4 + $0x3e0] sm:$0xf] }
 0x3bd   :  { %2053 = vmatpush.bf16.msrb.mxu2 %v6430_v21  ;;  %v6682_v2 = vor.u32 %v7943_v19, %v6681_v57  ;;  %v7942_v21 = vld [vmem:[#allocation4 + $0x3e4] sm:$0xf]  ;;  %v6659_v57 = vld [vmem:[#allocation4 + $0x3b8] sm:$0xf0]  ;;  %v6585_v19 = vld [vmem:[#allocation4 + $0x320] sm:$0xf] }
 0x3be   :  { %v8974_v22 = vpop.f32.mrf.mxu0  ;;  %v8976_v18 = vpop.f32.mrf.mxu1  ;;  %2071 = vmatpush.bf16.msrb.mxu3 %v6502_v4  ;;  %v7926_v4 = vld [vmem:[#allocation4 + $0x364] sm:$0xf] }
 0x3bf   :  { %v6622_v11 = vor.u32 %v7926_v4, %v6619_v40  ;;  %v7919_v4 = vld [vmem:[#allocation4 + $0x324] sm:$0xf0]  ;;  %v6649_v40 = vld [vmem:[#allocation4 + $0x3a0] sm:$0xf] }
 0x3c1   :  { %2348 = vmatpush.bf16.msra.mxu2 %v6626_v55 }
 0x3c2   :  { %2072 = vmatpush.bf16.msrb.mxu3 %v6494_v31  ;;  %v6686_v31 = vor.u32 %v7942_v21, %v6683_v26  ;;  %v6586_v21 = vor.u32 %v7919_v4, %v6585_v19  ;;  %v7935_v26 = vld [vmem:[#allocation4 + $0x3a4] sm:$0xf0] }
 0x3c3   :  { %v8978_v33 = vpop.f32.mrf.mxu2  ;;  %v8980_v20 = vpop.f32.mrf.mxu3 }
 0x3c4   :  { %10113 = vst [vmem:[#allocation24_spill] sm:$0xff] %v8978_v33  ;;  %v9224_v33 = vld [vmem:[#allocation6 + $0x108] sm:$0xff] }
 0x3c5   :  { %10114 = vst [vmem:[#allocation25_spill] sm:$0xff] %v8980_v20  ;;  %v9220_v20 = vld [vmem:[#allocation6 + $0x38] sm:$0xff] }
 0x3c6   :  { %v8982_v23 = vpop.f32.mrf.mxu0  ;;  %v8984_v28 = vpop.f32.mrf.mxu1  ;;  %10138 = vst [vmem:[#allocation49_spill] sm:$0xff] %v9220_v20 }
 0x3c7   :  { %v1512_v12 = vadd.f32 %v8984_v28, %v8982_v23 }
 0x3cb   :  { %v8986_v43 = vpop.f32.mrf.mxu2  ;;  %v8988_v15 = vpop.f32.mrf.mxu3 }
 0x3cc   :  { %v1474_v44 = vadd.f32 %v8988_v15, %v8986_v43 }
 0x3ce   :  { %v8990_v34 = vpop.f32.mrf.mxu0  ;;  %v8992_v17 = vpop.f32.mrf.mxu1 }
 0x3cf   :  { %10115 = vst [vmem:[#allocation26_spill] sm:$0xff] %v8990_v34 }
 0x3d0   :  { %10116 = vst [vmem:[#allocation27_spill] sm:$0xff] %v8992_v17 }
 0x3d3   :  { %v8994_v5 = vpop.f32.mrf.mxu2  ;;  %v8996_v41 = vpop.f32.mrf.mxu3 }
 0x3d4   :  { %10117 = vst [vmem:[#allocation28_spill] sm:$0xff] %v8994_v5  ;;  %v9182_v5 = vld [vmem:[#allocation6 + $0x138] sm:$0xff] }
 0x3d5   :  { %10118 = vst [vmem:[#allocation29_spill] sm:$0xff] %v8996_v41  ;;  %v9179_v41 = vld [vmem:[#allocation6 + $0x130] sm:$0xff] }
 0x3d6   :  { %v1723_v32 = vpop.f32.mrf.mxu0  ;;  %v1742_v50 = vpop.f32.mrf.mxu1 }
 0x3d7   :  { %v1724_v45 = vadd.f32 %v1723_v32, %v1507_v46 }
 0x3d9   :  { %v8998_v60 = vadd.f32 %v1742_v50, %v1724_v45  ;;  %v7912_v45 = vld [vmem:[%s10094_s3 + $0x30] sm:$0xff] }
 0x3db   :  { %v1685_v59 = vpop.f32.mrf.mxu2  ;;  %v1704_v61 = vpop.f32.mrf.mxu3 }
 0x3dc   :  { %v1686_v13 = vadd.f32 %v1685_v59, %v1469_v51  ;;  %v6689_v51 = vld [vmem:[#allocation4 + $0x3f0] sm:$0xf]  ;;  %v6627_v59 = vld [vmem:[#allocation4 + $0x378] sm:$0xf0] }
 0x3dd   :  { %v6630_v63 = vor.u32 %v7928_v58, %v6627_v59  ;;  %v7921_v58 = vld [vmem:[#allocation4 + $0x334] sm:$0xf0]  ;;  %v6657_v59 = vld [vmem:[#allocation4 + $0x3b0] sm:$0xf] }
 0x3de   :  { %v9000_v38 = vadd.f32 %v1704_v61, %v1686_v13  ;;  %v9002_v39 = vpop.f32.mrf.mxu0  ;;  %v9004_v3 = vpop.f32.mrf.mxu1  ;;  %v6690_v61 = vor.u32 %v7945_v52, %v6689_v51  ;;  %v6617_v13 = vld [vmem:[#allocation4 + $0x360] sm:$0xf]  ;;  %v6667_v51 = vld [vmem:[#allocation4 + $0x3c8] sm:$0xf0]  ;;  %v6593_v52 = vld [vmem:[#allocation4 + $0x330] sm:$0xf] }
 0x3df   :  { %10119 = vst [vmem:[#allocation30_spill] sm:$0xff] %v9004_v3  ;;  %v6618_v14 = vor.u32 %v7927_v56, %v6617_v13  ;;  %v6670_v55 = vor.u32 %v7938_v49, %v6667_v51  ;;  %v6598_v13 = vor.u32 %v7920_v8, %v6595_v9  ;;  %v7936_v56 = vld [vmem:[#allocation4 + $0x3b4] sm:$0xf]  ;;  %v7915_v49 = vld [vmem:[#allocation4 + $0x304] sm:$0xf0]  ;;  %v9218_v3 = vld [vmem:[#allocation6 + $0x100] sm:$0xff] }
 0x3e0   :  { %2367 = vmatpush.bf16.msra.mxu3 %v6690_v61  ;;  %v6594_v61 = vor.u32 %v7921_v58, %v6593_v52  ;;  %v6633_v51 = vld [vmem:[#allocation4 + $0x380] sm:$0xf]  ;;  %v7931_v58 = vld [vmem:[#allocation4 + $0x384] sm:$0xf0]  ;;  %v7930_v9 = vld [vmem:[#allocation4 + $0x384] sm:$0xf] }
 0x3e1   :  { %2349 = vmatpush.bf16.msra.mxu2 %v6618_v14  ;;  %v6662_v14 = vor.u32 %v7936_v56, %v6659_v57  ;;  %10137 = vst [vmem:[#allocation48_spill] sm:$0xff] %v9218_v3 }
 0x3e3   :  { %v9006_v16 = vpop.f32.mrf.mxu2  ;;  %v9008_v35 = vpop.f32.mrf.mxu3 }
 0x3e4   :  { %10120 = vst [vmem:[#allocation31_spill] sm:$0xff] %v9006_v16  ;;  %2368 = vmatpush.bf16.msra.mxu3 %v6682_v2  ;;  %v9196_v16 = vld [vmem:[#allocation6 + $0x58] sm:$0xff] }
 0x3e5   :  { %10121 = vst [vmem:[#allocation32_spill] sm:$0xff] %v9008_v35 }
 0x3e6   :  { %v1728_v36 = vpop.f32.mrf.mxu0  ;;  %v1747_v0 = vpop.f32.mrf.mxu1 }
 0x3e7   :  { %v1729_v1 = vadd.f32 %v1728_v36, %v1512_v12  ;;  %v6609_v12 = vld [vmem:[#allocation4 + $0x350] sm:$0xf]  ;;  %v7925_v36 = vld [vmem:[#allocation4 + $0x354] sm:$0xf0] }
 0x3e9   :  { %v9012_v53 = vadd.f32 %v1747_v0, %v1729_v1  ;;  %v6673_v1 = vld [vmem:[#allocation4 + $0x3d0] sm:$0xf]  ;;  %v6610_v0 = vor.u32 %v7925_v36, %v6609_v12  ;;  %v6587_v12 = vld [vmem:[#allocation4 + $0x328] sm:$0xf0] }
 0x3eb   :  { %10122 = vst [vmem:[#allocation33_spill] sm:$0xff] %v9012_v53  ;;  %v1690_v54 = vpop.f32.mrf.mxu2  ;;  %v1709_v62 = vpop.f32.mrf.mxu3  ;;  %2350 = vmatpush.bf16.msra.mxu2 %v6610_v0 }
 0x3ec   :  { %v1691_v27 = vadd.f32 %v1690_v54, %v1474_v44  ;;  %v7941_v44 = vld [vmem:[#allocation4 + $0x3d4] sm:$0xf0]  ;;  %v7924_v54 = vld [vmem:[#allocation4 + $0x354] sm:$0xf] }
 0x3ee   :  { %v9016_v29 = vadd.f32 %v1709_v62, %v1691_v27  ;;  %v6611_v62 = vld [vmem:[#allocation4 + $0x358] sm:$0xf0]  ;;  %v6674_v27 = vor.u32 %v7941_v44, %v6673_v1  ;;  %v6650_v1 = vor.u32 %v7935_v26, %v6649_v40  ;;  %v7934_v44 = vld [vmem:[#allocation4 + $0x3a4] sm:$0xf]  ;;  %v9058_v26 = vld [vmem:[#allocation6 + $0x1e8] sm:$0xff] }
 0x3f0   :  { %2369 = vmatpush.bf16.msra.mxu3 %v6674_v27  ;;  %v6577_v27 = vld [vmem:[#allocation4 + $0x310] sm:$0xf] }
 0x3f3   :  { %v9018_v37 = vpop.f32.mrf.mxu2  ;;  %v9020_v24 = vpop.f32.mrf.mxu3 }
 0x3f4   :  { %10123 = vst [vmem:[#allocation34_spill] sm:$0xff] %v9018_v37  ;;  %v9171_v37 = vld [vmem:[#allocation6 + $0x140] sm:$0xff] }
 0x3f5   :  { %10124 = vst [vmem:[#allocation35_spill] sm:$0xff] %v9020_v24  ;;  %v9159_v24 = vld [vmem:[#allocation6 + $0x150] sm:$0xff] }
 0x3fb   :  { %v1782_v23 = vpop.f32.mrf.mxu2  ;;  %v1801_v28 = vpop.f32.mrf.mxu3 }
 0x403   :  { %v1784_v25 = vpop.f32.mrf.mxu2  ;;  %v1803_v30 = vpop.f32.mrf.mxu3 }
 0x404   :  { %v1811_v46 = vpack.c.bf16 %v1784_v25, %v1782_v23  ;;  %v1812_v32 = vpack.c.bf16 %v1803_v30, %v1801_v28  ;;  %v6614_v23 = vor.u32 %v7924_v54, %v6611_v62  ;;  %v7940_v28 = vld [vmem:[#allocation4 + $0x3d4] sm:$0xf]  ;;  %v6675_v25 = vld [vmem:[#allocation4 + $0x3d8] sm:$0xf0]  ;;  %v6651_v54 = vld [vmem:[#allocation4 + $0x3a8] sm:$0xf0] }
 0x405   :  { %v6678_v30 = vor.u32 %v7940_v28, %v6675_v25  ;;  %v6654_v62 = vor.u32 %v7934_v44, %v6651_v54  ;;  %v6641_v28 = vld [vmem:[#allocation4 + $0x390] sm:$0xf]  ;;  %v9073_v54 = vld [vmem:[#allocation6 + $0x1c0] sm:$0xff] }
 0x406   :  { %2016 = vmatmul.bf16.vlgmr.msra.gmra.mxu0 %v1811_v46  ;;  %2035 = vmatmul.bf16.vlgmr.msra.gmra.mxu1 %v1812_v32 }
 0x407   :  { %2054 = vmatmul.bf16.vlgmr.msrb.gmra.mxu2 %v1811_v46  ;;  %2073 = vmatmul.bf16.vlgmr.msrb.gmra.mxu3 %v1812_v32  ;;  %v6601_v46 = vld [vmem:[#allocation4 + $0x340] sm:$0xf]  ;;  %v7923_v32 = vld [vmem:[#allocation4 + $0x344] sm:$0xf0] }
 0x408   :  { %2386 = vmatpush.bf16.msra.mxu0 %v6630_v63  ;;  %2405 = vmatpush.bf16.msra.mxu1 %v6694_v10  ;;  %v7937_v63 = vld [vmem:[#allocation4 + $0x3b4] sm:$0xf0] }
 0x409   :  { %v6658_v10 = vor.u32 %v7937_v63, %v6657_v59  ;;  %v7914_v59 = vld [vmem:[#allocation4 + $0x304] sm:$0xf]  ;;  %v6634_v63 = vor.u32 %v7931_v58, %v6633_v51  ;;  %v9120_v51 = vld [vmem:[#allocation6 + $0xa8] sm:$0xff] }
 0x40b   :  { %v1787_v43 = vpop.f32.mrf.mxu2  ;;  %v1806_v15 = vpop.f32.mrf.mxu3 }
 0x40c   :  { %2387 = vmatpush.bf16.msra.mxu0 %v6622_v11  ;;  %2406 = vmatpush.bf16.msra.mxu1 %v6686_v31  ;;  %v7918_v31 = vld [vmem:[#allocation4 + $0x324] sm:$0xf] }
 0x40d   :  { %v6590_v0 = vor.u32 %v7918_v31, %v6587_v12  ;;  %v9060_v31 = vld [vmem:[#allocation6 + $0x1d0] sm:$0xff] }
 0x40e   :  { %v9064_v12 = vld [vmem:[#allocation6 + $0xf0] sm:$0xff] }
 0x410   :  { %2388 = vmatpush.bf16.msra.mxu0 %v6614_v23  ;;  %2407 = vmatpush.bf16.msra.mxu1 %v6678_v30  ;;  %v7917_v23 = vld [vmem:[#allocation4 + $0x314] sm:$0xf0] }
 0x411   :  { %v6578_v30 = vor.u32 %v7917_v23, %v6577_v27  ;;  %v9078_v27 = vld [vmem:[#allocation6 + $0xe8] sm:$0xff]  ;;  %v9082_v23 = vld [vmem:[#allocation6 + $0xd0] sm:$0xff] }
 0x413   :  { %v1789_v50 = vpop.f32.mrf.mxu2  ;;  %v1808_v6 = vpop.f32.mrf.mxu3 }
 0x414   :  { %v1813_v48 = vpack.c.bf16 %v1789_v50, %v1787_v43  ;;  %v1814_v7 = vpack.c.bf16 %v1808_v6, %v1806_v15  ;;  %v6665_v43 = vld [vmem:[#allocation4 + $0x3c0] sm:$0xf]  ;;  %v9032_v15 = vpop.f32.mrf.mxu0  ;;  %v9034_v50 = vpop.f32.mrf.mxu1  ;;  %v6602_v6 = vor.u32 %v7923_v32, %v6601_v46  ;;  %2408 = vmatpush.bf16.msra.mxu1 %v6670_v55  ;;  %v7933_v46 = vld [vmem:[#allocation4 + $0x394] sm:$0xf0]  ;;  %v7916_v32 = vld [vmem:[#allocation4 + $0x314] sm:$0xf] }
 0x415   :  { %10125 = vst [vmem:[#allocation36_spill] sm:$0xff] %v9032_v15 }
 0x416   :  { %2021 = vmatmul.bf16.gmra.mxu0 %v1813_v48  ;;  %2040 = vmatmul.bf16.gmra.mxu1 %v1814_v7  ;;  %10126 = vst [vmem:[#allocation37_spill] sm:$0xff] %v9034_v50  ;;  %v9174_v50 = vld [vmem:[#allocation6 + $0x148] sm:$0xff] }
 0x417   :  { %2059 = vmatmul.bf16.gmra.mxu2 %v1813_v48  ;;  %2078 = vmatmul.bf16.gmra.mxu3 %v1814_v7  ;;  %v7939_v48 = vld [vmem:[#allocation4 + $0x3c4] sm:$0xf0]  ;;  %v7922_v7 = vld [vmem:[#allocation4 + $0x344] sm:$0xf] }
 0x418   :  { %2351 = vmatpush.bf16.msra.mxu2 %v6602_v6  ;;  %2409 = vmatpush.bf16.msra.mxu1 %v6662_v14  ;;  %v6642_v6 = vor.u32 %v7933_v46, %v6641_v28  ;;  %v9084_v28 = vld [vmem:[#allocation6 + $0xd8] sm:$0xff] }
 0x419   :  { %v9090_v46 = vld [vmem:[#allocation6 + $0x1b8] sm:$0xff] }
 0x41c   :  { %2352 = vmatpush.bf16.msra.mxu2 %v6594_v61  ;;  %2410 = vmatpush.bf16.msra.mxu1 %v6654_v62  ;;  %v6571_v61 = vld [vmem:[#allocation4 + $0x308] sm:$0xf0] }
 0x41d   :  { %v6574_v8 = vor.u32 %v7914_v59, %v6571_v61  ;;  %v9076_v62 = vld [vmem:[#allocation6 + $0x1c8] sm:$0xff] }
 0x420   :  { %2353 = vmatpush.bf16.msra.mxu2 %v6586_v21  ;;  %v9054_v21 = vld [vmem:[#allocation6 + $0x1e0] sm:$0xff] }
 0x424   :  { %2354 = vmatpush.bf16.msra.mxu2 %v6578_v30  ;;  %v9087_v30 = vld [vmem:[#allocation6 + $0x1b0] sm:$0xff] }
 0x426   :  { %6563 = vmatmul.msk.bf16.vlgmr.msrb.gmra.mxu0 %vm451_vm0, %v7912_v45  ;;  %6565 = vmatmul.msk.bf16.vlgmr.msrb.gmra.mxu1 %vm451_vm0, %v7912_v45  ;;  %v6603_v45 = vld [vmem:[#allocation4 + $0x348] sm:$0xf0] }
 0x427   :  { %v6606_v47 = vor.u32 %v7922_v7, %v6603_v45  ;;  %v7932_v7 = vld [vmem:[#allocation4 + $0x394] sm:$0xf]  ;;  %v6643_v45 = vld [vmem:[#allocation4 + $0x398] sm:$0xf0] }
 0x429   :  { %2389 = vmatpush.bf16.msra.mxu0 %v6606_v47  ;;  %v6569_v47 = vld [vmem:[#allocation4 + $0x300] sm:$0xf] }
 0x42a   :  { %v6570_v52 = vor.u32 %v7915_v49, %v6569_v47  ;;  %v9114_v47 = vld [vmem:[#allocation6 + $0x198] sm:$0xff]  ;;  %v9118_v49 = vld [vmem:[#allocation6 + $0xa0] sm:$0xff] }
 0x42c   :  { %2355 = vmatpush.bf16.msra.mxu2 %v6570_v52 }
 0x42d   :  { %2390 = vmatpush.bf16.msra.mxu0 %v6598_v13 }
 0x430   :  { %2496 = vmatpush.msrb.mxu2 %v9064_v12 }
 0x431   :  { %2391 = vmatpush.bf16.msra.mxu0 %v6590_v0 }
 0x436   :  { %6564 = vmatmul.msk.bf16.gmra.mxu0 %vm451_vm0, %v7913_v42  ;;  %6566 = vmatmul.msk.bf16.gmra.mxu1 %vm451_vm0, %v7913_v42  ;;  %v6666_v42 = vor.u32 %v7939_v48, %v6665_v43  ;;  %v6579_v43 = vld [vmem:[#allocation4 + $0x318] sm:$0xf0] }
 0x437   :  { %v6582_v48 = vor.u32 %v7916_v32, %v6579_v43  ;;  %v9094_v32 = vld [vmem:[#allocation6 + $0xc0] sm:$0xff]  ;;  %v9096_v43 = vld [vmem:[#allocation6 + $0xc8] sm:$0xff] }
 0x438   :  { %2370 = vmatpush.bf16.msra.mxu3 %v6666_v42  ;;  %v6646_v42 = vor.u32 %v7932_v7, %v6643_v45  ;;  %v9106_v7 = vld [vmem:[#allocation6 + $0xb0] sm:$0xff]  ;;  %v9108_v45 = vld [vmem:[#allocation6 + $0xb8] sm:$0xff] }
 0x439   :  { %2392 = vmatpush.bf16.msra.mxu0 %v6582_v48  ;;  %v9102_v48 = vld [vmem:[#allocation6 + $0x1a8] sm:$0xff] }
 0x43a   :  { %2411 = vmatpush.bf16.msra.mxu1 %v6646_v42  ;;  %v9111_v42 = vld [vmem:[#allocation6 + $0x190] sm:$0xff] }
 0x43c   :  { %2371 = vmatpush.bf16.msra.mxu3 %v6658_v10  ;;  %v6635_v10 = vld [vmem:[#allocation4 + $0x388] sm:$0xf0] }
 0x43d   :  { %v6638_v13 = vor.u32 %v7930_v9, %v6635_v10  ;;  %2393 = vmatpush.bf16.msra.mxu0 %v6574_v8  ;;  %v9128_v8 = vld [vmem:[#allocation6 + $0x188] sm:$0xff]  ;;  %v9132_v9 = vld [vmem:[#allocation6 + $0x90] sm:$0xff]  ;;  %v9134_v10 = vld [vmem:[#allocation6 + $0x98] sm:$0xff] }
 0x43f   :  { %2412 = vmatpush.bf16.msra.mxu1 %v6638_v13  ;;  %v9136_v13 = vld [vmem:[#allocation6 + $0x170] sm:$0xff] }
 0x440   :  { %2372 = vmatpush.bf16.msra.mxu3 %v6650_v1  ;;  %v9070_v1 = vld [vmem:[#allocation6 + $0xe0] sm:$0xff] }
 0x441   :  { %2497 = vmatpush.msrb.mxu2 %v9070_v1 }
 0x443   :  { %2498 = vmatpush.msrb.mxu2 %v9082_v23 }
 0x444   :  { %2373 = vmatpush.bf16.msra.mxu3 %v6642_v6  ;;  %v9099_v6 = vld [vmem:[#allocation6 + $0x1a0] sm:$0xff] }
 0x445   :  { %2499 = vmatpush.msrb.mxu2 %v9094_v32 }
 0x447   :  { %2500 = vmatpush.msrb.mxu2 %v9106_v7 }
 0x448   :  { %2374 = vmatpush.bf16.msra.mxu3 %v6634_v63  ;;  %v9126_v63 = vld [vmem:[#allocation6 + $0x180] sm:$0xff] }
 0x449   :  { %2501 = vmatpush.msrb.mxu2 %v9118_v49 }
 0x44b   :  { %2502 = vmatpush.msrb.mxu2 %v9132_v9 }
 0x483   :  { %v2017_v2 = vpop.f32.mrf.mxu0  ;;  %v2036_v11 = vpop.f32.mrf.mxu1 }
 0x484   :  { %v2037_v36 = vadd.f32 %v2036_v11, %v2017_v2  ;;  %v9050_v2 = vld [vmem:[#allocation6 + $0x1f0] sm:$0xff]  ;;  %v9052_v11 = vld [vmem:[#allocation6 + $0x1f8] sm:$0xff] }
 0x485   :  { %2525 = vmatpush.msrb.mxu3 %v9050_v2  ;;  %2583 = vmatpush.msrb.mxu1 %v9052_v11 }
 0x486   :  { %v9037_v25 = vadd.f32 %v2037_v36, %v9000_v38  ;;  %v9066_v36 = vld [vmem:[#allocation6 + $0xf8] sm:$0xff] }
 0x487   :  { %2526 = vmatpush.msrb.mxu3 %v9054_v21  ;;  %2584 = vmatpush.msrb.mxu1 %v9058_v26 }
 0x488   :  { %10127 = vst [vmem:[#allocation38_spill] sm:$0xff] %v9037_v25  ;;  %2554 = vmatpush.msrb.mxu0 %v9066_v36  ;;  %v9194_v25 = vld [vmem:[#allocation6 + $0x120] sm:$0xff] }
 0x489   :  { %2527 = vmatpush.msrb.mxu3 %v9060_v31 }
 0x48a   :  { %2555 = vmatpush.msrb.mxu0 %v9078_v27  ;;  %v9188_v35 = vpop.f32.mrf.mxu2 }
 0x48b   :  { %v9039_v38 = vpop.f32.mrf.mxu0  ;;  %v9041_v55 = vpop.f32.mrf.mxu1  ;;  %2528 = vmatpush.msrb.mxu3 %v9073_v54 }
 0x48c   :  { %10128 = vst [vmem:[#allocation39_spill] sm:$0xff] %v9039_v38  ;;  %2556 = vmatpush.msrb.mxu0 %v9084_v28  ;;  %v9192_v38 = vld [vmem:[#allocation6 + $0x50] sm:$0xff] }
 0x48d   :  { %10129 = vst [vmem:[#allocation40_spill] sm:$0xff] %v9041_v55  ;;  %2529 = vmatpush.msrb.mxu3 %v9087_v30  ;;  %v9190_v55 = vpop.f32.mrf.mxu3 }
 0x48e   :  { %2557 = vmatpush.msrb.mxu0 %v9096_v43 }
 0x48f   :  { %2530 = vmatpush.msrb.mxu3 %v9099_v6 }
 0x490   :  { %2558 = vmatpush.msrb.mxu0 %v9108_v45 }
 0x491   :  { %2531 = vmatpush.msrb.mxu3 %v9111_v42 }
 0x492   :  { %2559 = vmatpush.msrb.mxu0 %v9120_v51 }
 0x493   :  { %v2022_v56 = vpop.f32.mrf.mxu0  ;;  %v2041_v57 = vpop.f32.mrf.mxu1  ;;  %2532 = vmatpush.msrb.mxu3 %v9126_v63 }
 0x494   :  { %v2042_v14 = vadd.f32 %v2041_v57, %v2022_v56  ;;  %v9138_v56 = vld [vmem:[#allocation6 + $0x178] sm:$0xff]  ;;  %v9142_v57 = vld [vmem:[#allocation6 + $0x80] sm:$0xff]  ;;  %2560 = vmatpush.msrb.mxu0 %v9134_v10 }
 0x495   :  { %2533 = vmatpush.msrb.mxu3 %v9136_v13  ;;  %2503 = vmatpush.msrb.mxu2 %v9142_v57 }
 0x496   :  { %v9044_v19 = vadd.f32 %v2042_v14, %v9016_v29  ;;  %v9062_v29 = vld [vmem:[#allocation6 + $0x1d8] sm:$0xff]  ;;  %v9144_v14 = vld [vmem:[#allocation6 + $0x88] sm:$0xff] }
 0x497   :  { %2585 = vmatpush.msrb.mxu1 %v9062_v29  ;;  %2561 = vmatpush.msrb.mxu0 %v9144_v14 }
 0x498   :  { %10130 = vst [vmem:[#allocation41_spill] sm:$0xff] %v9044_v19  ;;  %v9168_v19 = vld [vmem:[#allocation6 + $0x68] sm:$0xff] }
 0x499   :  { %2586 = vmatpush.msrb.mxu1 %v9076_v62 }
 0x49b   :  { %v9046_v4 = vpop.f32.mrf.mxu0  ;;  %v9048_v40 = vpop.f32.mrf.mxu1  ;;  %2587 = vmatpush.msrb.mxu1 %v9090_v46 }
 0x49c   :  { %10131 = vst [vmem:[#allocation42_spill] sm:$0xff] %v9046_v4  ;;  %v9166_v4 = vld [vmem:[#allocation6 + $0x60] sm:$0xff] }
 0x49d   :  { %10132 = vst [vmem:[#allocation43_spill] sm:$0xff] %v9048_v40  ;;  %2588 = vmatpush.msrb.mxu1 %v9102_v48  ;;  %v9162_v40 = vld [vmem:[#allocation6 + $0x158] sm:$0xff] }
 0x49f   :  { %2589 = vmatpush.msrb.mxu1 %v9114_v47 }
 0x4a1   :  { %2590 = vmatpush.msrb.mxu1 %v9128_v8 }
 0x4a3   :  { %v2122_v0 = vpop.f32.mrf.mxu0  ;;  %v2141_v44 = vpop.f32.mrf.mxu1  ;;  %2591 = vmatpush.msrb.mxu1 %v9138_v56 }
 0x4ab   :  { %v2124_v52 = vpop.f32.mrf.mxu0  ;;  %v2143_v58 = vpop.f32.mrf.mxu1 }
 0x4ac   :  { %v2151_v59 = vpack.c.bf16 %v2124_v52, %v2122_v0  ;;  %v2152_v61 = vpack.c.bf16 %v2143_v58, %v2141_v44  ;;  %v9147_v0 = vld [vmem:[#allocation6 + $0x160] sm:$0xff]  ;;  %v9150_v44 = vld [vmem:[#allocation6 + $0x168] sm:$0xff]  ;;  %v9154_v52 = vld [vmem:[#allocation6 + $0x70] sm:$0xff] }
 0x4ad   :  { %v9156_v58 = vld [vmem:[#allocation6 + $0x78] sm:$0xff]  ;;  %2534 = vmatpush.msrb.mxu3 %v9147_v0  ;;  %2592 = vmatpush.msrb.mxu1 %v9150_v44 }
 0x4ae   :  { %2356 = vmatmul.bf16.vlgmr.msra.gmra.mxu2 %v2151_v59  ;;  %2375 = vmatmul.bf16.vlgmr.msra.gmra.mxu3 %v2152_v61 }
 0x4af   :  { %2394 = vmatmul.bf16.vlgmr.msra.gmra.mxu0 %v2151_v59  ;;  %2413 = vmatmul.bf16.vlgmr.msra.gmra.mxu1 %v2152_v61 }
 0x4b0   :  { %2504 = vmatpush.msrb.mxu2 %v9154_v52  ;;  %2562 = vmatpush.msrb.mxu0 %v9156_v58 }
 0x4b1   :  { %2535 = vmatpush.msrb.mxu3 %v9159_v24  ;;  %2593 = vmatpush.msrb.mxu1 %v9162_v40 }
 0x4b2   :  { %2505 = vmatpush.msrb.mxu2 %v9166_v4  ;;  %2563 = vmatpush.msrb.mxu0 %v9168_v19 }
 0x4b3   :  { %v2127_v59 = vpop.f32.mrf.mxu0  ;;  %v2146_v61 = vpop.f32.mrf.mxu1  ;;  %2536 = vmatpush.msrb.mxu3 %v9171_v37  ;;  %2594 = vmatpush.msrb.mxu1 %v9174_v50 }
 0x4b4   :  { %2506 = vmatpush.msrb.mxu2 %v9192_v38  ;;  %2564 = vmatpush.msrb.mxu0 %v9196_v16 }
 0x4b5   :  { %2537 = vmatpush.msrb.mxu3 %v9179_v41  ;;  %2595 = vmatpush.msrb.mxu1 %v9182_v5 }
 0x4b7   :  { %2538 = vmatpush.msrb.mxu3 %v9194_v25 }
 0x4bb   :  { %v2129_v15 = vpop.f32.mrf.mxu0  ;;  %v2148_v53 = vpop.f32.mrf.mxu1 }
 0x4bc   :  { %v2153_v17 = vpack.c.bf16 %v2129_v15, %v2127_v59  ;;  %v2154_v34 = vpack.c.bf16 %v2148_v53, %v2146_v61  ;;  %v9200_v15 = vld [vmem:[#allocation6 + $0x128] sm:$0xff]  ;;  %v9212_v59 = vld [vmem:[#allocation6 + $0x118] sm:$0xff]  ;;  %v9216_v61 = vld [vmem:[#allocation6 + $0x30] sm:$0xff] }
 0x4bd   :  { %2596 = vmatpush.msrb.mxu1 %v9200_v15  ;;  %v9208_v53 = vld [vmem:[#allocation6 + $0x48] sm:$0xff]  ;;  %10135 = vst [vmem:[#allocation46_spill] sm:$0xff] %v9212_v59 }
 0x4be   :  { %2361 = vmatmul.bf16.gmra.mxu2 %v2153_v17  ;;  %2380 = vmatmul.bf16.gmra.mxu3 %v2154_v34  ;;  %10134 = vst [vmem:[#allocation45_spill] sm:$0xff] %v9208_v53 }
 0x4bf   :  { %2399 = vmatmul.bf16.gmra.mxu0 %v2153_v17  ;;  %2418 = vmatmul.bf16.gmra.mxu1 %v2154_v34  ;;  %v9204_v34 = vld [vmem:[#allocation6 + $0x40] sm:$0xff]  ;;  %v9206_v17 = vld [vmem:[#allocation6 + $0x110] sm:$0xff]  ;;  %10136 = vst [vmem:[#allocation47_spill] sm:$0xff] %v9216_v61 }
 0x4c0   :  { %10133 = vst [vmem:[#allocation44_spill] sm:$0xff] %v9206_v17  ;;  %2507 = vmatpush.msrb.mxu2 %v9204_v34  ;;  %2539 = vmatpush.msrb.mxu3 %v9206_v17  ;;  %v9228_v17 = vld [vmem:[#allocation6 + $0x20] sm:$0xff] }
 0x4c1   :  { %2565 = vmatpush.msrb.mxu0 %v9208_v53  ;;  %2597 = vmatpush.msrb.mxu1 %v9212_v59  ;;  %v9230_v53 = vld [vmem:[#allocation6 + $0x28] sm:$0xff]  ;;  %v9240_v59 = vpop.f32.mrf.mxu2 }
 0x4c2   :  { %2508 = vmatpush.msrb.mxu2 %v9216_v61  ;;  %2540 = vmatpush.msrb.mxu3 %v9218_v3  ;;  %10139 = vst [vmem:[#allocation50_spill] sm:$0xff] %v9230_v53  ;;  %v9236_v61 = vld [vmem:[#allocation6 + $0x10] sm:$0xff]  ;;  %v9238_v3 = vld [vmem:[#allocation6 + $0x18] sm:$0xff] }
 0x4c3   :  { %2566 = vmatpush.msrb.mxu0 %v9220_v20  ;;  %2598 = vmatpush.msrb.mxu1 %v9224_v33  ;;  %v9242_v20 = vpop.f32.mrf.mxu3 }
 0x4c4   :  { %2509 = vmatpush.msrb.mxu2 %v9228_v17  ;;  %2649 = vmatpush.msra.mxu3 %v9050_v2  ;;  %v9248_v2 = vld [vmem:[#allocation6] sm:$0xff] }
 0x4c5   :  { %2567 = vmatpush.msrb.mxu0 %v9230_v53  ;;  %2707 = vmatpush.msra.mxu1 %v9052_v11  ;;  %v9250_v53 = vld [vmem:[#allocation6 + $0x8] sm:$0xff] }
 0x4c6   :  { %2510 = vmatpush.msrb.mxu2 %v9236_v61  ;;  %2650 = vmatpush.msra.mxu3 %v9054_v21 }
 0x4c7   :  { %2568 = vmatpush.msrb.mxu0 %v9238_v3  ;;  %2708 = vmatpush.msra.mxu1 %v9058_v26  ;;  %v2075_v26 = vadd.f32 %v9190_v55, %v9188_v35  ;;  %v1509_v35 = vadd.f32 %v8976_v18, %v8974_v22  ;;  %v10141_v22 = vld [vmem:[#allocation45_spill] sm:$0xff]  ;;  %v10142_v18 = vld [vmem:[#allocation46_spill] sm:$0xff] }
 0x4c8   :  { %2511 = vmatpush.msrb.mxu2 %v9248_v2  ;;  %2651 = vmatpush.msra.mxu3 %v9060_v31 }
 0x4c9   :  { %2569 = vmatpush.msrb.mxu0 %v9250_v53  ;;  %2709 = vmatpush.msra.mxu1 %v9062_v29  ;;  %v9268_v11 = vpop.f32.mrf.mxu2  ;;  %v2085_v55 = vadd.f32 %v2075_v26, %v8998_v60  ;;  %v2077_v60 = vadd.f32 %v9242_v20, %v9240_v59  ;;  %v10149_v20 = vld [vmem:[#allocation31_spill] sm:$0xff]  ;;  %v10161_v26 = vld [vmem:[#allocation37_spill] sm:$0xff] }
 0x4ca   :  { %2620 = vmatpush.msra.mxu2 %v9064_v12  ;;  %2652 = vmatpush.msra.mxu3 %v9073_v54  ;;  %v10145_v12 = vld [vmem:[#allocation47_spill] sm:$0xff] }
 0x4cb   :  { %2678 = vmatpush.msra.mxu0 %v9066_v36  ;;  %2710 = vmatpush.msra.mxu1 %v9076_v62  ;;  %v9270_v21 = vpop.f32.mrf.mxu3  ;;  %v10146_v36 = vld [vmem:[#allocation48_spill] sm:$0xff]  ;;  %v10148_v62 = vld [vmem:[#allocation49_spill] sm:$0xff] }
 0x4cc   :  { %2621 = vmatpush.msra.mxu2 %v9070_v1  ;;  %2653 = vmatpush.msra.mxu3 %v9087_v30  ;;  %v10147_v1 = vld [vmem:[#allocation30_spill] sm:$0xff] }
 0x4cd   :  { %2679 = vmatpush.msra.mxu0 %v9078_v27  ;;  %2711 = vmatpush.msra.mxu1 %v9090_v46 }
 0x4ce   :  { %2622 = vmatpush.msra.mxu2 %v9082_v23  ;;  %2654 = vmatpush.msra.mxu3 %v9099_v6  ;;  %v10150_v23 = vld [vmem:[#allocation38_spill] sm:$0xff] }
 0x4cf   :  { %2680 = vmatpush.msra.mxu0 %v9084_v28  ;;  %2712 = vmatpush.msra.mxu1 %v9102_v48  ;;  %v10151_v6 = vld [vmem:[#allocation50_spill] sm:$0xff]  ;;  %v10152_v48 = vld [vmem:[#allocation39_spill] sm:$0xff] }
 0x4d0   :  { %2623 = vmatpush.msra.mxu2 %v9094_v32  ;;  %2655 = vmatpush.msra.mxu3 %v9111_v42  ;;  %v10154_v42 = vld [vmem:[#allocation32_spill] sm:$0xff] }
 0x4d1   :  { %2681 = vmatpush.msra.mxu0 %v9096_v43  ;;  %2713 = vmatpush.msra.mxu1 %v9114_v47  ;;  %v9294_v31 = vpop.f32.mrf.mxu2 }
 0x4d2   :  { %2624 = vmatpush.msra.mxu2 %v9106_v7  ;;  %2656 = vmatpush.msra.mxu3 %v9126_v63  ;;  %v10153_v7 = vld [vmem:[#allocation40_spill] sm:$0xff] }
 0x4d3   :  { %2682 = vmatpush.msra.mxu0 %v9108_v45  ;;  %2714 = vmatpush.msra.mxu1 %v9128_v8  ;;  %v9296_v29 = vpop.f32.mrf.mxu3  ;;  %v2039_v45 = vadd.f32 %v10153_v7, %v10152_v48 }
 0x4d4   :  { %2625 = vmatpush.msra.mxu2 %v9118_v49  ;;  %2657 = vmatpush.msra.mxu3 %v9136_v13  ;;  %v2080_v49 = vadd.f32 %v9270_v21, %v9268_v11 }
 0x4d5   :  { %2683 = vmatpush.msra.mxu0 %v9120_v51  ;;  %2715 = vmatpush.msra.mxu1 %v9138_v56  ;;  %v10155_v56 = vld [vmem:[#allocation26_spill] sm:$0xff] }
 0x4d6   :  { %2626 = vmatpush.msra.mxu2 %v9132_v9  ;;  %2658 = vmatpush.msra.mxu3 %v9147_v0  ;;  %v10157_v0 = vld [vmem:[#allocation33_spill] sm:$0xff] }
 0x4d7   :  { %2684 = vmatpush.msra.mxu0 %v9134_v10  ;;  %2716 = vmatpush.msra.mxu1 %v9150_v44  ;;  %v2089_v44 = vadd.f32 %v2080_v49, %v10157_v0 }
 0x4d8   :  { %2627 = vmatpush.msra.mxu2 %v9142_v57  ;;  %2659 = vmatpush.msra.mxu3 %v9159_v24  ;;  %v10156_v57 = vld [vmem:[#allocation27_spill] sm:$0xff] }
 0x4d9   :  { %2685 = vmatpush.msra.mxu0 %v9144_v14  ;;  %2717 = vmatpush.msra.mxu1 %v9162_v40  ;;  %v1514_v14 = vadd.f32 %v10156_v57, %v10155_v56 }
 0x4da   :  { %2628 = vmatpush.msra.mxu2 %v9154_v52  ;;  %2660 = vmatpush.msra.mxu3 %v9171_v37 }
 0x4db   :  { %2686 = vmatpush.msra.mxu0 %v9156_v58  ;;  %2718 = vmatpush.msra.mxu1 %v9174_v50  ;;  %v10158_v58 = vld [vmem:[#allocation36_spill] sm:$0xff] }
 0x4dc   :  { %2629 = vmatpush.msra.mxu2 %v9166_v4  ;;  %2661 = vmatpush.msra.mxu3 %v9179_v41  ;;  %v1726_v41 = vadd.f32 %v9002_v39, %v1509_v35  ;;  %v10143_v39 = vld [vmem:[#allocation24_spill] sm:$0xff] }
 0x4dd   :  { %2687 = vmatpush.msra.mxu0 %v9168_v19  ;;  %2719 = vmatpush.msra.mxu1 %v9182_v5  ;;  %v10140_v5 = vld [vmem:[#allocation44_spill] sm:$0xff] }
 0x4de   :  { %2630 = vmatpush.msra.mxu2 %v9192_v38  ;;  %2662 = vmatpush.msra.mxu3 %v9194_v25  ;;  %v10144_v38 = vld [vmem:[#allocation25_spill] sm:$0xff]  ;;  %v1745_v54 = vadd.f32 %v10147_v1, %v1726_v41 }
 0x4df   :  { %2688 = vmatpush.msra.mxu0 %v9196_v16  ;;  %2720 = vmatpush.msra.mxu1 %v9200_v15  ;;  %v1471_v19 = vadd.f32 %v10144_v38, %v10143_v39  ;;  %v1731_v15 = vadd.f32 %v10158_v58, %v1514_v14 }
 0x4e0   :  { %2631 = vmatpush.msra.mxu2 %v9204_v34  ;;  %2663 = vmatpush.msra.mxu3 %v10140_v5  ;;  %v2087_v32 = vadd.f32 %v2077_v60, %v1745_v54 }
 0x4e1   :  { %2689 = vmatpush.msra.mxu0 %v10141_v22  ;;  %2721 = vmatpush.msra.mxu1 %v10142_v18  ;;  %v1688_v27 = vadd.f32 %v10149_v20, %v1471_v19  ;;  %v10164_v22 = vld [vmem:[#allocation42_spill] sm:$0xff]  ;;  %v10165_v18 = vld [vmem:[#allocation43_spill] sm:$0xff] }
 0x4e2   :  { %2632 = vmatpush.msra.mxu2 %v10145_v12  ;;  %2664 = vmatpush.msra.mxu3 %v10146_v36  ;;  %v2044_v60 = vadd.f32 %v10165_v18, %v10164_v22 }
 0x4e3   :  { %2690 = vmatpush.msra.mxu0 %v10148_v62  ;;  %2722 = vmatpush.msra.mxu1 %v9224_v33  ;;  %v1707_v47 = vadd.f32 %v10154_v42, %v1688_v27 }
 0x4e4   :  { %2633 = vmatpush.msra.mxu2 %v9228_v17  ;;  %v2082_v17 = vadd.f32 %v9296_v29, %v9294_v31 }
 0x4e5   :  { %2691 = vmatpush.msra.mxu0 %v10151_v6  ;;  %v2086_v8 = vadd.f32 %v2039_v45, %v1707_v47 }
 0x4e6   :  { %2634 = vmatpush.msra.mxu2 %v9236_v61  ;;  %v10159_v61 = vld [vmem:[#allocation28_spill] sm:$0xff] }
 0x4e7   :  { %2692 = vmatpush.msra.mxu0 %v9238_v3 }
 0x4e8   :  { %2635 = vmatpush.msra.mxu2 %v9248_v2  ;;  %v10160_v2 = vld [vmem:[#allocation29_spill] sm:$0xff] }
 0x4e9   :  { %2693 = vmatpush.msra.mxu0 %v9250_v53  ;;  %v1476_v11 = vadd.f32 %v10160_v2, %v10159_v61 }
 0x52c   :  { %v2395_v24 = vpop.f32.mrf.mxu0  ;;  %v2414_v40 = vpop.f32.mrf.mxu1 }
 0x52d   :  { %v2415_v37 = vadd.f32 %v2414_v40, %v2395_v24  ;;  %v1750_v24 = vadd.f32 %v10161_v26, %v1731_v15  ;;  %v10162_v40 = vld [vmem:[#allocation34_spill] sm:$0xff] }
 0x52e   :  { %v1693_v35 = vadd.f32 %v10162_v40, %v1476_v11 }
 0x52f   :  { %v9314_v50 = vadd.f32 %v2415_v37, %v2085_v55  ;;  %v10163_v55 = vld [vmem:[#allocation41_spill] sm:$0xff]  ;;  %v2091_v31 = vadd.f32 %v2082_v17, %v1750_v24 }
 0x531   :  { %2541 = vmatmul.f32.vlgmr.msrb.gmra.mxu3 %v9314_v50  ;;  %2599 = vmatmul.f32.vlgmr.msrb.gmra.mxu1 %v9314_v50  ;;  %v2357_v16 = vpop.f32.mrf.mxu2  ;;  %v2376_v25 = vpop.f32.mrf.mxu3  ;;  %v2613_v1 = vmul.f32 %v9314_v50, %v9314_v50 }
 0x532   :  { %v2377_v4 = vadd.f32 %v2376_v25, %v2357_v16  ;;  %v10166_v25 = vld [vmem:[#allocation35_spill] sm:$0xff] }
 0x533   :  { %v1712_v39 = vadd.f32 %v10166_v25, %v1693_v35 }
 0x534   :  { %v9333_v28 = vadd.f32 %v2377_v4, %v10150_v23  ;;  %v2397_v30 = vpop.f32.mrf.mxu0  ;;  %v2416_v46 = vpop.f32.mrf.mxu1 }
 0x535   :  { %v2417_v43 = vadd.f32 %v2416_v46, %v2397_v30  ;;  %v2090_v4 = vadd.f32 %v2044_v60, %v1712_v39 }
 0x536   :  { %2512 = vmatmul.f32.vlgmr.msrb.gmra.mxu2 %v9333_v28  ;;  %2570 = vmatmul.f32.vlgmr.msrb.gmra.mxu0 %v9333_v28  ;;  %v2612_v54 = vmul.f32 %v9333_v28, %v9333_v28 }
 0x537   :  { %v9341_v33 = vadd.f32 %v2417_v43, %v2087_v32 }
 0x539   :  { %2544 = vmatmul.f32.gmra.mxu3 %v9341_v33  ;;  %2602 = vmatmul.f32.gmra.mxu1 %v9341_v33  ;;  %v2359_v51 = vpop.f32.mrf.mxu2  ;;  %v2378_v63 = vpop.f32.mrf.mxu3  ;;  %v2615_v62 = vmul.f32 %v9341_v33, %v9341_v33 }
 0x53a   :  { %v2379_v9 = vadd.f32 %v2378_v63, %v2359_v51 }
 0x53c   :  { %v9352_v10 = vadd.f32 %v2379_v9, %v2086_v8  ;;  %v2400_v3 = vpop.f32.mrf.mxu0  ;;  %v2419_v13 = vpop.f32.mrf.mxu1 }
 0x53d   :  { %v2420_v52 = vadd.f32 %v2419_v13, %v2400_v3 }
 0x53e   :  { %2515 = vmatmul.f32.gmra.mxu2 %v9352_v10  ;;  %2573 = vmatmul.f32.gmra.mxu0 %v9352_v10  ;;  %v2614_v20 = vmul.f32 %v9352_v10, %v9352_v10 }
 0x53f   :  { %v9360_v34 = vadd.f32 %v2420_v52, %v2089_v44 }
 0x541   :  { %2547 = vmatmul.f32.gmra.mxu3 %v9360_v34  ;;  %2605 = vmatmul.f32.gmra.mxu1 %v9360_v34  ;;  %v2362_v53 = vpop.f32.mrf.mxu2  ;;  %v2381_v59 = vpop.f32.mrf.mxu3  ;;  %v2617_v27 = vmul.f32 %v9360_v34, %v9360_v34 }
 0x542   :  { %v2382_v21 = vadd.f32 %v2381_v59, %v2362_v53 }
 0x544   :  { %v9371_v37 = vadd.f32 %v2382_v21, %v10163_v55  ;;  %v2402_v41 = vpop.f32.mrf.mxu0  ;;  %v2421_v5 = vpop.f32.mrf.mxu1 }
 0x545   :  { %v2422_v29 = vadd.f32 %v2421_v5, %v2402_v41 }
 0x546   :  { %2518 = vmatmul.f32.gmra.mxu2 %v9371_v37  ;;  %2576 = vmatmul.f32.gmra.mxu0 %v9371_v37  ;;  %v2616_v23 = vmul.f32 %v9371_v37, %v9371_v37 }
 0x547   :  { %v9377_v16 = vadd.f32 %v2422_v29, %v2091_v31 }
 0x549   :  { %2550 = vmatmul.f32.gmra.mxu3 %v9377_v16  ;;  %2608 = vmatmul.f32.gmra.mxu1 %v9377_v16  ;;  %v2364_v38 = vpop.f32.mrf.mxu2  ;;  %v2383_v19 = vpop.f32.mrf.mxu3  ;;  %v2619_v30 = vmul.f32 %v9377_v16, %v9377_v16 }
 0x54a   :  { %v2384_v12 = vadd.f32 %v2383_v19, %v2364_v38 }
 0x54c   :  { %v9382_v36 = vadd.f32 %v2384_v12, %v2090_v4 }
 0x54e   :  { %2521 = vmatmul.f32.gmra.mxu2 %v9382_v36  ;;  %2579 = vmatmul.f32.gmra.mxu0 %v9382_v36  ;;  %v2618_v46 = vmul.f32 %v9382_v36, %v9382_v36 }
 0x551   :  { %2665 = vmatmul.f32.vlgmr.msra.gmra.mxu3 %v2613_v1  ;;  %2723 = vmatmul.f32.vlgmr.msra.gmra.mxu1 %v2613_v1 }
 0x556   :  { %2636 = vmatmul.f32.vlgmr.msra.gmra.mxu2 %v2612_v54  ;;  %2694 = vmatmul.f32.vlgmr.msra.gmra.mxu0 %v2612_v54 }
 0x559   :  { %2668 = vmatmul.f32.gmra.mxu3 %v2615_v62  ;;  %2726 = vmatmul.f32.gmra.mxu1 %v2615_v62 }
 0x55e   :  { %2639 = vmatmul.f32.gmra.mxu2 %v2614_v20  ;;  %2697 = vmatmul.f32.gmra.mxu0 %v2614_v20 }
 0x561   :  { %2671 = vmatmul.f32.gmra.mxu3 %v2617_v27  ;;  %2729 = vmatmul.f32.gmra.mxu1 %v2617_v27 }
 0x566   :  { %2642 = vmatmul.f32.gmra.mxu2 %v2616_v23  ;;  %2700 = vmatmul.f32.gmra.mxu0 %v2616_v23 }
 0x569   :  { %2674 = vmatmul.f32.gmra.mxu3 %v2619_v30  ;;  %2732 = vmatmul.f32.gmra.mxu1 %v2619_v30 }
 0x56e   :  { %2645 = vmatmul.f32.gmra.mxu2 %v2618_v46  ;;  %2703 = vmatmul.f32.gmra.mxu0 %v2618_v46 }
 0x5ae   :  { %v2600_v32 = vpop.f32.mrf.mxu1 }
 0x5b3   :  { %v2571_v43 = vpop.f32.mrf.mxu0 }
 0x5b4   :  { %v2542_v6 = vpop.f32.mrf.mxu3  ;;  %v2601_v52 = vadd.f32 %v2600_v32, %v2571_v43 }
 0x5b6   :  { %v2603_v48 = vpop.f32.mrf.mxu1 }
 0x5b9   :  { %v2513_v7 = vpop.f32.mrf.mxu2 }
 0x5ba   :  { %v2543_v21 = vadd.f32 %v2542_v6, %v2513_v7 }
 0x5bb   :  { %v2574_v45 = vpop.f32.mrf.mxu0 }
 0x5bc   :  { %v2545_v42 = vpop.f32.mrf.mxu3  ;;  %v2604_v0 = vadd.f32 %v2603_v48, %v2574_v45 }
 0x5be   :  { %v2606_v47 = vpop.f32.mrf.mxu1  ;;  %v2745_v17 = vadd.f32 %v2604_v0, %v2601_v52 }
 0x5c1   :  { %v2516_v49 = vpop.f32.mrf.mxu2 }
 0x5c2   :  { %v2546_v61 = vadd.f32 %v2545_v42, %v2516_v49 }
 0x5c3   :  { %v2577_v51 = vpop.f32.mrf.mxu0 }
 0x5c4   :  { %v2548_v63 = vpop.f32.mrf.mxu3  ;;  %v2607_v58 = vadd.f32 %v2606_v47, %v2577_v51  ;;  %v2736_v35 = vadd.f32 %v2546_v61, %v2543_v21 }
 0x5c6   :  { %v2609_v8 = vpop.f32.mrf.mxu1  ;;  %v2746_v2 = vadd.f32 %v2745_v17, %v2607_v58 }
 0x5c9   :  { %v2519_v9 = vpop.f32.mrf.mxu2 }
 0x5ca   :  { %v2549_v26 = vadd.f32 %v2548_v63, %v2519_v9 }
 0x5cb   :  { %v2580_v3 = vpop.f32.mrf.mxu0 }
 0x5cc   :  { %v2551_v13 = vpop.f32.mrf.mxu3  ;;  %v2610_v53 = vadd.f32 %v2609_v8, %v2580_v3  ;;  %v2737_v41 = vadd.f32 %v2736_v35, %v2549_v26 }
 0x5ce   :  { %v2724_v56 = vpop.f32.mrf.mxu1  ;;  %v2747_v24 = vadd.f32 %v2746_v2, %v2610_v53 }
 0x5d0   :  { %v2748_v5 = vrot.slane %v2747_v24, 4 }
 0x5d1   :  { %v2522_v57 = vpop.f32.mrf.mxu2 }
 0x5d2   :  { %v2552_v55 = vadd.f32 %v2551_v13, %v2522_v57  ;;  %v2749_v60 = vadd.f32 %v2748_v5, %v2747_v24 }
 0x5d3   :  { %v2695_v14 = vpop.f32.mrf.mxu0 }
 0x5d4   :  { %v2666_v44 = vpop.f32.mrf.mxu3  ;;  %v2738_v22 = vadd.f32 %v2737_v41, %v2552_v55  ;;  %v2750_v19 = vrot.slane %v2749_v60, 2  ;;  %v2725_v4 = vadd.f32 %v2724_v56, %v2695_v14 }
 0x5d6   :  { %v2727_v15 = vpop.f32.mrf.mxu1  ;;  %v2739_v25 = vrot.slane %v2738_v22, 4  ;;  %v2751_v23 = vadd.f32 %v2750_v19, %v2749_v60 }
 0x5d8   :  { %v2740_v54 = vadd.f32 %v2739_v25, %v2738_v22  ;;  %v2752_v45 = vrot.slane %v2751_v23, 1 }
 0x5d9   :  { %v2637_v59 = vpop.f32.mrf.mxu2 }
 0x5da   :  { %v2741_v43 = vrot.slane %v2740_v54, 2  ;;  %v2667_v6 = vadd.f32 %v2666_v44, %v2637_v59  ;;  %v2753_v13 = vadd.f32 %v2752_v45, %v2751_v23 }
 0x5db   :  { %v2698_v11 = vpop.f32.mrf.mxu0 }
 0x5dc   :  { %v2669_v40 = vpop.f32.mrf.mxu3  ;;  %v2728_v39 = vadd.f32 %v2727_v15, %v2698_v11  ;;  %v2742_v63 = vadd.f32 %v2741_v43, %v2740_v54  ;;  %v2755_v58 = vmul.f32 0.001953125, %v2753_v13 }
 0x5de   :  { %v2730_v31 = vpop.f32.mrf.mxu1  ;;  %v2765_v62 = vadd.f32 %v2728_v39, %v2725_v4  ;;  %v2743_v14 = vrot.slane %v2742_v63, 1  ;;  %v2777_v2 = vmul.f32 %v2755_v58, %v2755_v58  ;;  %v2781_v54 = vsub.f32 %v9314_v50, %v2755_v58 }
 0x5e0   :  { %v2744_v17 = vadd.f32 %v2743_v14, %v2742_v63 }
 0x5e1   :  { %v2640_v29 = vpop.f32.mrf.mxu2 }
 0x5e2   :  { %v2670_v30 = vadd.f32 %v2669_v40, %v2640_v29  ;;  %v9402_v21 = vmul.f32 0.001953125, %v2744_v17  ;;  %v8008_v17 = vld [vmem:[#allocation9 + $0x1e4] sm:$0xf] }
 0x5e3   :  { %v2701_v18 = vpop.f32.mrf.mxu0 }
 0x5e4   :  { %v2672_v38 = vpop.f32.mrf.mxu3  ;;  %v2731_v12 = vadd.f32 %v2730_v31, %v2701_v18  ;;  %v2756_v42 = vadd.f32 %v2670_v30, %v2667_v6  ;;  %v2776_v41 = vmul.f32 %v9402_v21, %v9402_v21  ;;  %v2784_v6 = vsub.f32 %v9371_v37, %v9402_v21 }
 0x5e5   :  { %v2780_v63 = vsub.f32 %v9333_v28, %v9402_v21  ;;  %v2782_v13 = vsub.f32 %v9352_v10, %v9402_v21  ;;  %v8009_v28 = vld [vmem:[#allocation9 + $0x1e4] sm:$0xf0] }
 0x5e6   :  { %v2733_v20 = vpop.f32.mrf.mxu1  ;;  %v2766_v46 = vadd.f32 %v2765_v62, %v2731_v12  ;;  %v2785_v12 = vsub.f32 %v9360_v34, %v2755_v58  ;;  %v2783_v62 = vsub.f32 %v9341_v33, %v2755_v58  ;;  %v2786_v34 = vsub.f32 %v9382_v36, %v9402_v21 }
 0x5e9   :  { %v2643_v1 = vpop.f32.mrf.mxu2 }
 0x5ea   :  { %v2673_v48 = vadd.f32 %v2672_v38, %v2643_v1  ;;  %v2787_v1 = vsub.f32 %v9377_v16, %v2755_v58 }
 0x5eb   :  { %v2704_v27 = vpop.f32.mrf.mxu0 }
 0x5ec   :  { %v2734_v32 = vadd.f32 %v2733_v20, %v2704_v27  ;;  %v2675_v49 = vpop.f32.mrf.mxu3  ;;  %v2757_v8 = vadd.f32 %v2756_v42, %v2673_v48 }
 0x5ee   :  { %v2767_v7 = vadd.f32 %v2766_v46, %v2734_v32 }
 0x5f0   :  { %v2768_v47 = vrot.slane %v2767_v7, 4 }
 0x5f1   :  { %v2646_v51 = vpop.f32.mrf.mxu2 }
 0x5f2   :  { %v2769_v9 = vadd.f32 %v2768_v47, %v2767_v7  ;;  %v2676_v3 = vadd.f32 %v2675_v49, %v2646_v51  ;;  %v6829_v47 = vld [vmem:[#allocation9 + $0x1f0] sm:$0xf]  ;;  %v8011_v49 = vld [vmem:[#allocation9 + $0x1f4] sm:$0xf0] }
 0x5f4   :  { %v2770_v56 = vrot.slane %v2769_v9, 2  ;;  %v2758_v57 = vadd.f32 %v2757_v8, %v2676_v3  ;;  %v8010_v8 = vld [vmem:[#allocation9 + $0x1f4] sm:$0xf] }
 0x5f6   :  { %v2771_v0 = vadd.f32 %v2770_v56, %v2769_v9  ;;  %v2759_v52 = vrot.slane %v2758_v57, 4  ;;  %v6831_v9 = vld [vmem:[#allocation9 + $0x1f8] sm:$0xf0] }
 0x5f8   :  { %v2772_v15 = vrot.slane %v2771_v0, 1  ;;  %v2760_v44 = vadd.f32 %v2759_v52, %v2758_v57 }
 0x5fa   :  { %v2773_v53 = vadd.f32 %v2772_v15, %v2771_v0  ;;  %v2761_v59 = vrot.slane %v2760_v44, 2  ;;  %v6821_v0 = vld [vmem:[#allocation9 + $0x1e0] sm:$0xf]  ;;  %v6830_v15 = vor.u32 %v8011_v49, %v6829_v47  ;;  %v8003_v47 = vld [vmem:[#allocation9 + $0x1b4] sm:$0xf0] }
 0x5fb   :  { %v8002_v49 = vld [vmem:[#allocation9 + $0x1b4] sm:$0xf] }
 0x5fc   :  { %v2775_v61 = vmul.f32 0.001953125, %v2773_v53  ;;  %v2762_v11 = vadd.f32 %v2761_v59, %v2760_v44  ;;  %v6834_v44 = vor.u32 %v8010_v8, %v6831_v9  ;;  %v6823_v53 = vld [vmem:[#allocation9 + $0x1e8] sm:$0xf0]  ;;  %v6741_v8 = vld [vmem:[#allocation9 + $0x140] sm:$0xf] }
 0x5fd   :  { %v7989_v9 = vld [vmem:[#allocation9 + $0x144] sm:$0xf0] }
 0x5fe   :  { %v2779_v26 = vsub.f32 %v2775_v61, %v2777_v2  ;;  %v2763_v24 = vrot.slane %v2762_v11, 1  ;;  %v7979_v61 = vld [vmem:[#allocation7 + $0x8] sm:$0xff] }
 0x600   :  { %v2789_v40 = vadd.f32 1e-05, %v2779_v26  ;;  %v2764_v35 = vadd.f32 %v2763_v24, %v2762_v11  ;;  %v7946_v24 = vld [vmem:[#allocation7] sm:$0xff] }
 0x602   :  { %8223 = vrsqrt.f32 %v2789_v40  ;;  %v2774_v55 = vmul.f32 0.001953125, %v2764_v35  ;;  %vm2806_vm2 = vweird.f32 %v2789_v40  ;;  %v7995_v35 = vld [vmem:[#allocation9 + $0x174] sm:$0xf0] }
 0x604   :  { %v2778_v5 = vsub.f32 %v2774_v55, %v2776_v41  ;;  %v6822_v41 = vor.u32 %v8009_v28, %v6821_v0  ;;  %v8001_v0 = vld [vmem:[#allocation9 + $0x1a4] sm:$0xf0] }
 0x606   :  { %v2788_v31 = vadd.f32 1e-05, %v2778_v5  ;;  %v6826_v5 = vor.u32 %v8008_v17, %v6823_v53  ;;  %v6733_v17 = vld [vmem:[#allocation9 + $0x130] sm:$0xf]  ;;  %v7987_v53 = vld [vmem:[#allocation9 + $0x134] sm:$0xf0] }
 0x608   :  { %v8224_v29 = vpop.eup %8223  ;;  %8225 = vrsqrt.f32 %v2788_v31  ;;  %vm2796_vm9 = vweird.f32 %v2788_v31 }
 0x609   :  { %v2801_v22 = vmul.f32 %v8224_v29, %v2789_v40  ;;  %vm2807_vm0 = vweird.f32 %v8224_v29  ;;  %v6765_v40 = vld [vmem:[#allocation9 + $0x170] sm:$0xf] }
 0x60a   :  { %vm2808_vm3 = vmor %vm2806_vm2, %vm2807_vm0 }
 0x60b   :  { %v2802_v18 = vmul.f32 %v8224_v29, %v2801_v22  ;;  %v6813_v22 = vld [vmem:[#allocation9 + $0x1d0] sm:$0xf] }
 0x60d   :  { %v2803_v60 = vmul.f32 0.5, %v2802_v18 }
 0x60e   :  { %v8226_v25 = vpop.eup %8225 }
 0x60f   :  { %v2804_v39 = vsub.f32 1.5, %v2803_v60  ;;  %v2791_v38 = vmul.f32 %v8226_v25, %v2788_v31  ;;  %vm2797_vm4 = vweird.f32 %v8226_v25  ;;  %v7994_v31 = vld [vmem:[#allocation9 + $0x174] sm:$0xf] }
 0x610   :  { %vm2798_vm10 = vmor %vm2796_vm9, %vm2797_vm4 }
 0x611   :  { %v2792_v19 = vmul.f32 %v8226_v25, %v2791_v38  ;;  %v2805_v4 = vmul.f32 %v8224_v29, %v2804_v39  ;;  %v8006_v39 = vld [vmem:[#allocation9 + $0x1d4] sm:$0xf]  ;;  %v6815_v38 = vld [vmem:[#allocation9 + $0x1d8] sm:$0xf0] }
 0x613   :  { %v2793_v20 = vmul.f32 0.5, %v2792_v19  ;;  %v2809_v27 = vsel %vm2808_vm3, %v8224_v29, %v2805_v4  ;;  %v6767_v29 = vld [vmem:[#allocation9 + $0x178] sm:$0xf0]  ;;  %v6766_v19 = vor.u32 %v7995_v35, %v6765_v40  ;;  %v6734_v40 = vor.u32 %v7987_v53, %v6733_v17  ;;  %v6885_v17 = vld [vmem:[#allocation9 + $0x60] sm:$0xf] }
 0x614   :  { %v2815_v23 = vmul.f32 %v2809_v27, %v2785_v12  ;;  %v2817_v30 = vmul.f32 %v2809_v27, %v2787_v1  ;;  %v2811_v46 = vmul.f32 %v2809_v27, %v2781_v54  ;;  %v2813_v32 = vmul.f32 %v2809_v27, %v2783_v62  ;;  %v6757_v12 = vld [vmem:[#allocation9 + $0x160] sm:$0xf]  ;;  %v7993_v1 = vld [vmem:[#allocation9 + $0x164] sm:$0xf0]  ;;  %v7992_v27 = vld [vmem:[#allocation9 + $0x164] sm:$0xf] }
 0x615   :  { %v2794_v43 = vsub.f32 1.5, %v2793_v20  ;;  %v6770_v4 = vor.u32 %v7994_v31, %v6767_v29  ;;  %v6818_v20 = vor.u32 %v8006_v39, %v6815_v38  ;;  %v7984_v31 = vld [vmem:[#allocation9 + $0x124] sm:$0xf]  ;;  %v6775_v38 = vld [vmem:[#allocation9 + $0x188] sm:$0xf0] }
 0x616   :  { %vm2823_vm5 = vcmp.ge.f32.partialorder %v2815_v23, 0.0  ;;  %vm2825_vm6 = vcmp.ge.f32.partialorder %v2817_v30, 0.0  ;;  %v2831_v16 = vmul.f32 0.2, %v2815_v23  ;;  %v2833_v50 = vmul.f32 0.2, %v2817_v30 }
 0x617   :  { %vm2819_vm7 = vcmp.ge.f32.partialorder %v2811_v46, 0.0  ;;  %vm2821_vm8 = vcmp.ge.f32.partialorder %v2813_v32, 0.0  ;;  %v2827_v33 = vmul.f32 0.2, %v2811_v46  ;;  %v2829_v48 = vmul.f32 0.2, %v2813_v32 }
 0x618   :  { %v2839_v7 = vsel %vm2823_vm5, %v2815_v23, %v2831_v16  ;;  %v2841_v45 = vsel %vm2825_vm6, %v2817_v30, %v2833_v50  ;;  %v2795_v42 = vmul.f32 %v8226_v25, %v2794_v43  ;;  %v6759_v23 = vld [vmem:[#allocation9 + $0x168] sm:$0xf0]  ;;  %v6805_v30 = vld [vmem:[#allocation9 + $0x1c0] sm:$0xf]  ;;  %v6749_v16 = vld [vmem:[#allocation9 + $0x150] sm:$0xf] }
 0x619   :  { %v9415_v37 = vpack.c.bf16 %v2841_v45, %v2839_v7  ;;  %v2835_v51 = vsel %vm2819_vm7, %v2811_v46, %v2827_v33  ;;  %v2837_v36 = vsel %vm2821_vm8, %v2813_v32, %v2829_v48  ;;  %v8005_v46 = vld [vmem:[#allocation9 + $0x1c4] sm:$0xf0]  ;;  %v8004_v32 = vld [vmem:[#allocation9 + $0x1c4] sm:$0xf]  ;;  %v6807_v43 = vld [vmem:[#allocation9 + $0x1c8] sm:$0xf0] }
 0x61a   :  { %v2799_v3 = vsel %vm2798_vm10, %v8226_v25, %v2795_v42  ;;  %v9423_v52 = vpack.c.bf16 %v2837_v36, %v2835_v51  ;;  %v8007_v25 = vld [vmem:[#allocation9 + $0x1d4] sm:$0xf0]  ;;  %v6806_v33 = vor.u32 %v8005_v46, %v6805_v30  ;;  %v6810_v48 = vor.u32 %v8004_v32, %v6807_v43  ;;  %v7990_v7 = vld [vmem:[#allocation9 + $0x154] sm:$0xf]  ;;  %v6751_v45 = vld [vmem:[#allocation9 + $0x158] sm:$0xf0] }
 0x61b   :  { %2877 = vmatpush.bf16.msrb.mxu3 %v9415_v37  ;;  %2950 = vmatpush.bf16.msrb.mxu1 %v9415_v37  ;;  %v2814_v56 = vmul.f32 %v2799_v3, %v2784_v6  ;;  %v2816_v57 = vmul.f32 %v2799_v3, %v2786_v34  ;;  %v2810_v14 = vmul.f32 %v2799_v3, %v2780_v63  ;;  %v7991_v50 = vld [vmem:[#allocation9 + $0x154] sm:$0xf0]  ;;  %v6797_v42 = vld [vmem:[#allocation9 + $0x1b0] sm:$0xf]  ;;  %v6799_v51 = vld [vmem:[#allocation9 + $0x1b8] sm:$0xf0] }
 0x61c   :  { %v2812_v58 = vmul.f32 %v2799_v3, %v2782_v13  ;;  %v6814_v62 = vor.u32 %v8007_v25, %v6813_v22  ;;  %v6758_v6 = vor.u32 %v7993_v1, %v6757_v12  ;;  %v6762_v34 = vor.u32 %v7992_v27, %v6759_v23  ;;  %v7997_v25 = vld [vmem:[#allocation9 + $0x184] sm:$0xf0]  ;;  %v7996_v39 = vld [vmem:[#allocation9 + $0x184] sm:$0xf]  ;;  %v7977_v12 = vld [vmem:[#allocation9 + $0xf4] sm:$0xf] }
 0x61d   :  { %vm2822_vm11 = vcmp.ge.f32.partialorder %v2814_v56, 0.0  ;;  %vm2824_vm12 = vcmp.ge.f32.partialorder %v2816_v57, 0.0  ;;  %v2830_v59 = vmul.f32 0.2, %v2814_v56  ;;  %v2832_v10 = vmul.f32 0.2, %v2816_v57 }
 0x61e   :  { %vm2818_vm13 = vcmp.ge.f32.partialorder %v2810_v14, 0.0  ;;  %vm2820_vm14 = vcmp.ge.f32.partialorder %v2812_v58, 0.0  ;;  %v2826_v2 = vmul.f32 0.2, %v2810_v14  ;;  %v2828_v11 = vmul.f32 0.2, %v2812_v58 }
 0x61f   :  { %2878 = vmatpush.bf16.msrb.mxu3 %v9423_v52  ;;  %2951 = vmatpush.bf16.msrb.mxu1 %v9423_v52  ;;  %v2838_v21 = vsel %vm2822_vm11, %v2814_v56, %v2830_v59  ;;  %v2840_v26 = vsel %vm2824_vm12, %v2816_v57, %v2832_v10  ;;  %v6750_v36 = vor.u32 %v7991_v50, %v6749_v16  ;;  %v7988_v56 = vld [vmem:[#allocation9 + $0x144] sm:$0xf]  ;;  %v6743_v57 = vld [vmem:[#allocation9 + $0x148] sm:$0xf0]  ;;  %v6959_v1 = vld [vmem:[#allocation9 + $0xf8] sm:$0xf0] }
 0x620   :  { %v9427_v55 = vpack.c.bf16 %v2840_v26, %v2838_v21  ;;  %v2834_v18 = vsel %vm2818_vm13, %v2810_v14, %v2826_v2  ;;  %v2836_v60 = vsel %vm2820_vm14, %v2812_v58, %v2828_v11  ;;  %v6754_v63 = vor.u32 %v7990_v7, %v6751_v45  ;;  %v6789_v14 = vld [vmem:[#allocation9 + $0x1a0] sm:$0xf]  ;;  %v8000_v58 = vld [vmem:[#allocation9 + $0x1a4] sm:$0xf]  ;;  %v6735_v2 = vld [vmem:[#allocation9 + $0x138] sm:$0xf0] }
 0x621   :  { %v9435_v54 = vpack.c.bf16 %v2836_v60, %v2834_v18  ;;  %v6798_v3 = vor.u32 %v8003_v47, %v6797_v42  ;;  %v6802_v13 = vor.u32 %v8002_v49, %v6799_v51  ;;  %v6746_v28 = vor.u32 %v7988_v56, %v6743_v57  ;;  %v6781_v11 = vld [vmem:[#allocation9 + $0x190] sm:$0xf]  ;;  %v7999_v21 = vld [vmem:[#allocation9 + $0x194] sm:$0xf0]  ;;  %v7998_v26 = vld [vmem:[#allocation9 + $0x194] sm:$0xf] }
 0x622   :  { %2863 = vmatpush.bf16.msrb.mxu2 %v9427_v55  ;;  %2936 = vmatpush.bf16.msrb.mxu0 %v9427_v55  ;;  %v6790_v59 = vor.u32 %v8001_v0, %v6789_v14  ;;  %v6782_v29 = vor.u32 %v7999_v21, %v6781_v11  ;;  %v6727_v18 = vld [vmem:[#allocation9 + $0x128] sm:$0xf0]  ;;  %v6773_v60 = vld [vmem:[#allocation9 + $0x180] sm:$0xf]  ;;  %v6717_v27 = vld [vmem:[#allocation9 + $0x110] sm:$0xf]  ;;  %v6778_v30 = vor.u32 %v7996_v39, %v6775_v38 }
 0x623   :  { %3167 = vmatpush.bf16.msra.mxu3 %v6830_v15  ;;  %3195 = vmatpush.bf16.msra.mxu1 %v6834_v44  ;;  %v6791_v15 = vld [vmem:[#allocation9 + $0x1a8] sm:$0xf0]  ;;  %v6742_v44 = vor.u32 %v7989_v9, %v6741_v8  ;;  %v6774_v23 = vor.u32 %v7997_v25, %v6773_v60  ;;  %v7983_v46 = vld [vmem:[#allocation9 + $0x114] sm:$0xf0]  ;;  %v7982_v32 = vld [vmem:[#allocation9 + $0x114] sm:$0xf] }
 0x624   :  { %6706 = vmatmul.msk.bf16.vlgmr.msrb.gmra.mxu1 %vm2853_vm15, %v7979_v61  ;;  %6700 = vmatmul.msk.bf16.vlgmr.msrb.gmra.mxu3 %vm2853_vm15, %v7946_v24  ;;  %v6794_v10 = vor.u32 %v8000_v58, %v6791_v15  ;;  %v6719_v43 = vld [vmem:[#allocation9 + $0x118] sm:$0xf0]  ;;  %v6949_v16 = vld [vmem:[#allocation9 + $0xe0] sm:$0xf]  ;;  %v7976_v50 = vld [vmem:[#allocation9 + $0xe4] sm:$0xf0]  ;;  %v6718_v7 = vor.u32 %v7983_v46, %v6717_v27 }
 0x625   :  { %v6722_v45 = vor.u32 %v7982_v32, %v6719_v43  ;;  %v6709_v42 = vld [vmem:[#allocation9 + $0x100] sm:$0xf]  ;;  %v7981_v47 = vld [vmem:[#allocation9 + $0x104] sm:$0xf0]  ;;  %v7980_v49 = vld [vmem:[#allocation9 + $0x104] sm:$0xf]  ;;  %v6950_v8 = vor.u32 %v7976_v50, %v6949_v16 }
 0x626   :  { %2864 = vmatpush.bf16.msrb.mxu2 %v9435_v54  ;;  %2937 = vmatpush.bf16.msrb.mxu0 %v9435_v54  ;;  %v6711_v51 = vld [vmem:[#allocation9 + $0x108] sm:$0xf0]  ;;  %v6941_v56 = vld [vmem:[#allocation9 + $0xd0] sm:$0xf]  ;;  %v7974_v57 = vld [vmem:[#allocation9 + $0xd4] sm:$0xf0]  ;;  %v6710_v58 = vor.u32 %v7981_v47, %v6709_v42 }
 0x627   :  { %3168 = vmatpush.bf16.msra.mxu3 %v6822_v41  ;;  %3196 = vmatpush.bf16.msra.mxu1 %v6826_v5  ;;  %v6725_v41 = vld [vmem:[#allocation9 + $0x120] sm:$0xf]  ;;  %v7985_v5 = vld [vmem:[#allocation9 + $0x124] sm:$0xf0]  ;;  %v7973_v14 = vld [vmem:[#allocation9 + $0xd4] sm:$0xf]  ;;  %v6714_v15 = vor.u32 %v7980_v49, %v6711_v51 }
 0x628   :  { %v6943_v0 = vld [vmem:[#allocation9 + $0xd8] sm:$0xf0]  ;;  %v7960_v53 = vld [vmem:[#allocation9 + $0x64] sm:$0xf0]  ;;  %v6933_v11 = vld [vmem:[#allocation9 + $0xc0] sm:$0xf] }
 0x629   :  { %6705 = vmatmul.msk.bf16.vlgmr.msrb.gmra.mxu0 %vm2853_vm15, %v7979_v61  ;;  %6699 = vmatmul.msk.bf16.vlgmr.msrb.gmra.mxu2 %vm2853_vm15, %v7946_v24  ;;  %v7986_v61 = vld [vmem:[#allocation9 + $0x134] sm:$0xf]  ;;  %v6783_v24 = vld [vmem:[#allocation9 + $0x198] sm:$0xf0]  ;;  %v7972_v21 = vld [vmem:[#allocation9 + $0xc4] sm:$0xf0] }
 0x62a   :  { %3153 = vmatpush.bf16.msra.mxu2 %v6766_v19  ;;  %3181 = vmatpush.bf16.msra.mxu0 %v6770_v4  ;;  %v6738_v35 = vor.u32 %v7986_v61, %v6735_v2  ;;  %v6786_v22 = vor.u32 %v7998_v26, %v6783_v24  ;;  %v6957_v19 = vld [vmem:[#allocation9 + $0xf0] sm:$0xf]  ;;  %v7978_v4 = vld [vmem:[#allocation9 + $0xf4] sm:$0xf0]  ;;  %v7959_v61 = vld [vmem:[#allocation9 + $0x64] sm:$0xf] }
 0x62b   :  { %3169 = vmatpush.bf16.msra.mxu3 %v6814_v62  ;;  %3197 = vmatpush.bf16.msra.mxu1 %v6818_v20  ;;  %v6726_v62 = vor.u32 %v7985_v5, %v6725_v41  ;;  %v6730_v20 = vor.u32 %v7984_v31, %v6727_v18  ;;  %v6887_v2 = vld [vmem:[#allocation9 + $0x68] sm:$0xf0]  ;;  %v7971_v26 = vld [vmem:[#allocation9 + $0xc4] sm:$0xf]  ;;  %v6877_v41 = vld [vmem:[#allocation9 + $0x50] sm:$0xf]  ;;  %v6934_v31 = vor.u32 %v7972_v21, %v6933_v11 }
 0x62c   :  { %v6935_v24 = vld [vmem:[#allocation9 + $0xc8] sm:$0xf0]  ;;  %v7958_v5 = vld [vmem:[#allocation9 + $0x54] sm:$0xf0]  ;;  %v6879_v18 = vld [vmem:[#allocation9 + $0x58] sm:$0xf0] }
 0x62d   :  { %v6925_v60 = vld [vmem:[#allocation9 + $0xb0] sm:$0xf]  ;;  %v7970_v25 = vld [vmem:[#allocation9 + $0xb4] sm:$0xf0]  ;;  %v7969_v39 = vld [vmem:[#allocation9 + $0xb4] sm:$0xf] }
 0x62e   :  { %3154 = vmatpush.bf16.msra.mxu2 %v6758_v6  ;;  %3182 = vmatpush.bf16.msra.mxu0 %v6762_v34  ;;  %v6958_v6 = vor.u32 %v7978_v4, %v6957_v19  ;;  %v6962_v34 = vor.u32 %v7977_v12, %v6959_v1  ;;  %v6927_v38 = vld [vmem:[#allocation9 + $0xb8] sm:$0xf0]  ;;  %v6878_v19 = vor.u32 %v7958_v5, %v6877_v41  ;;  %v7955_v27 = vld [vmem:[#allocation9 + $0x44] sm:$0xf]  ;;  %v6917_v32 = vld [vmem:[#allocation9 + $0xa0] sm:$0xf] }
 0x62f   :  { %3170 = vmatpush.bf16.msra.mxu3 %v6806_v33  ;;  %3198 = vmatpush.bf16.msra.mxu1 %v6810_v48  ;;  %v7975_v33 = vld [vmem:[#allocation9 + $0xe4] sm:$0xf]  ;;  %v6951_v48 = vld [vmem:[#allocation9 + $0xe8] sm:$0xf0]  ;;  %v6926_v12 = vor.u32 %v7970_v25, %v6925_v60  ;;  %v6930_v1 = vor.u32 %v7969_v39, %v6927_v38  ;;  %v7968_v43 = vld [vmem:[#allocation9 + $0xa4] sm:$0xf0] }
 0x630   :  { %v6954_v9 = vor.u32 %v7975_v33, %v6951_v48  ;;  %v6919_v16 = vld [vmem:[#allocation9 + $0xa8] sm:$0xf0]  ;;  %v6861_v50 = vld [vmem:[#allocation9 + $0x30] sm:$0xf]  ;;  %v7954_v33 = vld [vmem:[#allocation9 + $0x34] sm:$0xf0] }
 0x631   :  { %v6863_v42 = vld [vmem:[#allocation9 + $0x38] sm:$0xf0]  ;;  %v6909_v49 = vld [vmem:[#allocation9 + $0x90] sm:$0xf]  ;;  %v7966_v51 = vld [vmem:[#allocation9 + $0x94] sm:$0xf0] }
 0x632   :  { %3155 = vmatpush.bf16.msra.mxu2 %v6750_v36  ;;  %3183 = vmatpush.bf16.msra.mxu0 %v6754_v63  ;;  %v6893_v36 = vld [vmem:[#allocation9 + $0x70] sm:$0xf]  ;;  %v7962_v63 = vld [vmem:[#allocation9 + $0x74] sm:$0xf0]  ;;  %v6847_v11 = vld [vmem:[#allocation9 + $0x18] sm:$0xf0] }
 0x633   :  { %3171 = vmatpush.bf16.msra.mxu3 %v6798_v3  ;;  %3199 = vmatpush.bf16.msra.mxu1 %v6802_v13  ;;  %v7961_v3 = vld [vmem:[#allocation9 + $0x74] sm:$0xf]  ;;  %v6895_v13 = vld [vmem:[#allocation9 + $0x78] sm:$0xf0]  ;;  %v6839_v41 = vld [vmem:[#allocation9 + $0x8] sm:$0xf0] }
 0x634   :  { %v7083_v38 = vld [vmem:[#allocation9 + $0x2e0] sm:$0xf]  ;;  %vm4346_vm8 = vcmask 130048  }
 0x636   :  { %3156 = vmatpush.bf16.msra.mxu2 %v6742_v44  ;;  %3184 = vmatpush.bf16.msra.mxu0 %v6746_v28  ;;  %v6894_v44 = vor.u32 %v7962_v63, %v6893_v36  ;;  %v6898_v28 = vor.u32 %v7961_v3, %v6895_v13  ;;  %v7965_v36 = vld [vmem:[#allocation9 + $0x94] sm:$0xf]  ;;  %v6910_v63 = vor.u32 %v7966_v51, %v6909_v49  ;;  %v6853_v3 = vld [vmem:[#allocation9 + $0x20] sm:$0xf]  ;;  %v7952_v13 = vld [vmem:[#allocation9 + $0x24] sm:$0xf0] }
 0x637   :  { %3172 = vmatpush.bf16.msra.mxu3 %v6790_v59  ;;  %3200 = vmatpush.bf16.msra.mxu1 %v6794_v10  ;;  %v6942_v59 = vor.u32 %v7974_v57, %v6941_v56  ;;  %v6946_v10 = vor.u32 %v7973_v14, %v6943_v0  ;;  %v7951_v56 = vld [vmem:[#allocation9 + $0x24] sm:$0xf]  ;;  %v6854_v57 = vor.u32 %v7952_v13, %v6853_v3  ;;  %v6855_v14 = vld [vmem:[#allocation9 + $0x28] sm:$0xf0]  ;;  %v7051_v3 = vld [vmem:[#allocation9 + $0x2a0] sm:$0xf] }
 0x638   :  { %v6858_v0 = vor.u32 %v7951_v56, %v6855_v14  ;;  %v8034_v13 = vld [vmem:[#allocation9 + $0x2a4] sm:$0xf0]  ;;  %v8020_v14 = vld [vmem:[#allocation9 + $0x234] sm:$0xf0] }
 0x63a   :  { %3157 = vmatpush.bf16.msra.mxu2 %v6734_v40  ;;  %3185 = vmatpush.bf16.msra.mxu0 %v6738_v35  ;;  %v6886_v40 = vor.u32 %v7960_v53, %v6885_v17  ;;  %v6890_v35 = vor.u32 %v7959_v61, %v6887_v2  ;;  %v6903_v17 = vld [vmem:[#allocation9 + $0x88] sm:$0xf0]  ;;  %v7949_v61 = vld [vmem:[#allocation9 + $0x14] sm:$0xf] }
 0x63b   :  { %3173 = vmatpush.bf16.msra.mxu3 %v6782_v29  ;;  %3201 = vmatpush.bf16.msra.mxu1 %v6786_v22  ;;  %v6938_v29 = vor.u32 %v7971_v26, %v6935_v24  ;;  %v7957_v22 = vld [vmem:[#allocation9 + $0x54] sm:$0xf]  ;;  %v6850_v21 = vor.u32 %v7949_v61, %v6847_v11  ;;  %v6837_v26 = vld [vmem:[#allocation9] sm:$0xf]  ;;  %v7948_v24 = vld [vmem:[#allocation9 + $0x4] sm:$0xf0] }
 0x63c   :  { %v6882_v4 = vor.u32 %v7957_v22, %v6879_v18  ;;  %v8044_v22 = vld [vmem:[#allocation9 + $0x2f4] sm:$0xf0]  ;;  %v7035_v61 = vld [vmem:[#allocation9 + $0x280] sm:$0xf] }
 0x63e   :  { %3158 = vmatpush.bf16.msra.mxu2 %v6726_v62  ;;  %3186 = vmatpush.bf16.msra.mxu0 %v6730_v20  ;;  %v6869_v62 = vld [vmem:[#allocation9 + $0x40] sm:$0xf]  ;;  %v7956_v20 = vld [vmem:[#allocation9 + $0x44] sm:$0xf0] }
 0x63f   :  { %3174 = vmatpush.bf16.msra.mxu3 %v6774_v23  ;;  %3202 = vmatpush.bf16.msra.mxu1 %v6778_v30  ;;  %v6870_v23 = vor.u32 %v7956_v20, %v6869_v62  ;;  %v6871_v30 = vld [vmem:[#allocation9 + $0x48] sm:$0xf0]  ;;  %v7075_v20 = vld [vmem:[#allocation9 + $0x2d0] sm:$0xf] }
 0x640   :  { %v6874_v46 = vor.u32 %v7955_v27, %v6871_v30  ;;  %v8040_v27 = vld [vmem:[#allocation9 + $0x2d4] sm:$0xf0] }
 0x642   :  { %3159 = vmatpush.bf16.msra.mxu2 %v6718_v7  ;;  %3187 = vmatpush.bf16.msra.mxu0 %v6722_v45  ;;  %v6862_v7 = vor.u32 %v7954_v33, %v6861_v50  ;;  %v7953_v45 = vld [vmem:[#allocation9 + $0x34] sm:$0xf] }
 0x643   :  { %3383 = vmatpush.bf16.msrb.mxu3 %v6958_v6  ;;  %3411 = vmatpush.bf16.msrb.mxu1 %v6962_v34  ;;  %v7967_v6 = vld [vmem:[#allocation9 + $0xa4] sm:$0xf]  ;;  %v6918_v34 = vor.u32 %v7968_v43, %v6917_v32  ;;  %v6866_v47 = vor.u32 %v7953_v45, %v6863_v42  ;;  %v7019_v32 = vld [vmem:[#allocation9 + $0x260] sm:$0xf]  ;;  %v8026_v43 = vld [vmem:[#allocation9 + $0x264] sm:$0xf0] }
 0x644   :  { %v6922_v48 = vor.u32 %v7967_v6, %v6919_v16  ;;  %v7076_v6 = vor.u32 %v8040_v27, %v7075_v20  ;;  %v8038_v16 = vld [vmem:[#allocation9 + $0x2c4] sm:$0xf0]  ;;  %v7020_v50 = vor.u32 %v8026_v43, %v7019_v32  ;;  %v7059_v42 = vld [vmem:[#allocation9 + $0x2b0] sm:$0xf]  ;;  %v7069_v20 = vld [vmem:[#allocation9 + $0x2c8] sm:$0xf0] }
 0x645   :  { %v8035_v32 = vld [vmem:[#allocation9 + $0x2b4] sm:$0xf]  ;;  %v7061_v43 = vld [vmem:[#allocation9 + $0x2b8] sm:$0xf0] }
 0x646   :  { %3160 = vmatpush.bf16.msra.mxu2 %v6710_v58  ;;  %3188 = vmatpush.bf16.msra.mxu0 %v6714_v15  ;;  %v6901_v58 = vld [vmem:[#allocation9 + $0x80] sm:$0xf]  ;;  %v7964_v15 = vld [vmem:[#allocation9 + $0x84] sm:$0xf0] }
 0x647   :  { %3384 = vmatpush.bf16.msrb.mxu3 %v6950_v8  ;;  %3412 = vmatpush.bf16.msrb.mxu1 %v6954_v9  ;;  %v6911_v8 = vld [vmem:[#allocation9 + $0x98] sm:$0xf0] }
 0x648   :  { %v6914_v9 = vor.u32 %v7965_v36, %v6911_v8  ;;  %v7003_v36 = vld [vmem:[#allocation9 + $0x240] sm:$0xf] }
 0x64a   :  { %3369 = vmatpush.bf16.msrb.mxu2 %v6894_v44  ;;  %3397 = vmatpush.bf16.msrb.mxu0 %v6898_v28  ;;  %v7963_v44 = vld [vmem:[#allocation9 + $0x84] sm:$0xf]  ;;  %v6902_v28 = vor.u32 %v7964_v15, %v6901_v58  ;;  %v7052_v58 = vor.u32 %v8034_v13, %v7051_v3  ;;  %v7043_v15 = vld [vmem:[#allocation9 + $0x290] sm:$0xf] }
 0x64b   :  { %3385 = vmatpush.bf16.msrb.mxu3 %v6942_v59  ;;  %3413 = vmatpush.bf16.msrb.mxu1 %v6946_v10  ;;  %v6906_v53 = vor.u32 %v7963_v44, %v6903_v17  ;;  %v6845_v59 = vld [vmem:[#allocation9 + $0x10] sm:$0xf]  ;;  %v7950_v10 = vld [vmem:[#allocation9 + $0x14] sm:$0xf0]  ;;  %v8017_v13 = vld [vmem:[#allocation9 + $0x224] sm:$0xf] }
 0x64c   :  { %v6846_v2 = vor.u32 %v7950_v10, %v6845_v59  ;;  %v8032_v44 = vld [vmem:[#allocation9 + $0x294] sm:$0xf0]  ;;  %v8018_v59 = vld [vmem:[#allocation9 + $0x224] sm:$0xf0] }
 0x64d   :  { %v7044_v10 = vor.u32 %v8032_v44, %v7043_v15  ;;  %v8029_v15 = vld [vmem:[#allocation9 + $0x284] sm:$0xf] }
 0x64e   :  { %3370 = vmatpush.bf16.msrb.mxu2 %v6886_v40  ;;  %3398 = vmatpush.bf16.msrb.mxu0 %v6890_v35  ;;  %v7947_v40 = vld [vmem:[#allocation9 + $0x4] sm:$0xf]  ;;  %v6838_v35 = vor.u32 %v7948_v24, %v6837_v26  ;;  %v8016_v26 = vld [vmem:[#allocation9 + $0x214] sm:$0xf0] }
 0x64f   :  { %3386 = vmatpush.bf16.msrb.mxu3 %v6934_v31  ;;  %3414 = vmatpush.bf16.msrb.mxu1 %v6938_v29  ;;  %v6842_v5 = vor.u32 %v7947_v40, %v6839_v41  ;;  %v7091_v29 = vld [vmem:[#allocation9 + $0x2f0] sm:$0xf]  ;;  %v8014_v41 = vld [vmem:[#allocation9 + $0x204] sm:$0xf0] }
 0x650   :  { %v7092_v25 = vor.u32 %v8044_v22, %v7091_v29  ;;  %v8043_v29 = vld [vmem:[#allocation9 + $0x2f4] sm:$0xf]  ;;  %v7093_v22 = vld [vmem:[#allocation9 + $0x2f8] sm:$0xf0] }
 0x652   :  { %3371 = vmatpush.bf16.msrb.mxu2 %v6878_v19  ;;  %3399 = vmatpush.bf16.msrb.mxu0 %v6882_v4  ;;  %v8042_v19 = vld [vmem:[#allocation9 + $0x2e4] sm:$0xf0]  ;;  %v7027_v4 = vld [vmem:[#allocation9 + $0x270] sm:$0xf] }
 0x653   :  { %3387 = vmatpush.bf16.msrb.mxu3 %v6926_v12  ;;  %3415 = vmatpush.bf16.msrb.mxu1 %v6930_v1  ;;  %v8028_v12 = vld [vmem:[#allocation9 + $0x274] sm:$0xf0]  ;;  %v7084_v1 = vor.u32 %v8042_v19, %v7083_v38 }
 0x654   :  { %v7028_v30 = vor.u32 %v8028_v12, %v7027_v4  ;;  %v7077_v4 = vld [vmem:[#allocation9 + $0x2d8] sm:$0xf0] }
 0x656   :  { %3372 = vmatpush.bf16.msrb.mxu2 %v6870_v23  ;;  %3400 = vmatpush.bf16.msrb.mxu0 %v6874_v46 }
 0x657   :  { %3388 = vmatpush.bf16.msrb.mxu3 %v6918_v34  ;;  %3416 = vmatpush.bf16.msrb.mxu1 %v6922_v48  ;;  %v7067_v34 = vld [vmem:[#allocation9 + $0x2c0] sm:$0xf]  ;;  %v7011_v48 = vld [vmem:[#allocation9 + $0x250] sm:$0xf] }
 0x658   :  { %v7068_v45 = vor.u32 %v8038_v16, %v7067_v34  ;;  %v8021_v34 = vld [vmem:[#allocation9 + $0x244] sm:$0xf]  ;;  %v7005_v16 = vld [vmem:[#allocation9 + $0x248] sm:$0xf0] }
 0x65a   :  { %3373 = vmatpush.bf16.msrb.mxu2 %v6862_v7  ;;  %3401 = vmatpush.bf16.msrb.mxu0 %v6866_v47  ;;  %v8024_v7 = vld [vmem:[#allocation9 + $0x254] sm:$0xf0] }
 0x65b   :  { %3389 = vmatpush.bf16.msrb.mxu3 %v6910_v63  ;;  %3417 = vmatpush.bf16.msrb.mxu1 %v6914_v9  ;;  %v8036_v47 = vld [vmem:[#allocation9 + $0x2b4] sm:$0xf0]  ;;  %v7012_v49 = vor.u32 %v8024_v7, %v7011_v48  ;;  %v8022_v63 = vld [vmem:[#allocation9 + $0x244] sm:$0xf0]  ;;  %v7053_v48 = vld [vmem:[#allocation9 + $0x2a8] sm:$0xf0] }
 0x65c   :  { %v7060_v8 = vor.u32 %v8036_v47, %v7059_v42  ;;  %v7004_v56 = vor.u32 %v8022_v63, %v7003_v36 }
 0x65e   :  { %3374 = vmatpush.bf16.msrb.mxu2 %v6854_v57  ;;  %3402 = vmatpush.bf16.msrb.mxu0 %v6858_v0  ;;  %v6995_v57 = vld [vmem:[#allocation9 + $0x230] sm:$0xf] }
 0x65f   :  { %3390 = vmatpush.bf16.msrb.mxu3 %v6902_v28  ;;  %3418 = vmatpush.bf16.msrb.mxu1 %v6906_v53  ;;  %v6996_v28 = vor.u32 %v8020_v14, %v6995_v57  ;;  %v6987_v53 = vld [vmem:[#allocation9 + $0x220] sm:$0xf] }
 0x660   :  { %v6988_v11 = vor.u32 %v8018_v59, %v6987_v53 }
 0x662   :  { %3375 = vmatpush.bf16.msrb.mxu2 %v6846_v2  ;;  %3403 = vmatpush.bf16.msrb.mxu0 %v6850_v21  ;;  %v8030_v2 = vld [vmem:[#allocation9 + $0x284] sm:$0xf0]  ;;  %v6979_v21 = vld [vmem:[#allocation9 + $0x210] sm:$0xf] }
 0x663   :  { %v7036_v24 = vor.u32 %v8030_v2, %v7035_v61  ;;  %v6980_v40 = vor.u32 %v8016_v26, %v6979_v21  ;;  %v6973_v61 = vld [vmem:[#allocation9 + $0x208] sm:$0xf0] }
 0x666   :  { %3376 = vmatpush.bf16.msrb.mxu2 %v6838_v35  ;;  %3404 = vmatpush.bf16.msrb.mxu0 %v6842_v5  ;;  %v6971_v35 = vld [vmem:[#allocation9 + $0x200] sm:$0xf]  ;;  %v8012_v5 = vld [vmem:[#allocation7 + $0x10] sm:$0xff] }
 0x6a1   :  { %v2953_v31 = vpop.f32.mrf.mxu1 }
 0x6a6   :  { %v2939_v18 = vpop.f32.mrf.mxu0 }
 0x6a7   :  { %v2880_v62 = vpop.f32.mrf.mxu3 }
 0x6a9   :  { %v2955_v60 = vpop.f32.mrf.mxu1 }
 0x6aa   :  { %v2959_v39 = vpack.c.bf16 %v2955_v60, %v2953_v31  ;;  %v6972_v31 = vor.u32 %v8014_v41, %v6971_v35  ;;  %v8041_v60 = vld [vmem:[#allocation9 + $0x2e4] sm:$0xf]  ;;  %v7161_v41 = vld [vmem:[#allocation9 + $0x370] sm:$0xf] }
 0x6ac   :  { %3175 = vmatmul.bf16.vlgmr.msra.gmra.mxu3 %v2959_v39  ;;  %3203 = vmatmul.bf16.vlgmr.msra.gmra.mxu1 %v2959_v39  ;;  %v2866_v33 = vpop.f32.mrf.mxu2  ;;  %v7029_v39 = vld [vmem:[#allocation9 + $0x278] sm:$0xf0] }
 0x6ad   :  { %3456 = vmatpush.bf16.msra.mxu3 %v9415_v37  ;;  %3673 = vmatpush.bf16.msra.mxu1 %v7092_v25  ;;  %v7085_v25 = vld [vmem:[#allocation9 + $0x2e8] sm:$0xf0] }
 0x6ae   :  { %v2941_v23 = vpop.f32.mrf.mxu0  ;;  %v7088_v38 = vor.u32 %v8041_v60, %v7085_v25  ;;  %v8076_v60 = vld [vmem:[#allocation9 + $0x3f4] sm:$0xf]  ;;  %v7227_v25 = vld [vmem:[#allocation9 + $0x3f8] sm:$0xf0] }
 0x6af   :  { %v2958_v46 = vpack.c.bf16 %v2941_v23, %v2939_v18  ;;  %v2882_v51 = vpop.f32.mrf.mxu3  ;;  %v7096_v18 = vor.u32 %v8043_v29, %v7093_v22  ;;  %v8023_v23 = vld [vmem:[#allocation9 + $0x254] sm:$0xf]  ;;  %v8077_v22 = vld [vmem:[#allocation9 + $0x3f4] sm:$0xf0] }
 0x6b0   :  { %v2886_v9 = vpack.c.bf16 %v2882_v51, %v2880_v62  ;;  %v6997_v51 = vld [vmem:[#allocation9 + $0x238] sm:$0xf0] }
 0x6b1   :  { %3457 = vmatpush.bf16.msra.mxu3 %v9423_v52  ;;  %3674 = vmatpush.bf16.msra.mxu1 %v7084_v1  ;;  %v7021_v1 = vld [vmem:[#allocation9 + $0x268] sm:$0xf0] }
 0x6b2   :  { %3161 = vmatmul.bf16.vlgmr.msra.gmra.mxu2 %v2958_v46  ;;  %3189 = vmatmul.bf16.vlgmr.msra.gmra.mxu0 %v2958_v46 }
 0x6b3   :  { %3442 = vmatpush.bf16.msra.mxu2 %v9427_v55  ;;  %3659 = vmatpush.bf16.msra.mxu0 %v7028_v30  ;;  %v7013_v30 = vld [vmem:[#allocation9 + $0x258] sm:$0xf0] }
 0x6b4   :  { %v2868_v0 = vpop.f32.mrf.mxu2  ;;  %v7016_v46 = vor.u32 %v8023_v23, %v7013_v30  ;;  %v7219_v30 = vld [vmem:[#allocation9 + $0x3e8] sm:$0xf0] }
 0x6b5   :  { %3675 = vmatpush.bf16.msra.mxu1 %v7076_v6  ;;  %v2885_v17 = vpack.c.bf16 %v2868_v0, %v2866_v33  ;;  %v7064_v6 = vor.u32 %v8035_v32, %v7061_v43  ;;  %v8033_v33 = vld [vmem:[#allocation9 + $0x2a4] sm:$0xf]  ;;  %v8015_v0 = vld [vmem:[#allocation9 + $0x214] sm:$0xf]  ;;  %v7209_v32 = vld [vmem:[#allocation9 + $0x3d0] sm:$0xf] }
 0x6b6   :  { %v8073_v43 = vld [vmem:[#allocation9 + $0x3d4] sm:$0xf0] }
 0x6b7   :  { %3443 = vmatpush.bf16.msra.mxu2 %v9435_v54  ;;  %3660 = vmatpush.bf16.msra.mxu0 %v7020_v50  ;;  %v7008_v50 = vor.u32 %v8021_v34, %v7005_v16  ;;  %v7210_v34 = vor.u32 %v8073_v43, %v7209_v32  ;;  %v7211_v16 = vld [vmem:[#allocation9 + $0x3d8] sm:$0xf0]  ;;  %v7121_v43 = vld [vmem:[#allocation9 + $0x320] sm:$0xf] }
 0x6b9   :  { %3676 = vmatpush.bf16.msra.mxu1 %v7068_v45  ;;  %v7056_v45 = vor.u32 %v8033_v33, %v7053_v48  ;;  %v7153_v33 = vld [vmem:[#allocation9 + $0x360] sm:$0xf]  ;;  %v8059_v48 = vld [vmem:[#allocation9 + $0x364] sm:$0xf0] }
 0x6bb   :  { %3661 = vmatpush.bf16.msra.mxu0 %v7012_v49  ;;  %v8019_v49 = vld [vmem:[#allocation9 + $0x234] sm:$0xf] }
 0x6bc   :  { %3391 = vmatmul.bf16.vlgmr.msrb.gmra.mxu3 %v2886_v9  ;;  %3419 = vmatmul.bf16.vlgmr.msrb.gmra.mxu1 %v2886_v9  ;;  %v7000_v63 = vor.u32 %v8019_v49, %v6997_v51  ;;  %v7045_v9 = vld [vmem:[#allocation9 + $0x298] sm:$0xf0]  ;;  %v7201_v51 = vld [vmem:[#allocation9 + $0x3c0] sm:$0xf] }
 0x6bd   :  { %3677 = vmatpush.bf16.msra.mxu1 %v7060_v8  ;;  %3701 = vmatpush.bf16.msrb.mxu3 %v7096_v18  ;;  %v8031_v8 = vld [vmem:[#allocation9 + $0x294] sm:$0xf] }
 0x6be   :  { %v7048_v3 = vor.u32 %v8031_v8, %v7045_v9  ;;  %v8070_v8 = vld [vmem:[#allocation9 + $0x3c4] sm:$0xf] }
 0x6bf   :  { %3662 = vmatpush.bf16.msra.mxu0 %v7004_v56  ;;  %v6989_v56 = vld [vmem:[#allocation9 + $0x228] sm:$0xf0] }
 0x6c0   :  { %v6992_v57 = vor.u32 %v8017_v13, %v6989_v56  ;;  %v7145_v13 = vld [vmem:[#allocation9 + $0x350] sm:$0xf]  ;;  %v8057_v56 = vld [vmem:[#allocation9 + $0x354] sm:$0xf0] }
 0x6c1   :  { %3678 = vmatpush.bf16.msra.mxu1 %v7052_v58  ;;  %3702 = vmatpush.bf16.msrb.mxu3 %v7088_v38  ;;  %v6981_v58 = vld [vmem:[#allocation9 + $0x218] sm:$0xf0]  ;;  %v7230_v38 = vor.u32 %v8076_v60, %v7227_v25  ;;  %v7185_v25 = vld [vmem:[#allocation9 + $0x3a0] sm:$0xf] }
 0x6c2   :  { %3377 = vmatmul.bf16.vlgmr.msrb.gmra.mxu2 %v2885_v17  ;;  %3405 = vmatmul.bf16.vlgmr.msrb.gmra.mxu0 %v2885_v17  ;;  %v7037_v17 = vld [vmem:[#allocation9 + $0x288] sm:$0xf0] }
 0x6c3   :  { %3663 = vmatpush.bf16.msra.mxu0 %v6996_v28  ;;  %v6984_v28 = vor.u32 %v8015_v0, %v6981_v58  ;;  %v7040_v59 = vor.u32 %v8029_v15, %v7037_v17  ;;  %v7146_v0 = vor.u32 %v8057_v56, %v7145_v13  ;;  %v7147_v58 = vld [vmem:[#allocation9 + $0x358] sm:$0xf0]  ;;  %v7193_v17 = vld [vmem:[#allocation9 + $0x3b0] sm:$0xf]  ;;  %v7171_v56 = vld [vmem:[#allocation9 + $0x388] sm:$0xf0] }
 0x6c4   :  { %v7115_v13 = vld [vmem:[#allocation9 + $0x318] sm:$0xf0] }
 0x6c5   :  { %3679 = vmatpush.bf16.msra.mxu1 %v7044_v10  ;;  %v8013_v10 = vld [vmem:[#allocation9 + $0x204] sm:$0xf] }
 0x6c6   :  { %v6976_v2 = vor.u32 %v8013_v10, %v6973_v61  ;;  %v8068_v10 = vld [vmem:[#allocation9 + $0x3b4] sm:$0xf] }
 0x6c7   :  { %3664 = vmatpush.bf16.msra.mxu0 %v6988_v11 }
 0x6c9   :  { %3680 = vmatpush.bf16.msra.mxu1 %v7036_v24 }
 0x6cb   :  { %3665 = vmatpush.bf16.msra.mxu0 %v6980_v40 }
 0x6cc   :  { %6968 = vmatmul.msk.bf16.vlgmr.msra.gmra.mxu3 %vm2853_vm15, %v8012_v5 }
 0x6cd   :  { %3750 = vmatpush.bf16.msrb.mxu1 %v9415_v37  ;;  %v8027_v37 = vld [vmem:[#allocation9 + $0x274] sm:$0xf] }
 0x6ce   :  { %v7032_v19 = vor.u32 %v8027_v37, %v7029_v39 }
 0x6cf   :  { %3666 = vmatpush.bf16.msra.mxu0 %v6972_v31  ;;  %v7225_v31 = vld [vmem:[#allocation9 + $0x3f0] sm:$0xf] }
 0x6d0   :  { %3687 = vmatpush.bf16.msrb.mxu2 %v7032_v19  ;;  %v7226_v18 = vor.u32 %v8077_v22, %v7225_v31  ;;  %v7139_v22 = vld [vmem:[#allocation9 + $0x348] sm:$0xf0] }
 0x6d1   :  { %3751 = vmatpush.bf16.msrb.mxu1 %v9423_v52  ;;  %v8039_v52 = vld [vmem:[#allocation9 + $0x2d4] sm:$0xf] }
 0x6d2   :  { %6967 = vmatmul.msk.bf16.vlgmr.msra.gmra.mxu2 %vm2853_vm15, %v8012_v5  ;;  %v7080_v12 = vor.u32 %v8039_v52, %v7077_v4  ;;  %v8061_v5 = vld [vmem:[#allocation9 + $0x374] sm:$0xf0]  ;;  %v8060_v52 = vld [vmem:[#allocation9 + $0x374] sm:$0xf]  ;;  %v7163_v4 = vld [vmem:[#allocation9 + $0x378] sm:$0xf0] }
 0x6d3   :  { %3736 = vmatpush.bf16.msrb.mxu0 %v9427_v55  ;;  %v8025_v55 = vld [vmem:[#allocation9 + $0x264] sm:$0xf]  ;;  %v7162_v29 = vor.u32 %v8061_v5, %v7161_v41  ;;  %v8055_v41 = vld [vmem:[#allocation9 + $0x344] sm:$0xf0] }
 0x6d4   :  { %v7024_v62 = vor.u32 %v8025_v55, %v7021_v1  ;;  %3703 = vmatpush.bf16.msrb.mxu3 %v7080_v12  ;;  %v7166_v55 = vor.u32 %v8060_v52, %v7163_v4  ;;  %v8054_v5 = vld [vmem:[#allocation9 + $0x344] sm:$0xf]  ;;  %v7129_v52 = vld [vmem:[#allocation9 + $0x330] sm:$0xf]  ;;  %v8053_v4 = vld [vmem:[#allocation9 + $0x334] sm:$0xf0] }
 0x6d5   :  { %v7142_v60 = vor.u32 %v8054_v5, %v7139_v22  ;;  %v9485_v5 = vld [vmem:[#allocation10 + $0x1e0] sm:$0xff] }
 0x6d6   :  { %3688 = vmatpush.bf16.msrb.mxu2 %v7024_v62  ;;  %v8045_v62 = vld [vmem:[#allocation7 + $0x18] sm:$0xff] }
 0x6d7   :  { %3737 = vmatpush.bf16.msrb.mxu0 %v9435_v54  ;;  %v8037_v54 = vld [vmem:[#allocation9 + $0x2c4] sm:$0xf] }
 0x6d8   :  { %v7072_v27 = vor.u32 %v8037_v54, %v7069_v20  ;;  %v7217_v54 = vld [vmem:[#allocation9 + $0x3e0] sm:$0xf]  ;;  %v8075_v20 = vld [vmem:[#allocation9 + $0x3e4] sm:$0xf0] }
 0x6d9   :  { %v7218_v23 = vor.u32 %v8075_v20, %v7217_v54  ;;  %v7177_v20 = vld [vmem:[#allocation9 + $0x390] sm:$0xf] }
 0x6da   :  { %3704 = vmatpush.bf16.msrb.mxu3 %v7072_v27  ;;  %3689 = vmatpush.bf16.msrb.mxu2 %v7016_v46  ;;  %v8074_v27 = vld [vmem:[#allocation9 + $0x3e4] sm:$0xf] }
 0x6db   :  { %v7222_v46 = vor.u32 %v8074_v27, %v7219_v30  ;;  %v8065_v27 = vld [vmem:[#allocation9 + $0x394] sm:$0xf0] }
 0x6dc   :  { %v7178_v30 = vor.u32 %v8065_v27, %v7177_v20  ;;  %v9528_v20 = vld [vmem:[#allocation10 + $0xc0] sm:$0xff]  ;;  %v9530_v27 = vld [vmem:[#allocation10 + $0xc8] sm:$0xff] }
 0x6de   :  { %3705 = vmatpush.bf16.msrb.mxu3 %v7064_v6  ;;  %3690 = vmatpush.bf16.msrb.mxu2 %v7008_v50  ;;  %v8072_v6 = vld [vmem:[#allocation9 + $0x3d4] sm:$0xf] }
 0x6e2   :  { %3706 = vmatpush.bf16.msrb.mxu3 %v7056_v45  ;;  %3691 = vmatpush.bf16.msrb.mxu2 %v7000_v63  ;;  %v7214_v45 = vor.u32 %v8072_v6, %v7211_v16  ;;  %v8071_v63 = vld [vmem:[#allocation9 + $0x3c4] sm:$0xf0] }
 0x6e3   :  { %v7202_v9 = vor.u32 %v8071_v63, %v7201_v51  ;;  %v8051_v6 = vld [vmem:[#allocation9 + $0x324] sm:$0xf0]  ;;  %v8049_v51 = vld [vmem:[#allocation9 + $0x314] sm:$0xf0]  ;;  %v8048_v63 = vld [vmem:[#allocation9 + $0x314] sm:$0xf] }
 0x6e6   :  { %3707 = vmatpush.bf16.msrb.mxu3 %v7048_v3  ;;  %3692 = vmatpush.bf16.msrb.mxu2 %v6992_v57  ;;  %v7203_v3 = vld [vmem:[#allocation9 + $0x3c8] sm:$0xf0]  ;;  %v8056_v57 = vld [vmem:[#allocation9 + $0x354] sm:$0xf] }
 0x6ea   :  { %3708 = vmatpush.bf16.msrb.mxu3 %v7040_v59  ;;  %3693 = vmatpush.bf16.msrb.mxu2 %v6984_v28  ;;  %v7150_v28 = vor.u32 %v8056_v57, %v7147_v58  ;;  %v8069_v59 = vld [vmem:[#allocation9 + $0x3b4] sm:$0xf0]  ;;  %v7118_v57 = vor.u32 %v8048_v63, %v7115_v13  ;;  %v8047_v58 = vld [vmem:[#allocation9 + $0x304] sm:$0xf0] }
 0x6eb   :  { %v7194_v61 = vor.u32 %v8069_v59, %v7193_v17  ;;  %v7107_v59 = vld [vmem:[#allocation9 + $0x308] sm:$0xf0]  ;;  %v9576_v63 = vld [vmem:[#allocation10 + $0x178] sm:$0xff] }
 0x6ec   :  { %v9582_v13 = vld [vmem:[#allocation10 + $0x88] sm:$0xff] }
 0x6ee   :  { %3694 = vmatpush.bf16.msrb.mxu2 %v6976_v2  ;;  %3967 = vmatpush.bf16.msra.mxu3 %v7226_v18  ;;  %v7195_v2 = vld [vmem:[#allocation9 + $0x3b8] sm:$0xf0] }
 0x6ef   :  { %v7198_v31 = vor.u32 %v8068_v10, %v7195_v2 }
 0x6f2   :  { %3953 = vmatpush.bf16.msra.mxu2 %v7162_v29  ;;  %3968 = vmatpush.bf16.msra.mxu3 %v7218_v23  ;;  %v8064_v23 = vld [vmem:[#allocation9 + $0x394] sm:$0xf] }
 0x6f6   :  { %3969 = vmatpush.bf16.msra.mxu3 %v7210_v34  ;;  %v8050_v34 = vld [vmem:[#allocation9 + $0x324] sm:$0xf] }
 0x6fa   :  { %3970 = vmatpush.bf16.msra.mxu3 %v7202_v9 }
 0x6fe   :  { %3971 = vmatpush.bf16.msra.mxu3 %v7194_v61 }
 0x729   :  { %v3204_v7 = vpop.f32.mrf.mxu1 }
 0x72f   :  { %v3176_v42 = vpop.f32.mrf.mxu3  ;;  %v3190_v47 = vpop.f32.mrf.mxu0 }
 0x730   :  { %v9451_v36 = vadd.f32 %v3204_v7, %v3190_v47  ;;  %v8058_v7 = vld [vmem:[#allocation9 + $0x364] sm:$0xf]  ;;  %v7155_v47 = vld [vmem:[#allocation9 + $0x368] sm:$0xf0] }
 0x731   :  { %v9469_v50 = vpop.f32.mrf.mxu1  ;;  %v7158_v49 = vor.u32 %v8058_v7, %v7155_v47  ;;  %v8062_v47 = vld [vmem:[#allocation9 + $0x384] sm:$0xf] }
 0x732   :  { %10167 = vst [vmem:[#allocation44_spill] sm:$0xff] %v9451_v36  ;;  %v9668_v36 = vld [vmem:[#allocation10 + $0x10] sm:$0xff] }
 0x733   :  { %10172 = vst [vmem:[#allocation47_spill] sm:$0xff] %v9469_v50  ;;  %v9654_v50 = vld [vmem:[#allocation10 + $0x108] sm:$0xff] }
 0x734   :  { %10180 = vst [vmem:[#allocation40_spill] sm:$0xff] %v9654_v50 }
 0x735   :  { %v3162_v14 = vpop.f32.mrf.mxu2 }
 0x736   :  { %v9453_v44 = vadd.f32 %v3176_v42, %v3162_v14  ;;  %v7154_v42 = vor.u32 %v8059_v48, %v7153_v33  ;;  %v7206_v14 = vor.u32 %v8070_v8, %v7203_v3  ;;  %v7122_v33 = vor.u32 %v8051_v6, %v7121_v43  ;;  %v7123_v48 = vld [vmem:[#allocation9 + $0x328] sm:$0xf0]  ;;  %v9544_v43 = vld [vmem:[#allocation10 + $0xb8] sm:$0xff]  ;;  %v9547_v6 = vld [vmem:[#allocation10 + $0x190] sm:$0xff] }
 0x737   :  { %v9455_v53 = vpop.f32.mrf.mxu3  ;;  %v9471_v15 = vpop.f32.mrf.mxu0  ;;  %v7126_v7 = vor.u32 %v8050_v34, %v7123_v48  ;;  %v9550_v34 = vld [vmem:[#allocation10 + $0x198] sm:$0xff]  ;;  %v9559_v48 = vld [vmem:[#allocation10 + $0x180] sm:$0xff] }
 0x738   :  { %10168 = vst [vmem:[#allocation45_spill] sm:$0xff] %v9455_v53  ;;  %3954 = vmatpush.bf16.msra.mxu2 %v7154_v42  ;;  %v8063_v42 = vld [vmem:[#allocation9 + $0x384] sm:$0xf0]  ;;  %v9640_v53 = vld [vmem:[#allocation10 + $0x110] sm:$0xff] }
 0x739   :  { %10173 = vst [vmem:[#allocation48_spill] sm:$0xff] %v9471_v15  ;;  %v9473_v18 = vpop.f32.mrf.mxu1 }
 0x73a   :  { %10174 = vst [vmem:[#allocation30_spill] sm:$0xff] %v9473_v18  ;;  %v9662_v18 = vld [vmem:[#allocation10 + $0x20] sm:$0xff] }
 0x73c   :  { %3955 = vmatpush.bf16.msra.mxu2 %v7146_v0  ;;  %v7105_v0 = vld [vmem:[#allocation9 + $0x300] sm:$0xf] }
 0x73d   :  { %v9457_v11 = vpop.f32.mrf.mxu2  ;;  %v7106_v17 = vor.u32 %v8047_v58, %v7105_v0  ;;  %v9594_v0 = vld [vmem:[#allocation10 + $0x78] sm:$0xff]  ;;  %v9597_v58 = vld [vmem:[#allocation10 + $0x150] sm:$0xff] }
 0x73e   :  { %10169 = vst [vmem:[#allocation46_spill] sm:$0xff] %v9457_v11  ;;  %v9648_v11 = vld [vmem:[#allocation10 + $0x38] sm:$0xff] }
 0x73f   :  { %v9459_v21 = vpop.f32.mrf.mxu3  ;;  %v9475_v32 = vpop.f32.mrf.mxu0 }
 0x740   :  { %10175 = vst [vmem:[#allocation49_spill] sm:$0xff] %v9475_v32  ;;  %v9664_v32 = vld [vmem:[#allocation10 + $0x28] sm:$0xff] }
 0x741   :  { %v9477_v9 = vpop.f32.mrf.mxu1 }
 0x742   :  { %10176 = vst [vmem:[#allocation31_spill] sm:$0xff] %v9477_v9  ;;  %v9638_v9 = vld [vmem:[#allocation10 + $0x48] sm:$0xff] }
 0x745   :  { %v9461_v26 = vpop.f32.mrf.mxu2 }
 0x746   :  { %v3379_v22 = vadd.f32 %v9461_v26, %v9453_v44  ;;  %v9511_v44 = vld [vmem:[#allocation10 + $0xe8] sm:$0xff] }
 0x747   :  { %v9463_v24 = vpop.f32.mrf.mxu3  ;;  %v9479_v10 = vpop.f32.mrf.mxu0 }
 0x748   :  { %10170 = vst [vmem:[#allocation24_spill] sm:$0xff] %v9463_v24  ;;  %v9629_v24 = vld [vmem:[#allocation10 + $0x120] sm:$0xff] }
 0x749   :  { %10177 = vst [vmem:[#allocation38_spill] sm:$0xff] %v9479_v10  ;;  %v9652_v10 = vld [vmem:[#allocation10 + $0x100] sm:$0xff] }
 0x74d   :  { %v9465_v40 = vpop.f32.mrf.mxu2 }
 0x74e   :  { %10171 = vst [vmem:[#allocation25_spill] sm:$0xff] %v9465_v40  ;;  %v9636_v40 = vld [vmem:[#allocation10 + $0x40] sm:$0xff] }
 0x74f   :  { %v3459_v35 = vpop.f32.mrf.mxu3 }
 0x755   :  { %v3445_v37 = vpop.f32.mrf.mxu2 }
 0x757   :  { %v3461_v39 = vpop.f32.mrf.mxu3 }
 0x758   :  { %v3465_v19 = vpack.c.bf16 %v3461_v39, %v3459_v35  ;;  %v7137_v35 = vld [vmem:[#allocation9 + $0x340] sm:$0xf]  ;;  %v8066_v39 = vld [vmem:[#allocation9 + $0x3a4] sm:$0xf] }
 0x759   :  { %v7138_v29 = vor.u32 %v8055_v41, %v7137_v35  ;;  %v9481_v35 = vld [vmem:[#allocation10 + $0x1f0] sm:$0xff]  ;;  %v9483_v41 = vld [vmem:[#allocation10 + $0x1f8] sm:$0xff] }
 0x75a   :  { %3681 = vmatmul.bf16.vlgmr.msra.gmra.mxu1 %v3465_v19  ;;  %3709 = vmatmul.bf16.vlgmr.msrb.gmra.mxu3 %v3465_v19  ;;  %v7187_v19 = vld [vmem:[#allocation9 + $0x3a8] sm:$0xf0] }
 0x75b   :  { %3995 = vmatpush.bf16.msra.mxu1 %v7230_v38  ;;  %3956 = vmatpush.bf16.msra.mxu2 %v7138_v29  ;;  %v9491_v29 = vld [vmem:[#allocation10 + $0x1d0] sm:$0xff] }
 0x75d   :  { %v3447_v12 = vpop.f32.mrf.mxu2 }
 0x75e   :  { %v3464_v1 = vpack.c.bf16 %v3447_v12, %v3445_v37  ;;  %v8067_v37 = vld [vmem:[#allocation9 + $0x3a4] sm:$0xf0]  ;;  %v8052_v12 = vld [vmem:[#allocation9 + $0x334] sm:$0xf] }
 0x75f   :  { %3996 = vmatpush.bf16.msra.mxu1 %v7222_v46  ;;  %v7186_v38 = vor.u32 %v8067_v37, %v7185_v25  ;;  %v7179_v46 = vld [vmem:[#allocation9 + $0x398] sm:$0xf0]  ;;  %v9497_v25 = vld [vmem:[#allocation10 + $0xf0] sm:$0xff] }
 0x760   :  { %3667 = vmatmul.bf16.vlgmr.msra.gmra.mxu0 %v3464_v1  ;;  %3695 = vmatmul.bf16.vlgmr.msrb.gmra.mxu2 %v3464_v1  ;;  %v7130_v1 = vor.u32 %v8053_v4, %v7129_v52  ;;  %v7182_v16 = vor.u32 %v8064_v23, %v7179_v46  ;;  %v9499_v37 = vld [vmem:[#allocation10 + $0xf8] sm:$0xff]  ;;  %v9515_v52 = vld [vmem:[#allocation10 + $0xd0] sm:$0xff] }
 0x761   :  { %3981 = vmatpush.bf16.msra.mxu0 %v7166_v55  ;;  %v7190_v55 = vor.u32 %v8066_v39, %v7187_v19  ;;  %3972 = vmatpush.bf16.msra.mxu3 %v7186_v38  ;;  %v9503_v39 = vld [vmem:[#allocation10 + $0xe0] sm:$0xff]  ;;  %v9509_v19 = vld [vmem:[#allocation10 + $0x1c8] sm:$0xff]  ;;  %v9517_v4 = vld [vmem:[#allocation10 + $0xd8] sm:$0xff] }
 0x762   :  { %3957 = vmatpush.bf16.msra.mxu2 %v7130_v1  ;;  %v9506_v38 = vld [vmem:[#allocation10 + $0x1c0] sm:$0xff]  ;;  %v9521_v1 = vld [vmem:[#allocation10 + $0x1b0] sm:$0xff] }
 0x763   :  { %3997 = vmatpush.bf16.msra.mxu1 %v7214_v45  ;;  %v7169_v45 = vld [vmem:[#allocation9 + $0x380] sm:$0xf]  ;;  %v9542_v46 = vld [vmem:[#allocation10 + $0xb0] sm:$0xff] }
 0x764   :  { %v7170_v8 = vor.u32 %v8063_v42, %v7169_v45  ;;  %v9566_v42 = vld [vmem:[#allocation10 + $0x90] sm:$0xff] }
 0x765   :  { %3982 = vmatpush.bf16.msra.mxu0 %v7158_v49  ;;  %3973 = vmatpush.bf16.msra.mxu3 %v7178_v30  ;;  %v7113_v49 = vld [vmem:[#allocation9 + $0x310] sm:$0xf]  ;;  %v9538_v30 = vld [vmem:[#allocation10 + $0x1a8] sm:$0xff] }
 0x766   :  { %3958 = vmatpush.bf16.msra.mxu2 %v7122_v33  ;;  %v7114_v3 = vor.u32 %v8049_v51, %v7113_v49  ;;  %v9556_v33 = vld [vmem:[#allocation10 + $0xa8] sm:$0xff]  ;;  %v9573_v51 = vld [vmem:[#allocation10 + $0x170] sm:$0xff] }
 0x767   :  { %3998 = vmatpush.bf16.msra.mxu1 %v7206_v14  ;;  %v7174_v14 = vor.u32 %v8062_v47, %v7171_v56  ;;  %v9568_v47 = vld [vmem:[#allocation10 + $0x98] sm:$0xff]  ;;  %v9585_v56 = vld [vmem:[#allocation10 + $0x160] sm:$0xff] }
 0x769   :  { %3983 = vmatpush.bf16.msra.mxu0 %v7150_v28  ;;  %3974 = vmatpush.bf16.msra.mxu3 %v7170_v8  ;;  %v8046_v28 = vld [vmem:[#allocation9 + $0x304] sm:$0xf] }
 0x76a   :  { %7102 = vmatmul.msk.bf16.vlgmr.msrb.gmra.mxu1 %vm2853_vm15, %v8045_v62  ;;  %3959 = vmatpush.bf16.msra.mxu2 %v7114_v3  ;;  %v7110_v61 = vor.u32 %v8046_v28, %v7107_v59  ;;  %v9580_v3 = vld [vmem:[#allocation10 + $0x80] sm:$0xff]  ;;  %v9600_v28 = vld [vmem:[#allocation10 + $0x158] sm:$0xff]  ;;  %v9606_v59 = vld [vmem:[#allocation10 + $0x68] sm:$0xff] }
 0x76b   :  { %3999 = vmatpush.bf16.msra.mxu1 %v7198_v31  ;;  %v9489_v31 = vld [vmem:[#allocation10 + $0x1e8] sm:$0xff] }
 0x76d   :  { %3984 = vmatpush.bf16.msra.mxu0 %v7142_v60  ;;  %4100 = vmatpush.msrb.mxu3 %v9481_v35  ;;  %v9495_v60 = vld [vmem:[#allocation10 + $0x1d8] sm:$0xff] }
 0x76e   :  { %3960 = vmatpush.bf16.msra.mxu2 %v7106_v17  ;;  %v9604_v17 = vld [vmem:[#allocation10 + $0x60] sm:$0xff] }
 0x76f   :  { %4000 = vmatpush.bf16.msra.mxu1 %v7190_v55  ;;  %4101 = vmatpush.msrb.mxu3 %v9485_v5 }
 0x770   :  { %7101 = vmatmul.msk.bf16.vlgmr.msrb.gmra.mxu0 %vm2853_vm15, %v8045_v62  ;;  %v7131_v62 = vld [vmem:[#allocation9 + $0x338] sm:$0xf0] }
 0x771   :  { %v7134_v54 = vor.u32 %v8052_v12, %v7131_v62  ;;  %4102 = vmatpush.msrb.mxu3 %v9491_v29  ;;  %v3393_v12 = vadd.f32 %v9459_v21, %v3379_v22  ;;  %v9524_v62 = vld [vmem:[#allocation10 + $0x1b8] sm:$0xff]  ;;  %v9535_v21 = vld [vmem:[#allocation10 + $0x1a0] sm:$0xff] }
 0x772   :  { %4077 = vmatpush.msrb.mxu2 %v9497_v25 }
 0x773   :  { %3985 = vmatpush.bf16.msra.mxu0 %v7134_v54  ;;  %4001 = vmatpush.bf16.msra.mxu1 %v7182_v16  ;;  %v9554_v16 = vld [vmem:[#allocation10 + $0xa0] sm:$0xff] }
 0x774   :  { %4078 = vmatpush.msrb.mxu2 %v9503_v39  ;;  %4103 = vmatpush.msrb.mxu3 %v9506_v38 }
 0x776   :  { %4079 = vmatpush.msrb.mxu2 %v9515_v52  ;;  %4104 = vmatpush.msrb.mxu3 %v9521_v1 }
 0x777   :  { %3986 = vmatpush.bf16.msra.mxu0 %v7126_v7  ;;  %4002 = vmatpush.bf16.msra.mxu1 %v7174_v14  ;;  %v9562_v7 = vld [vmem:[#allocation10 + $0x188] sm:$0xff]  ;;  %v9592_v14 = vld [vmem:[#allocation10 + $0x70] sm:$0xff] }
 0x778   :  { %4080 = vmatpush.msrb.mxu2 %v9528_v20  ;;  %4105 = vmatpush.msrb.mxu3 %v9535_v21 }
 0x77a   :  { %4081 = vmatpush.msrb.mxu2 %v9542_v46  ;;  %4106 = vmatpush.msrb.mxu3 %v9547_v6 }
 0x77b   :  { %3987 = vmatpush.bf16.msra.mxu0 %v7118_v57  ;;  %4146 = vmatpush.msrb.mxu1 %v9483_v41  ;;  %v9588_v57 = vld [vmem:[#allocation10 + $0x168] sm:$0xff] }
 0x77c   :  { %4082 = vmatpush.msrb.mxu2 %v9554_v16  ;;  %4107 = vmatpush.msrb.mxu3 %v9559_v48 }
 0x77d   :  { %4147 = vmatpush.msrb.mxu1 %v9489_v31 }
 0x77e   :  { %4083 = vmatpush.msrb.mxu2 %v9566_v42  ;;  %4108 = vmatpush.msrb.mxu3 %v9573_v51 }
 0x77f   :  { %3988 = vmatpush.bf16.msra.mxu0 %v7110_v61  ;;  %4148 = vmatpush.msrb.mxu1 %v9495_v60  ;;  %v9609_v61 = vld [vmem:[#allocation10 + $0x140] sm:$0xff] }
 0x780   :  { %4084 = vmatpush.msrb.mxu2 %v9580_v3  ;;  %4109 = vmatpush.msrb.mxu3 %v9585_v56 }
 0x781   :  { %4149 = vmatpush.msrb.mxu1 %v9509_v19 }
 0x782   :  { %4085 = vmatpush.msrb.mxu2 %v9592_v14  ;;  %4110 = vmatpush.msrb.mxu3 %v9597_v58 }
 0x783   :  { %4123 = vmatpush.msrb.mxu0 %v9499_v37  ;;  %4150 = vmatpush.msrb.mxu1 %v9524_v62 }
 0x784   :  { %4086 = vmatpush.msrb.mxu2 %v9604_v17  ;;  %4111 = vmatpush.msrb.mxu3 %v9609_v61 }
 0x785   :  { %4124 = vmatpush.msrb.mxu0 %v9511_v44  ;;  %4151 = vmatpush.msrb.mxu1 %v9538_v30 }
 0x787   :  { %4125 = vmatpush.msrb.mxu0 %v9517_v4  ;;  %4152 = vmatpush.msrb.mxu1 %v9550_v34 }
 0x789   :  { %4126 = vmatpush.msrb.mxu0 %v9530_v27  ;;  %4153 = vmatpush.msrb.mxu1 %v9562_v7 }
 0x78b   :  { %4127 = vmatpush.msrb.mxu0 %v9544_v43  ;;  %4154 = vmatpush.msrb.mxu1 %v9576_v63 }
 0x78d   :  { %4128 = vmatpush.msrb.mxu0 %v9556_v33  ;;  %4155 = vmatpush.msrb.mxu1 %v9588_v57 }
 0x78f   :  { %4129 = vmatpush.msrb.mxu0 %v9568_v47  ;;  %4156 = vmatpush.msrb.mxu1 %v9600_v28 }
 0x791   :  { %4130 = vmatpush.msrb.mxu0 %v9582_v13 }
 0x793   :  { %4131 = vmatpush.msrb.mxu0 %v9594_v0 }
 0x795   :  { %4132 = vmatpush.msrb.mxu0 %v9606_v59 }
 0x7d7   :  { %v3682_v2 = vpop.f32.mrf.mxu1 }
 0x7dd   :  { %v3668_v26 = vpop.f32.mrf.mxu0 }
 0x7de   :  { %v3683_v55 = vadd.f32 %v3682_v2, %v3668_v26  ;;  %v9612_v2 = vld [vmem:[#allocation10 + $0x148] sm:$0xff]  ;;  %v9616_v26 = vld [vmem:[#allocation10 + $0x50] sm:$0xff] }
 0x7df   :  { %v3684_v54 = vpop.f32.mrf.mxu1  ;;  %4157 = vmatpush.msrb.mxu1 %v9612_v2  ;;  %4087 = vmatpush.msrb.mxu2 %v9616_v26 }
 0x7e0   :  { %v9532_v23 = vadd.f32 %v3683_v55, %v3393_v12  ;;  %v9618_v12 = vld [vmem:[#allocation10 + $0x58] sm:$0xff]  ;;  %v9621_v55 = vld [vmem:[#allocation10 + $0x130] sm:$0xff] }
 0x7e1   :  { %4133 = vmatpush.msrb.mxu0 %v9618_v12  ;;  %4112 = vmatpush.msrb.mxu3 %v9621_v55 }
 0x7e2   :  { %10178 = vst [vmem:[#allocation50_spill] sm:$0xff] %v9532_v23  ;;  %v9632_v23 = vld [vmem:[#allocation10 + $0x128] sm:$0xff]  ;;  %4088 = vmatpush.msrb.mxu2 %v9636_v40 }
 0x7e3   :  { %4113 = vmatpush.msrb.mxu3 %v9629_v24  ;;  %4134 = vmatpush.msrb.mxu0 %v9638_v9 }
 0x7e5   :  { %v3670_v45 = vpop.f32.mrf.mxu0  ;;  %4114 = vmatpush.msrb.mxu3 %v9640_v53  ;;  %4135 = vmatpush.msrb.mxu0 %v9648_v11 }
 0x7e6   :  { %v9570_v49 = vadd.f32 %v3684_v54, %v3670_v45  ;;  %v9624_v54 = vld [vmem:[#allocation10 + $0x138] sm:$0xff] }
 0x7e7   :  { %v3753_v8 = vpop.f32.mrf.mxu1  ;;  %4158 = vmatpush.msrb.mxu1 %v9624_v54  ;;  %4115 = vmatpush.msrb.mxu3 %v9652_v10 }
 0x7e8   :  { %10179 = vst [vmem:[#allocation39_spill] sm:$0xff] %v9570_v49  ;;  %4136 = vmatpush.msrb.mxu0 %v9664_v32 }
 0x7e9   :  { %4159 = vmatpush.msrb.mxu1 %v9632_v23 }
 0x7ed   :  { %v3739_v22 = vpop.f32.mrf.mxu0 }
 0x7ef   :  { %v3755_v45 = vpop.f32.mrf.mxu1 }
 0x7f0   :  { %v3759_v49 = vpack.c.bf16 %v3755_v45, %v3753_v8  ;;  %v9642_v8 = vld [vmem:[#allocation10 + $0x118] sm:$0xff]  ;;  %v9646_v45 = vld [vmem:[#allocation10 + $0x30] sm:$0xff] }
 0x7f1   :  { %4160 = vmatpush.msrb.mxu1 %v9642_v8  ;;  %4089 = vmatpush.msrb.mxu2 %v9646_v45 }
 0x7f2   :  { %3975 = vmatmul.bf16.vlgmr.msra.gmra.mxu3 %v3759_v49  ;;  %4003 = vmatmul.bf16.vlgmr.msra.gmra.mxu1 %v3759_v49 }
 0x7f3   :  { %4161 = vmatpush.msrb.mxu1 %v9654_v50  ;;  %4196 = vmatpush.msra.mxu3 %v9481_v35  ;;  %v9678_v50 = vld [vmem:[#allocation10 + $0x8] sm:$0xff] }
 0x7f4   :  { %4090 = vmatpush.msrb.mxu2 %v9662_v18 }
 0x7f5   :  { %v3741_v49 = vpop.f32.mrf.mxu0  ;;  %4242 = vmatpush.msra.mxu1 %v9483_v41  ;;  %4197 = vmatpush.msra.mxu3 %v9485_v5 }
 0x7f6   :  { %v3758_v15 = vpack.c.bf16 %v3741_v49, %v3739_v22  ;;  %v9670_v22 = vld [vmem:[#allocation10 + $0x18] sm:$0xff]  ;;  %v9676_v49 = vld [vmem:[#allocation10] sm:$0xff]  ;;  %4091 = vmatpush.msrb.mxu2 %v9668_v36 }
 0x7f7   :  { %4243 = vmatpush.msra.mxu1 %v9489_v31  ;;  %4137 = vmatpush.msrb.mxu0 %v9670_v22 }
 0x7f8   :  { %3961 = vmatmul.bf16.vlgmr.msra.gmra.mxu2 %v3758_v15  ;;  %3989 = vmatmul.bf16.vlgmr.msra.gmra.mxu0 %v3758_v15  ;;  %v10181_v15 = vld [vmem:[#allocation40_spill] sm:$0xff] }
 0x7f9   :  { %4198 = vmatpush.msra.mxu3 %v9491_v29  ;;  %4244 = vmatpush.msra.mxu1 %v9495_v60  ;;  %v10185_v29 = vld [vmem:[#allocation48_spill] sm:$0xff] }
 0x7fa   :  { %4092 = vmatpush.msrb.mxu2 %v9676_v49  ;;  %4138 = vmatpush.msrb.mxu0 %v9678_v50 }
 0x7fb   :  { %4199 = vmatpush.msra.mxu3 %v9506_v38  ;;  %4245 = vmatpush.msra.mxu1 %v9509_v19 }
 0x7fc   :  { %4173 = vmatpush.msra.mxu2 %v9497_v25  ;;  %4219 = vmatpush.msra.mxu0 %v9499_v37 }
 0x7fd   :  { %4200 = vmatpush.msra.mxu3 %v9521_v1  ;;  %4246 = vmatpush.msra.mxu1 %v9524_v62  ;;  %v10189_v1 = vld [vmem:[#allocation45_spill] sm:$0xff] }
 0x7fe   :  { %4174 = vmatpush.msra.mxu2 %v9503_v39  ;;  %4220 = vmatpush.msra.mxu0 %v9511_v44  ;;  %v10187_v39 = vld [vmem:[#allocation38_spill] sm:$0xff] }
 0x7ff   :  { %4201 = vmatpush.msra.mxu3 %v9535_v21  ;;  %4247 = vmatpush.msra.mxu1 %v9538_v30 }
 0x800   :  { %4175 = vmatpush.msra.mxu2 %v9515_v52  ;;  %4221 = vmatpush.msra.mxu0 %v9517_v4  ;;  %v10188_v4 = vld [vmem:[#allocation46_spill] sm:$0xff] }
 0x801   :  { %4202 = vmatpush.msra.mxu3 %v9547_v6  ;;  %4248 = vmatpush.msra.mxu1 %v9550_v34  ;;  %v3179_v62 = vadd.f32 %v10189_v1, %v10188_v4  ;;  %v10192_v34 = vld [vmem:[#allocation50_spill] sm:$0xff] }
 0x802   :  { %4176 = vmatpush.msra.mxu2 %v9528_v20  ;;  %4222 = vmatpush.msra.mxu0 %v9530_v27  ;;  %v10190_v20 = vld [vmem:[#allocation31_spill] sm:$0xff] }
 0x803   :  { %4203 = vmatpush.msra.mxu3 %v9559_v48  ;;  %4249 = vmatpush.msra.mxu1 %v9562_v7  ;;  %v10193_v7 = vld [vmem:[#allocation24_spill] sm:$0xff] }
 0x804   :  { %4177 = vmatpush.msra.mxu2 %v9542_v46  ;;  %4223 = vmatpush.msra.mxu0 %v9544_v43  ;;  %v10191_v46 = vld [vmem:[#allocation25_spill] sm:$0xff] }
 0x805   :  { %4204 = vmatpush.msra.mxu3 %v9573_v51  ;;  %4250 = vmatpush.msra.mxu1 %v9576_v63  ;;  %v3381_v43 = vadd.f32 %v10191_v46, %v3179_v62  ;;  %v10194_v63 = vld [vmem:[#allocation39_spill] sm:$0xff] }
 0x806   :  { %4178 = vmatpush.msra.mxu2 %v9554_v16  ;;  %4224 = vmatpush.msra.mxu0 %v9556_v33 }
 0x807   :  { %4205 = vmatpush.msra.mxu3 %v9585_v56  ;;  %4251 = vmatpush.msra.mxu1 %v9588_v57 }
 0x808   :  { %4179 = vmatpush.msra.mxu2 %v9566_v42  ;;  %4225 = vmatpush.msra.mxu0 %v9568_v47  ;;  %v3395_v42 = vadd.f32 %v10193_v7, %v3381_v43 }
 0x809   :  { %4206 = vmatpush.msra.mxu3 %v9597_v58  ;;  %4252 = vmatpush.msra.mxu1 %v9600_v28 }
 0x80a   :  { %4180 = vmatpush.msra.mxu2 %v9580_v3  ;;  %4226 = vmatpush.msra.mxu0 %v9582_v13  ;;  %v3717_v3 = vadd.f32 %v10194_v63, %v3395_v42 }
 0x80b   :  { %4207 = vmatpush.msra.mxu3 %v9609_v61  ;;  %4253 = vmatpush.msra.mxu1 %v9612_v2 }
 0x80c   :  { %4181 = vmatpush.msra.mxu2 %v9592_v14  ;;  %4227 = vmatpush.msra.mxu0 %v9594_v0 }
 0x80d   :  { %4208 = vmatpush.msra.mxu3 %v9621_v55  ;;  %4254 = vmatpush.msra.mxu1 %v9624_v54 }
 0x80e   :  { %4182 = vmatpush.msra.mxu2 %v9604_v17  ;;  %4228 = vmatpush.msra.mxu0 %v9606_v59 }
 0x80f   :  { %4209 = vmatpush.msra.mxu3 %v9629_v24  ;;  %4255 = vmatpush.msra.mxu1 %v9632_v23  ;;  %v3696_v24 = vpop.f32.mrf.mxu2 }
 0x810   :  { %4183 = vmatpush.msra.mxu2 %v9616_v26  ;;  %4229 = vmatpush.msra.mxu0 %v9618_v12 }
 0x811   :  { %4210 = vmatpush.msra.mxu3 %v9640_v53  ;;  %4256 = vmatpush.msra.mxu1 %v9642_v8  ;;  %v3710_v53 = vpop.f32.mrf.mxu3 }
 0x812   :  { %4184 = vmatpush.msra.mxu2 %v9636_v40  ;;  %4230 = vmatpush.msra.mxu0 %v9638_v9  ;;  %v10182_v40 = vld [vmem:[#allocation44_spill] sm:$0xff]  ;;  %v10183_v9 = vld [vmem:[#allocation49_spill] sm:$0xff]  ;;  %v3711_v35 = vadd.f32 %v3710_v53, %v3696_v24 }
 0x813   :  { %4211 = vmatpush.msra.mxu3 %v9652_v10  ;;  %4257 = vmatpush.msra.mxu1 %v10181_v15  ;;  %v3407_v10 = vadd.f32 %v10183_v9, %v10182_v40 }
 0x814   :  { %4185 = vmatpush.msra.mxu2 %v9646_v45  ;;  %4231 = vmatpush.msra.mxu0 %v9648_v11 }
 0x816   :  { %4186 = vmatpush.msra.mxu2 %v9662_v18  ;;  %4232 = vmatpush.msra.mxu0 %v9664_v32  ;;  %v10184_v18 = vld [vmem:[#allocation30_spill] sm:$0xff] }
 0x817   :  { %v3698_v41 = vpop.f32.mrf.mxu2  ;;  %v3421_v31 = vadd.f32 %v10184_v18, %v3407_v10 }
 0x818   :  { %4187 = vmatpush.msra.mxu2 %v9668_v36  ;;  %4233 = vmatpush.msra.mxu0 %v9670_v22  ;;  %v10186_v36 = vld [vmem:[#allocation47_spill] sm:$0xff] }
 0x819   :  { %v3712_v11 = vpop.f32.mrf.mxu3  ;;  %v3207_v60 = vadd.f32 %v10186_v36, %v10185_v29  ;;  %v3716_v25 = vadd.f32 %v3711_v35, %v3421_v31 }
 0x81a   :  { %4188 = vmatpush.msra.mxu2 %v9676_v49  ;;  %4234 = vmatpush.msra.mxu0 %v9678_v50  ;;  %v3713_v44 = vadd.f32 %v3712_v11, %v3698_v41 }
 0x81b   :  { %v3409_v38 = vadd.f32 %v10187_v39, %v3207_v60 }
 0x81d   :  { %v3423_v27 = vadd.f32 %v10190_v20, %v3409_v38 }
 0x81f   :  { %v3718_v6 = vadd.f32 %v3713_v44, %v3423_v27 }
 0x86f   :  { %v4004_v5 = vpop.f32.mrf.mxu1 }
 0x875   :  { %v3990_v32 = vpop.f32.mrf.mxu0  ;;  %v3976_v19 = vpop.f32.mrf.mxu3 }
 0x876   :  { %v4005_v37 = vadd.f32 %v4004_v5, %v3990_v32 }
 0x877   :  { %v4006_v30 = vpop.f32.mrf.mxu1 }
 0x878   :  { %v9750_v50 = vadd.f32 %v4005_v37, %v3716_v25 }
 0x87a   :  { %4116 = vmatmul.f32.vlgmr.msrb.gmra.mxu3 %v9750_v50  ;;  %4162 = vmatmul.f32.vlgmr.msrb.gmra.mxu1 %v9750_v50  ;;  %v4170_v57 = vmul.f32 %v9750_v50, %v9750_v50 }
 0x87b   :  { %v3962_v52 = vpop.f32.mrf.mxu2 }
 0x87c   :  { %v3977_v23 = vadd.f32 %v3976_v19, %v3962_v52 }
 0x87d   :  { %v3992_v21 = vpop.f32.mrf.mxu0  ;;  %v3978_v51 = vpop.f32.mrf.mxu3 }
 0x87e   :  { %v9759_v16 = vadd.f32 %v3977_v23, %v10192_v34  ;;  %v4007_v33 = vadd.f32 %v4006_v30, %v3992_v21 }
 0x880   :  { %v9761_v48 = vadd.f32 %v4007_v33, %v3718_v6  ;;  %4093 = vmatmul.f32.vlgmr.msrb.gmra.mxu2 %v9759_v16  ;;  %4139 = vmatmul.f32.vlgmr.msrb.gmra.mxu0 %v9759_v16  ;;  %v4169_v14 = vmul.f32 %v9759_v16, %v9759_v16 }
 0x882   :  { %4119 = vmatmul.f32.gmra.mxu3 %v9761_v48  ;;  %4165 = vmatmul.f32.gmra.mxu1 %v9761_v48  ;;  %v4172_v0 = vmul.f32 %v9761_v48, %v9761_v48 }
 0x883   :  { %v3964_v47 = vpop.f32.mrf.mxu2 }
 0x884   :  { %v3979_v13 = vadd.f32 %v3978_v51, %v3964_v47 }
 0x886   :  { %v9769_v56 = vadd.f32 %v3979_v13, %v3717_v3 }
 0x888   :  { %4096 = vmatmul.f32.gmra.mxu2 %v9769_v56  ;;  %4142 = vmatmul.f32.gmra.mxu0 %v9769_v56  ;;  %v4171_v58 = vmul.f32 %v9769_v56, %v9769_v56 }
 0x88a   :  { %4212 = vmatmul.f32.vlgmr.msra.gmra.mxu3 %v4170_v57  ;;  %4258 = vmatmul.f32.vlgmr.msra.gmra.mxu1 %v4170_v57 }
 0x890   :  { %4189 = vmatmul.f32.vlgmr.msra.gmra.mxu2 %v4169_v14  ;;  %4235 = vmatmul.f32.vlgmr.msra.gmra.mxu0 %v4169_v14 }
 0x892   :  { %4215 = vmatmul.f32.gmra.mxu3 %v4172_v0  ;;  %4261 = vmatmul.f32.gmra.mxu1 %v4172_v0 }
 0x898   :  { %4192 = vmatmul.f32.gmra.mxu2 %v4171_v58  ;;  %4238 = vmatmul.f32.gmra.mxu0 %v4171_v58 }
 0x8f7   :  { %v4163_v28 = vpop.f32.mrf.mxu1 }
 0x8fd   :  { %v4117_v17 = vpop.f32.mrf.mxu3  ;;  %v4140_v59 = vpop.f32.mrf.mxu0 }
 0x8fe   :  { %v4164_v12 = vadd.f32 %v4163_v28, %v4140_v59 }
 0x8ff   :  { %v4166_v61 = vpop.f32.mrf.mxu1 }
 0x903   :  { %v4094_v2 = vpop.f32.mrf.mxu2 }
 0x904   :  { %v4118_v15 = vadd.f32 %v4117_v17, %v4094_v2 }
 0x905   :  { %v4143_v26 = vpop.f32.mrf.mxu0  ;;  %v4120_v54 = vpop.f32.mrf.mxu3 }
 0x906   :  { %v4167_v55 = vadd.f32 %v4166_v61, %v4143_v26 }
 0x907   :  { %v4259_v22 = vpop.f32.mrf.mxu1 }
 0x908   :  { %v4272_v8 = vadd.f32 %v4167_v55, %v4164_v12 }
 0x90a   :  { %v4273_v45 = vrot.slane %v4272_v8, 4 }
 0x90b   :  { %v4097_v49 = vpop.f32.mrf.mxu2 }
 0x90c   :  { %v4121_v53 = vadd.f32 %v4120_v54, %v4097_v49  ;;  %v4274_v40 = vadd.f32 %v4273_v45, %v4272_v8 }
 0x90d   :  { %v4236_v24 = vpop.f32.mrf.mxu0  ;;  %v4213_v11 = vpop.f32.mrf.mxu3 }
 0x90e   :  { %v4265_v9 = vadd.f32 %v4121_v53, %v4118_v15  ;;  %v4275_v35 = vrot.slane %v4274_v40, 2  ;;  %v4260_v29 = vadd.f32 %v4259_v22, %v4236_v24 }
 0x90f   :  { %v4262_v18 = vpop.f32.mrf.mxu1 }
 0x910   :  { %v4266_v10 = vrot.slane %v4265_v9, 4  ;;  %v4276_v32 = vadd.f32 %v4275_v35, %v4274_v40  ;;  %v8140_v35 = vld [vmem:[#allocation13 + $0x1f4] sm:$0xf] }
 0x912   :  { %v4267_v5 = vadd.f32 %v4266_v10, %v4265_v9  ;;  %v4277_v37 = vrot.slane %v4276_v32, 1  ;;  %v7357_v9 = vld [vmem:[#allocation13 + $0x1f0] sm:$0xf]  ;;  %v8141_v10 = vld [vmem:[#allocation13 + $0x1f4] sm:$0xf0] }
 0x913   :  { %v4190_v41 = vpop.f32.mrf.mxu2 }
 0x914   :  { %v4268_v60 = vrot.slane %v4267_v5, 2  ;;  %v4214_v52 = vadd.f32 %v4213_v11, %v4190_v41  ;;  %v4278_v62 = vadd.f32 %v4277_v37, %v4276_v32  ;;  %v7359_v41 = vld [vmem:[#allocation13 + $0x1f8] sm:$0xf0]  ;;  %v7349_v32 = vld [vmem:[#allocation13 + $0x1e0] sm:$0xf] }
 0x915   :  { %v4239_v31 = vpop.f32.mrf.mxu0  ;;  %v4216_v38 = vpop.f32.mrf.mxu3  ;;  %v7362_v37 = vor.u32 %v8140_v35, %v7359_v41  ;;  %v8118_v35 = vld [vmem:[#allocation13 + $0x144] sm:$0xf]  ;;  %v7271_v41 = vld [vmem:[#allocation13 + $0x148] sm:$0xf0] }
 0x916   :  { %v4263_v36 = vadd.f32 %v4262_v18, %v4239_v31  ;;  %v4269_v44 = vadd.f32 %v4268_v60, %v4267_v5  ;;  %v4280_v46 = vmul.f32 0.0078125, %v4278_v62  ;;  %v4345_v62 = vld [vmem:[#allocation12] sm:$0xf] }
 0x918   :  { %v4288_v25 = vadd.f32 %v4263_v36, %v4260_v29  ;;  %v4270_v23 = vrot.slane %v4269_v44, 1  ;;  %v4298_v47 = vmul.f32 %v4280_v46, %v4280_v46  ;;  %v4302_v22 = vsub.f32 %v9750_v50, %v4280_v46  ;;  %v8139_v29 = vld [vmem:[#allocation13 + $0x1e4] sm:$0xf0] }
 0x919   :  { %v4304_v49 = vsub.f32 %v9761_v48, %v4280_v46 }
 0x91a   :  { %v4289_v39 = vrot.slane %v4288_v25, 4  ;;  %v4271_v34 = vadd.f32 %v4270_v23, %v4269_v44  ;;  %v8124_v23 = vld [vmem:[#allocation13 + $0x174] sm:$0xf] }
 0x91b   :  { %v4193_v19 = vpop.f32.mrf.mxu2 }
 0x91c   :  { %v4290_v4 = vadd.f32 %v4289_v39, %v4288_v25  ;;  %v4217_v1 = vadd.f32 %v4216_v38, %v4193_v19  ;;  %v4279_v63 = vmul.f32 0.0078125, %v4271_v34  ;;  %v7358_v25 = vor.u32 %v8141_v10, %v7357_v9  ;;  %v8138_v39 = vld [vmem:[#allocation13 + $0x1e4] sm:$0xf]  ;;  %v7351_v38 = vld [vmem:[#allocation13 + $0x1e8] sm:$0xf0] }
 0x91d   :  { %v8137_v34 = vld [vmem:[#allocation13 + $0x1d4] sm:$0xf0]  ;;  %v7327_v9 = vld [vmem:[#allocation13 + $0x1b8] sm:$0xf0]  ;;  %v7269_v10 = vld [vmem:[#allocation13 + $0x140] sm:$0xf] }
 0x91e   :  { %v4291_v20 = vrot.slane %v4290_v4, 2  ;;  %v4281_v27 = vadd.f32 %v4217_v1, %v4214_v52  ;;  %v4297_v58 = vmul.f32 %v4279_v63, %v4279_v63  ;;  %v4301_v31 = vsub.f32 %v9759_v16, %v4279_v63  ;;  %v4411_v52 = vld [vmem:[#allocation12 + $0x4] sm:$0xf]  ;;  %v8125_v1 = vld [vmem:[#allocation13 + $0x174] sm:$0xf0] }
 0x91f   :  { %v4303_v50 = vsub.f32 %v9769_v56, %v4279_v63  ;;  %v7293_v56 = vld [vmem:[#allocation13 + $0x170] sm:$0xf]  ;;  %v7285_v63 = vld [vmem:[#allocation13 + $0x160] sm:$0xf] }
 0x920   :  { %v4292_v21 = vadd.f32 %v4291_v20, %v4290_v4  ;;  %v4282_v30 = vrot.slane %v4281_v27, 4  ;;  %v7350_v20 = vor.u32 %v8139_v29, %v7349_v32  ;;  %v7274_v32 = vor.u32 %v8118_v35, %v7271_v41  ;;  %v8130_v29 = vld [vmem:[#allocation13 + $0x1a4] sm:$0xf]  ;;  %v7469_v35 = vld [vmem:[#allocation13 + $0xd0] sm:$0xf] }
 0x922   :  { %v4293_v43 = vrot.slane %v4292_v21, 1  ;;  %v4283_v6 = vadd.f32 %v4282_v30, %v4281_v27  ;;  %v7354_v27 = vor.u32 %v8138_v39, %v7351_v38  ;;  %v7263_v39 = vld [vmem:[#allocation13 + $0x138] sm:$0xf0] }
 0x924   :  { %v4294_v33 = vadd.f32 %v4293_v43, %v4292_v21  ;;  %v4284_v7 = vrot.slane %v4283_v6, 2  ;;  %v7295_v21 = vld [vmem:[#allocation13 + $0x178] sm:$0xf0]  ;;  %v7294_v43 = vor.u32 %v8125_v1, %v7293_v56  ;;  %v8128_v1 = vld [vmem:[#allocation13 + $0x194] sm:$0xf] }
 0x926   :  { %v4296_v42 = vmul.f32 0.0078125, %v4294_v33  ;;  %v4285_v51 = vadd.f32 %v4284_v7, %v4283_v6  ;;  %v7341_v6 = vld [vmem:[#allocation13 + $0x1d0] sm:$0xf] }
 0x928   :  { %v4300_v3 = vsub.f32 %v4296_v42, %v4298_v47  ;;  %v4286_v13 = vrot.slane %v4285_v51, 1  ;;  %v7298_v42 = vor.u32 %v8124_v23, %v7295_v21  ;;  %v8136_v47 = vld [vmem:[#allocation13 + $0x1d4] sm:$0xf]  ;;  %v8114_v23 = vld [vmem:[#allocation13 + $0x124] sm:$0xf] }
 0x929   :  { %v7255_v21 = vld [vmem:[#allocation13 + $0x128] sm:$0xf0] }
 0x92a   :  { %v4306_v57 = vadd.f32 1e-05, %v4300_v3  ;;  %v4287_v14 = vadd.f32 %v4286_v13, %v4285_v51  ;;  %v7343_v51 = vld [vmem:[#allocation13 + $0x1d8] sm:$0xf0]  ;;  %v8123_v13 = vld [vmem:[#allocation13 + $0x164] sm:$0xf0] }
 0x92c   :  { %8227 = vrsqrt.f32 %v4306_v57  ;;  %v4295_v0 = vmul.f32 0.0078125, %v4287_v14  ;;  %vm4323_vm0 = vweird.f32 %v4306_v57  ;;  %v7287_v14 = vld [vmem:[#allocation13 + $0x168] sm:$0xf0] }
 0x92e   :  { %v4299_v28 = vsub.f32 %v4295_v0, %v4297_v58  ;;  %v7342_v0 = vor.u32 %v8137_v34, %v7341_v6  ;;  %v7346_v58 = vor.u32 %v8136_v47, %v7343_v51  ;;  %v8127_v6 = vld [vmem:[#allocation13 + $0x184] sm:$0xf0]  ;;  %v8126_v34 = vld [vmem:[#allocation13 + $0x184] sm:$0xf]  ;;  %v7485_v47 = vld [vmem:[#allocation13 + $0xf0] sm:$0xf] }
 0x92f   :  { %v8109_v51 = vld [vmem:[#allocation13 + $0xf4] sm:$0xf0] }
 0x930   :  { %v4305_v17 = vadd.f32 1e-05, %v4299_v28  ;;  %v7333_v28 = vld [vmem:[#allocation13 + $0x1c0] sm:$0xf] }
 0x932   :  { %v8228_v59 = vpop.eup %8227  ;;  %8229 = vrsqrt.f32 %v4305_v17  ;;  %vm4313_vm6 = vweird.f32 %v4305_v17 }
 0x933   :  { %v4318_v61 = vmul.f32 %v8228_v59, %v4306_v57  ;;  %vm4324_vm1 = vweird.f32 %v8228_v59  ;;  %v8122_v57 = vld [vmem:[#allocation13 + $0x164] sm:$0xf] }
 0x934   :  { %vm4325_vm2 = vmor %vm4323_vm0, %vm4324_vm1 }
 0x935   :  { %v4319_v2 = vmul.f32 %v8228_v59, %v4318_v61  ;;  %v7290_v61 = vor.u32 %v8122_v57, %v7287_v14  ;;  %v7245_v57 = vld [vmem:[#allocation13 + $0x110] sm:$0xf]  ;;  %v8113_v14 = vld [vmem:[#allocation13 + $0x114] sm:$0xf0] }
 0x937   :  { %v4320_v26 = vmul.f32 0.5, %v4319_v2  ;;  %v8134_v2 = vld [vmem:[#allocation13 + $0x1c4] sm:$0xf] }
 0x938   :  { %v8230_v12 = vpop.eup %8229 }
 0x939   :  { %v4321_v55 = vsub.f32 1.5, %v4320_v26  ;;  %v4308_v54 = vmul.f32 %v8230_v12, %v4305_v17  ;;  %vm4314_vm3 = vweird.f32 %v8230_v12  ;;  %v8135_v17 = vld [vmem:[#allocation13 + $0x1c4] sm:$0xf0]  ;;  %v7335_v26 = vld [vmem:[#allocation13 + $0x1c8] sm:$0xf0] }
 0x93a   :  { %vm4315_vm7 = vmor %vm4313_vm6, %vm4314_vm3 }
 0x93b   :  { %v4309_v8 = vmul.f32 %v8230_v12, %v4308_v54  ;;  %v4322_v45 = vmul.f32 %v8228_v59, %v4321_v55  ;;  %v8121_v55 = vld [vmem:[#allocation13 + $0x154] sm:$0xf0]  ;;  %v8120_v54 = vld [vmem:[#allocation13 + $0x154] sm:$0xf] }
 0x93d   :  { %v4310_v15 = vmul.f32 0.5, %v4309_v8  ;;  %v4326_v53 = vsel %vm4325_vm2, %v8228_v59, %v4322_v45  ;;  %v7286_v59 = vor.u32 %v8123_v13, %v7285_v63  ;;  %v7279_v8 = vld [vmem:[#allocation13 + $0x158] sm:$0xf0]  ;;  %v7334_v45 = vor.u32 %v8135_v17, %v7333_v28  ;;  %v8108_v63 = vld [vmem:[#allocation13 + $0xf4] sm:$0xf] }
 0x93e   :  { %v4328_v24 = vmul.f32 %v4326_v53, %v4302_v22  ;;  %v4330_v40 = vmul.f32 %v4326_v53, %v4304_v49  ;;  %v7338_v22 = vor.u32 %v8134_v2, %v7335_v26  ;;  %v7325_v49 = vld [vmem:[#allocation13 + $0x1b0] sm:$0xf]  ;;  %v7487_v13 = vld [vmem:[#allocation13 + $0xf8] sm:$0xf0]  ;;  %v7477_v2 = vld [vmem:[#allocation13 + $0xe0] sm:$0xf] }
 0x93f   :  { %v4311_v11 = vsub.f32 1.5, %v4310_v15  ;;  %v8133_v15 = vld [vmem:[#allocation13 + $0x1b4] sm:$0xf0]  ;;  %v8107_v26 = vld [vmem:[#allocation13 + $0xe4] sm:$0xf0] }
 0x940   :  { %vm4332_vm4 = vcmp.ge.f32.partialorder %v4328_v24, 0.0  ;;  %vm4334_vm5 = vcmp.ge.f32.partialorder %v4330_v40, 0.0  ;;  %v4336_v5 = vmul.f32 0.2, %v4328_v24  ;;  %v4338_v18 = vmul.f32 0.2, %v4330_v40 }
 0x941   :  { %v4312_v48 = vmul.f32 %v8230_v12, %v4311_v11  ;;  %v8119_v11 = vld [vmem:[#allocation13 + $0x144] sm:$0xf0] }
 0x942   :  { %v4340_v36 = vsel %vm4332_vm4, %v4328_v24, %v4336_v5  ;;  %v4342_v60 = vsel %vm4334_vm5, %v4330_v40, %v4338_v18  ;;  %v7282_v24 = vor.u32 %v8120_v54, %v7279_v8  ;;  %v8132_v40 = vld [vmem:[#allocation13 + $0x1b4] sm:$0xf]  ;;  %v7326_v5 = vor.u32 %v8133_v15, %v7325_v49  ;;  %v7479_v8 = vld [vmem:[#allocation13 + $0xe8] sm:$0xf0]  ;;  %v8110_v49 = vld [vmem:[#allocation13 + $0x104] sm:$0xf] }
 0x943   :  { %v9786_v19 = vpack.c.bf16 %v4342_v60, %v4340_v36  ;;  %v4316_v44 = vsel %vm4315_vm7, %v8230_v12, %v4312_v48  ;;  %v7277_v12 = vld [vmem:[#allocation13 + $0x150] sm:$0xf]  ;;  %v7330_v18 = vor.u32 %v8132_v40, %v7327_v9  ;;  %v7270_v48 = vor.u32 %v8119_v11, %v7269_v10  ;;  %v7319_v36 = vld [vmem:[#allocation13 + $0x1a8] sm:$0xf0]  ;;  %v8092_v40 = vld [vmem:[#allocation13 + $0x74] sm:$0xf] }
 0x944   :  { %v4327_v16 = vmul.f32 %v4316_v44, %v4301_v31  ;;  %v4329_v4 = vmul.f32 %v4316_v44, %v4303_v50  ;;  %v7278_v53 = vor.u32 %v8121_v55, %v7277_v12  ;;  %v7317_v31 = vld [vmem:[#allocation13 + $0x1a0] sm:$0xf]  ;;  %v8131_v50 = vld [vmem:[#allocation13 + $0x1a4] sm:$0xf0]  ;;  %v7261_v60 = vld [vmem:[#allocation13 + $0x130] sm:$0xf]  ;;  %v7322_v44 = vor.u32 %v8130_v29, %v7319_v36 }
 0x945   :  { %4370 = vmatpush.bf16.msrb.mxu3 %v9786_v19  ;;  %4435 = vmatpush.bf16.msrb.mxu1 %v9786_v19  ;;  %v7318_v38 = vor.u32 %v8131_v50, %v7317_v31  ;;  %v8106_v12 = vld [vmem:[#allocation13 + $0xe4] sm:$0xf]  ;;  %v7246_v55 = vor.u32 %v8113_v14, %v7245_v57  ;;  %v7239_v15 = vld [vmem:[#allocation13 + $0x108] sm:$0xf0]  ;;  %v7423_v9 = vld [vmem:[#allocation13 + $0x78] sm:$0xf0]  ;;  %v7478_v10 = vor.u32 %v8107_v26, %v7477_v2 }
 0x946   :  { %vm4331_vm9 = vcmp.ge.f32.partialorder %v4327_v16, 0.0  ;;  %vm4333_vm10 = vcmp.ge.f32.partialorder %v4329_v4, 0.0  ;;  %v4335_v30 = vmul.f32 0.2, %v4327_v16  ;;  %v4337_v46 = vmul.f32 0.2, %v4329_v4 }
 0x947   :  { %v7482_v11 = vor.u32 %v8106_v12, %v7479_v8  ;;  %v8104_v31 = vld [vmem:[#allocation13 + $0xd4] sm:$0xf]  ;;  %v7471_v50 = vld [vmem:[#allocation13 + $0xd8] sm:$0xf0]  ;;  %v7413_v29 = vld [vmem:[#allocation13 + $0x60] sm:$0xf] }
 0x948   :  { %7234 = vmatmul.msk.bf16.vlgmr.msrb.gmra.mxu1 %vm4346_vm8, %v4411_v52  ;;  %v4339_v33 = vsel %vm4331_vm9, %v4327_v16, %v4335_v30  ;;  %v4341_v7 = vsel %vm4333_vm10, %v4329_v4, %v4337_v46  ;;  %7232 = vmatmul.msk.bf16.vlgmr.msrb.gmra.mxu3 %vm4346_vm8, %v4345_v62  ;;  %v8129_v16 = vld [vmem:[#allocation13 + $0x194] sm:$0xf0]  ;;  %v8091_v36 = vld [vmem:[#allocation13 + $0x64] sm:$0xf0]  ;;  %v7445_v57 = vld [vmem:[#allocation13 + $0xa0] sm:$0xf] }
 0x949   :  { %4649 = vmatpush.bf16.msra.mxu3 %v7358_v25  ;;  %4675 = vmatpush.bf16.msra.mxu1 %v7362_v37  ;;  %v9792_v3 = vpack.c.bf16 %v4341_v7, %v4339_v33  ;;  %v8117_v25 = vld [vmem:[#allocation13 + $0x134] sm:$0xf0]  ;;  %v8116_v37 = vld [vmem:[#allocation13 + $0x134] sm:$0xf]  ;;  %v7258_v7 = vor.u32 %v8114_v23, %v7255_v21  ;;  %v8099_v14 = vld [vmem:[#allocation13 + $0xa4] sm:$0xf0] }
 0x94a   :  { %v7262_v4 = vor.u32 %v8117_v25, %v7261_v60  ;;  %v7266_v56 = vor.u32 %v8116_v37, %v7263_v39  ;;  %v8090_v60 = vld [vmem:[#allocation13 + $0x64] sm:$0xf]  ;;  %v7415_v25 = vld [vmem:[#allocation13 + $0x68] sm:$0xf0]  ;;  %v7474_v39 = vor.u32 %v8104_v31, %v7471_v50  ;;  %v8084_v2 = vld [vmem:[#allocation13 + $0x34] sm:$0xf]  ;;  %v7446_v12 = vor.u32 %v8099_v14, %v7445_v57 }
 0x94b   :  { %4357 = vmatpush.bf16.msrb.mxu2 %v9792_v3  ;;  %4422 = vmatpush.bf16.msrb.mxu0 %v9792_v3  ;;  %v7391_v26 = vld [vmem:[#allocation13 + $0x38] sm:$0xf0]  ;;  %v8097_v8 = vld [vmem:[#allocation13 + $0x94] sm:$0xf0]  ;;  %v8094_v31 = vld [vmem:[#allocation13 + $0x84] sm:$0xf] }
 0x94c   :  { %vm5765_vm5 = vcmask 64512   ;;  %vm5831_vm10 = vcmask 7168  }
 0x94d   :  { %4650 = vmatpush.bf16.msra.mxu3 %v7350_v20  ;;  %4676 = vmatpush.bf16.msra.mxu1 %v7354_v27  ;;  %v7253_v20 = vld [vmem:[#allocation13 + $0x120] sm:$0xf]  ;;  %v8115_v27 = vld [vmem:[#allocation13 + $0x124] sm:$0xf0] }
 0x94e   :  { %7233 = vmatmul.msk.bf16.vlgmr.msrb.gmra.mxu0 %vm4346_vm8, %v4411_v52  ;;  %7231 = vmatmul.msk.bf16.vlgmr.msrb.gmra.mxu2 %vm4346_vm8, %v4345_v62  ;;  %v7309_v52 = vld [vmem:[#allocation13 + $0x190] sm:$0xf]  ;;  %v7311_v62 = vld [vmem:[#allocation13 + $0x198] sm:$0xf0]  ;;  %v7254_v33 = vor.u32 %v8115_v27, %v7253_v20  ;;  %v8088_v20 = vld [vmem:[#allocation13 + $0x54] sm:$0xf] }
 0x94f   :  { %4636 = vmatpush.bf16.msra.mxu2 %v7294_v43  ;;  %4662 = vmatpush.bf16.msra.mxu0 %v7298_v42  ;;  %v7310_v30 = vor.u32 %v8129_v16, %v7309_v52  ;;  %v7314_v46 = vor.u32 %v8128_v1, %v7311_v62  ;;  %v7301_v43 = vld [vmem:[#allocation13 + $0x180] sm:$0xf]  ;;  %v7303_v42 = vld [vmem:[#allocation13 + $0x188] sm:$0xf0]  ;;  %v8102_v52 = vld [vmem:[#allocation13 + $0xc4] sm:$0xf] }
 0x950   :  { %v7302_v28 = vor.u32 %v8127_v6, %v7301_v43  ;;  %v7306_v17 = vor.u32 %v8126_v34, %v7303_v42  ;;  %v7463_v16 = vld [vmem:[#allocation13 + $0xc8] sm:$0xf0]  ;;  %v7405_v1 = vld [vmem:[#allocation13 + $0x50] sm:$0xf]  ;;  %v8089_v62 = vld [vmem:[#allocation13 + $0x54] sm:$0xf0] }
 0x951   :  { %4651 = vmatpush.bf16.msra.mxu3 %v7342_v0  ;;  %4677 = vmatpush.bf16.msra.mxu1 %v7346_v58  ;;  %v8112_v0 = vld [vmem:[#allocation13 + $0x114] sm:$0xf]  ;;  %v7247_v58 = vld [vmem:[#allocation13 + $0x118] sm:$0xf0]  ;;  %v7466_v21 = vor.u32 %v8102_v52, %v7463_v16  ;;  %v7406_v34 = vor.u32 %v8089_v62, %v7405_v1  ;;  %v8087_v42 = vld [vmem:[#allocation13 + $0x44] sm:$0xf0] }
 0x952   :  { %v7250_v54 = vor.u32 %v8112_v0, %v7247_v58  ;;  %v7407_v27 = vld [vmem:[#allocation13 + $0x58] sm:$0xf0]  ;;  %v8100_v43 = vld [vmem:[#allocation13 + $0xb4] sm:$0xf]  ;;  %v8098_v0 = vld [vmem:[#allocation13 + $0xa4] sm:$0xf] }
 0x953   :  { %4637 = vmatpush.bf16.msra.mxu2 %v7286_v59  ;;  %4663 = vmatpush.bf16.msra.mxu0 %v7290_v61  ;;  %v7486_v59 = vor.u32 %v8109_v51, %v7485_v47  ;;  %v7490_v61 = vor.u32 %v8108_v63, %v7487_v13  ;;  %v7455_v6 = vld [vmem:[#allocation13 + $0xb8] sm:$0xf0]  ;;  %v8086_v47 = vld [vmem:[#allocation13 + $0x44] sm:$0xf]  ;;  %v7399_v51 = vld [vmem:[#allocation13 + $0x48] sm:$0xf0] }
 0x954   :  { %v7458_v13 = vor.u32 %v8100_v43, %v7455_v6  ;;  %v7447_v58 = vld [vmem:[#allocation13 + $0xa8] sm:$0xf0]  ;;  %v8078_v52 = vld [vmem:[#allocation13 + $0x4] sm:$0xf]  ;;  %v7615_v1 = vld [vmem:[#allocation13 + $0x2f0] sm:$0xf] }
 0x955   :  { %4652 = vmatpush.bf16.msra.mxu3 %v7334_v45  ;;  %4678 = vmatpush.bf16.msra.mxu1 %v7338_v22  ;;  %v7237_v45 = vld [vmem:[#allocation13 + $0x100] sm:$0xf]  ;;  %v8111_v22 = vld [vmem:[#allocation13 + $0x104] sm:$0xf0]  ;;  %v8173_v62 = vld [vmem:[#allocation13 + $0x2f4] sm:$0xf0] }
 0x956   :  { %v7238_v41 = vor.u32 %v8111_v22, %v7237_v45  ;;  %v8096_v45 = vld [vmem:[#allocation13 + $0x94] sm:$0xf]  ;;  %v7439_v22 = vld [vmem:[#allocation13 + $0x98] sm:$0xf0]  ;;  %v8157_v43 = vld [vmem:[#allocation13 + $0x274] sm:$0xf0] }
 0x957   :  { %4638 = vmatpush.bf16.msra.mxu2 %v7278_v53  ;;  %4664 = vmatpush.bf16.msra.mxu0 %v7282_v24  ;;  %v7421_v53 = vld [vmem:[#allocation13 + $0x70] sm:$0xf]  ;;  %v8093_v24 = vld [vmem:[#allocation13 + $0x74] sm:$0xf0] }
 0x959   :  { %4653 = vmatpush.bf16.msra.mxu3 %v7326_v5  ;;  %4679 = vmatpush.bf16.msra.mxu1 %v7330_v18  ;;  %v7242_v5 = vor.u32 %v8110_v49, %v7239_v15  ;;  %v8105_v18 = vld [vmem:[#allocation13 + $0xd4] sm:$0xf0]  ;;  %v7394_v15 = vor.u32 %v8084_v2, %v7391_v26  ;;  %v7583_v26 = vld [vmem:[#allocation13 + $0x2b0] sm:$0xf] }
 0x95a   :  { %v7470_v37 = vor.u32 %v8105_v18, %v7469_v35  ;;  %v7383_v35 = vld [vmem:[#allocation13 + $0x28] sm:$0xf0]  ;;  %v8095_v18 = vld [vmem:[#allocation13 + $0x84] sm:$0xf0] }
 0x95b   :  { %4639 = vmatpush.bf16.msra.mxu2 %v7270_v48  ;;  %4665 = vmatpush.bf16.msra.mxu0 %v7274_v32  ;;  %v7422_v48 = vor.u32 %v8093_v24, %v7421_v53  ;;  %v7426_v32 = vor.u32 %v8092_v40, %v7423_v9  ;;  %v7442_v24 = vor.u32 %v8096_v45, %v7439_v22  ;;  %v7381_v40 = vld [vmem:[#allocation13 + $0x20] sm:$0xf]  ;;  %v8083_v9 = vld [vmem:[#allocation13 + $0x24] sm:$0xf0] }
 0x95c   :  { %v7527_v45 = vld [vmem:[#allocation13 + $0x240] sm:$0xf]  ;;  %v8151_v22 = vld [vmem:[#allocation13 + $0x244] sm:$0xf0] }
 0x95d   :  { %4654 = vmatpush.bf16.msra.mxu3 %v7318_v38  ;;  %4680 = vmatpush.bf16.msra.mxu1 %v7322_v44  ;;  %v7461_v38 = vld [vmem:[#allocation13 + $0xc0] sm:$0xf]  ;;  %v8103_v44 = vld [vmem:[#allocation13 + $0xc4] sm:$0xf0] }
 0x95e   :  { %v7462_v23 = vor.u32 %v8103_v44, %v7461_v38  ;;  %v7365_v38 = vld [vmem:[#allocation13] sm:$0xf]  ;;  %v8079_v44 = vld [vmem:[#allocation13 + $0x4] sm:$0xf0] }
 0x95f   :  { %4640 = vmatpush.bf16.msra.mxu2 %v7262_v4  ;;  %4666 = vmatpush.bf16.msra.mxu0 %v7266_v56  ;;  %v7414_v4 = vor.u32 %v8091_v36, %v7413_v29  ;;  %v7418_v56 = vor.u32 %v8090_v60, %v7415_v25  ;;  %v7373_v29 = vld [vmem:[#allocation13 + $0x10] sm:$0xf]  ;;  %v8081_v36 = vld [vmem:[#allocation13 + $0x14] sm:$0xf0]  ;;  %v8080_v60 = vld [vmem:[#allocation13 + $0x14] sm:$0xf]  ;;  %v7366_v16 = vor.u32 %v8079_v44, %v7365_v38 }
 0x960   :  { %v7374_v25 = vor.u32 %v8081_v36, %v7373_v29  ;;  %v7559_v29 = vld [vmem:[#allocation13 + $0x280] sm:$0xf]  ;;  %v8159_v36 = vld [vmem:[#allocation13 + $0x284] sm:$0xf0] }
 0x961   :  { %4655 = vmatpush.bf16.msra.mxu3 %v7310_v30  ;;  %4681 = vmatpush.bf16.msra.mxu1 %v7314_v46  ;;  %v7453_v30 = vld [vmem:[#allocation13 + $0xb0] sm:$0xf]  ;;  %v8101_v46 = vld [vmem:[#allocation13 + $0xb4] sm:$0xf0]  ;;  %v7495_v44 = vld [vmem:[#allocation13 + $0x200] sm:$0xf] }
 0x962   :  { %v7454_v63 = vor.u32 %v8101_v46, %v7453_v30  ;;  %v8171_v30 = vld [vmem:[#allocation13 + $0x2e4] sm:$0xf0]  ;;  %v7551_v46 = vld [vmem:[#allocation13 + $0x270] sm:$0xf] }
 0x963   :  { %4641 = vmatpush.bf16.msra.mxu2 %v7254_v33  ;;  %4667 = vmatpush.bf16.msra.mxu0 %v7258_v7  ;;  %v7410_v33 = vor.u32 %v8088_v20, %v7407_v27  ;;  %v7397_v7 = vld [vmem:[#allocation13 + $0x40] sm:$0xf]  ;;  %v7616_v27 = vor.u32 %v8173_v62, %v7615_v1  ;;  %v7617_v1 = vld [vmem:[#allocation13 + $0x2f8] sm:$0xf0] }
 0x965   :  { %4656 = vmatpush.bf16.msra.mxu3 %v7302_v28  ;;  %4682 = vmatpush.bf16.msra.mxu1 %v7306_v17  ;;  %v7398_v28 = vor.u32 %v8087_v42, %v7397_v7  ;;  %v7402_v17 = vor.u32 %v8086_v47, %v7399_v51  ;;  %v7552_v42 = vor.u32 %v8157_v43, %v7551_v46  ;;  %v7601_v43 = vld [vmem:[#allocation13 + $0x2d8] sm:$0xf0] }
 0x967   :  { %4642 = vmatpush.bf16.msra.mxu2 %v7246_v55  ;;  %4668 = vmatpush.bf16.msra.mxu0 %v7250_v54  ;;  %v7450_v55 = vor.u32 %v8098_v0, %v7447_v58  ;;  %v7437_v54 = vld [vmem:[#allocation13 + $0x90] sm:$0xf]  ;;  %v7591_v0 = vld [vmem:[#allocation13 + $0x2c0] sm:$0xf]  ;;  %v8167_v58 = vld [vmem:[#allocation13 + $0x2c4] sm:$0xf0] }
 0x968   :  { %v7438_v53 = vor.u32 %v8097_v8, %v7437_v54 }
 0x969   :  { %4861 = vmatpush.bf16.msrb.mxu3 %v7486_v59  ;;  %4887 = vmatpush.bf16.msrb.mxu1 %v7490_v61  ;;  %v7389_v59 = vld [vmem:[#allocation13 + $0x30] sm:$0xf]  ;;  %v8085_v61 = vld [vmem:[#allocation13 + $0x34] sm:$0xf0] }
 0x96a   :  { %v7390_v49 = vor.u32 %v8085_v61, %v7389_v59  ;;  %v8153_v59 = vld [vmem:[#allocation13 + $0x254] sm:$0xf0]  ;;  %v7592_v61 = vor.u32 %v8167_v58, %v7591_v0  ;;  %v8150_v58 = vld [vmem:[#allocation13 + $0x244] sm:$0xf] }
 0x96b   :  { %4643 = vmatpush.bf16.msra.mxu2 %v7238_v41  ;;  %4669 = vmatpush.bf16.msra.mxu0 %v7242_v5  ;;  %v7429_v5 = vld [vmem:[#allocation13 + $0x80] sm:$0xf] }
 0x96c   :  { %v7430_v50 = vor.u32 %v8095_v18, %v7429_v5  ;;  %v7567_v5 = vld [vmem:[#allocation13 + $0x290] sm:$0xf]  ;;  %v8161_v18 = vld [vmem:[#allocation13 + $0x294] sm:$0xf0] }
 0x96d   :  { %4862 = vmatpush.bf16.msrb.mxu3 %v7478_v10  ;;  %4888 = vmatpush.bf16.msrb.mxu1 %v7482_v11  ;;  %v8082_v10 = vld [vmem:[#allocation13 + $0x24] sm:$0xf]  ;;  %v7382_v11 = vor.u32 %v8083_v9, %v7381_v40  ;;  %v7528_v40 = vor.u32 %v8151_v22, %v7527_v45  ;;  %v7519_v9 = vld [vmem:[#allocation13 + $0x230] sm:$0xf]  ;;  %v7569_v45 = vld [vmem:[#allocation13 + $0x298] sm:$0xf0] }
 0x96e   :  { %v7386_v41 = vor.u32 %v8082_v10, %v7383_v35  ;;  %v8149_v10 = vld [vmem:[#allocation13 + $0x234] sm:$0xf0] }
 0x96f   :  { %4848 = vmatpush.bf16.msrb.mxu2 %v7422_v48  ;;  %4874 = vmatpush.bf16.msrb.mxu0 %v7426_v32  ;;  %v7431_v48 = vld [vmem:[#allocation13 + $0x88] sm:$0xf0] }
 0x970   :  { %v7434_v32 = vor.u32 %v8094_v31, %v7431_v48  ;;  %v7520_v31 = vor.u32 %v8149_v10, %v7519_v9  ;;  %v8147_v48 = vld [vmem:[#allocation13 + $0x224] sm:$0xf0]  ;;  %v8158_v9 = vld [vmem:[#allocation13 + $0x284] sm:$0xf] }
 0x971   :  { %4863 = vmatpush.bf16.msrb.mxu3 %v7470_v37  ;;  %4889 = vmatpush.bf16.msrb.mxu1 %v7474_v39  ;;  %v7375_v37 = vld [vmem:[#allocation13 + $0x18] sm:$0xf0] }
 0x972   :  { %v7378_v39 = vor.u32 %v8080_v60, %v7375_v37  ;;  %v8145_v37 = vld [vmem:[#allocation13 + $0x214] sm:$0xf0] }
 0x973   :  { %4849 = vmatpush.bf16.msrb.mxu2 %v7414_v4  ;;  %4875 = vmatpush.bf16.msrb.mxu0 %v7418_v56  ;;  %v7367_v4 = vld [vmem:[#allocation13 + $0x8] sm:$0xf0] }
 0x974   :  { %v7370_v56 = vor.u32 %v8078_v52, %v7367_v4  ;;  %v8143_v52 = vld [vmem:[#allocation13 + $0x204] sm:$0xf0] }
 0x975   :  { %4864 = vmatpush.bf16.msrb.mxu3 %v7462_v23  ;;  %4890 = vmatpush.bf16.msrb.mxu1 %v7466_v21  ;;  %v7607_v21 = vld [vmem:[#allocation13 + $0x2e0] sm:$0xf]  ;;  %v7496_v4 = vor.u32 %v8143_v52, %v7495_v44 }
 0x976   :  { %v7608_v6 = vor.u32 %v8171_v30, %v7607_v21  ;;  %v7553_v21 = vld [vmem:[#allocation13 + $0x278] sm:$0xf0] }
 0x977   :  { %4850 = vmatpush.bf16.msrb.mxu2 %v7406_v34  ;;  %4876 = vmatpush.bf16.msrb.mxu0 %v7410_v33  ;;  %v7599_v34 = vld [vmem:[#allocation13 + $0x2d0] sm:$0xf]  ;;  %v8169_v33 = vld [vmem:[#allocation13 + $0x2d4] sm:$0xf0] }
 0x978   :  { %v7600_v57 = vor.u32 %v8169_v33, %v7599_v34  ;;  %v8154_v34 = vld [vmem:[#allocation13 + $0x264] sm:$0xf]  ;;  %v7545_v33 = vld [vmem:[#allocation13 + $0x268] sm:$0xf0] }
 0x979   :  { %4865 = vmatpush.bf16.msrb.mxu3 %v7454_v63  ;;  %4891 = vmatpush.bf16.msrb.mxu1 %v7458_v13  ;;  %v7543_v63 = vld [vmem:[#allocation13 + $0x260] sm:$0xf]  ;;  %v8155_v13 = vld [vmem:[#allocation13 + $0x264] sm:$0xf0] }
 0x97b   :  { %4851 = vmatpush.bf16.msrb.mxu2 %v7398_v28  ;;  %4877 = vmatpush.bf16.msrb.mxu0 %v7402_v17  ;;  %v7544_v28 = vor.u32 %v8155_v13, %v7543_v63  ;;  %v7535_v17 = vld [vmem:[#allocation13 + $0x250] sm:$0xf]  ;;  %v7593_v63 = vld [vmem:[#allocation13 + $0x2c8] sm:$0xf0] }
 0x97d   :  { %4866 = vmatpush.bf16.msrb.mxu3 %v7446_v12  ;;  %4892 = vmatpush.bf16.msrb.mxu1 %v7450_v55  ;;  %v8165_v12 = vld [vmem:[#allocation13 + $0x2b4] sm:$0xf0]  ;;  %v7536_v55 = vor.u32 %v8153_v59, %v7535_v17  ;;  %v8162_v59 = vld [vmem:[#allocation13 + $0x2a4] sm:$0xf] }
 0x97f   :  { %4852 = vmatpush.bf16.msrb.mxu2 %v7390_v49  ;;  %4878 = vmatpush.bf16.msrb.mxu0 %v7394_v15  ;;  %v7584_v15 = vor.u32 %v8165_v12, %v7583_v26  ;;  %v8148_v26 = vld [vmem:[#allocation13 + $0x234] sm:$0xf]  ;;  %v7521_v12 = vld [vmem:[#allocation13 + $0x238] sm:$0xf0] }
 0x981   :  { %4867 = vmatpush.bf16.msrb.mxu3 %v7438_v53  ;;  %4893 = vmatpush.bf16.msrb.mxu1 %v7442_v24  ;;  %v7575_v53 = vld [vmem:[#allocation13 + $0x2a0] sm:$0xf]  ;;  %v8163_v24 = vld [vmem:[#allocation13 + $0x2a4] sm:$0xf0] }
 0x983   :  { %4853 = vmatpush.bf16.msrb.mxu2 %v7382_v11  ;;  %4879 = vmatpush.bf16.msrb.mxu0 %v7386_v41  ;;  %v7576_v11 = vor.u32 %v8163_v24, %v7575_v53  ;;  %v8144_v24 = vld [vmem:[#allocation13 + $0x214] sm:$0xf] }
 0x985   :  { %4868 = vmatpush.bf16.msrb.mxu3 %v7430_v50  ;;  %4894 = vmatpush.bf16.msrb.mxu1 %v7434_v32  ;;  %v7511_v50 = vld [vmem:[#allocation13 + $0x220] sm:$0xf]  ;;  %v7568_v32 = vor.u32 %v8161_v18, %v7567_v5 }
 0x986   :  { %v7512_v60 = vor.u32 %v8147_v48, %v7511_v50  ;;  %v8142_v50 = vld [vmem:[#allocation13 + $0x204] sm:$0xf]  ;;  %v7497_v48 = vld [vmem:[#allocation13 + $0x208] sm:$0xf0] }
 0x987   :  { %4854 = vmatpush.bf16.msrb.mxu2 %v7374_v25  ;;  %4880 = vmatpush.bf16.msrb.mxu0 %v7378_v39  ;;  %v7503_v25 = vld [vmem:[#allocation13 + $0x210] sm:$0xf]  ;;  %v7560_v39 = vor.u32 %v8159_v36, %v7559_v29 }
 0x988   :  { %v7504_v38 = vor.u32 %v8145_v37, %v7503_v25 }
 0x98b   :  { %4855 = vmatpush.bf16.msrb.mxu2 %v7366_v16  ;;  %4881 = vmatpush.bf16.msrb.mxu0 %v7370_v56  ;;  %v4901_v16 = vld [vmem:[#allocation12 + $0x8] sm:$0xf]  ;;  %v8172_v56 = vld [vmem:[#allocation13 + $0x2f4] sm:$0xf] }
 0x98c   :  { %v7620_v62 = vor.u32 %v8172_v56, %v7617_v1 }
 0x9c5   :  { %v4437_v20 = vpop.f32.mrf.mxu1 }
 0x9c6   :  { %v4442_v23 = vpack.c.bf16 %v4437_v20, %v4437_v20  ;;  %v8170_v20 = vld [vmem:[#allocation13 + $0x2e4] sm:$0xf] }
 0x9c8   :  { %4657 = vmatmul.bf16.vlgmr.msra.gmra.mxu3 %v4442_v23  ;;  %4683 = vmatmul.bf16.vlgmr.msra.gmra.mxu1 %v4442_v23  ;;  %v8156_v23 = vld [vmem:[#allocation13 + $0x274] sm:$0xf] }
 0x9c9   :  { %4925 = vmatpush.bf16.msra.mxu3 %v9786_v19  ;;  %5139 = vmatpush.bf16.msra.mxu1 %v7616_v27  ;;  %v7609_v27 = vld [vmem:[#allocation13 + $0x2e8] sm:$0xf0]  ;;  %v7556_v46 = vor.u32 %v8156_v23, %v7553_v21  ;;  %v7681_v23 = vld [vmem:[#allocation13 + $0x370] sm:$0xf]  ;;  %v8189_v21 = vld [vmem:[#allocation13 + $0x374] sm:$0xf0] }
 0x9ca   :  { %v7612_v30 = vor.u32 %v8170_v20, %v7609_v27 }
 0x9cb   :  { %v4424_v7 = vpop.f32.mrf.mxu0  ;;  %v4372_v47 = vpop.f32.mrf.mxu3 }
 0x9cc   :  { %v4441_v51 = vpack.c.bf16 %v4424_v7, %v4424_v7  ;;  %v4377_v49 = vpack.c.bf16 %v4372_v47, %v4372_v47  ;;  %v8152_v7 = vld [vmem:[#allocation13 + $0x254] sm:$0xf]  ;;  %v8166_v47 = vld [vmem:[#allocation13 + $0x2c4] sm:$0xf] }
 0x9cd   :  { %5140 = vmatpush.bf16.msra.mxu1 %v7608_v6  ;;  %v4439_v14 = vpop.f32.mrf.mxu1  ;;  %v7596_v13 = vor.u32 %v8166_v47, %v7593_v63 }
 0x9ce   :  { %4644 = vmatmul.bf16.vlgmr.msra.gmra.mxu2 %v4441_v51  ;;  %4670 = vmatmul.bf16.vlgmr.msra.gmra.mxu0 %v4441_v51  ;;  %v7585_v14 = vld [vmem:[#allocation13 + $0x2b8] sm:$0xf0] }
 0x9cf   :  { %4912 = vmatpush.bf16.msra.mxu2 %v9792_v3  ;;  %5126 = vmatpush.bf16.msra.mxu0 %v7552_v42  ;;  %v7537_v42 = vld [vmem:[#allocation13 + $0x258] sm:$0xf0] }
 0x9d0   :  { %v7540_v51 = vor.u32 %v8152_v7, %v7537_v42  ;;  %v8204_v7 = vld [vmem:[#allocation13 + $0x3f4] sm:$0xf]  ;;  %v7747_v42 = vld [vmem:[#allocation13 + $0x3f8] sm:$0xf0] }
 0x9d1   :  { %5141 = vmatpush.bf16.msra.mxu1 %v7600_v57  ;;  %v4359_v2 = vpop.f32.mrf.mxu2  ;;  %v8164_v57 = vld [vmem:[#allocation13 + $0x2b4] sm:$0xf] }
 0x9d2   :  { %v4376_v41 = vpack.c.bf16 %v4359_v2, %v4359_v2  ;;  %v7588_v0 = vor.u32 %v8164_v57, %v7585_v14  ;;  %v8185_v57 = vld [vmem:[#allocation13 + $0x354] sm:$0xf0]  ;;  %v7729_v14 = vld [vmem:[#allocation13 + $0x3d0] sm:$0xf] }
 0x9d3   :  { %5127 = vmatpush.bf16.msra.mxu0 %v7544_v28  ;;  %v4426_v54 = vpop.f32.mrf.mxu0  ;;  %v4374_v8 = vpop.f32.mrf.mxu3  ;;  %v7529_v28 = vld [vmem:[#allocation13 + $0x248] sm:$0xf0] }
 0x9d4   :  { %v7532_v17 = vor.u32 %v8150_v58, %v7529_v28  ;;  %v8160_v8 = vld [vmem:[#allocation13 + $0x294] sm:$0xf]  ;;  %v7750_v28 = vor.u32 %v8204_v7, %v7747_v42  ;;  %v7651_v7 = vld [vmem:[#allocation13 + $0x338] sm:$0xf0] }
 0x9d5   :  { %5142 = vmatpush.bf16.msra.mxu1 %v7592_v61  ;;  %v7577_v61 = vld [vmem:[#allocation13 + $0x2a8] sm:$0xf0]  ;;  %v7572_v22 = vor.u32 %v8160_v8, %v7569_v45  ;;  %v8200_v8 = vld [vmem:[#allocation13 + $0x3d4] sm:$0xf]  ;;  %v7731_v45 = vld [vmem:[#allocation13 + $0x3d8] sm:$0xf0] }
 0x9d6   :  { %v7580_v2 = vor.u32 %v8162_v59, %v7577_v61  ;;  %v8202_v61 = vld [vmem:[#allocation13 + $0x3e4] sm:$0xf] }
 0x9d7   :  { %5128 = vmatpush.bf16.msra.mxu0 %v7536_v55  ;;  %v7524_v55 = vor.u32 %v8148_v26, %v7521_v12  ;;  %v8188_v12 = vld [vmem:[#allocation13 + $0x374] sm:$0xf] }
 0x9d8   :  { %4869 = vmatmul.bf16.vlgmr.msrb.gmra.mxu3 %v4377_v49  ;;  %4895 = vmatmul.bf16.vlgmr.msrb.gmra.mxu1 %v4377_v49  ;;  %v8146_v49 = vld [vmem:[#allocation13 + $0x224] sm:$0xf] }
 0x9d9   :  { %5143 = vmatpush.bf16.msra.mxu1 %v7584_v15  ;;  %v4361_v35 = vpop.f32.mrf.mxu2  ;;  %5165 = vmatpush.bf16.msrb.mxu3 %v7620_v62  ;;  %v7513_v15 = vld [vmem:[#allocation13 + $0x228] sm:$0xf0] }
 0x9da   :  { %v7516_v53 = vor.u32 %v8146_v49, %v7513_v15 }
 0x9db   :  { %5129 = vmatpush.bf16.msra.mxu0 %v7528_v40  ;;  %v7505_v40 = vld [vmem:[#allocation13 + $0x218] sm:$0xf0] }
 0x9dc   :  { %v7508_v10 = vor.u32 %v8144_v24, %v7505_v40  ;;  %v7675_v24 = vld [vmem:[#allocation13 + $0x368] sm:$0xf0] }
 0x9dd   :  { %5144 = vmatpush.bf16.msra.mxu1 %v7576_v11  ;;  %5166 = vmatpush.bf16.msrb.mxu3 %v7612_v30  ;;  %v7561_v11 = vld [vmem:[#allocation13 + $0x288] sm:$0xf0]  ;;  %v7745_v30 = vld [vmem:[#allocation13 + $0x3f0] sm:$0xf] }
 0x9de   :  { %4856 = vmatmul.bf16.vlgmr.msrb.gmra.mxu2 %v4376_v41  ;;  %4882 = vmatmul.bf16.vlgmr.msrb.gmra.mxu0 %v4376_v41  ;;  %v7564_v5 = vor.u32 %v8158_v9, %v7561_v11  ;;  %v7734_v9 = vor.u32 %v8200_v8, %v7731_v45  ;;  %v8184_v11 = vld [vmem:[#allocation13 + $0x354] sm:$0xf] }
 0x9df   :  { %5130 = vmatpush.bf16.msra.mxu0 %v7520_v31  ;;  %5152 = vmatpush.bf16.msrb.mxu2 %v7556_v46  ;;  %v7682_v46 = vor.u32 %v8189_v21, %v7681_v23  ;;  %v7705_v23 = vld [vmem:[#allocation13 + $0x3a0] sm:$0xf]  ;;  %v8195_v21 = vld [vmem:[#allocation13 + $0x3a4] sm:$0xf0]  ;;  %v8176_v8 = vld [vmem:[#allocation13 + $0x314] sm:$0xf] }
 0x9e1   :  { %5145 = vmatpush.bf16.msra.mxu1 %v7568_v32  ;;  %v7500_v32 = vor.u32 %v8142_v50, %v7497_v48  ;;  %v8199_v50 = vld [vmem:[#allocation13 + $0x3c4] sm:$0xf0]  ;;  %v8198_v48 = vld [vmem:[#allocation13 + $0x3c4] sm:$0xf] }
 0x9e3   :  { %5131 = vmatpush.bf16.msra.mxu0 %v7512_v60 }
 0x9e5   :  { %5146 = vmatpush.bf16.msra.mxu1 %v7560_v39 }
 0x9e7   :  { %5132 = vmatpush.bf16.msra.mxu0 %v7504_v38 }
 0x9e8   :  { %7492 = vmatmul.msk.bf16.vlgmr.msra.gmra.mxu3 %vm4346_vm8, %v4901_v16 }
 0x9e9   :  { %5205 = vmatpush.bf16.msrb.mxu1 %v9786_v19  ;;  %v8168_v19 = vld [vmem:[#allocation13 + $0x2d4] sm:$0xf] }
 0x9ea   :  { %v7604_v6 = vor.u32 %v8168_v19, %v7601_v43  ;;  %v8205_v19 = vld [vmem:[#allocation13 + $0x3f4] sm:$0xf0] }
 0x9eb   :  { %5133 = vmatpush.bf16.msra.mxu0 %v7496_v4  ;;  %v7746_v43 = vor.u32 %v8205_v19, %v7745_v30  ;;  %v8194_v30 = vld [vmem:[#allocation13 + $0x3a4] sm:$0xf]  ;;  %v7707_v19 = vld [vmem:[#allocation13 + $0x3a8] sm:$0xf0] }
 0x9ec   :  { %5167 = vmatpush.bf16.msrb.mxu3 %v7604_v6  ;;  %v7673_v6 = vld [vmem:[#allocation13 + $0x360] sm:$0xf] }
 0x9ee   :  { %7491 = vmatmul.msk.bf16.vlgmr.msra.gmra.mxu2 %vm4346_vm8, %v4901_v16 }
 0x9ef   :  { %5192 = vmatpush.bf16.msrb.mxu0 %v9792_v3  ;;  %v7548_v3 = vor.u32 %v8154_v34, %v7545_v33  ;;  %v8187_v34 = vld [vmem:[#allocation13 + $0x364] sm:$0xf0]  ;;  %v7737_v33 = vld [vmem:[#allocation13 + $0x3e0] sm:$0xf] }
 0x9f0   :  { %5168 = vmatpush.bf16.msrb.mxu3 %v7596_v13  ;;  %v7674_v47 = vor.u32 %v8187_v34, %v7673_v6  ;;  %v7665_v13 = vld [vmem:[#allocation13 + $0x350] sm:$0xf]  ;;  %v8181_v6 = vld [vmem:[#allocation13 + $0x334] sm:$0xf0]  ;;  %v8180_v34 = vld [vmem:[#allocation13 + $0x334] sm:$0xf] }
 0x9f1   :  { %5153 = vmatpush.bf16.msrb.mxu2 %v7548_v3  ;;  %v8203_v3 = vld [vmem:[#allocation13 + $0x3e4] sm:$0xf0]  ;;  %v7654_v42 = vor.u32 %v8180_v34, %v7651_v7  ;;  %v9871_v34 = vld [vmem:[#allocation15 + $0x190] sm:$0xff]  ;;  %v9881_v7 = vld [vmem:[#allocation15 + $0xa0] sm:$0xff] }
 0x9f4   :  { %5169 = vmatpush.bf16.msrb.mxu3 %v7588_v0  ;;  %v8201_v0 = vld [vmem:[#allocation13 + $0x3d4] sm:$0xf0] }
 0x9f5   :  { %5154 = vmatpush.bf16.msrb.mxu2 %v7540_v51  ;;  %v7738_v51 = vor.u32 %v8203_v3, %v7737_v33  ;;  %v7730_v26 = vor.u32 %v8201_v0, %v7729_v14  ;;  %v7710_v33 = vor.u32 %v8194_v30, %v7707_v19  ;;  %v7641_v14 = vld [vmem:[#allocation13 + $0x320] sm:$0xf]  ;;  %v8179_v0 = vld [vmem:[#allocation13 + $0x324] sm:$0xf0]  ;;  %v9866_v19 = vld [vmem:[#allocation15 + $0xb0] sm:$0xff] }
 0x9f6   :  { %v9862_v30 = vld [vmem:[#allocation15 + $0x1a8] sm:$0xff] }
 0x9f8   :  { %5170 = vmatpush.bf16.msrb.mxu3 %v7580_v2  ;;  %v7739_v2 = vld [vmem:[#allocation13 + $0x3e8] sm:$0xf0] }
 0x9f9   :  { %5155 = vmatpush.bf16.msrb.mxu2 %v7532_v17  ;;  %v7666_v17 = vor.u32 %v8185_v57, %v7665_v13  ;;  %v7699_v57 = vld [vmem:[#allocation13 + $0x398] sm:$0xf0] }
 0x9fc   :  { %5171 = vmatpush.bf16.msrb.mxu3 %v7572_v22 }
 0x9fd   :  { %5156 = vmatpush.bf16.msrb.mxu2 %v7524_v55  ;;  %v7683_v55 = vld [vmem:[#allocation13 + $0x378] sm:$0xf0] }
 0x9fe   :  { %v7686_v49 = vor.u32 %v8188_v12, %v7683_v55  ;;  %v8190_v12 = vld [vmem:[#allocation13 + $0x384] sm:$0xf]  ;;  %v7633_v55 = vld [vmem:[#allocation13 + $0x310] sm:$0xf] }
 0xa00   :  { %5172 = vmatpush.bf16.msrb.mxu3 %v7564_v5 }
 0xa01   :  { %5157 = vmatpush.bf16.msrb.mxu2 %v7516_v53  ;;  %v8186_v53 = vld [vmem:[#allocation13 + $0x364] sm:$0xf] }
 0xa04   :  { %5419 = vmatpush.bf16.msra.mxu3 %v7746_v43  ;;  %v7649_v43 = vld [vmem:[#allocation13 + $0x330] sm:$0xf] }
 0xa05   :  { %5158 = vmatpush.bf16.msrb.mxu2 %v7508_v10  ;;  %v7678_v10 = vor.u32 %v8186_v53, %v7675_v24  ;;  %v7650_v3 = vor.u32 %v8181_v6, %v7649_v43  ;;  %v9868_v43 = vld [vmem:[#allocation15 + $0xb8] sm:$0xff] }
 0xa08   :  { %5420 = vmatpush.bf16.msra.mxu3 %v7738_v51  ;;  %v8193_v51 = vld [vmem:[#allocation13 + $0x394] sm:$0xf0] }
 0xa09   :  { %5159 = vmatpush.bf16.msrb.mxu2 %v7500_v32 }
 0xa0c   :  { %5421 = vmatpush.bf16.msra.mxu3 %v7730_v26  ;;  %v8191_v26 = vld [vmem:[#allocation13 + $0x384] sm:$0xf0] }
 0xa0d   :  { %5406 = vmatpush.bf16.msra.mxu2 %v7682_v46  ;;  %v7706_v46 = vor.u32 %v8195_v21, %v7705_v23  ;;  %v9859_v21 = vld [vmem:[#allocation15 + $0x1a0] sm:$0xff] }
 0xa11   :  { %5407 = vmatpush.bf16.msra.mxu2 %v7674_v47  ;;  %v7697_v47 = vld [vmem:[#allocation13 + $0x390] sm:$0xf] }
 0xa12   :  { %v7698_v13 = vor.u32 %v8193_v51, %v7697_v47  ;;  %v9886_v47 = vld [vmem:[#allocation15 + $0x180] sm:$0xff]  ;;  %v9889_v51 = vld [vmem:[#allocation15 + $0x188] sm:$0xff] }
 0xa15   :  { %5408 = vmatpush.bf16.msra.mxu2 %v7666_v17  ;;  %v7642_v17 = vor.u32 %v8179_v0, %v7641_v14  ;;  %v9901_v14 = vld [vmem:[#allocation15 + $0x178] sm:$0xff] }
 0xa45   :  { %v4684_v54 = vpop.f32.mrf.mxu1 }
 0xa4b   :  { %v4658_v35 = vpop.f32.mrf.mxu3  ;;  %v4671_v41 = vpop.f32.mrf.mxu0 }
 0xa4c   :  { %v4685_v18 = vadd.f32 %v4684_v54, %v4671_v41  ;;  %v7742_v54 = vor.u32 %v8202_v61, %v7739_v2  ;;  %v7689_v2 = vld [vmem:[#allocation13 + $0x380] sm:$0xf] }
 0xa4d   :  { %v4686_v31 = vpop.f32.mrf.mxu1  ;;  %v7690_v45 = vor.u32 %v8191_v26, %v7689_v2  ;;  %v9913_v2 = vld [vmem:[#allocation15 + $0x168] sm:$0xff] }
 0xa4e   :  { %v7721_v31 = vld [vmem:[#allocation13 + $0x3c0] sm:$0xf] }
 0xa4f   :  { %v7722_v32 = vor.u32 %v8199_v50, %v7721_v31  ;;  %v9814_v31 = vld [vmem:[#allocation15 + $0x1e0] sm:$0xff]  ;;  %v9818_v50 = vld [vmem:[#allocation15 + $0x1e8] sm:$0xff] }
 0xa51   :  { %v4645_v29 = vpop.f32.mrf.mxu2  ;;  %5422 = vmatpush.bf16.msra.mxu3 %v7722_v32 }
 0xa52   :  { %v4659_v36 = vadd.f32 %v4658_v35, %v4645_v29  ;;  %v7667_v35 = vld [vmem:[#allocation13 + $0x358] sm:$0xf0]  ;;  %v7723_v29 = vld [vmem:[#allocation13 + $0x3c8] sm:$0xf0] }
 0xa53   :  { %v4660_v60 = vpop.f32.mrf.mxu3  ;;  %v4673_v25 = vpop.f32.mrf.mxu0  ;;  %v7670_v5 = vor.u32 %v8184_v11, %v7667_v35  ;;  %v7627_v35 = vld [vmem:[#allocation13 + $0x308] sm:$0xf0] }
 0xa54   :  { %v7713_v60 = vld [vmem:[#allocation13 + $0x3b0] sm:$0xf]  ;;  %v8197_v25 = vld [vmem:[#allocation13 + $0x3b4] sm:$0xf0] }
 0xa55   :  { %v4896_v37 = vpop.f32.mrf.mxu1 }
 0xa59   :  { %v4647_v39 = vpop.f32.mrf.mxu2 }
 0xa5a   :  { %v7714_v39 = vor.u32 %v8197_v25, %v7713_v60  ;;  %v9826_v60 = vld [vmem:[#allocation15 + $0xf8] sm:$0xff]  ;;  %v9830_v25 = vld [vmem:[#allocation15 + $0xe0] sm:$0xff] }
 0xa5b   :  { %v4870_v38 = vpop.f32.mrf.mxu3  ;;  %v4883_v44 = vpop.f32.mrf.mxu0 }
 0xa5c   :  { %v4884_v52 = vadd.f32 %v4883_v44, %v4685_v18  ;;  %v5181_v18 = vld [vmem:[#allocation12 + $0xc] sm:$0xf]  ;;  %v7657_v44 = vld [vmem:[#allocation13 + $0x340] sm:$0xf]  ;;  %5423 = vmatpush.bf16.msra.mxu3 %v7714_v39  ;;  %v9836_v39 = vld [vmem:[#allocation15 + $0x1c8] sm:$0xff] }
 0xa5d   :  { %v4898_v16 = vpop.f32.mrf.mxu1 }
 0xa5e   :  { %v9804_v4 = vadd.f32 %v4896_v37, %v4884_v52  ;;  %v8196_v37 = vld [vmem:[#allocation13 + $0x3b4] sm:$0xf]  ;;  %v8183_v52 = vld [vmem:[#allocation13 + $0x344] sm:$0xf0]  ;;  %v8182_v16 = vld [vmem:[#allocation13 + $0x344] sm:$0xf] }
 0xa60   :  { %5424 = vmatpush.bf16.msra.mxu3 %v7706_v46 }
 0xa61   :  { %v4857_v56 = vpop.f32.mrf.mxu2 }
 0xa62   :  { %v4858_v1 = vadd.f32 %v4857_v56, %v4659_v36  ;;  %v7726_v36 = vor.u32 %v8198_v48, %v7723_v29  ;;  %v9820_v48 = vld [vmem:[#allocation15 + $0x1d0] sm:$0xff]  ;;  %v9822_v29 = vld [vmem:[#allocation15 + $0x1d8] sm:$0xff] }
 0xa63   :  { %v4872_v62 = vpop.f32.mrf.mxu3  ;;  %v4885_v20 = vpop.f32.mrf.mxu0 }
 0xa64   :  { %v9806_v27 = vadd.f32 %v4870_v38, %v4858_v1  ;;  %v7715_v38 = vld [vmem:[#allocation13 + $0x3b8] sm:$0xf0]  ;;  %v7658_v1 = vor.u32 %v8183_v52, %v7657_v44  ;;  %v7659_v62 = vld [vmem:[#allocation13 + $0x348] sm:$0xf0]  ;;  %5425 = vmatpush.bf16.msra.mxu3 %v7698_v13  ;;  %v9842_v44 = vld [vmem:[#allocation15 + $0xd0] sm:$0xff] }
 0xa65   :  { %v7718_v56 = vor.u32 %v8196_v37, %v7715_v38  ;;  %v7662_v20 = vor.u32 %v8182_v16, %v7659_v62  ;;  %v9833_v37 = vld [vmem:[#allocation15 + $0x1c0] sm:$0xff]  ;;  %v9838_v38 = vld [vmem:[#allocation15 + $0xe8] sm:$0xff]  ;;  %v9844_v52 = vld [vmem:[#allocation15 + $0xd8] sm:$0xff] }
 0xa66   :  { %5409 = vmatpush.bf16.msra.mxu2 %v7658_v1  ;;  %v9847_v16 = vld [vmem:[#allocation15 + $0x1b0] sm:$0xff]  ;;  %v9854_v1 = vld [vmem:[#allocation15 + $0xc0] sm:$0xff]  ;;  %v9856_v62 = vld [vmem:[#allocation15 + $0xc8] sm:$0xff] }
 0xa68   :  { %5426 = vmatpush.bf16.msra.mxu3 %v7690_v45  ;;  %v9930_v45 = vld [vmem:[#allocation15 + $0x158] sm:$0xff] }
 0xa69   :  { %v4859_v63 = vpop.f32.mrf.mxu2 }
 0xa6a   :  { %v8192_v63 = vld [vmem:[#allocation13 + $0x394] sm:$0xf]  ;;  %5410 = vmatpush.bf16.msra.mxu2 %v7650_v3 }
 0xa6b   :  { %v4927_v58 = vpop.f32.mrf.mxu3 }
 0xa6c   :  { %v4932_v59 = vpack.c.bf16 %v4927_v58, %v4927_v58  ;;  %v8178_v58 = vld [vmem:[#allocation13 + $0x324] sm:$0xf] }
 0xa6e   :  { %5147 = vmatmul.bf16.vlgmr.msra.gmra.mxu1 %v4932_v59  ;;  %5173 = vmatmul.bf16.vlgmr.msrb.gmra.mxu3 %v4932_v59  ;;  %v7643_v59 = vld [vmem:[#allocation13 + $0x328] sm:$0xf0] }
 0xa6f   :  { %5445 = vmatpush.bf16.msra.mxu1 %v7750_v28  ;;  %v7702_v28 = vor.u32 %v8192_v63, %v7699_v57  ;;  %v7646_v61 = vor.u32 %v8178_v58, %v7643_v59  ;;  %5411 = vmatpush.bf16.msra.mxu2 %v7642_v17  ;;  %v9895_v63 = vld [vmem:[#allocation15 + $0x98] sm:$0xff]  ;;  %v9898_v57 = vld [vmem:[#allocation15 + $0x170] sm:$0xff]  ;;  %v9905_v58 = vld [vmem:[#allocation15 + $0x80] sm:$0xff] }
 0xa71   :  { %v4914_v22 = vpop.f32.mrf.mxu2 }
 0xa72   :  { %v4931_v15 = vpack.c.bf16 %v4914_v22, %v4914_v22 }
 0xa73   :  { %v4929_v40 = vpop.f32.mrf.mxu3  ;;  %5446 = vmatpush.bf16.msra.mxu1 %v7742_v54  ;;  %v8177_v54 = vld [vmem:[#allocation13 + $0x314] sm:$0xf0] }
 0xa74   :  { %5134 = vmatmul.bf16.vlgmr.msra.gmra.mxu0 %v4931_v15  ;;  %5160 = vmatmul.bf16.vlgmr.msrb.gmra.mxu2 %v4931_v15  ;;  %v7634_v22 = vor.u32 %v8177_v54, %v7633_v55  ;;  %v7691_v15 = vld [vmem:[#allocation13 + $0x388] sm:$0xf0]  ;;  %v7625_v40 = vld [vmem:[#allocation13 + $0x300] sm:$0xf]  ;;  %v9922_v55 = vld [vmem:[#allocation15 + $0x78] sm:$0xff] }
 0xa75   :  { %5432 = vmatpush.bf16.msra.mxu0 %v7686_v49  ;;  %v7635_v49 = vld [vmem:[#allocation13 + $0x318] sm:$0xf0]  ;;  %v7694_v24 = vor.u32 %v8190_v12, %v7691_v15  ;;  %v9920_v12 = vld [vmem:[#allocation15 + $0x70] sm:$0xff]  ;;  %v9938_v15 = vld [vmem:[#allocation15 + $0x140] sm:$0xff] }
 0xa76   :  { %v7638_v53 = vor.u32 %v8176_v8, %v7635_v49  ;;  %5412 = vmatpush.bf16.msra.mxu2 %v7634_v22  ;;  %v9934_v22 = vld [vmem:[#allocation15 + $0x60] sm:$0xff]  ;;  %v9936_v49 = vld [vmem:[#allocation15 + $0x68] sm:$0xff] }
 0xa77   :  { %5447 = vmatpush.bf16.msra.mxu1 %v7734_v9  ;;  %v8175_v9 = vld [vmem:[#allocation13 + $0x304] sm:$0xf0] }
 0xa78   :  { %v7626_v11 = vor.u32 %v8175_v9, %v7625_v40  ;;  %v9944_v40 = vld [vmem:[#allocation15 + $0x50] sm:$0xff]  ;;  %v9946_v9 = vld [vmem:[#allocation15 + $0x58] sm:$0xff] }
 0xa79   :  { %v4916_v41 = vpop.f32.mrf.mxu2  ;;  %5433 = vmatpush.bf16.msra.mxu0 %v7678_v10  ;;  %v8174_v10 = vld [vmem:[#allocation13 + $0x304] sm:$0xf] }
 0xa7a   :  { %v7630_v41 = vor.u32 %v8174_v10, %v7627_v35  ;;  %5413 = vmatpush.bf16.msra.mxu2 %v7626_v11  ;;  %v9949_v10 = vld [vmem:[#allocation15 + $0x130] sm:$0xff]  ;;  %v9952_v11 = vld [vmem:[#allocation15 + $0x138] sm:$0xff] }
 0xa7b   :  { %5448 = vmatpush.bf16.msra.mxu1 %v7726_v36  ;;  %v9824_v36 = vld [vmem:[#allocation15 + $0xf0] sm:$0xff] }
 0xa7d   :  { %5434 = vmatpush.bf16.msra.mxu0 %v7670_v5  ;;  %v9810_v5 = vld [vmem:[#allocation15 + $0x1f0] sm:$0xff] }
 0xa7e   :  { %7622 = vmatmul.msk.bf16.vlgmr.msrb.gmra.mxu1 %vm4346_vm8, %v5181_v18  ;;  %5544 = vmatpush.msrb.mxu3 %v9810_v5 }
 0xa7f   :  { %5449 = vmatpush.bf16.msra.mxu1 %v7718_v56  ;;  %5524 = vmatpush.msrb.mxu2 %v9824_v36  ;;  %v9850_v56 = vld [vmem:[#allocation15 + $0x1b8] sm:$0xff] }
 0xa80   :  { %5545 = vmatpush.msrb.mxu3 %v9814_v31 }
 0xa81   :  { %5435 = vmatpush.bf16.msra.mxu0 %v7662_v20  ;;  %5525 = vmatpush.msrb.mxu2 %v9830_v25 }
 0xa82   :  { %5546 = vmatpush.msrb.mxu3 %v9820_v48 }
 0xa83   :  { %5450 = vmatpush.bf16.msra.mxu1 %v7710_v33  ;;  %5526 = vmatpush.msrb.mxu2 %v9842_v44  ;;  %v9874_v33 = vld [vmem:[#allocation15 + $0x198] sm:$0xff] }
 0xa84   :  { %7621 = vmatmul.msk.bf16.vlgmr.msrb.gmra.mxu0 %vm4346_vm8, %v5181_v18  ;;  %v9812_v18 = vld [vmem:[#allocation15 + $0x1f8] sm:$0xff]  ;;  %5547 = vmatpush.msrb.mxu3 %v9833_v37 }
 0xa85   :  { %5436 = vmatpush.bf16.msra.mxu0 %v7654_v42  ;;  %5527 = vmatpush.msrb.mxu2 %v9854_v1  ;;  %v9883_v42 = vld [vmem:[#allocation15 + $0xa8] sm:$0xff] }
 0xa86   :  { %5548 = vmatpush.msrb.mxu3 %v9847_v16 }
 0xa87   :  { %5451 = vmatpush.bf16.msra.mxu1 %v7702_v28  ;;  %5528 = vmatpush.msrb.mxu2 %v9866_v19  ;;  %v9907_v28 = vld [vmem:[#allocation15 + $0x88] sm:$0xff] }
 0xa88   :  { %5549 = vmatpush.msrb.mxu3 %v9859_v21 }
 0xa89   :  { %5437 = vmatpush.bf16.msra.mxu0 %v7646_v61  ;;  %5529 = vmatpush.msrb.mxu2 %v9881_v7  ;;  %v9910_v61 = vld [vmem:[#allocation15 + $0x160] sm:$0xff] }
 0xa8a   :  { %5550 = vmatpush.msrb.mxu3 %v9871_v34 }
 0xa8b   :  { %5452 = vmatpush.bf16.msra.mxu1 %v7694_v24 }
 0xa8c   :  { %5551 = vmatpush.msrb.mxu3 %v9886_v47 }
 0xa8d   :  { %5438 = vmatpush.bf16.msra.mxu0 %v7638_v53  ;;  %v9940_v53 = vld [vmem:[#allocation15 + $0x148] sm:$0xff] }
 0xa8e   :  { %5552 = vmatpush.msrb.mxu3 %v9898_v57 }
 0xa8f   :  { %5584 = vmatpush.msrb.mxu1 %v9812_v18 }
 0xa90   :  { %5553 = vmatpush.msrb.mxu3 %v9910_v61 }
 0xa91   :  { %5439 = vmatpush.bf16.msra.mxu0 %v7630_v41  ;;  %5585 = vmatpush.msrb.mxu1 %v9818_v50 }
 0xa93   :  { %5586 = vmatpush.msrb.mxu1 %v9822_v29 }
 0xa95   :  { %5564 = vmatpush.msrb.mxu0 %v9826_v60  ;;  %5587 = vmatpush.msrb.mxu1 %v9836_v39 }
 0xa97   :  { %5565 = vmatpush.msrb.mxu0 %v9838_v38  ;;  %5588 = vmatpush.msrb.mxu1 %v9850_v56 }
 0xa99   :  { %5566 = vmatpush.msrb.mxu0 %v9844_v52  ;;  %5589 = vmatpush.msrb.mxu1 %v9862_v30 }
 0xa9b   :  { %5567 = vmatpush.msrb.mxu0 %v9856_v62  ;;  %5590 = vmatpush.msrb.mxu1 %v9874_v33 }
 0xa9d   :  { %5568 = vmatpush.msrb.mxu0 %v9868_v43  ;;  %5591 = vmatpush.msrb.mxu1 %v9889_v51 }
 0xa9f   :  { %5569 = vmatpush.msrb.mxu0 %v9883_v42  ;;  %5592 = vmatpush.msrb.mxu1 %v9901_v14 }
 0xaa1   :  { %5570 = vmatpush.msrb.mxu0 %v9895_v63  ;;  %5593 = vmatpush.msrb.mxu1 %v9913_v2 }
 0xaa3   :  { %5571 = vmatpush.msrb.mxu0 %v9907_v28  ;;  %5594 = vmatpush.msrb.mxu1 %v9930_v45 }
 0xaa5   :  { %5572 = vmatpush.msrb.mxu0 %v9922_v55  ;;  %5595 = vmatpush.msrb.mxu1 %v9940_v53 }
 0xaa7   :  { %5573 = vmatpush.msrb.mxu0 %v9936_v49  ;;  %5596 = vmatpush.msrb.mxu1 %v9952_v11 }
 0xaa9   :  { %5574 = vmatpush.msrb.mxu0 %v9946_v9 }
 0xaeb   :  { %v5148_v32 = vpop.f32.mrf.mxu1 }
 0xaf1   :  { %v5135_v20 = vpop.f32.mrf.mxu0  ;;  %v5174_v23 = vpop.f32.mrf.mxu3 }
 0xaf2   :  { %v5149_v46 = vadd.f32 %v5148_v32, %v5135_v20  ;;  %v9957_v32 = vld [vmem:[#allocation15 + $0x120] sm:$0xff]  ;;  %v9960_v20 = vld [vmem:[#allocation15 + $0x128] sm:$0xff] }
 0xaf3   :  { %v5150_v6 = vpop.f32.mrf.mxu1  ;;  %5597 = vmatpush.msrb.mxu1 %v9960_v20 }
 0xaf4   :  { %v9877_v3 = vadd.f32 %v5149_v46, %v9806_v27  ;;  %v9893_v27 = vld [vmem:[#allocation15 + $0x90] sm:$0xff]  ;;  %v9964_v46 = vld [vmem:[#allocation15 + $0x40] sm:$0xff]  ;;  %v9966_v6 = vld [vmem:[#allocation15 + $0x48] sm:$0xff] }
 0xaf5   :  { %5530 = vmatpush.msrb.mxu2 %v9893_v27  ;;  %5575 = vmatpush.msrb.mxu0 %v9966_v6 }
 0xaf6   :  { %10195 = vst [vmem:[#allocation32_spill] sm:$0xff] %v9877_v3  ;;  %v9998_v3 = vld [vmem:[#allocation15 + $0x18] sm:$0xff] }
 0xaf7   :  { %v5161_v13 = vpop.f32.mrf.mxu2  ;;  %5531 = vmatpush.msrb.mxu2 %v9905_v58 }
 0xaf8   :  { %v5175_v0 = vadd.f32 %v5174_v23, %v5161_v13  ;;  %v9968_v13 = vld [vmem:[#allocation15 + $0x110] sm:$0xff] }
 0xaf9   :  { %v5137_v17 = vpop.f32.mrf.mxu0  ;;  %v5176_v59 = vpop.f32.mrf.mxu3  ;;  %5532 = vmatpush.msrb.mxu2 %v9920_v12 }
 0xafa   :  { %v9916_v26 = vadd.f32 %v5175_v0, %v9804_v4  ;;  %v9928_v4 = vld [vmem:[#allocation15 + $0x150] sm:$0xff]  ;;  %v9970_v0 = vld [vmem:[#allocation15 + $0x118] sm:$0xff] }
 0xafb   :  { %v5207_v54 = vpop.f32.mrf.mxu1  ;;  %5554 = vmatpush.msrb.mxu3 %v9928_v4  ;;  %5533 = vmatpush.msrb.mxu2 %v9934_v22  ;;  %v9974_v17 = vld [vmem:[#allocation15 + $0x30] sm:$0xff]  ;;  %v9976_v59 = vld [vmem:[#allocation15 + $0x38] sm:$0xff] }
 0xafc   :  { %10196 = vst [vmem:[#allocation26_spill] sm:$0xff] %v9916_v26  ;;  %v5212_v8 = vpack.c.bf16 %v5207_v54, %v5207_v54  ;;  %v9980_v54 = vld [vmem:[#allocation15 + $0x100] sm:$0xff]  ;;  %5598 = vmatpush.msrb.mxu1 %v9970_v0  ;;  %5576 = vmatpush.msrb.mxu0 %v9976_v59  ;;  %v10006_v26 = vld [vmem:[#allocation15 + $0x8] sm:$0xff] }
 0xafd   :  { %5555 = vmatpush.msrb.mxu3 %v9938_v15  ;;  %5534 = vmatpush.msrb.mxu2 %v9944_v40 }
 0xafe   :  { %5427 = vmatmul.bf16.vlgmr.msra.gmra.mxu3 %v5212_v8  ;;  %5453 = vmatmul.bf16.vlgmr.msra.gmra.mxu1 %v5212_v8  ;;  %v9982_v8 = vld [vmem:[#allocation15 + $0x108] sm:$0xff] }
 0xaff   :  { %v5163_v24 = vpop.f32.mrf.mxu2  ;;  %5556 = vmatpush.msrb.mxu3 %v9949_v10  ;;  %5535 = vmatpush.msrb.mxu2 %v9964_v46 }
 0xb00   :  { %v9988_v24 = vld [vmem:[#allocation15 + $0x20] sm:$0xff]  ;;  %5599 = vmatpush.msrb.mxu1 %v9982_v8 }
 0xb01   :  { %v5194_v35 = vpop.f32.mrf.mxu0  ;;  %5557 = vmatpush.msrb.mxu3 %v9957_v32  ;;  %5536 = vmatpush.msrb.mxu2 %v9974_v17 }
 0xb02   :  { %v5211_v41 = vpack.c.bf16 %v5194_v35, %v5194_v35  ;;  %v9990_v35 = vld [vmem:[#allocation15 + $0x28] sm:$0xff]  ;;  %5666 = vmatpush.msra.mxu1 %v9812_v18 }
 0xb03   :  { %v5209_v23 = vpop.f32.mrf.mxu1  ;;  %5558 = vmatpush.msrb.mxu3 %v9968_v13  ;;  %5537 = vmatpush.msrb.mxu2 %v9988_v24 }
 0xb04   :  { %5414 = vmatmul.bf16.vlgmr.msra.gmra.mxu2 %v5211_v41  ;;  %5440 = vmatmul.bf16.vlgmr.msra.gmra.mxu0 %v5211_v41  ;;  %v9996_v23 = vld [vmem:[#allocation15 + $0x10] sm:$0xff] }
 0xb05   :  { %5559 = vmatpush.msrb.mxu3 %v9980_v54  ;;  %5577 = vmatpush.msrb.mxu0 %v9990_v35 }
 0xb06   :  { %5667 = vmatpush.msra.mxu1 %v9818_v50  ;;  %5538 = vmatpush.msrb.mxu2 %v9996_v23 }
 0xb07   :  { %5626 = vmatpush.msra.mxu3 %v9810_v5  ;;  %5578 = vmatpush.msrb.mxu0 %v9998_v3 }
 0xb08   :  { %5668 = vmatpush.msra.mxu1 %v9822_v29  ;;  %v10197_v29 = vld [vmem:[#allocation26_spill] sm:$0xff] }
 0xb09   :  { %v5196_v41 = vpop.f32.mrf.mxu0  ;;  %5627 = vmatpush.msra.mxu3 %v9814_v31  ;;  %5579 = vmatpush.msrb.mxu0 %v10006_v26 }
 0xb0a   :  { %v10004_v41 = vld [vmem:[#allocation15] sm:$0xff]  ;;  %5669 = vmatpush.msra.mxu1 %v9836_v39 }
 0xb0b   :  { %5628 = vmatpush.msra.mxu3 %v9820_v48  ;;  %5539 = vmatpush.msrb.mxu2 %v10004_v41 }
 0xb0c   :  { %5646 = vmatpush.msra.mxu0 %v9826_v60  ;;  %5670 = vmatpush.msra.mxu1 %v9850_v56 }
 0xb0d   :  { %5606 = vmatpush.msra.mxu2 %v9824_v36  ;;  %5629 = vmatpush.msra.mxu3 %v9833_v37 }
 0xb0e   :  { %5647 = vmatpush.msra.mxu0 %v9838_v38  ;;  %5671 = vmatpush.msra.mxu1 %v9862_v30  ;;  %v10198_v38 = vld [vmem:[#allocation32_spill] sm:$0xff] }
 0xb0f   :  { %5607 = vmatpush.msra.mxu2 %v9830_v25  ;;  %5630 = vmatpush.msra.mxu3 %v9847_v16 }
 0xb10   :  { %5648 = vmatpush.msra.mxu0 %v9844_v52  ;;  %5672 = vmatpush.msra.mxu1 %v9874_v33 }
 0xb11   :  { %5608 = vmatpush.msra.mxu2 %v9842_v44  ;;  %5631 = vmatpush.msra.mxu3 %v9859_v21 }
 0xb12   :  { %5649 = vmatpush.msra.mxu0 %v9856_v62  ;;  %5673 = vmatpush.msra.mxu1 %v9889_v51 }
 0xb13   :  { %5609 = vmatpush.msra.mxu2 %v9854_v1  ;;  %5632 = vmatpush.msra.mxu3 %v9871_v34 }
 0xb14   :  { %5650 = vmatpush.msra.mxu0 %v9868_v43  ;;  %5674 = vmatpush.msra.mxu1 %v9901_v14 }
 0xb15   :  { %5610 = vmatpush.msra.mxu2 %v9866_v19  ;;  %5633 = vmatpush.msra.mxu3 %v9886_v47 }
 0xb16   :  { %5651 = vmatpush.msra.mxu0 %v9883_v42  ;;  %5675 = vmatpush.msra.mxu1 %v9913_v2 }
 0xb17   :  { %5611 = vmatpush.msra.mxu2 %v9881_v7  ;;  %5634 = vmatpush.msra.mxu3 %v9898_v57 }
 0xb18   :  { %5652 = vmatpush.msra.mxu0 %v9895_v63  ;;  %5676 = vmatpush.msra.mxu1 %v9930_v45 }
 0xb19   :  { %5612 = vmatpush.msra.mxu2 %v9893_v27  ;;  %5635 = vmatpush.msra.mxu3 %v9910_v61 }
 0xb1a   :  { %5653 = vmatpush.msra.mxu0 %v9907_v28  ;;  %5677 = vmatpush.msra.mxu1 %v9940_v53 }
 0xb1b   :  { %5613 = vmatpush.msra.mxu2 %v9905_v58  ;;  %5636 = vmatpush.msra.mxu3 %v9928_v4 }
 0xb1c   :  { %5654 = vmatpush.msra.mxu0 %v9922_v55  ;;  %5678 = vmatpush.msra.mxu1 %v9952_v11 }
 0xb1d   :  { %5614 = vmatpush.msra.mxu2 %v9920_v12  ;;  %5637 = vmatpush.msra.mxu3 %v9938_v15 }
 0xb1e   :  { %5655 = vmatpush.msra.mxu0 %v9936_v49  ;;  %5679 = vmatpush.msra.mxu1 %v9960_v20 }
 0xb1f   :  { %5615 = vmatpush.msra.mxu2 %v9934_v22  ;;  %5638 = vmatpush.msra.mxu3 %v9949_v10 }
 0xb20   :  { %5656 = vmatpush.msra.mxu0 %v9946_v9  ;;  %5680 = vmatpush.msra.mxu1 %v9970_v0 }
 0xb21   :  { %5616 = vmatpush.msra.mxu2 %v9944_v40  ;;  %5639 = vmatpush.msra.mxu3 %v9957_v32 }
 0xb22   :  { %5657 = vmatpush.msra.mxu0 %v9966_v6  ;;  %5681 = vmatpush.msra.mxu1 %v9982_v8 }
 0xb23   :  { %5617 = vmatpush.msra.mxu2 %v9964_v46  ;;  %5640 = vmatpush.msra.mxu3 %v9968_v13 }
 0xb24   :  { %5658 = vmatpush.msra.mxu0 %v9976_v59 }
 0xb25   :  { %5618 = vmatpush.msra.mxu2 %v9974_v17  ;;  %5641 = vmatpush.msra.mxu3 %v9980_v54 }
 0xb26   :  { %5659 = vmatpush.msra.mxu0 %v9990_v35 }
 0xb27   :  { %5619 = vmatpush.msra.mxu2 %v9988_v24  ;;  %v5754_v24 = vlaneseq }
 0xb28   :  { %5660 = vmatpush.msra.mxu0 %v9998_v3 }
 0xb29   :  { %5620 = vmatpush.msra.mxu2 %v9996_v23 }
 0xb2a   :  { %5661 = vmatpush.msra.mxu0 %v10006_v26 }
 0xb2b   :  { %5621 = vmatpush.msra.mxu2 %v10004_v41  ;;  %v5755_v41 = vshrl.u32 %v5754_v24, 7 }
 0xb7b   :  { %v5454_v5 = vpop.f32.mrf.mxu1 }
 0xb81   :  { %v5441_v18 = vpop.f32.mrf.mxu0  ;;  %v5428_v31 = vpop.f32.mrf.mxu3 }
 0xb82   :  { %v5455_v50 = vadd.f32 %v5454_v5, %v5441_v18 }
 0xb83   :  { %v5456_v48 = vpop.f32.mrf.mxu1 }
 0xb84   :  { %v10073_v36 = vadd.f32 %v5455_v50, %v10197_v29  ;;  %v5758_v50 = vmul.u32 4, %v5755_v41 }
 0xb86   :  { %5560 = vmatmul.f32.vlgmr.msrb.gmra.mxu3 %v10073_v36  ;;  %5600 = vmatmul.f32.vlgmr.msrb.gmra.mxu1 %v10073_v36  ;;  %v5605_v52 = vmul.f32 %v10073_v36, %v10073_v36 }
 0xb87   :  { %v5415_v60 = vpop.f32.mrf.mxu2 }
 0xb88   :  { %v5429_v25 = vadd.f32 %v5428_v31, %v5415_v60 }
 0xb89   :  { %v5443_v37 = vpop.f32.mrf.mxu0  ;;  %v5430_v39 = vpop.f32.mrf.mxu3 }
 0xb8a   :  { %v10078_v44 = vadd.f32 %v5429_v25, %v10198_v38  ;;  %v5757_v25 = vand.u32 127, %v5754_v24  ;;  %v5760_v37 = vadd.s32 4, %v5758_v50 }
 0xb8c   :  { %5540 = vmatmul.f32.vlgmr.msrb.gmra.mxu2 %v10078_v44  ;;  %5580 = vmatmul.f32.vlgmr.msrb.gmra.mxu0 %v10078_v44  ;;  %v5604_v56 = vmul.f32 %v10078_v44, %v10078_v44  ;;  %vm5759_vm14 = vcmp.ge.s32.totalorder %v5757_v25, %v5758_v50  ;;  %vm5761_vm15 = vcmp.lt.s32.totalorder %v5757_v25, %v5760_v37 }
 0xb8d   :  { %vm5762_vm2 = vmand %vm5759_vm14, %vm5761_vm15 }
 0xb8e   :  { %5642 = vmatmul.f32.vlgmr.msra.gmra.mxu3 %v5605_v52  ;;  %5682 = vmatmul.f32.vlgmr.msra.gmra.mxu1 %v5605_v52 }
 0xb8f   :  { %v5417_v16 = vpop.f32.mrf.mxu2 }
 0xb94   :  { %5622 = vmatmul.f32.vlgmr.msra.gmra.mxu2 %v5604_v56  ;;  %5662 = vmatmul.f32.vlgmr.msra.gmra.mxu0 %v5604_v56 }
 0xc03   :  { %v5601_v1 = vpop.f32.mrf.mxu1 }
 0xc09   :  { %v5581_v62 = vpop.f32.mrf.mxu0  ;;  %v5561_v19 = vpop.f32.mrf.mxu3 }
 0xc0a   :  { %v5602_v21 = vadd.f32 %v5601_v1, %v5581_v62 }
 0xc0b   :  { %v5683_v7 = vpop.f32.mrf.mxu1 }
 0xc0c   :  { %v5692_v30 = vrot.slane %v5602_v21, 4 }
 0xc0e   :  { %v5693_v43 = vadd.f32 %v5692_v30, %v5602_v21 }
 0xc0f   :  { %v5541_v34 = vpop.f32.mrf.mxu2 }
 0xc10   :  { %v5694_v33 = vrot.slane %v5693_v43, 2  ;;  %v5562_v3 = vadd.f32 %v5561_v19, %v5541_v34  ;;  %v5751_v19 = vld [vmem:[#allocation16 + $0x8] sm:$0xff] }
 0xc11   :  { %v5663_v42 = vpop.f32.mrf.mxu0  ;;  %v5643_v61 = vpop.f32.mrf.mxu3 }
 0xc12   :  { %v5695_v47 = vadd.f32 %v5694_v33, %v5693_v43  ;;  %v5686_v51 = vrot.slane %v5562_v3, 4  ;;  %v5684_v27 = vadd.f32 %v5683_v7, %v5663_v42 }
 0xc14   :  { %v5696_v63 = vrot.slane %v5695_v47, 1  ;;  %v5687_v57 = vadd.f32 %v5686_v51, %v5562_v3  ;;  %v5706_v14 = vrot.slane %v5684_v27, 4  ;;  %v8507_v3 = vmov 0.0  }
 0xc15   :  { %v7751_v7 = vsel %vm5762_vm2, 1.0, %v8507_v3 }
 0xc16   :  { %v5688_v58 = vrot.slane %v5687_v57, 2  ;;  %v5707_v28 = vadd.f32 %v5706_v14, %v5684_v27  ;;  %v5697_v26 = vadd.f32 %v5696_v63, %v5695_v47  ;;  %v5750_v27 = vld [vmem:[#allocation16] sm:$0xff] }
 0xc17   :  { %v5623_v2 = vpop.f32.mrf.mxu2 }
 0xc18   :  { %v5689_v12 = vadd.f32 %v5688_v58, %v5687_v57  ;;  %v5708_v55 = vrot.slane %v5707_v28, 2  ;;  %v5644_v4 = vadd.f32 %v5643_v61, %v5623_v2  ;;  %v5699_v15 = vmul.f32 0.03125, %v5697_v26 }
 0xc1a   :  { %v5709_v45 = vadd.f32 %v5708_v55, %v5707_v28  ;;  %v5690_v22 = vrot.slane %v5689_v12, 1  ;;  %v5700_v49 = vrot.slane %v5644_v4, 4  ;;  %v5715_v32 = vmul.f32 %v5699_v15, %v5699_v15 }
 0xc1b   :  { %v5719_v52 = vsub.f32 %v10073_v36, %v5699_v15 }
 0xc1c   :  { %v5710_v53 = vrot.slane %v5709_v45, 1  ;;  %v5701_v40 = vadd.f32 %v5700_v49, %v5644_v4  ;;  %v5691_v10 = vadd.f32 %v5690_v22, %v5689_v12 }
 0xc1e   :  { %v5711_v9 = vadd.f32 %v5710_v53, %v5709_v45  ;;  %v5702_v11 = vrot.slane %v5701_v40, 2  ;;  %v5698_v13 = vmul.f32 0.03125, %v5691_v10 }
 0xc20   :  { %v5713_v20 = vmul.f32 0.03125, %v5711_v9  ;;  %v5703_v46 = vadd.f32 %v5702_v11, %v5701_v40  ;;  %v5714_v54 = vmul.f32 %v5698_v13, %v5698_v13  ;;  %v5718_v33 = vsub.f32 %v10078_v44, %v5698_v13 }
 0xc22   :  { %v5717_v6 = vsub.f32 %v5713_v20, %v5715_v32  ;;  %v5704_v0 = vrot.slane %v5703_v46, 1 }
 0xc24   :  { %v5721_v17 = vadd.f32 1e-05, %v5717_v6  ;;  %v5705_v59 = vadd.f32 %v5704_v0, %v5703_v46 }
 0xc26   :  { %8231 = vrsqrt.f32 %v5721_v17  ;;  %v5712_v8 = vmul.f32 0.03125, %v5705_v59  ;;  %vm5738_vm12 = vweird.f32 %v5721_v17 }
 0xc28   :  { %v5716_v35 = vsub.f32 %v5712_v8, %v5714_v54 }
 0xc2a   :  { %v5720_v23 = vadd.f32 1e-05, %v5716_v35 }
 0xc2c   :  { %v8232_v5 = vpop.eup %8231  ;;  %8233 = vrsqrt.f32 %v5720_v23  ;;  %vm5728_vm3 = vweird.f32 %v5720_v23 }
 0xc2d   :  { %v5733_v18 = vmul.f32 %v8232_v5, %v5721_v17  ;;  %vm5739_vm11 = vweird.f32 %v8232_v5 }
 0xc2e   :  { %vm5740_vm13 = vmor %vm5738_vm12, %vm5739_vm11 }
 0xc2f   :  { %v5734_v31 = vmul.f32 %v8232_v5, %v5733_v18 }
 0xc31   :  { %v5735_v48 = vmul.f32 0.5, %v5734_v31 }
 0xc32   :  { %v8234_v29 = vpop.eup %8233 }
 0xc33   :  { %v5736_v60 = vsub.f32 1.5, %v5735_v48  ;;  %v5723_v39 = vmul.f32 %v8234_v29, %v5720_v23  ;;  %vm5729_vm1 = vweird.f32 %v8234_v29 }
 0xc34   :  { %vm5730_vm4 = vmor %vm5728_vm3, %vm5729_vm1 }
 0xc35   :  { %v5737_v38 = vmul.f32 %v8232_v5, %v5736_v60  ;;  %v5724_v16 = vmul.f32 %v8234_v29, %v5723_v39 }
 0xc37   :  { %v5741_v56 = vsel %vm5740_vm13, %v8232_v5, %v5737_v38  ;;  %v5725_v1 = vmul.f32 0.5, %v5724_v16 }
 0xc38   :  { %v5743_v62 = vmul.f32 %v5741_v56, %v5719_v52 }
 0xc39   :  { %v5726_v21 = vsub.f32 1.5, %v5725_v1 }
 0xc3a   :  { %vm5745_vm0 = vcmp.ge.f32.partialorder %v5743_v62, 0.0  ;;  %v5747_v30 = vmul.f32 0.2, %v5743_v62 }
 0xc3b   :  { %v5727_v34 = vmul.f32 %v8234_v29, %v5726_v21 }
 0xc3c   :  { %v5749_v43 = vsel %vm5745_vm0, %v5743_v62, %v5747_v30 }
 0xc3d   :  { %v5753_v36 = vmul.f32 %v5751_v19, %v5749_v43  ;;  %v5731_v42 = vsel %vm5730_vm4, %v8234_v29, %v5727_v34 }
 0xc3e   :  { %v5742_v47 = vmul.f32 %v5731_v42, %v5718_v33 }
 0xc3f   :  { %5804 = vmatpush.msrb.mxu3 %v5753_v36 }
 0xc40   :  { %7753 = vmatmul.msk.f32.vlgmr.msrb.gmra.mxu3 %vm5765_vm5, %v7751_v7  ;;  %vm5744_vm6 = vcmp.ge.f32.partialorder %v5742_v47, 0.0  ;;  %v5746_v51 = vmul.f32 0.2, %v5742_v47 }
 0xc42   :  { %v5748_v63 = vsel %vm5744_vm6, %v5742_v47, %v5746_v51 }
 0xc43   :  { %v5752_v57 = vmul.f32 %v5750_v27, %v5748_v63 }
 0xc45   :  { %5784 = vmatpush.msrb.mxu2 %v5752_v57 }
 0xc46   :  { %7752 = vmatmul.msk.f32.vlgmr.msrb.gmra.mxu2 %vm5765_vm5, %v7751_v7 }
 0xcc3   :  { %v5806_v14 = vpop.f32.mrf.mxu3 }
 0xcc9   :  { %v5786_v58 = vpop.f32.mrf.mxu2 }
 0xcca   :  { %v5809_v28 = vadd.f32 %v5806_v14, %v5786_v58 }
 0xccc   :  { %5810 = vadd.xlane.f32.xlu0 %v5809_v28 }
 0xd3f   :  { %v5811_v44 = vpop.xlane.xlu0 %5810 }
 0xd40   :  { %v5812_v61 = vsub.f32 0.0, %v5811_v44 }
 0xd42   :  { %v5813_v2 = vmul.f32 1.442695, %v5812_v61 }
 0xd44   :  { %8235 = vpow2.f32 %v5813_v2 }
 0xd4a   :  { %v8236_v26 = vpop.eup %8235 }
 0xd4b   :  { %v5815_v12 = vadd.f32 1.0, %v8236_v26 }
 0xd4d   :  { %8237 = vrcp.f32 %v5815_v12  ;;  %v5827_v22 = vand.u32 2147483648, %v5815_v12  ;;  %v5825_v15 = vand.u32 2147483647, %v5815_v12  ;;  %vm5821_vm8 = vweird.f32 %v5815_v12 }
 0xd4f   :  { %v5828_v40 = vor.u32 1.1754944e-38, %v5827_v22  ;;  %vm5826_vm11 = vcmp.eq.f32.partialorder %v5825_v15, 8.507059e+37 }
 0xd53   :  { %v8238_v55 = vpop.eup %8237 }
 0xd54   :  { %v5817_v4 = vmul.f32 %v8238_v55, %v5815_v12  ;;  %vm5822_vm7 = vweird.f32 %v8238_v55 }
 0xd55   :  { %vm5823_vm9 = vmor %vm5821_vm8, %vm5822_vm7 }
 0xd56   :  { %v5818_v45 = vsub.f32 1.0, %v5817_v4 }
 0xd58   :  { %v5819_v49 = vmul.f32 %v8238_v55, %v5818_v45 }
 0xd5a   :  { %v5820_v53 = vadd.f32 %v8238_v55, %v5819_v49 }
 0xd5c   :  { %v5824_v9 = vsel %vm5823_vm9, %v8238_v55, %v5820_v53 }
 0xd5d   :  { %v5829_v10 = vsel %vm5826_vm11, %v5828_v40, %v5824_v9 }
 0xd5e   :  { %5832 = vst.msk [vmem:[%s10104_s13] sm:$0xff] %vm5831_vm10, %v5829_v10 }
 0xd5f   :  { %5837 = vsyncpa [#allocation3], 1 }
 0xd60   :  { %5838 = vsyncpa [#allocation5], 1 }
 0xd61   :  { %5839 = vsyncpa [#allocation8], 1 }
 0xd62   :  { %5840 = vsyncpa [#allocation11], 1 }
 0xd63   :  { %5841 = vsyncpa [#allocation14], 1 }
 0xd64   :  { %5842 = vsyncpa [#allocation17], 1 }

</bundles_post_ra>
